<compile_context>
chip_gen: v5e
topology: v5e:2x2
jax: 0.10.0
libtpu: 0.0.40
codegen_flags: <defaults>
</compile_context>

<pallas_src>
import functools

import jax
import jax.numpy as jnp
import numpy as np
from jax.experimental import pallas as pl
from jax.experimental.pallas import tpu as pltpu


def _resnet_block_kernel(*refs, cpg, eps, has_res_conv, cout_tiles):
    if has_res_conv:
        (x_ref, w9_ref, b3_ref, gamma_ref, beta_ref,
         wres_ref, bres_ref, out_ref, xpad_ref) = refs
    else:
        (x_ref, w9_ref, b3_ref, gamma_ref, beta_ref,
         out_ref, xpad_ref) = refs

    H, W, ct = out_ref.shape
    Cin = x_ref.shape[-1]
    HW = H * W
    gpt = ct // cpg                       # groups handled by this Cout tile
    c = pl.program_id(1)

    # ---- padded-x scratch: zero ONLY the halo + fill interior, once per b --
    @pl.when(c == 0)
    def _():
        zrow = jnp.zeros((1, W + 2, Cin), xpad_ref.dtype)
        zcol = jnp.zeros((H, 1, Cin), xpad_ref.dtype)
        xpad_ref[0:1, :, :] = zrow
        xpad_ref[H + 1:H + 2, :, :] = zrow
        xpad_ref[1:H + 1, 0:1, :] = zcol
        xpad_ref[1:H + 1, W + 1:W + 2, :] = zcol
        xpad_ref[1:1 + H, 1:1 + W, :] = x_ref[...].astype(xpad_ref.dtype)

    # ---- 3x3 conv: 9 accumulating K=Cin MXU matmuls (bf16 in, f32 accum) ---
    acc = None
    x_center = None
    for t in range(9):
        kh, kw = t // 3, t % 3
        tap = xpad_ref[kh:kh + H, kw:kw + W, :].reshape(HW, Cin)
        if t == 4:
            x_center = tap                # == x tile in bf16 (reused for 1x1)
        p = jnp.dot(tap, w9_ref[t], preferred_element_type=jnp.float32)
        acc = p if acc is None else acc + p
    acc = acc + b3_ref[...]               # (HW, ct) f32

    # ---- GroupNorm: groups never straddle a Cout tile -> exact per tile ----
    inv_n = 1.0 / float(HW * cpg)
    ch_sum = jnp.sum(acc, axis=0, keepdims=True)           # (1, ct)
    ch_sq = jnp.sum(acc * acc, axis=0, keepdims=True)      # (1, ct)
    g_sum = jnp.sum(ch_sum.reshape(gpt, cpg), axis=-1, keepdims=True)
    g_sq = jnp.sum(ch_sq.reshape(gpt, cpg), axis=-1, keepdims=True)
    mean_g = g_sum * inv_n                                  # (gpt, 1)
    # one-pass variance; f32 conv accumulator keeps this within tolerance
    var_g = g_sq * inv_n - mean_g * mean_g
    rstd_g = jax.lax.rsqrt(var_g + eps)
    mean_c = jnp.broadcast_to(mean_g, (gpt, cpg)).reshape(1, ct)
    rstd_c = jnp.broadcast_to(rstd_g, (gpt, cpg)).reshape(1, ct)

    # fused affine: h = (acc - mean) * rstd * gamma + beta
    scale = rstd_c * gamma_ref[...]
    shift = beta_ref[...] - mean_c * scale
    h = acc * scale + shift

    # ---- SiLU ---------------------------------------------------------------
    h = h * jax.nn.sigmoid(h)

    # ---- residual -----------------------------------------------------------
    if has_res_conv:
        # 1x1 conv: reuse the bf16 center tap as the x operand.
        h = h + (jnp.dot(x_center, wres_ref[...],
                         preferred_element_type=jnp.float32) + bres_ref[...])
    else:
        # nn.Identity(): add the f32 input exactly (no matmul, no rounding).
        if cout_tiles == 1:
            xs = x_ref[...]
        else:
            start = pl.multiple_of(c * ct, ct)
            xs = x_ref[:, :, pl.ds(start, ct)]
        h = h + xs.astype(jnp.float32).reshape(HW, ct)

    out_ref[...] = h.reshape(H, W, ct).astype(out_ref.dtype)


def _vmem_budget_bytes(H, W, Cin, ct):
    HW = H * W
    need = (
        2 * HW * Cin * 4                      # x block, double-buffered
        + 2 * HW * ct * 4                     # out block, double-buffered
        + (H + 2) * (W + 2) * Cin * 2         # padded bf16 scratch
        + 2 * (9 + 1) * Cin * ct * 2          # bf16 weights, double-buffered
        + 3 * HW * ct * 4                     # live f32 temporaries
        + 2 * HW * Cin * 2                    # per-tap bf16 relayout copies
        + 16 * ct * 4                         # biases / affine / stats
    )
    try:
        phys = pltpu.get_tpu_info().vmem_capacity_bytes
    except Exception:
        phys = 64 * 2 ** 20                   # assume the smallest (v7x) part
    cap = min(phys - 12 * 2 ** 20, 100 * 2 ** 20)  # headroom for Mosaic scratch
    return int(min(cap, max(32 * 2 ** 20, 2 * need)))


def resnet_block_forward(x_nchw, params, *, groups=8, cout_tile=None):
    """ResnetBlock forward. x_nchw: (B, Cin, H, W) float32 (PyTorch layout)."""
    B, Cin, H, W = x_nchw.shape
    w3 = params["w3"].astype(jnp.float32)                 # (Cout, Cin, 3, 3)
    Cout = w3.shape[0]
    assert Cout % groups == 0
    cpg = Cout // groups

    # --- weight standardization (parameter preprocessing, plain JAX, f32) ---
    eps_ws = 1e-5 if x_nchw.dtype == jnp.float32 else 1e-3
    mean = jnp.mean(w3, axis=(1, 2, 3), keepdims=True)
    var = jnp.var(w3, axis=(1, 2, 3), keepdims=True)       # unbiased=False
    w3n = (w3 - mean) * jax.lax.rsqrt(var + eps_ws)
    # (Cout, Cin, 3, 3) -> (kh, kw, Cin, Cout) -> (9, Cin, Cout); bf16 for MXU
    w9 = jnp.transpose(w3n, (2, 3, 1, 0)).reshape(9, Cin, Cout).astype(jnp.bfloat16)

    b3_2d = params["b3"].astype(jnp.float32).reshape(1, Cout)
    gamma_2d = params["gamma"].astype(jnp.float32).reshape(1, Cout)
    beta_2d = params["beta"].astype(jnp.float32).reshape(1, Cout)

    has_res_conv = (Cin != Cout)

    # --- Cout tiling on group boundaries (MXU-native N where possible) ------
    if cout_tile is None:
        if Cout > 256 and Cout % 256 == 0 and 256 % cpg == 0:
            cout_tile = 256               # v6e/v7x MXU-native N
        elif Cout > 128 and Cout % 128 == 0 and 128 % cpg == 0:
            cout_tile = 128               # lane-dense stores, v5e MXU-native
        else:
            cout_tile = Cout              # toy shapes: single tile
    assert Cout % cout_tile == 0 and cout_tile % cpg == 0
    n_ct = Cout // cout_tile

    # --- NCHW -> NHWC (kernel-internal layout) -------------------------------
    # TODO(synk): keep activations NHWC across the model to drop this HBM pass.
    x_nhwc = jnp.transpose(x_nchw, (0, 2, 3, 1)).astype(jnp.float32)

    def vec_spec():
        return pl.BlockSpec((1, cout_tile), lambda b, c: (0, c))

    in_specs = [
        pl.BlockSpec((pl.Squeezed(), H, W, Cin), lambda b, c: (b, 0, 0, 0)),
        pl.BlockSpec((9, Cin, cout_tile), lambda b, c: (0, 0, c)),
        vec_spec(), vec_spec(), vec_spec(),
    ]
    args = [x_nhwc, w9, b3_2d, gamma_2d, beta_2d]
    if has_res_conv:
        wres = jnp.transpose(params["wres"][:, :, 0, 0], (1, 0)).astype(jnp.bfloat16)
        bres_2d = params["bres"].astype(jnp.float32).reshape(1, Cout)
        in_specs += [pl.BlockSpec((Cin, cout_tile), lambda b, c: (0, c)),
                     vec_spec()]
        args += [wres, bres_2d]

    out_nhwc = pl.pallas_call(
        functools.partial(_resnet_block_kernel, cpg=cpg, eps=1e-5,
                          has_res_conv=has_res_conv, cout_tiles=n_ct),
        out_shape=jax.ShapeDtypeStruct((B, H, W, Cout), jnp.float32),
        grid=(B, n_ct),
        in_specs=in_specs,
        out_specs=pl.BlockSpec((pl.Squeezed(), H, W, cout_tile),
                               lambda b, c: (b, 0, 0, c)),
        scratch_shapes=[pltpu.VMEM((H + 2, W + 2, Cin), jnp.bfloat16)],
        compiler_params=pltpu.CompilerParams(
            dimension_semantics=("parallel", "arbitrary"),
            vmem_limit_bytes=_vmem_budget_bytes(H, W, Cin, cout_tile)),
    )(*args)

    # TODO(synk): emit bf16 output on bandwidth-bound parts (v5e) when the
    # consumer tolerates it; f32 kept here to match the PyTorch reference.
    return jnp.transpose(out_nhwc, (0, 3, 1, 2))            # back to NCHW


# ----------------------- pure-JAX reference (NCHW) --------------------------
def _reference(x, params, *, groups=8):
    w3 = params["w3"]
    mean = jnp.mean(w3, axis=(1, 2, 3), keepdims=True)
    var = jnp.var(w3, axis=(1, 2, 3), keepdims=True)
    w3n = (w3 - mean) * jax.lax.rsqrt(var + 1e-5)
    h = jax.lax.conv_general_dilated(
        x, w3n, window_strides=(1, 1), padding=((1, 1), (1, 1)),
        dimension_numbers=("NCHW", "OIHW", "NCHW"))
    h = h + params["b3"][None, :, None, None]
    B, C, H, W = h.shape
    cpg = C // groups
    hg = h.reshape(B, groups, cpg, H, W)
    m = jnp.mean(hg, axis=(2, 3, 4), keepdims=True)
    v = jnp.mean((hg - m) ** 2, axis=(2, 3, 4), keepdims=True)
    hn = ((hg - m) * jax.lax.rsqrt(v + 1e-5)).reshape(B, C, H, W)
    hn = hn * params["gamma"][None, :, None, None] + params["beta"][None, :, None, None]
    hn = hn * jax.nn.sigmoid(hn)
    Cin = x.shape[1]
    if Cin != C:
        res = jax.lax.conv_general_dilated(
            x, params["wres"], window_strides=(1, 1), padding=((0, 0), (0, 0)),
            dimension_numbers=("NCHW", "OIHW", "NCHW"))
        res = res + params["bres"][None, :, None, None]
    else:
        res = x
    return hn + res


if __name__ == "__main__":
    key = jax.random.PRNGKey(0)

    def make_params(k, Cin, Cout):
        ks = jax.random.split(k, 7)
        p = {
            "w3": jax.random.normal(ks[1], (Cout, Cin, 3, 3), jnp.float32) * 0.2,
            "b3": jax.random.normal(ks[2], (Cout,), jnp.float32) * 0.1,
            "gamma": 1.0 + 0.1 * jax.random.normal(ks[3], (Cout,), jnp.float32),
            "beta": 0.1 * jax.random.normal(ks[4], (Cout,), jnp.float32),
        }
        if Cin != Cout:
            p["wres"] = jax.random.normal(ks[5], (Cout, Cin, 1, 1), jnp.float32) * 0.3
            p["bres"] = jax.random.normal(ks[6], (Cout,), jnp.float32) * 0.1
        return p

    # bf16 MXU operands with f32 accumulation -> compare at 2e-2 tolerance.
    TOL = dict(rtol=2e-2, atol=2e-2)

    # Case 1: dim != dim_out (real 1x1 residual conv).
    B, Cin, Cout, H, W, groups = 2, 4, 8, 16, 16, 8
    kx, kp = jax.random.split(key)
    x = jax.random.normal(kx, (B, Cin, H, W), jnp.float32)
    params = make_params(kp, Cin, Cout)
    out = jax.block_until_ready(resnet_block_forward(x, params, groups=groups))
    ref = jax.block_until_ready(_reference(x, params, groups=groups))
    np.testing.assert_allclose(np.asarray(out), np.asarray(ref), **TOL)

    # Case 2: dim == dim_out (identity skip; residual matmul is skipped).
    Cin2 = Cout2 = 8
    kx2, kp2 = jax.random.split(kp)
    x2 = jax.random.normal(kx2, (B, Cin2, H, W), jnp.float32)
    params2 = make_params(kp2, Cin2, Cout2)
    out2 = jax.block_until_ready(resnet_block_forward(x2, params2, groups=groups))
    ref2 = jax.block_until_ready(_reference(x2, params2, groups=groups))
    np.testing.assert_allclose(np.asarray(out2), np.asarray(ref2), **TOL)

    print("KERNEL_OK")
</pallas_src>

<mosaic_0001>
module attributes {stable_mosaic.version = 11 : i64} {
  func.func @_resnet_block_kernel(%arg0: i32, %arg1: i32, %arg2: memref<1x16x16x4xf32, #tpu.memory_space<vmem>>, %arg3: memref<9x4x8xbf16, #tpu.memory_space<vmem>>, %arg4: memref<1x8xf32, #tpu.memory_space<vmem>>, %arg5: memref<1x8xf32, #tpu.memory_space<vmem>>, %arg6: memref<1x8xf32, #tpu.memory_space<vmem>>, %arg7: memref<4x8xbf16, #tpu.memory_space<vmem>>, %arg8: memref<1x8xf32, #tpu.memory_space<vmem>>, %arg9: memref<1x16x16x8xf32, #tpu.memory_space<vmem>>, %arg10: memref<18x18x4xbf16, #tpu.memory_space<vmem>>) attributes {dimension_semantics = [#tpu.dimension_semantics<parallel>, #tpu.dimension_semantics<arbitrary>], iteration_bounds = array<i64: 2, 1>, scalar_prefetch = 0 : i64, scratch_operands = 1 : i64, tpu.core_type = #tpu.core_type<tc>, window_params = [{transform_indices = @transform_0, window_bounds = array<i64: 1, 16, 16, 4>}, {transform_indices = @transform_1, window_bounds = array<i64: 9, 4, 8>}, {transform_indices = @transform_2, window_bounds = array<i64: 1, 8>}, {transform_indices = @transform_3, window_bounds = array<i64: 1, 8>}, {transform_indices = @transform_4, window_bounds = array<i64: 1, 8>}, {transform_indices = @transform_5, window_bounds = array<i64: 4, 8>}, {transform_indices = @transform_6, window_bounds = array<i64: 1, 8>}, {transform_indices = @transform_7, window_bounds = array<i64: 1, 16, 16, 8>}]} {
    %c0_i32 = arith.constant 0 : i32
    %0 = arith.cmpi eq, %arg1, %c0_i32 : i32
    %1 = arith.extui %0 : i1 to i32
    %c0_i32_0 = arith.constant 0 : i32
    %2 = arith.cmpi ne, %1, %c0_i32_0 : i32
    scf.if %2 {
      %cst_77 = arith.constant 0.000000e+00 : bf16
      %106 = vector.broadcast %cst_77 : bf16 to vector<1x18x4xbf16>
      %cst_78 = arith.constant 0.000000e+00 : bf16
      %107 = vector.broadcast %cst_78 : bf16 to vector<16x1x4xbf16>
      %c0_79 = arith.constant 0 : index
      %c0_80 = arith.constant 0 : index
      %c0_81 = arith.constant 0 : index
      %108 = vector.load %arg10[%c0_79, %c0_80, %c0_81] : memref<18x18x4xbf16, #tpu.memory_space<vmem>>, vector<1x18x4xbf16>
      tpu.vector_store %arg10[%c0_79, %c0_80, %c0_81], %106 {strides = array<i32>} : memref<18x18x4xbf16, #tpu.memory_space<vmem>>, vector<1x18x4xbf16>,
      %c17 = arith.constant 17 : index
      %c0_82 = arith.constant 0 : index
      %c0_83 = arith.constant 0 : index
      %109 = vector.load %arg10[%c17, %c0_82, %c0_83] : memref<18x18x4xbf16, #tpu.memory_space<vmem>>, vector<1x18x4xbf16>
      tpu.vector_store %arg10[%c17, %c0_82, %c0_83], %106 {strides = array<i32>} : memref<18x18x4xbf16, #tpu.memory_space<vmem>>, vector<1x18x4xbf16>,
      %c1_84 = arith.constant 1 : index
      %c0_85 = arith.constant 0 : index
      %c0_86 = arith.constant 0 : index
      %110 = vector.load %arg10[%c1_84, %c0_85, %c0_86] : memref<18x18x4xbf16, #tpu.memory_space<vmem>>, vector<16x1x4xbf16>
      tpu.vector_store %arg10[%c1_84, %c0_85, %c0_86], %107 {strides = array<i32>} : memref<18x18x4xbf16, #tpu.memory_space<vmem>>, vector<16x1x4xbf16>,
      %c1_87 = arith.constant 1 : index
      %c17_88 = arith.constant 17 : index
      %c0_89 = arith.constant 0 : index
      %111 = vector.load %arg10[%c1_87, %c17_88, %c0_89] : memref<18x18x4xbf16, #tpu.memory_space<vmem>>, vector<16x1x4xbf16>
      tpu.vector_store %arg10[%c1_87, %c17_88, %c0_89], %107 {strides = array<i32>} : memref<18x18x4xbf16, #tpu.memory_space<vmem>>, vector<16x1x4xbf16>,
      %c0_90 = arith.constant 0 : index
      %c0_91 = arith.constant 0 : index
      %c0_92 = arith.constant 0 : index
      %c0_93 = arith.constant 0 : index
      %112 = vector.load %arg2[%c0_90, %c0_91, %c0_92, %c0_93] : memref<1x16x16x4xf32, #tpu.memory_space<vmem>>, vector<1x16x16x4xf32>
      %113 = vector.shape_cast %112 : vector<1x16x16x4xf32> to vector<16x16x4xf32>
      %114 = arith.truncf %113 : vector<16x16x4xf32> to vector<16x16x4xbf16>
      %c1_94 = arith.constant 1 : index
      %c1_95 = arith.constant 1 : index
      %c0_96 = arith.constant 0 : index
      %115 = vector.load %arg10[%c1_94, %c1_95, %c0_96] : memref<18x18x4xbf16, #tpu.memory_space<vmem>>, vector<16x16x4xbf16>
      tpu.vector_store %arg10[%c1_94, %c1_95, %c0_96], %114 {strides = array<i32>} : memref<18x18x4xbf16, #tpu.memory_space<vmem>>, vector<16x16x4xbf16>,
    } else {
    }
    %c0 = arith.constant 0 : index
    %c0_1 = arith.constant 0 : index
    %c0_2 = arith.constant 0 : index
    %3 = vector.load %arg10[%c0, %c0_1, %c0_2] : memref<18x18x4xbf16, #tpu.memory_space<vmem>>, vector<16x16x4xbf16>
    %4 = vector.shape_cast %3 : vector<16x16x4xbf16> to vector<256x4xbf16>
    %c0_3 = arith.constant 0 : index
    %c0_4 = arith.constant 0 : index
    %c0_5 = arith.constant 0 : index
    %5 = vector.load %arg3[%c0_3, %c0_4, %c0_5] : memref<9x4x8xbf16, #tpu.memory_space<vmem>>, vector<1x4x8xbf16>
    %6 = vector.shape_cast %5 : vector<1x4x8xbf16> to vector<4x8xbf16>
    %cst = arith.constant dense<0.000000e+00> : vector<256x8xf32>
    %7 = tpu.matmul %4, %6, %cst {dimension_numbers = #tpu.dot_dimension_numbers<[1], [0], [0], [1], [0, 0, 1, 1], [], []>} : vector<256x4xbf16>, vector<4x8xbf16>, vector<256x8xf32> -> vector<256x8xf32>
    %c0_6 = arith.constant 0 : index
    %c1 = arith.constant 1 : index
    %c0_7 = arith.constant 0 : index
    %8 = vector.load %arg10[%c0_6, %c1, %c0_7] : memref<18x18x4xbf16, #tpu.memory_space<vmem>>, vector<16x16x4xbf16>
    %9 = vector.shape_cast %8 : vector<16x16x4xbf16> to vector<256x4xbf16>
    %c1_8 = arith.constant 1 : index
    %c0_9 = arith.constant 0 : index
    %c0_10 = arith.constant 0 : index
    %10 = vector.load %arg3[%c1_8, %c0_9, %c0_10] : memref<9x4x8xbf16, #tpu.memory_space<vmem>>, vector<1x4x8xbf16>
    %11 = vector.shape_cast %10 : vector<1x4x8xbf16> to vector<4x8xbf16>
    %cst_11 = arith.constant dense<0.000000e+00> : vector<256x8xf32>
    %12 = tpu.matmul %9, %11, %cst_11 {dimension_numbers = #tpu.dot_dimension_numbers<[1], [0], [0], [1], [0, 0, 1, 1], [], []>} : vector<256x4xbf16>, vector<4x8xbf16>, vector<256x8xf32> -> vector<256x8xf32>
    %13 = arith.addf %7, %12 : vector<256x8xf32>
    %c0_12 = arith.constant 0 : index
    %c2 = arith.constant 2 : index
    %c0_13 = arith.constant 0 : index
    %14 = vector.load %arg10[%c0_12, %c2, %c0_13] : memref<18x18x4xbf16, #tpu.memory_space<vmem>>, vector<16x16x4xbf16>
    %15 = vector.shape_cast %14 : vector<16x16x4xbf16> to vector<256x4xbf16>
    %c2_14 = arith.constant 2 : index
    %c0_15 = arith.constant 0 : index
    %c0_16 = arith.constant 0 : index
    %16 = vector.load %arg3[%c2_14, %c0_15, %c0_16] : memref<9x4x8xbf16, #tpu.memory_space<vmem>>, vector<1x4x8xbf16>
    %17 = vector.shape_cast %16 : vector<1x4x8xbf16> to vector<4x8xbf16>
    %cst_17 = arith.constant dense<0.000000e+00> : vector<256x8xf32>
    %18 = tpu.matmul %15, %17, %cst_17 {dimension_numbers = #tpu.dot_dimension_numbers<[1], [0], [0], [1], [0, 0, 1, 1], [], []>} : vector<256x4xbf16>, vector<4x8xbf16>, vector<256x8xf32> -> vector<256x8xf32>
    %19 = arith.addf %13, %18 : vector<256x8xf32>
    %c1_18 = arith.constant 1 : index
    %c0_19 = arith.constant 0 : index
    %c0_20 = arith.constant 0 : index
    %20 = vector.load %arg10[%c1_18, %c0_19, %c0_20] : memref<18x18x4xbf16, #tpu.memory_space<vmem>>, vector<16x16x4xbf16>
    %21 = vector.shape_cast %20 : vector<16x16x4xbf16> to vector<256x4xbf16>
    %c3 = arith.constant 3 : index
    %c0_21 = arith.constant 0 : index
    %c0_22 = arith.constant 0 : index
    %22 = vector.load %arg3[%c3, %c0_21, %c0_22] : memref<9x4x8xbf16, #tpu.memory_space<vmem>>, vector<1x4x8xbf16>
    %23 = vector.shape_cast %22 : vector<1x4x8xbf16> to vector<4x8xbf16>
    %cst_23 = arith.constant dense<0.000000e+00> : vector<256x8xf32>
    %24 = tpu.matmul %21, %23, %cst_23 {dimension_numbers = #tpu.dot_dimension_numbers<[1], [0], [0], [1], [0, 0, 1, 1], [], []>} : vector<256x4xbf16>, vector<4x8xbf16>, vector<256x8xf32> -> vector<256x8xf32>
    %25 = arith.addf %19, %24 : vector<256x8xf32>
    %c1_24 = arith.constant 1 : index
    %c1_25 = arith.constant 1 : index
    %c0_26 = arith.constant 0 : index
    %26 = vector.load %arg10[%c1_24, %c1_25, %c0_26] : memref<18x18x4xbf16, #tpu.memory_space<vmem>>, vector<16x16x4xbf16>
    %27 = vector.shape_cast %26 : vector<16x16x4xbf16> to vector<256x4xbf16>
    %c4 = arith.constant 4 : index
    %c0_27 = arith.constant 0 : index
    %c0_28 = arith.constant 0 : index
    %28 = vector.load %arg3[%c4, %c0_27, %c0_28] : memref<9x4x8xbf16, #tpu.memory_space<vmem>>, vector<1x4x8xbf16>
    %29 = vector.shape_cast %28 : vector<1x4x8xbf16> to vector<4x8xbf16>
    %cst_29 = arith.constant dense<0.000000e+00> : vector<256x8xf32>
    %30 = tpu.matmul %27, %29, %cst_29 {dimension_numbers = #tpu.dot_dimension_numbers<[1], [0], [0], [1], [0, 0, 1, 1], [], []>} : vector<256x4xbf16>, vector<4x8xbf16>, vector<256x8xf32> -> vector<256x8xf32>
    %31 = arith.addf %25, %30 : vector<256x8xf32>
    %c1_30 = arith.constant 1 : index
    %c2_31 = arith.constant 2 : index
    %c0_32 = arith.constant 0 : index
    %32 = vector.load %arg10[%c1_30, %c2_31, %c0_32] : memref<18x18x4xbf16, #tpu.memory_space<vmem>>, vector<16x16x4xbf16>
    %33 = vector.shape_cast %32 : vector<16x16x4xbf16> to vector<256x4xbf16>
    %c5 = arith.constant 5 : index
    %c0_33 = arith.constant 0 : index
    %c0_34 = arith.constant 0 : index
    %34 = vector.load %arg3[%c5, %c0_33, %c0_34] : memref<9x4x8xbf16, #tpu.memory_space<vmem>>, vector<1x4x8xbf16>
    %35 = vector.shape_cast %34 : vector<1x4x8xbf16> to vector<4x8xbf16>
    %cst_35 = arith.constant dense<0.000000e+00> : vector<256x8xf32>
    %36 = tpu.matmul %33, %35, %cst_35 {dimension_numbers = #tpu.dot_dimension_numbers<[1], [0], [0], [1], [0, 0, 1, 1], [], []>} : vector<256x4xbf16>, vector<4x8xbf16>, vector<256x8xf32> -> vector<256x8xf32>
    %37 = arith.addf %31, %36 : vector<256x8xf32>
    %c2_36 = arith.constant 2 : index
    %c0_37 = arith.constant 0 : index
    %c0_38 = arith.constant 0 : index
    %38 = vector.load %arg10[%c2_36, %c0_37, %c0_38] : memref<18x18x4xbf16, #tpu.memory_space<vmem>>, vector<16x16x4xbf16>
    %39 = vector.shape_cast %38 : vector<16x16x4xbf16> to vector<256x4xbf16>
    %c6 = arith.constant 6 : index
    %c0_39 = arith.constant 0 : index
    %c0_40 = arith.constant 0 : index
    %40 = vector.load %arg3[%c6, %c0_39, %c0_40] : memref<9x4x8xbf16, #tpu.memory_space<vmem>>, vector<1x4x8xbf16>
    %41 = vector.shape_cast %40 : vector<1x4x8xbf16> to vector<4x8xbf16>
    %cst_41 = arith.constant dense<0.000000e+00> : vector<256x8xf32>
    %42 = tpu.matmul %39, %41, %cst_41 {dimension_numbers = #tpu.dot_dimension_numbers<[1], [0], [0], [1], [0, 0, 1, 1], [], []>} : vector<256x4xbf16>, vector<4x8xbf16>, vector<256x8xf32> -> vector<256x8xf32>
    %43 = arith.addf %37, %42 : vector<256x8xf32>
    %c2_42 = arith.constant 2 : index
    %c1_43 = arith.constant 1 : index
    %c0_44 = arith.constant 0 : index
    %44 = vector.load %arg10[%c2_42, %c1_43, %c0_44] : memref<18x18x4xbf16, #tpu.memory_space<vmem>>, vector<16x16x4xbf16>
    %45 = vector.shape_cast %44 : vector<16x16x4xbf16> to vector<256x4xbf16>
    %c7 = arith.constant 7 : index
    %c0_45 = arith.constant 0 : index
    %c0_46 = arith.constant 0 : index
    %46 = vector.load %arg3[%c7, %c0_45, %c0_46] : memref<9x4x8xbf16, #tpu.memory_space<vmem>>, vector<1x4x8xbf16>
    %47 = vector.shape_cast %46 : vector<1x4x8xbf16> to vector<4x8xbf16>
    %cst_47 = arith.constant dense<0.000000e+00> : vector<256x8xf32>
    %48 = tpu.matmul %45, %47, %cst_47 {dimension_numbers = #tpu.dot_dimension_numbers<[1], [0], [0], [1], [0, 0, 1, 1], [], []>} : vector<256x4xbf16>, vector<4x8xbf16>, vector<256x8xf32> -> vector<256x8xf32>
    %49 = arith.addf %43, %48 : vector<256x8xf32>
    %c2_48 = arith.constant 2 : index
    %c2_49 = arith.constant 2 : index
    %c0_50 = arith.constant 0 : index
    %50 = vector.load %arg10[%c2_48, %c2_49, %c0_50] : memref<18x18x4xbf16, #tpu.memory_space<vmem>>, vector<16x16x4xbf16>
    %51 = vector.shape_cast %50 : vector<16x16x4xbf16> to vector<256x4xbf16>
    %c8 = arith.constant 8 : index
    %c0_51 = arith.constant 0 : index
    %c0_52 = arith.constant 0 : index
    %52 = vector.load %arg3[%c8, %c0_51, %c0_52] : memref<9x4x8xbf16, #tpu.memory_space<vmem>>, vector<1x4x8xbf16>
    %53 = vector.shape_cast %52 : vector<1x4x8xbf16> to vector<4x8xbf16>
    %cst_53 = arith.constant dense<0.000000e+00> : vector<256x8xf32>
    %54 = tpu.matmul %51, %53, %cst_53 {dimension_numbers = #tpu.dot_dimension_numbers<[1], [0], [0], [1], [0, 0, 1, 1], [], []>} : vector<256x4xbf16>, vector<4x8xbf16>, vector<256x8xf32> -> vector<256x8xf32>
    %55 = arith.addf %49, %54 : vector<256x8xf32>
    %c0_54 = arith.constant 0 : index
    %c0_55 = arith.constant 0 : index
    %56 = vector.load %arg4[%c0_54, %c0_55] : memref<1x8xf32, #tpu.memory_space<vmem>>, vector<1x8xf32>
    %57 = vector.broadcast %56 : vector<1x8xf32> to vector<256x8xf32>
    %58 = arith.addf %55, %57 : vector<256x8xf32>
    %cst_56 = arith.constant dense<0.000000e+00> : vector<8xf32>
    %59 = vector.multi_reduction <add>, %58, %cst_56 [0] : vector<256x8xf32> to vector<8xf32>
    %60 = vector.shape_cast %59 : vector<8xf32> to vector<1x8xf32>
    %61 = arith.mulf %58, %58 : vector<256x8xf32>
    %cst_57 = arith.constant dense<0.000000e+00> : vector<8xf32>
    %62 = vector.multi_reduction <add>, %61, %cst_57 [0] : vector<256x8xf32> to vector<8xf32>
    %63 = vector.shape_cast %62 : vector<8xf32> to vector<1x8xf32>
    %64 = vector.shape_cast %60 : vector<1x8xf32> to vector<8x1xf32>
    %cst_58 = arith.constant dense<0.000000e+00> : vector<8xf32>
    %65 = vector.multi_reduction <add>, %64, %cst_58 [1] : vector<8x1xf32> to vector<8xf32>
    %66 = vector.shape_cast %65 : vector<8xf32> to vector<8x1xf32>
    %67 = vector.shape_cast %63 : vector<1x8xf32> to vector<8x1xf32>
    %cst_59 = arith.constant dense<0.000000e+00> : vector<8xf32>
    %68 = vector.multi_reduction <add>, %67, %cst_59 [1] : vector<8x1xf32> to vector<8xf32>
    %69 = vector.shape_cast %68 : vector<8xf32> to vector<8x1xf32>
    %cst_60 = arith.constant 3.906250e-03 : f32
    %70 = vector.broadcast %cst_60 : f32 to vector<8x1xf32>
    %71 = arith.mulf %66, %70 : vector<8x1xf32>
    %cst_61 = arith.constant 3.906250e-03 : f32
    %72 = vector.broadcast %cst_61 : f32 to vector<8x1xf32>
    %73 = arith.mulf %69, %72 : vector<8x1xf32>
    %74 = arith.mulf %71, %71 : vector<8x1xf32>
    %75 = arith.subf %73, %74 : vector<8x1xf32>
    %cst_62 = arith.constant 9.99999974E-6 : f32
    %76 = vector.broadcast %cst_62 : f32 to vector<8x1xf32>
    %77 = arith.addf %75, %76 : vector<8x1xf32>
    %78 = math.rsqrt %77 : vector<8x1xf32>
    %79 = vector.shape_cast %71 : vector<8x1xf32> to vector<1x8xf32>
    %80 = vector.shape_cast %78 : vector<8x1xf32> to vector<1x8xf32>
    %c0_63 = arith.constant 0 : index
    %c0_64 = arith.constant 0 : index
    %81 = vector.load %arg5[%c0_63, %c0_64] : memref<1x8xf32, #tpu.memory_space<vmem>>, vector<1x8xf32>
    %82 = arith.mulf %80, %81 : vector<1x8xf32>
    %c0_65 = arith.constant 0 : index
    %c0_66 = arith.constant 0 : index
    %83 = vector.load %arg6[%c0_65, %c0_66] : memref<1x8xf32, #tpu.memory_space<vmem>>, vector<1x8xf32>
    %84 = arith.mulf %79, %82 : vector<1x8xf32>
    %85 = arith.subf %83, %84 : vector<1x8xf32>
    %86 = vector.broadcast %82 : vector<1x8xf32> to vector<256x8xf32>
    %87 = arith.mulf %58, %86 : vector<256x8xf32>
    %88 = vector.broadcast %85 : vector<1x8xf32> to vector<256x8xf32>
    %89 = arith.addf %87, %88 : vector<256x8xf32>
    %90 = arith.negf %89 : vector<256x8xf32>
    %91 = math.exp %90 : vector<256x8xf32>
    %cst_67 = arith.constant 1.000000e+00 : f32
    %92 = vector.broadcast %cst_67 : f32 to vector<256x8xf32>
    %93 = arith.addf %92, %91 : vector<256x8xf32>
    %94 = arith.divf %92, %93 : vector<256x8xf32>
    %95 = arith.mulf %89, %94 : vector<256x8xf32>
    %c0_68 = arith.constant 0 : index
    %c0_69 = arith.constant 0 : index
    %96 = vector.load %arg7[%c0_68, %c0_69] : memref<4x8xbf16, #tpu.memory_space<vmem>>, vector<4x8xbf16>
    %cst_70 = arith.constant dense<0.000000e+00> : vector<256x8xf32>
    %97 = tpu.matmul %27, %96, %cst_70 {dimension_numbers = #tpu.dot_dimension_numbers<[1], [0], [0], [1], [0, 0, 1, 1], [], []>} : vector<256x4xbf16>, vector<4x8xbf16>, vector<256x8xf32> -> vector<256x8xf32>
    %c0_71 = arith.constant 0 : index
    %c0_72 = arith.constant 0 : index
    %98 = vector.load %arg8[%c0_71, %c0_72] : memref<1x8xf32, #tpu.memory_space<vmem>>, vector<1x8xf32>
    %99 = vector.broadcast %98 : vector<1x8xf32> to vector<256x8xf32>
    %100 = arith.addf %97, %99 : vector<256x8xf32>
    %101 = arith.addf %95, %100 : vector<256x8xf32>
    %102 = vector.shape_cast %101 : vector<256x8xf32> to vector<16x16x8xf32>
    %c0_73 = arith.constant 0 : index
    %c0_74 = arith.constant 0 : index
    %c0_75 = arith.constant 0 : index
    %c0_76 = arith.constant 0 : index
    %103 = vector.load %arg9[%c0_73, %c0_74, %c0_75, %c0_76] : memref<1x16x16x8xf32, #tpu.memory_space<vmem>>, vector<1x16x16x8xf32>
    %104 = vector.shape_cast %103 : vector<1x16x16x8xf32> to vector<16x16x8xf32>
    %105 = vector.shape_cast %102 : vector<16x16x8xf32> to vector<1x16x16x8xf32>
    tpu.vector_store %arg9[%c0_73, %c0_74, %c0_75, %c0_76], %105 {strides = array<i32>} : memref<1x16x16x8xf32, #tpu.memory_space<vmem>>, vector<1x16x16x8xf32>,
    return
  }
  func.func @transform_0(%arg0: i32, %arg1: i32) -> (i32, i32, i32, i32) {
    %c0_i32 = arith.constant 0 : i32
    %c0_i32_0 = arith.constant 0 : i32
    %c0_i32_1 = arith.constant 0 : i32
    %c0_i32_2 = arith.constant 0 : i32
    return %arg0, %c0_i32, %c0_i32_0, %c0_i32_1 : i32, i32, i32, i32
  }
  func.func @transform_1(%arg0: i32, %arg1: i32) -> (i32, i32, i32) {
    %c0_i32 = arith.constant 0 : i32
    %c0_i32_0 = arith.constant 0 : i32
    %c0_i32_1 = arith.constant 0 : i32
    return %c0_i32, %c0_i32_0, %arg1 : i32, i32, i32
  }
  func.func @transform_2(%arg0: i32, %arg1: i32) -> (i32, i32) {
    %c0_i32 = arith.constant 0 : i32
    %c0_i32_0 = arith.constant 0 : i32
    return %c0_i32, %arg1 : i32, i32
  }
  func.func @transform_3(%arg0: i32, %arg1: i32) -> (i32, i32) {
    %c0_i32 = arith.constant 0 : i32
    %c0_i32_0 = arith.constant 0 : i32
    return %c0_i32, %arg1 : i32, i32
  }
  func.func @transform_4(%arg0: i32, %arg1: i32) -> (i32, i32) {
    %c0_i32 = arith.constant 0 : i32
    %c0_i32_0 = arith.constant 0 : i32
    return %c0_i32, %arg1 : i32, i32
  }
  func.func @transform_5(%arg0: i32, %arg1: i32) -> (i32, i32) {
    %c0_i32 = arith.constant 0 : i32
    %c0_i32_0 = arith.constant 0 : i32
    return %c0_i32, %arg1 : i32, i32
  }
  func.func @transform_6(%arg0: i32, %arg1: i32) -> (i32, i32) {
    %c0_i32 = arith.constant 0 : i32
    %c0_i32_0 = arith.constant 0 : i32
    return %c0_i32, %arg1 : i32, i32
  }
  func.func @transform_7(%arg0: i32, %arg1: i32) -> (i32, i32, i32, i32) {
    %c0_i32 = arith.constant 0 : i32
    %c0_i32_0 = arith.constant 0 : i32
    %c0_i32_1 = arith.constant 0 : i32
    return %arg0, %c0_i32, %c0_i32_0, %arg1 : i32, i32, i32, i32
  }
}

</mosaic_0001>

<bundles_post_ra>
// kernel: tpu_custom_call.1
= control target key start
LH: loop header
LB: loop body
LE: loop exit
PB: predicated region body
PF: predicated region fallthrough
CT: control target
= control target key end

     0   :  { %s7003_s24 = smov 0   ;;  %s7005_s25 = smov 0   ;;  %s10383_s0 = inlined_call_operand.vmem [shape: f32[2,16,16,4], index: 0, kind: input, shape index: {}]   ;;  %s10384_s1 = inlined_call_operand.vmem [shape: bf16[9,4,8], index: 1, kind: input, shape index: {}]   ;;  %s10385_s2 = inlined_call_operand.vmem [shape: f32[1,8], index: 2, kind: input, shape index: {}]   ;;  %s10386_s3 = inlined_call_operand.vmem [shape: f32[1,8], index: 3, kind: input, shape index: {}]   ;;  %s10387_s4 = inlined_call_operand.vmem [shape: f32[1,8], index: 4, kind: input, shape index: {}]   ;;  %s10388_s5 = inlined_call_operand.vmem [shape: bf16[4,8], index: 5, kind: input, shape index: {}]   ;;  %s10389_s6 = inlined_call_operand.vmem [shape: f32[1,8], index: 6, kind: input, shape index: {}]   ;;  %s10390_s7 = inlined_call_operand.vmem [shape: f32[2,16,16,8], index: 7, kind: output, shape index: {}]  }
   0x1   :  { %s7007_s26 = smov 0  }
   0x2 LB: > { %s29_s27 = sadd.s32 1, %s6956_s25  ;;  %p6249_p0 = scmp.ge.s32.totalorder %s6960_s26, 1  ;;  %s6960_s26 = sphi %s7007_s26, %s17_s26   ;;  %s6956_s25 = sphi %s7005_s25, %s10850_s25   ;;  %s6952_s24 = sphi %s7003_s24, %s10849_s24  }
   0x3   : > { %p31_p1 = scmp.ge.s32.totalorder %s29_s27, 2  ;;  %p301_p2 = scmp.lt.s32.totalorder %s6960_s26, 3 }
   0x5   : > { %s10852_s27 = smov (%p31_p1, %s29_s27), 0  ;;  %p302_p3 = pnand %p6249_p0, %p301_p2 }
   0x7   : > { %305 = sbr.rel (%p302_p3) target bundleno = 1304 (0x518), region = 48 }
   0xc   : > { %v1037_v0 = vld [vmem:[%s10384_s1] sm:$0x3]  ;;  %vm1540_vm0 = vcmask 1041408   ;;  %p356_p4 = scmp.lt.s32.totalorder %s6952_s24, 1  ;;  %vm397_vm1 = vcmask 24576   ;;  %v10391_v8 = vmov 0  }
   0xd   : > { %v1762_v1 = vsel %vm1540_vm0, %v1037_v0, 0  ;;  %vm405_vm2 = vsmask.f32 256  ;;  %v428_v2 = vld [vmem:[#allocation2 + $0x60] sm:$0x1]  ;;  %6776 = vset.pattern.permute.xlu2 %v10391_v8  ;;  %vm394_vm6 = vcmask 27648  }
   0xe   : > { %6747 = vmatpush.bf16.msra.mxu3 %v1762_v1  ;;  %s10854_s24 = smov (!%p356_p4, %s6952_s24), 1  ;;  %vm7029_vm3 = vmand %vm397_vm1, %vm405_vm2  ;;  %vm455_vm4 = vsmask.f32 7938  ;;  %1771 = vmatpush.bf16.msra.mxu1 %v1762_v1  ;;  %v6254_v6 = vld [vmem:[%s10384_s1 + $0x2] sm:$0x3]  ;;  %vm1491_vm11 = vcmask 31744  }
   0xf   : > { %v429_v4 = vsel %vm7029_vm3, 0, %v428_v2  ;;  %vm7037_vm5 = vmand %vm397_vm1, %vm455_vm4  ;;  %v478_v7 = vld [vmem:[#allocation2 + $0x68] sm:$0x1]  ;;  %s6696_s9 = sshll.u32 %s10854_s24, 8  ;;  %v1542_v9 = vsel %vm1540_vm0, %v6254_v6, 0  ;;  %vm1901_vm14 = vcmask 1042432  }
  0x10   : > { %430 = vst [vmem:[#allocation2 + $0x60] sm:$0x1] %v429_v4  ;;  %v479_v10 = vsel %vm7037_vm5, 0, %v478_v7  ;;  %s7054_s12 = scalar_lea.vmem %s10383_s0, %s6696_s9  ;;  %6746 = vmatpush.bf16.msra.mxu2 %v1542_v9  ;;  %1551 = vmatpush.bf16.msra.mxu0 %v1542_v9  ;;  %vm569_vm7 = vsmask.f32 4368  ;;  %vm7090_vm12 = vmand %vm394_vm6, %vm455_vm4  ;;  %vm1902_vm15 = vcmask 1046532   ;;  %s10068_s21 = scalar_lea.vmem %s10390_s7, %s6696_s9 }
  0x11   : > { %480 = vst [vmem:[#allocation2 + $0x68] sm:$0x1] %v479_v10  ;;  %v519_v11 = vld [vmem:[%s7054_s12 + $0x70] sm:$0xff]  ;;  %v520_v12 = vld [vmem:[%s7054_s12 + $0x78] sm:$0xff]  ;;  %v6367_v15 = vld [vmem:[%s10384_s1 + $0x4] sm:$0x3] }
  0x12   : > { %395 = vst.msk [vmem:[#allocation2] sm:$0xf] %vm394_vm6, %v10391_v8  ;;  %v551_v13 = vpack.c.bf16 %v519_v11, %v519_v11  ;;  %v552_v14 = vpack.c.bf16 %v520_v12, %v520_v12  ;;  %v6384_v16 = vld [vmem:[%s10384_s1 + $0x6] sm:$0x3]  ;;  %v2115_v17 = vsel %vm1540_vm0, %v6367_v15, 0  ;;  %vm7081_vm10 = vmor %vm405_vm2, %vm569_vm7  ;;  %v522_v29 = vld [vmem:[%s7054_s12 + $0x88] sm:$0xff] }
  0x13   : > { %396 = vst.msk [vmem:[#allocation2 + $0x4] sm:$0xf] %vm394_vm6, %v10391_v8  ;;  %v2402_v18 = vsel %vm1540_vm0, %v6384_v16, 0  ;;  %v431_v19 = vld [vmem:[#allocation2 + $0x6c] sm:$0x1]  ;;  %v521_v25 = vld [vmem:[%s7054_s12 + $0x80] sm:$0xff]  ;;  %v554_v44 = vpack.c.bf16 %v522_v29, %v522_v29 }
  0x14   : > { %398 = vst.msk [vmem:[#allocation2 + $0x8] sm:$0x1] %vm397_vm1, %v10391_v8  ;;  %v691_v20 = vshrl.u32 %v551_v13, 16  ;;  %v694_v21 = vshll.u32 %v551_v13, 16  ;;  %v699_v22 = vshrl.u32 %v552_v14, 16  ;;  %v702_v23 = vshll.u32 %v552_v14, 16  ;;  %2124 = vmatpush.bf16.msrb.mxu2 %v2115_v17  ;;  %2411 = vmatpush.bf16.msrb.mxu3 %v2402_v18 }
  0x15   : > { %400 = vst.msk [vmem:[#allocation2 + $0xcc] sm:$0xf] %vm394_vm6, %v10391_v8  ;;  %vm1054_vm8 = vsmask.f32 3328  ;;  %vm1055_vm9 = vsmask.f32 7440  ;;  %v553_v30 = vpack.c.bf16 %v521_v25, %v521_v25 }
  0x16   : > { %401 = vst.msk [vmem:[#allocation2 + $0xd0] sm:$0xf] %vm394_vm6, %v10391_v8  ;;  %v432_v24 = vsel %vm7029_vm3, 0, %v431_v19  ;;  %v693_v27 = vrot.slane %v691_v20, 7  ;;  %v701_v28 = vrot.slane %v699_v22, 7  ;;  %v505_v39 = vld [vmem:[%s7054_s12] sm:$0xff]  ;;  %vm7114_vm13 = vmor %vm1054_vm8, %vm1055_vm9 }
  0x17   : > { %402 = vst.msk [vmem:[#allocation2 + $0xd4] sm:$0x1] %vm397_vm1, %v10391_v8  ;;  %v942_v32 = vld [vmem:[#allocation2 + $0x60] sm:$0xf]  ;;  %v708_v45 = vshrl.u32 %v553_v30, 16  ;;  %v711_v60 = vshll.u32 %v553_v30, 16  ;;  %v7106_v61 = vpack.c.bf16 %v505_v39, %v505_v39  ;;  %vm7473_vm1 = vmor %vm1901_vm14, %vm1902_vm15 }
  0x18   : > { %v946_v33 = vld [vmem:[#allocation2 + $0x68] sm:$0x1]  ;;  %433 = vst [vmem:[#allocation2 + $0x6c] sm:$0x1] %v432_v24  ;;  %v696_v34 = vor.u32 %v694_v21, %v693_v27  ;;  %v697_v35 = vrot.slane %v693_v27, 4  ;;  %v704_v36 = vor.u32 %v702_v23, %v701_v28  ;;  %v706_v37 = vrot.slane %v701_v28, 4 }
  0x19   : > { %v1005_v38 = vld [vmem:[#allocation2] sm:$0xf]  ;;  %v481_v52 = vld [vmem:[#allocation2 + $0x74] sm:$0x1]  ;;  %v407_v57 = vld [vmem:[#allocation2 + $0xc] sm:$0x1] }
  0x1a   : > { %v1006_v40 = vld [vmem:[#allocation2 + $0x4] sm:$0xf]  ;;  %v1058_v41 = vshrl.u32 %v1005_v38, 16  ;;  %v1061_v42 = vshll.u32 %v1005_v38, 16  ;;  %v6465_v46 = vld [vmem:[%s10384_s1 + $0x8] sm:$0x3]  ;;  %v705_v47 = vsel %vm7081_vm10, %v697_v35, %v704_v36  ;;  %v943_v48 = vsel %vm7090_vm12, %v696_v34, %v942_v32 }
  0x1b   : > { %v6698_v43 = vld [vmem:[#allocation2] sm:$0xff]  ;;  %v947_v49 = vsel %vm7029_vm3, %v706_v37, %v946_v33  ;;  %v1038_v50 = vld [vmem:[#allocation2 + $0x8] sm:$0x1]  ;;  %v1067_v51 = vshll.u32 %v1006_v40, 16  ;;  %944 = vst [vmem:[#allocation2 + $0x60] sm:$0xf] %v943_v48 }
  0x1c   : > { %v1060_v53 = vrot.slane %v1058_v41, 4  ;;  %v1063_v54 = vrot.slane %v1061_v42, 5  ;;  %v1071_v55 = vshrl.u32 %v1006_v40, 16  ;;  %v1077_v56 = vshll.u32 %v1038_v50, 16  ;;  %6335 = vmatmul.msk.bf16.vlgmr.msra.gmra.mxu1 %vm1491_vm11, %v6698_v43  ;;  %945 = vst.msk [vmem:[#allocation2 + $0x64] sm:$0xf] %vm394_vm6, %v705_v47 }
  0x1d   : > { %v1069_v58 = vrot.slane %v1067_v51, 5  ;;  %v710_v59 = vrot.slane %v708_v45, 7  ;;  %948 = vst [vmem:[#allocation2 + $0x68] sm:$0x1] %v947_v49  ;;  %v716_v1 = vshrl.u32 %v554_v44, 16  ;;  %v719_v6 = vshll.u32 %v554_v44, 16 }
  0x1e   : > { %v1064_v62 = vor.u32 %v1063_v54, %v1060_v53  ;;  %v1073_v63 = vrot.slane %v1071_v55, 4  ;;  %v1079_v0 = vrot.slane %v1077_v56, 5  ;;  %v3056_v9 = vsel %vm1540_vm0, %v6465_v46, 0  ;;  %v457_v14 = vld [vmem:[#allocation2 + $0x14] sm:$0x1]  ;;  %v506_v15 = vld [vmem:[%s7054_s12 + $0x8] sm:$0xff] }
  0x1f   : > { %v713_v2 = vor.u32 %v711_v60, %v710_v59  ;;  %v714_v4 = vrot.slane %v710_v59, 4  ;;  %v949_v7 = vld [vmem:[#allocation2 + $0x6c] sm:$0xf]  ;;  %v718_v12 = vrot.slane %v716_v1, 7  ;;  %3065 = vmatpush.bf16.msrb.mxu0 %v3056_v9  ;;  %v482_v13 = vsel %vm7037_vm5, 0, %v481_v52  ;;  %v524_v25 = vld [vmem:[%s7054_s12 + $0x98] sm:$0xff] }
  0x20   : > { %v1065_v10 = vrot.slane %v1064_v62, 4  ;;  %v1074_v11 = vor.u32 %v1073_v63, %v1069_v58  ;;  %483 = vst [vmem:[#allocation2 + $0x74] sm:$0x1] %v482_v13  ;;  %v408_v18 = vsel %vm7029_vm3, 0, %v407_v57  ;;  %v458_v19 = vsel %vm7037_vm5, 0, %v457_v14  ;;  %v523_v24 = vld [vmem:[%s7054_s12 + $0x90] sm:$0xff] }
  0x21   : > { %v950_v17 = vsel %vm7090_vm12, %v713_v2, %v949_v7  ;;  %v721_v22 = vor.u32 %v719_v6, %v718_v12  ;;  %v723_v23 = vrot.slane %v718_v12, 4  ;;  %409 = vst [vmem:[#allocation2 + $0xc] sm:$0x1] %v408_v18  ;;  %v538_v29 = vpack.c.bf16 %v506_v15, %v506_v15  ;;  %v434_v52 = vld [vmem:[#allocation2 + $0x78] sm:$0x1] }
  0x22   : > { %v1070_v20 = vsel %vm7114_vm13, %v1065_v10, %v1069_v58  ;;  %v1075_v21 = vrot.slane %v1074_v11, 4  ;;  %951 = vst [vmem:[#allocation2 + $0x6c] sm:$0xf] %v950_v17  ;;  %v1021_v27 = vld [vmem:[#allocation2 + $0x60] sm:$0xf]  ;;  %v572_v30 = vshrl.u32 %v7106_v61, 16  ;;  %v7135_v43 = vpack.c.bf16 %v523_v24, %v523_v24 }
  0x23   : > { %v1443_v28 = vunpack.c.l.b16 %v1070_v20  ;;  %v575_v32 = vshll.u32 %v7106_v61, 16  ;;  %v6706_v33 = vld [vmem:[#allocation2 + $0x60] sm:$0xff]  ;;  %v1250_v35 = vshrl.u32 %v1021_v27, 16  ;;  %v1253_v36 = vshll.u32 %v1021_v27, 16  ;;  %459 = vst [vmem:[#allocation2 + $0x14] sm:$0x1] %v458_v19 }
  0x24   : > { %v1022_v34 = vld [vmem:[#allocation2 + $0x64] sm:$0xf]  ;;  %v1080_v37 = vsel %vm7114_vm13, %v1075_v21, %v1079_v0  ;;  %v722_v38 = vsel %vm7081_vm10, %v714_v4, %v721_v22  ;;  %v1046_v39 = vld [vmem:[#allocation2 + $0x68] sm:$0x1]  ;;  %6343 = vmatmul.msk.bf16.vlgmr.msra.gmra.mxu3 %vm1491_vm11, %v6706_v33  ;;  %v7138_v47 = vpack.c.bf16 %v524_v25, %v524_v25  ;;  %v574_v51 = vrot.slane %v572_v30, 7 }
  0x25   : > { %v1259_v40 = vshll.u32 %v1022_v34, 16  ;;  %v1263_v41 = vshrl.u32 %v1022_v34, 16  ;;  %v1444_v42 = vunpack.c.l.b16 %v1080_v37  ;;  %952 = vst.msk [vmem:[#allocation2 + $0x70] sm:$0xf] %vm394_vm6, %v722_v38  ;;  %v1252_v44 = vrot.slane %v1250_v35, 4  ;;  %v507_v34 = vld [vmem:[%s7054_s12 + $0x10] sm:$0xff] }
  0x26   : > { %v1255_v45 = vrot.slane %v1253_v36, 5  ;;  %v1269_v46 = vshll.u32 %v1046_v39, 16  ;;  %v580_v56 = vshrl.u32 %v538_v29, 16  ;;  %v583_v57 = vshll.u32 %v538_v29, 16  ;;  %v484_v27 = vld [vmem:[#allocation2 + $0x80] sm:$0x1] }
  0x27   : > { %v1261_v48 = vrot.slane %v1259_v40, 5  ;;  %v1265_v49 = vrot.slane %v1263_v41, 4  ;;  %v1475_v50 = vpack.c.b16 %v1444_v42, %v1443_v28  ;;  %v953_v55 = vld [vmem:[#allocation2 + $0x74] sm:$0x1]  ;;  %v577_v61 = vor.u32 %v575_v32, %v574_v51  ;;  %v410_v28 = vld [vmem:[#allocation2 + $0x18] sm:$0x1] }
  0x28   : > { %v1256_v53 = vor.u32 %v1255_v45, %v1252_v44  ;;  %v1271_v54 = vrot.slane %v1269_v46, 5  ;;  %v954_v59 = vsel %vm7029_vm3, %v723_v23, %v953_v55  ;;  %v578_v62 = vrot.slane %v574_v51, 4  ;;  %v893_v15 = vld [vmem:[#allocation2 + $0xc] sm:$0xf]  ;;  %v460_v39 = vld [vmem:[#allocation2 + $0x20] sm:$0x1] }
  0x29   : > { %v1266_v58 = vor.u32 %v1265_v49, %v1261_v48  ;;  %6255 = vmatmul.msk.bf16.vlgmr.msra.gmra.mxu0 %vm1491_vm11, %v1475_v50  ;;  %v1023_v60 = vld [vmem:[#allocation2 + $0x6c] sm:$0xf]  ;;  %955 = vst [vmem:[#allocation2 + $0x74] sm:$0x1] %v954_v59  ;;  %v582_v2 = vrot.slane %v580_v56, 7  ;;  %v435_v6 = vsel %vm7029_vm3, 0, %v434_v52  ;;  %v894_v32 = vsel %vm7090_vm12, %v577_v61, %v893_v15 }
  0x2a   : > { %v1257_v63 = vrot.slane %v1256_v53, 4  ;;  %v1274_v0 = vshrl.u32 %v1023_v60, 16  ;;  %v1277_v1 = vshll.u32 %v1023_v60, 16  ;;  %v725_v7 = vshrl.u32 %v7135_v43, 16  ;;  %v897_v21 = vld [vmem:[#allocation2 + $0x14] sm:$0x1] }
  0x2b   : > { %v1267_v4 = vrot.slane %v1266_v58, 4  ;;  %v728_v9 = vshll.u32 %v7135_v43, 16  ;;  %v585_v14 = vor.u32 %v583_v57, %v582_v2  ;;  %436 = vst [vmem:[#allocation2 + $0x78] sm:$0x1] %v435_v6  ;;  %v587_v25 = vrot.slane %v582_v2, 4  ;;  %v508_v44 = vld [vmem:[%s7054_s12 + $0x18] sm:$0xff] }
  0x2c   : > { %v1262_v10 = vsel %vm7114_vm13, %v1257_v63, %v1261_v48  ;;  %v1024_v11 = vld [vmem:[#allocation2 + $0x70] sm:$0xf]  ;;  %v1276_v12 = vrot.slane %v1274_v0, 4  ;;  %v1279_v13 = vrot.slane %v1277_v1, 5  ;;  %v727_v33 = vrot.slane %v725_v7, 7  ;;  %v526_v60 = vld [vmem:[%s7054_s12 + $0xa8] sm:$0xff] }
  0x2d   : > { %v1272_v17 = vsel %vm7114_vm13, %v1267_v4, %v1271_v54  ;;  %v1459_v18 = vunpack.c.l.b16 %v1262_v10  ;;  %v1283_v19 = vshll.u32 %v1024_v11, 16  ;;  %v1287_v20 = vshrl.u32 %v1024_v11, 16  ;;  %895 = vst [vmem:[#allocation2 + $0xc] sm:$0xf] %v894_v32  ;;  %v6707_v45 = vld [vmem:[#allocation2 + $0x6c] sm:$0xff] }
  0x2e   : > { %v1460_v22 = vunpack.c.l.b16 %v1272_v17  ;;  %v1280_v23 = vor.u32 %v1279_v13, %v1276_v12  ;;  %v586_v24 = vsel %vm7081_vm10, %v578_v62, %v585_v14  ;;  %v898_v37 = vsel %vm7029_vm3, %v587_v25, %v897_v21  ;;  %v437_v50 = vld [vmem:[#allocation2 + $0x84] sm:$0x1] }
  0x2f   : > { %v1285_v29 = vrot.slane %v1283_v19, 5  ;;  %v1289_v30 = vrot.slane %v1287_v20, 4  ;;  %896 = vst.msk [vmem:[#allocation2 + $0x10] sm:$0xf] %vm394_vm6, %v586_v24  ;;  %v733_v38 = vshrl.u32 %v7138_v47, 16  ;;  %v730_v42 = vor.u32 %v728_v9, %v727_v33 }
  0x30   : > { %v1483_v35 = vpack.c.b16 %v1460_v22, %v1459_v18  ;;  %v1281_v36 = vrot.slane %v1280_v23, 4  ;;  %v1047_v40 = vld [vmem:[#allocation2 + $0x74] sm:$0x1]  ;;  %899 = vst [vmem:[#allocation2 + $0x14] sm:$0x1] %v898_v37  ;;  %v736_v43 = vshll.u32 %v7138_v47, 16  ;;  %v539_v59 = vpack.c.bf16 %v507_v34, %v507_v34 }
  0x31   : > { %v1290_v41 = vor.u32 %v1289_v30, %v1285_v29  ;;  %v1293_v46 = vshll.u32 %v1047_v40, 16  ;;  %v731_v48 = vrot.slane %v727_v33, 4  ;;  %v735_v49 = vrot.slane %v733_v38, 7  ;;  %v525_v47 = vld [vmem:[%s7054_s12 + $0xa0] sm:$0xff] }
  0x32   : > { %6263 = vmatmul.msk.bf16.vlgmr.msra.gmra.mxu2 %vm1491_vm11, %v1483_v35  ;;  %v1286_v51 = vsel %vm7114_vm13, %v1281_v36, %v1285_v29  ;;  %v485_v53 = vsel %vm7037_vm5, 0, %v484_v27  ;;  %v411_v54 = vsel %vm7029_vm3, 0, %v410_v28  ;;  %v956_v58 = vld [vmem:[#allocation2 + $0x78] sm:$0xf]  ;;  %v461_v62 = vsel %vm7037_vm5, 0, %v460_v39 }
  0x33   : > { %v1291_v52 = vrot.slane %v1290_v41, 4  ;;  %v1295_v55 = vrot.slane %v1293_v46, 5  ;;  %v738_v56 = vor.u32 %v736_v43, %v735_v49  ;;  %v740_v57 = vrot.slane %v735_v49, 4  ;;  %486 = vst [vmem:[#allocation2 + $0x80] sm:$0x1] %v485_v53  ;;  %v509_v41 = vld [vmem:[%s7054_s12 + $0x20] sm:$0xff] }
  0x34   : > { %v957_v61 = vsel %vm7090_vm12, %v730_v42, %v956_v58  ;;  %412 = vst [vmem:[#allocation2 + $0x18] sm:$0x1] %v411_v54  ;;  %v540_v63 = vpack.c.bf16 %v508_v44, %v508_v44  ;;  %v438_v0 = vsel %vm7029_vm3, 0, %v437_v50  ;;  %6344 = vmatmul.msk.bf16.gmra.mxu3 %vm1491_vm11, %v6707_v45  ;;  %v589_v6 = vshrl.u32 %v539_v59, 16  ;;  %v1007_v10 = vld [vmem:[#allocation2 + $0xc] sm:$0xf] }
  0x35   : > { %v1296_v1 = vsel %vm7114_vm13, %v1291_v52, %v1295_v55  ;;  %v739_v4 = vsel %vm7081_vm10, %v731_v48, %v738_v56  ;;  %958 = vst [vmem:[#allocation2 + $0x78] sm:$0xf] %v957_v61  ;;  %v592_v7 = vshll.u32 %v539_v59, 16  ;;  %v7182_v9 = vunpack.c.l.b16 %v1286_v51  ;;  %v510_v61 = vld [vmem:[%s7054_s12 + $0x28] sm:$0xff] }
  0x36   : > { %v1008_v2 = vld [vmem:[#allocation2 + $0x10] sm:$0xf]  ;;  %v597_v14 = vshrl.u32 %v540_v63, 16  ;;  %v1462_v15 = vunpack.c.l.b16 %v1296_v1  ;;  %v1082_v18 = vshrl.u32 %v1007_v10, 16  ;;  %v1085_v19 = vshll.u32 %v1007_v10, 16 }
  0x37   : > { %v1091_v11 = vshll.u32 %v1008_v2, 16  ;;  %v1095_v12 = vshrl.u32 %v1008_v2, 16  ;;  %v6699_v13 = vld [vmem:[#allocation2 + $0xc] sm:$0xff]  ;;  %v1039_v17 = vld [vmem:[#allocation2 + $0x14] sm:$0x1]  ;;  %v7185_v20 = vpack.c.bf16 %v525_v47, %v525_v47  ;;  %v7188_v24 = vpack.c.bf16 %v526_v60, %v526_v60 }
  0x38   : > { %959 = vst.msk [vmem:[#allocation2 + $0x7c] sm:$0xf] %vm394_vm6, %v739_v4  ;;  %v1101_v23 = vshll.u32 %v1039_v17, 16  ;;  %6336 = vmatmul.msk.bf16.gmra.mxu1 %vm1491_vm11, %v6699_v13  ;;  %v1084_v25 = vrot.slane %v1082_v18, 4  ;;  %v1087_v27 = vrot.slane %v1085_v19, 5  ;;  %v591_v28 = vrot.slane %v589_v6, 7 }
  0x39   : > { %v1093_v21 = vrot.slane %v1091_v11, 5  ;;  %v1097_v22 = vrot.slane %v1095_v12, 4  ;;  %462 = vst [vmem:[#allocation2 + $0x20] sm:$0x1] %v461_v62  ;;  %v599_v29 = vrot.slane %v597_v14, 7  ;;  %v600_v34 = vshll.u32 %v540_v63, 16 }
  0x3a   : > { %439 = vst [vmem:[#allocation2 + $0x84] sm:$0x1] %v438_v0  ;;  %v1103_v32 = vrot.slane %v1101_v23, 5  ;;  %v960_v33 = vld [vmem:[#allocation2 + $0x80] sm:$0x1]  ;;  %v742_v35 = vshrl.u32 %v7185_v20, 16  ;;  %v1088_v36 = vor.u32 %v1087_v27, %v1084_v25  ;;  %v594_v38 = vor.u32 %v592_v7, %v591_v28 }
  0x3b   : > { %v1098_v30 = vor.u32 %v1097_v22, %v1093_v21  ;;  %v961_v37 = vsel %vm7029_vm3, %v740_v57, %v960_v33  ;;  %v595_v39 = vrot.slane %v591_v28, 4  ;;  %v900_v40 = vld [vmem:[#allocation2 + $0x18] sm:$0xf]  ;;  %v1484_v42 = vpack.c.b16 %v1462_v15, %v7182_v9  ;;  %v487_v2 = vld [vmem:[#allocation2 + $0x8c] sm:$0x1] }
  0x3c   : > { %962 = vst [vmem:[#allocation2 + $0x80] sm:$0x1] %v961_v37  ;;  %v1025_v44 = vld [vmem:[#allocation2 + $0x78] sm:$0xf]  ;;  %v602_v45 = vor.u32 %v600_v34, %v599_v29  ;;  %v604_v46 = vrot.slane %v599_v29, 4  ;;  %v1089_v48 = vrot.slane %v1088_v36, 4  ;;  %v901_v51 = vsel %vm7090_vm12, %v594_v38, %v900_v40 }
  0x3d   : > { %v1099_v43 = vrot.slane %v1098_v30, 4  ;;  %v1298_v49 = vshrl.u32 %v1025_v44, 16  ;;  %v1301_v50 = vshll.u32 %v1025_v44, 16  ;;  %902 = vst [vmem:[#allocation2 + $0x18] sm:$0xf] %v901_v51  ;;  %v744_v47 = vrot.slane %v742_v35, 7 }
  0x3e   : > { %v603_v54 = vsel %vm7081_vm10, %v595_v39, %v602_v45  ;;  %v7201_v55 = vpack.c.bf16 %v509_v41, %v509_v41  ;;  %v1094_v56 = vsel %vm7114_vm13, %v1089_v48, %v1093_v21  ;;  %v413_v4 = vld [vmem:[#allocation2 + $0x24] sm:$0x1]  ;;  %v745_v9 = vshll.u32 %v7185_v20, 16  ;;  %v463_v28 = vld [vmem:[#allocation2 + $0x2c] sm:$0x1] }
  0x3f   : > { %v1104_v52 = vsel %vm7114_vm13, %v1099_v43, %v1103_v32  ;;  %v1026_v53 = vld [vmem:[#allocation2 + $0x7c] sm:$0xf]  ;;  %v1300_v58 = vrot.slane %v1298_v49, 4  ;;  %v1303_v59 = vrot.slane %v1301_v50, 5  ;;  %903 = vst.msk [vmem:[#allocation2 + $0x1c] sm:$0xf] %vm394_vm6, %v603_v54  ;;  %v1445_v62 = vunpack.c.l.b16 %v1094_v56 }
  0x40   : > { %v1446_v57 = vunpack.c.l.b16 %v1104_v52  ;;  %v904_v60 = vld [vmem:[#allocation2 + $0x20] sm:$0x1]  ;;  %v1307_v63 = vshll.u32 %v1026_v53, 16  ;;  %v1311_v0 = vshrl.u32 %v1026_v53, 16  ;;  %v6708_v6 = vld [vmem:[#allocation2 + $0x78] sm:$0xff]  ;;  %v748_v10 = vrot.slane %v744_v47, 4 }
  0x41   : > { %v905_v1 = vsel %vm7029_vm3, %v604_v46, %v904_v60  ;;  %v1304_v7 = vor.u32 %v1303_v59, %v1300_v58  ;;  %v750_v11 = vshrl.u32 %v7188_v24, 16  ;;  %v753_v15 = vshll.u32 %v7188_v24, 16  ;;  %v963_v17 = vld [vmem:[#allocation2 + $0x84] sm:$0xf]  ;;  %v527_v35 = vld [vmem:[%s7054_s12 + $0xb0] sm:$0xff]  ;;  %v528_v56 = vld [vmem:[%s7054_s12 + $0xb8] sm:$0xff] }
  0x42   : > { %6264 = vmatmul.msk.bf16.gmra.mxu2 %vm1491_vm11, %v1484_v42  ;;  %906 = vst [vmem:[#allocation2 + $0x20] sm:$0x1] %v905_v1  ;;  %v1476_v12 = vpack.c.b16 %v1446_v57, %v1445_v62  ;;  %v1309_v13 = vrot.slane %v1307_v63, 5  ;;  %v1313_v14 = vrot.slane %v1311_v0, 4  ;;  %v747_v21 = vor.u32 %v745_v9, %v744_v47 }
  0x43   : > { %v1048_v18 = vld [vmem:[#allocation2 + $0x80] sm:$0x1]  ;;  %v1305_v19 = vrot.slane %v1304_v7, 4  ;;  %v752_v22 = vrot.slane %v750_v11, 7  ;;  %v488_v23 = vsel %vm7037_vm5, 0, %v487_v2  ;;  %v414_v27 = vsel %vm7029_vm3, 0, %v413_v4 }
  0x44   : > { %6256 = vmatmul.msk.bf16.gmra.mxu0 %vm1491_vm11, %v1476_v12  ;;  %v1314_v20 = vor.u32 %v1313_v14, %v1309_v13  ;;  %v1317_v25 = vshll.u32 %v1048_v18, 16  ;;  %489 = vst [vmem:[#allocation2 + $0x8c] sm:$0x1] %v488_v23  ;;  %v542_v29 = vpack.c.bf16 %v510_v61, %v510_v61  ;;  %6345 = vmatmul.msk.bf16.gmra.mxu3 %vm1491_vm11, %v6708_v6  ;;  %v1009_v30 = vld [vmem:[#allocation2 + $0x18] sm:$0xf]  ;;  %v464_v50 = vsel %vm7037_vm5, 0, %v463_v28 }
  0x45   : > { %v1310_v24 = vsel %vm7114_vm13, %v1305_v19, %v1309_v13  ;;  %v755_v32 = vor.u32 %v753_v15, %v752_v22  ;;  %v757_v33 = vrot.slane %v752_v22, 4  ;;  %v964_v34 = vsel %vm7090_vm12, %v747_v21, %v963_v17  ;;  %415 = vst [vmem:[#allocation2 + $0x24] sm:$0x1] %v414_v27  ;;  %v440_v61 = vld [vmem:[#allocation2 + $0x90] sm:$0x1] }
  0x46   : > { %v1315_v36 = vrot.slane %v1314_v20, 4  ;;  %v1319_v37 = vrot.slane %v1317_v25, 5  ;;  %v1463_v38 = vunpack.c.l.b16 %v1310_v24  ;;  %v1010_v39 = vld [vmem:[#allocation2 + $0x1c] sm:$0xf]  ;;  %v1106_v40 = vshrl.u32 %v1009_v30, 16 }
  0x47   : > { %v6700_v41 = vld [vmem:[#allocation2 + $0x18] sm:$0xff]  ;;  %v1109_v42 = vshll.u32 %v1009_v30, 16  ;;  %v1115_v43 = vshll.u32 %v1010_v39, 16  ;;  %v1119_v44 = vshrl.u32 %v1010_v39, 16  ;;  %v756_v45 = vsel %vm7081_vm10, %v748_v10, %v755_v32  ;;  %965 = vst [vmem:[#allocation2 + $0x84] sm:$0xf] %v964_v34 }
  0x48   : > { %v1320_v46 = vsel %vm7114_vm13, %v1315_v36, %v1319_v37  ;;  %v1108_v49 = vrot.slane %v1106_v40, 4  ;;  %6337 = vmatmul.msk.bf16.gmra.mxu1 %vm1491_vm11, %v6700_v41  ;;  %966 = vst.msk [vmem:[#allocation2 + $0x88] sm:$0xf] %vm394_vm6, %v756_v45  ;;  %v7232_v51 = vpack.c.bf16 %v527_v35, %v527_v35  ;;  %v606_v58 = vshrl.u32 %v7201_v55, 16  ;;  %v490_v32 = vld [vmem:[#allocation2 + $0x98] sm:$0x1] }
  0x49   : > { %v1040_v48 = vld [vmem:[#allocation2 + $0x20] sm:$0x1]  ;;  %v1464_v52 = vunpack.c.l.b16 %v1320_v46  ;;  %v1111_v53 = vrot.slane %v1109_v42, 5  ;;  %v1117_v54 = vrot.slane %v1115_v43, 5  ;;  %v1121_v47 = vrot.slane %v1119_v44, 4  ;;  %v511_v39 = vld [vmem:[%s7054_s12 + $0x30] sm:$0xff] }
  0x4a   : > { %465 = vst [vmem:[#allocation2 + $0x2c] sm:$0x1] %v464_v50  ;;  %v1125_v57 = vshll.u32 %v1040_v48, 16  ;;  %v609_v59 = vshll.u32 %v7201_v55, 16  ;;  %v614_v60 = vshrl.u32 %v542_v29, 16  ;;  %v617_v2 = vshll.u32 %v542_v29, 16 }
  0x4b   : > { %v1485_v62 = vpack.c.b16 %v1464_v52, %v1463_v38  ;;  %v1112_v63 = vor.u32 %v1111_v53, %v1108_v49  ;;  %v1122_v0 = vor.u32 %v1121_v47, %v1117_v54  ;;  %v967_v1 = vld [vmem:[#allocation2 + $0x8c] sm:$0x1]  ;;  %v608_v7 = vrot.slane %v606_v58, 7  ;;  %v416_v38 = vld [vmem:[#allocation2 + $0x30] sm:$0x1] }
  0x4c   : > { %v1127_v4 = vrot.slane %v1125_v57, 5  ;;  %v968_v6 = vsel %vm7029_vm3, %v757_v33, %v967_v1  ;;  %v616_v9 = vrot.slane %v614_v60, 7  ;;  %v907_v10 = vld [vmem:[#allocation2 + $0x24] sm:$0xf]  ;;  %v441_v55 = vsel %vm7029_vm3, 0, %v440_v61 }
  0x4d   : > { %v1113_v11 = vrot.slane %v1112_v63, 4  ;;  %v1123_v12 = vrot.slane %v1122_v0, 4  ;;  %969 = vst [vmem:[#allocation2 + $0x8c] sm:$0x1] %v968_v6  ;;  %v560_v13 = vpack.c.bf16 %v528_v56, %v528_v56  ;;  %v611_v15 = vor.u32 %v609_v59, %v608_v7  ;;  %v466_v44 = vld [vmem:[#allocation2 + $0x38] sm:$0x1] }
  0x4e   : > { %v1027_v14 = vld [vmem:[#allocation2 + $0x84] sm:$0xf]  ;;  %v612_v17 = vrot.slane %v608_v7, 4  ;;  %v619_v18 = vor.u32 %v617_v2, %v616_v9  ;;  %v621_v19 = vrot.slane %v616_v9, 4  ;;  %442 = vst [vmem:[#allocation2 + $0x90] sm:$0x1] %v441_v55  ;;  %v543_v60 = vpack.c.bf16 %v511_v39, %v511_v39 }
  0x4f   : > { %v1118_v21 = vsel %vm7114_vm13, %v1113_v11, %v1117_v54  ;;  %v1128_v22 = vsel %vm7114_vm13, %v1123_v12, %v1127_v4  ;;  %v1028_v23 = vld [vmem:[#allocation2 + $0x88] sm:$0xf]  ;;  %v1322_v20 = vshrl.u32 %v1027_v14, 16  ;;  %v1325_v25 = vshll.u32 %v1027_v14, 16  ;;  %v512_v59 = vld [vmem:[%s7054_s12 + $0x38] sm:$0xff]  ;;  %v529_v11 = vld [vmem:[%s7054_s12 + $0xc0] sm:$0xff] }
  0x50   : > { %v1447_v27 = vunpack.c.l.b16 %v1118_v21  ;;  %v1448_v28 = vunpack.c.l.b16 %v1128_v22  ;;  %v1331_v29 = vshll.u32 %v1028_v23, 16  ;;  %v1335_v24 = vshrl.u32 %v1028_v23, 16  ;;  %v6709_v33 = vld [vmem:[#allocation2 + $0x84] sm:$0xff] }
  0x51   : > { %v911_v30 = vld [vmem:[#allocation2 + $0x2c] sm:$0x1]  ;;  %v1324_v34 = vrot.slane %v1322_v20, 4  ;;  %v1327_v35 = vrot.slane %v1325_v25, 5  ;;  %v620_v36 = vsel %vm7081_vm10, %v612_v17, %v619_v18  ;;  %v908_v37 = vsel %vm7090_vm12, %v611_v15, %v907_v10  ;;  %v530_v12 = vld [vmem:[%s7054_s12 + $0xc8] sm:$0xff] }
  0x52   : > { %6265 = vmatmul.msk.bf16.gmra.mxu2 %vm1491_vm11, %v1485_v62  ;;  %v1477_v40 = vpack.c.b16 %v1448_v28, %v1447_v27  ;;  %v1333_v41 = vrot.slane %v1331_v29, 5  ;;  %v1337_v42 = vrot.slane %v1335_v24, 4  ;;  %909 = vst [vmem:[#allocation2 + $0x24] sm:$0xf] %v908_v37  ;;  %v912_v43 = vsel %vm7029_vm3, %v621_v19, %v911_v30  ;;  %v443_v29 = vld [vmem:[#allocation2 + $0x9c] sm:$0x1] }
  0x53   : > { %v1328_v45 = vor.u32 %v1327_v35, %v1324_v34  ;;  %910 = vst.msk [vmem:[#allocation2 + $0x28] sm:$0xf] %vm394_vm6, %v620_v36  ;;  %v759_v46 = vshrl.u32 %v7232_v51, 16  ;;  %v762_v48 = vshll.u32 %v7232_v51, 16  ;;  %v767_v49 = vshrl.u32 %v560_v13, 16 }
  0x54   : > { %6257 = vmatmul.msk.bf16.gmra.mxu0 %vm1491_vm11, %v1477_v40  ;;  %v1049_v50 = vld [vmem:[#allocation2 + $0x8c] sm:$0x1]  ;;  %v1338_v52 = vor.u32 %v1337_v42, %v1333_v41  ;;  %913 = vst [vmem:[#allocation2 + $0x2c] sm:$0x1] %v912_v43  ;;  %v770_v53 = vshll.u32 %v560_v13, 16  ;;  %v491_v54 = vsel %vm7037_vm5, 0, %v490_v32  ;;  %6346 = vmatmul.msk.bf16.gmra.mxu3 %vm1491_vm11, %v6709_v33  ;;  %v544_v10 = vpack.c.bf16 %v512_v59, %v512_v59 }
  0x55   : > { %v1329_v47 = vrot.slane %v1328_v45, 4  ;;  %v1341_v56 = vshll.u32 %v1049_v50, 16  ;;  %v761_v57 = vrot.slane %v759_v46, 7  ;;  %v970_v58 = vld [vmem:[#allocation2 + $0x90] sm:$0xf]  ;;  %v769_v61 = vrot.slane %v767_v49, 7 }
  0x56   : > { %v1339_v51 = vrot.slane %v1338_v52, 4  ;;  %492 = vst [vmem:[#allocation2 + $0x98] sm:$0x1] %v491_v54  ;;  %v417_v62 = vsel %vm7029_vm3, 0, %v416_v38  ;;  %v467_v63 = vsel %vm7037_vm5, 0, %v466_v44  ;;  %v623_v15 = vshrl.u32 %v543_v60, 16 }
  0x57   : > { %v1334_v0 = vsel %vm7114_vm13, %v1329_v47, %v1333_v41  ;;  %v1343_v1 = vrot.slane %v1341_v56, 5  ;;  %v764_v2 = vor.u32 %v762_v48, %v761_v57  ;;  %v765_v4 = vrot.slane %v761_v57, 4  ;;  %418 = vst [vmem:[#allocation2 + $0x30] sm:$0x1] %v417_v62 }
  0x58   : > { %v1465_v6 = vunpack.c.l.b16 %v1334_v0  ;;  %v772_v7 = vor.u32 %v770_v53, %v769_v61  ;;  %v774_v9 = vrot.slane %v769_v61, 4  ;;  %468 = vst [vmem:[#allocation2 + $0x38] sm:$0x1] %v467_v63  ;;  %v626_v17 = vshll.u32 %v543_v60, 16 }
  0x59   : > { %v1344_v55 = vsel %vm7114_vm13, %v1339_v51, %v1343_v1  ;;  %v1011_v13 = vld [vmem:[#allocation2 + $0x24] sm:$0xf]  ;;  %v971_v14 = vsel %vm7090_vm12, %v764_v2, %v970_v58  ;;  %v561_v24 = vpack.c.bf16 %v529_v11, %v529_v11  ;;  %v7275_v30 = vpack.c.bf16 %v530_v12, %v530_v12 }
  0x5a   : > { %v1466_v18 = vunpack.c.l.b16 %v1344_v55  ;;  %v1012_v19 = vld [vmem:[#allocation2 + $0x28] sm:$0xf]  ;;  %v1130_v21 = vshrl.u32 %v1011_v13, 16  ;;  %v1133_v22 = vshll.u32 %v1011_v13, 16  ;;  %v773_v20 = vsel %vm7081_vm10, %v765_v4, %v772_v7  ;;  %972 = vst [vmem:[#allocation2 + $0x90] sm:$0xf] %v971_v14 }
  0x5b   : > { %v6701_v23 = vld [vmem:[#allocation2 + $0x24] sm:$0xff]  ;;  %v1041_v25 = vld [vmem:[#allocation2 + $0x2c] sm:$0x1]  ;;  %v1139_v27 = vshll.u32 %v1012_v19, 16  ;;  %v1143_v28 = vshrl.u32 %v1012_v19, 16  ;;  %v625_v39 = vrot.slane %v623_v15, 7 }
  0x5c   : > { %v1486_v32 = vpack.c.b16 %v1466_v18, %v1465_v6  ;;  %v1132_v33 = vrot.slane %v1130_v21, 4  ;;  %v1135_v34 = vrot.slane %v1133_v22, 5  ;;  %v1149_v35 = vshll.u32 %v1041_v25, 16  ;;  %6338 = vmatmul.msk.bf16.gmra.mxu1 %vm1491_vm11, %v6701_v23  ;;  %973 = vst.msk [vmem:[#allocation2 + $0x94] sm:$0xf] %vm394_vm6, %v773_v20  ;;  %v513_v55 = vld [vmem:[%s7054_s12 + $0x40] sm:$0xff] }
  0x5d   : > { %v1141_v36 = vrot.slane %v1139_v27, 5  ;;  %v1145_v37 = vrot.slane %v1143_v28, 4  ;;  %v974_v38 = vld [vmem:[#allocation2 + $0x98] sm:$0x1]  ;;  %v631_v40 = vshrl.u32 %v544_v10, 16  ;;  %v634_v44 = vshll.u32 %v544_v10, 16 }
  0x5e   : > { %v1136_v41 = vor.u32 %v1135_v34, %v1132_v33  ;;  %v1151_v42 = vrot.slane %v1149_v35, 5  ;;  %v975_v43 = vsel %vm7029_vm3, %v774_v9, %v974_v38  ;;  %v914_v45 = vld [vmem:[#allocation2 + $0x30] sm:$0xf]  ;;  %v628_v48 = vor.u32 %v626_v17, %v625_v39  ;;  %v514_v13 = vld [vmem:[%s7054_s12 + $0x48] sm:$0xff] }
  0x5f   : > { %v1146_v46 = vor.u32 %v1145_v37, %v1141_v36  ;;  %976 = vst [vmem:[#allocation2 + $0x98] sm:$0x1] %v975_v43  ;;  %v629_v49 = vrot.slane %v625_v39, 4  ;;  %v633_v50 = vrot.slane %v631_v40, 7  ;;  %v444_v53 = vsel %vm7029_vm3, 0, %v443_v29 }
  0x60   : > { %v1137_v52 = vrot.slane %v1136_v41, 4  ;;  %v776_v54 = vshrl.u32 %v561_v24, 16  ;;  %v779_v47 = vshll.u32 %v561_v24, 16  ;;  %v915_v59 = vsel %vm7090_vm12, %v628_v48, %v914_v45  ;;  %v918_v60 = vld [vmem:[#allocation2 + $0x38] sm:$0x1] }
  0x61   : > { %v1147_v56 = vrot.slane %v1146_v46, 4  ;;  %v636_v57 = vor.u32 %v634_v44, %v633_v50  ;;  %v638_v58 = vrot.slane %v633_v50, 4  ;;  %445 = vst [vmem:[#allocation2 + $0x9c] sm:$0x1] %v444_v53  ;;  %v1029_v61 = vld [vmem:[#allocation2 + $0x90] sm:$0xf] }
  0x62   : > { %6266 = vmatmul.msk.bf16.gmra.mxu2 %vm1491_vm11, %v1486_v32  ;;  %v1142_v51 = vsel %vm7114_vm13, %v1137_v52, %v1141_v36  ;;  %916 = vst [vmem:[#allocation2 + $0x30] sm:$0xf] %v915_v59  ;;  %v7288_v62 = vrot.slane %v776_v54, 7  ;;  %v784_v63 = vshrl.u32 %v7275_v30, 16  ;;  %v1346_v6 = vshrl.u32 %v1029_v61, 16  ;;  %v531_v52 = vld [vmem:[%s7054_s12 + $0xd0] sm:$0xff] }
  0x63   : > { %v1152_v0 = vsel %vm7114_vm13, %v1147_v56, %v1151_v42  ;;  %v1449_v1 = vunpack.c.l.b16 %v1142_v51  ;;  %v6710_v2 = vld [vmem:[#allocation2 + $0x90] sm:$0xff]  ;;  %v1349_v7 = vshll.u32 %v1029_v61, 16  ;;  %v637_v12 = vsel %vm7081_vm10, %v629_v49, %v636_v57  ;;  %v493_v19 = vld [vmem:[#allocation2 + $0xa4] sm:$0x1]  ;;  %v419_v29 = vld [vmem:[#allocation2 + $0x3c] sm:$0x1] }
  0x64   : > { %v1030_v4 = vld [vmem:[#allocation2 + $0x94] sm:$0xf]  ;;  %v1450_v9 = vunpack.c.l.b16 %v1152_v0  ;;  %6347 = vmatmul.msk.bf16.gmra.mxu3 %vm1491_vm11, %v6710_v2  ;;  %v1348_v14 = vrot.slane %v1346_v6, 4  ;;  %917 = vst.msk [vmem:[#allocation2 + $0x34] sm:$0xf] %vm394_vm6, %v637_v12  ;;  %v919_v17 = vsel %vm7029_vm3, %v638_v58, %v918_v60  ;;  %v781_v18 = vor.u32 %v779_v47, %v7288_v62 }
  0x65   : > { %v1355_v10 = vshll.u32 %v1030_v4, 16  ;;  %v1359_v11 = vshrl.u32 %v1030_v4, 16  ;;  %v1351_v15 = vrot.slane %v1349_v7, 5  ;;  %920 = vst [vmem:[#allocation2 + $0x38] sm:$0x1] %v919_v17  ;;  %v782_v28 = vrot.slane %v7288_v62, 4 }
  0x66   : > { %v1478_v21 = vpack.c.b16 %v1450_v9, %v1449_v1  ;;  %v1050_v22 = vld [vmem:[#allocation2 + $0x98] sm:$0x1]  ;;  %v469_v24 = vld [vmem:[#allocation2 + $0x44] sm:$0x1]  ;;  %v7303_v32 = vpack.c.bf16 %v513_v55, %v513_v55  ;;  %v786_v34 = vrot.slane %v784_v63, 7  ;;  %v787_v35 = vshll.u32 %v7275_v30, 16 }
  0x67   : > { %v1357_v23 = vrot.slane %v1355_v10, 5  ;;  %v1361_v20 = vrot.slane %v1359_v11, 4  ;;  %v1352_v25 = vor.u32 %v1351_v15, %v1348_v14  ;;  %v1365_v27 = vshll.u32 %v1050_v22, 16  ;;  %v446_v2 = vld [vmem:[#allocation2 + $0xa8] sm:$0x1]  ;;  %v532_v22 = vld [vmem:[%s7054_s12 + $0xd8] sm:$0xff] }
  0x68   : > { %6258 = vmatmul.msk.bf16.gmra.mxu0 %vm1491_vm11, %v1478_v21  ;;  %v977_v36 = vld [vmem:[#allocation2 + $0x9c] sm:$0xf]  ;;  %v494_v37 = vsel %vm7037_vm5, 0, %v493_v19  ;;  %v7311_v42 = vpack.c.bf16 %v514_v13, %v514_v13  ;;  %v789_v46 = vor.u32 %v787_v35, %v786_v34  ;;  %v791_v48 = vrot.slane %v786_v34, 4 }
  0x69   : > { %v1362_v33 = vor.u32 %v1361_v20, %v1357_v23  ;;  %v1353_v38 = vrot.slane %v1352_v25, 4  ;;  %v1367_v39 = vrot.slane %v1365_v27, 5  ;;  %v1013_v40 = vld [vmem:[#allocation2 + $0x30] sm:$0xf]  ;;  %v978_v41 = vsel %vm7090_vm12, %v781_v18, %v977_v36  ;;  %495 = vst [vmem:[#allocation2 + $0xa4] sm:$0x1] %v494_v37 }
  0x6a   : > { %v1154_v44 = vshrl.u32 %v1013_v40, 16  ;;  %v1157_v45 = vshll.u32 %v1013_v40, 16  ;;  %979 = vst [vmem:[#allocation2 + $0x9c] sm:$0xf] %v978_v41  ;;  %v420_v49 = vsel %vm7029_vm3, 0, %v419_v29  ;;  %v470_v50 = vsel %vm7037_vm5, 0, %v469_v24 }
  0x6b   : > { %v1363_v43 = vrot.slane %v1362_v33, 4  ;;  %v1358_v30 = vsel %vm7114_vm13, %v1353_v38, %v1357_v23  ;;  %v1014_v47 = vld [vmem:[#allocation2 + $0x34] sm:$0xf]  ;;  %v790_v62 = vsel %vm7081_vm10, %v782_v28, %v789_v46  ;;  %421 = vst [vmem:[#allocation2 + $0x3c] sm:$0x1] %v420_v49  ;;  %v640_v1 = vshrl.u32 %v7303_v32, 16 }
  0x6c   : > { %v1467_v54 = vunpack.c.l.b16 %v1358_v30  ;;  %v1156_v56 = vrot.slane %v1154_v44, 4  ;;  %v1159_v57 = vrot.slane %v1157_v45, 5  ;;  %v6702_v58 = vld [vmem:[#allocation2 + $0x30] sm:$0xff]  ;;  %v1042_v60 = vld [vmem:[#allocation2 + $0x38] sm:$0x1]  ;;  %v1163_v51 = vshll.u32 %v1014_v47, 16 }
  0x6d   : > { %v1368_v53 = vsel %vm7114_vm13, %v1363_v43, %v1367_v39  ;;  %v1167_v61 = vshrl.u32 %v1014_v47, 16  ;;  %v1173_v0 = vshll.u32 %v1042_v60, 16  ;;  %6339 = vmatmul.msk.bf16.gmra.mxu1 %vm1491_vm11, %v6702_v58  ;;  %980 = vst.msk [vmem:[#allocation2 + $0xa0] sm:$0xf] %vm394_vm6, %v790_v62  ;;  %v563_v4 = vpack.c.bf16 %v531_v52, %v531_v52  ;;  %v515_v44 = vld [vmem:[%s7054_s12 + $0x50] sm:$0xff] }
  0x6e   : > { %v1468_v59 = vunpack.c.l.b16 %v1368_v53  ;;  %v1160_v63 = vor.u32 %v1159_v57, %v1156_v56  ;;  %v1165_v7 = vrot.slane %v1163_v51, 5  ;;  %471 = vst [vmem:[#allocation2 + $0x44] sm:$0x1] %v470_v50  ;;  %v643_v10 = vshll.u32 %v7303_v32, 16  ;;  %v496_v47 = vld [vmem:[#allocation2 + $0xb0] sm:$0x1] }
  0x6f   : > { %v1169_v9 = vrot.slane %v1167_v61, 4  ;;  %v1175_v12 = vrot.slane %v1173_v0, 5  ;;  %v642_v13 = vrot.slane %v640_v1, 7  ;;  %v648_v14 = vshrl.u32 %v7311_v42, 16  ;;  %v422_v56 = vld [vmem:[#allocation2 + $0x48] sm:$0x1] }
  0x70   : > { %v1487_v6 = vpack.c.b16 %v1468_v59, %v1467_v54  ;;  %v1161_v11 = vrot.slane %v1160_v63, 4  ;;  %v981_v55 = vld [vmem:[#allocation2 + $0xa4] sm:$0x1]  ;;  %v651_v19 = vshll.u32 %v7311_v42, 16  ;;  %v447_v21 = vsel %vm7029_vm3, 0, %v446_v2 }
  0x71   : > { %v1170_v15 = vor.u32 %v1169_v9, %v1165_v7  ;;  %v982_v17 = vsel %vm7029_vm3, %v791_v48, %v981_v55  ;;  %v1031_v18 = vld [vmem:[#allocation2 + $0x9c] sm:$0xf]  ;;  %v645_v27 = vor.u32 %v643_v10, %v642_v13  ;;  %v646_v24 = vrot.slane %v642_v13, 4  ;;  %448 = vst [vmem:[#allocation2 + $0xa8] sm:$0x1] %v447_v21 }
  0x72   : > { %6267 = vmatmul.msk.bf16.gmra.mxu2 %vm1491_vm11, %v1487_v6  ;;  %v1166_v23 = vsel %vm7114_vm13, %v1161_v11, %v1165_v7  ;;  %983 = vst [vmem:[#allocation2 + $0xa4] sm:$0x1] %v982_v17  ;;  %v1370_v20 = vshrl.u32 %v1031_v18, 16  ;;  %v1373_v25 = vshll.u32 %v1031_v18, 16  ;;  %v650_v32 = vrot.slane %v648_v14, 7  ;;  %v516_v7 = vld [vmem:[%s7054_s12 + $0x58] sm:$0xff] }
  0x73   : > { %v1171_v28 = vrot.slane %v1170_v15, 4  ;;  %v1451_v29 = vunpack.c.l.b16 %v1166_v23  ;;  %v921_v35 = vld [vmem:[#allocation2 + $0x3c] sm:$0xf]  ;;  %v564_v36 = vpack.c.bf16 %v532_v22, %v532_v22  ;;  %v793_v37 = vshrl.u32 %v563_v4, 16  ;;  %v472_v6 = vld [vmem:[#allocation2 + $0x50] sm:$0x1] }
  0x74   : > { %v1372_v33 = vrot.slane %v1370_v20, 4  ;;  %v1375_v34 = vrot.slane %v1373_v25, 5  ;;  %v6711_v39 = vld [vmem:[#allocation2 + $0x9c] sm:$0xff]  ;;  %v653_v41 = vor.u32 %v651_v19, %v650_v32  ;;  %v655_v42 = vrot.slane %v650_v32, 4 }
  0x75   : > { %v1176_v38 = vsel %vm7114_vm13, %v1171_v28, %v1175_v12  ;;  %v1032_v40 = vld [vmem:[#allocation2 + $0xa0] sm:$0xf]  ;;  %v922_v43 = vsel %vm7090_vm12, %v645_v27, %v921_v35  ;;  %v925_v49 = vld [vmem:[#allocation2 + $0x44] sm:$0x1]  ;;  %6348 = vmatmul.msk.bf16.gmra.mxu3 %vm1491_vm11, %v6711_v39  ;;  %v795_v53 = vrot.slane %v793_v37, 7  ;;  %v796_v54 = vshll.u32 %v563_v4, 16 }
  0x76   : > { %v1452_v45 = vunpack.c.l.b16 %v1176_v38  ;;  %v1376_v46 = vor.u32 %v1375_v34, %v1372_v33  ;;  %v1379_v30 = vshll.u32 %v1032_v40, 16  ;;  %v1383_v48 = vshrl.u32 %v1032_v40, 16  ;;  %923 = vst [vmem:[#allocation2 + $0x3c] sm:$0xf] %v922_v43 }
  0x77   : > { %v654_v50 = vsel %vm7081_vm10, %v646_v24, %v653_v41  ;;  %v926_v52 = vsel %vm7029_vm3, %v655_v42, %v925_v49  ;;  %v798_v61 = vor.u32 %v796_v54, %v795_v53  ;;  %v799_v62 = vrot.slane %v795_v53, 4  ;;  %v449_v49 = vld [vmem:[#allocation2 + $0xb4] sm:$0x1] }
  0x78   : > { %v1479_v57 = vpack.c.b16 %v1452_v45, %v1451_v29  ;;  %v1377_v58 = vrot.slane %v1376_v46, 4  ;;  %v1381_v59 = vrot.slane %v1379_v30, 5  ;;  %v1385_v60 = vrot.slane %v1383_v48, 4  ;;  %924 = vst.msk [vmem:[#allocation2 + $0x40] sm:$0xf] %vm394_vm6, %v654_v50  ;;  %v533_v29 = vld [vmem:[%s7054_s12 + $0xe0] sm:$0xff] }
  0x79   : > { %v1051_v51 = vld [vmem:[#allocation2 + $0xa4] sm:$0x1]  ;;  %927 = vst [vmem:[#allocation2 + $0x44] sm:$0x1] %v926_v52  ;;  %v801_v63 = vshrl.u32 %v564_v36, 16  ;;  %v547_v9 = vpack.c.bf16 %v515_v44, %v515_v44  ;;  %v804_v12 = vshll.u32 %v564_v36, 16  ;;  %v548_v23 = vpack.c.bf16 %v516_v7, %v516_v7 }
  0x7a   : > { %6259 = vmatmul.msk.bf16.gmra.mxu0 %vm1491_vm11, %v1479_v57  ;;  %v1382_v0 = vsel %vm7114_vm13, %v1377_v58, %v1381_v59  ;;  %v1386_v1 = vor.u32 %v1385_v60, %v1381_v59  ;;  %v1389_v2 = vshll.u32 %v1051_v51, 16  ;;  %v984_v4 = vld [vmem:[#allocation2 + $0xa8] sm:$0xf]  ;;  %v497_v15 = vsel %vm7037_vm5, 0, %v496_v47  ;;  %v534_v50 = vld [vmem:[%s7054_s12 + $0xe8] sm:$0xff] }
  0x7b   : > { %v1469_v10 = vunpack.c.l.b16 %v1382_v0  ;;  %v803_v11 = vrot.slane %v801_v63, 7  ;;  %v985_v55 = vsel %vm7090_vm12, %v798_v61, %v984_v4  ;;  %v423_v17 = vsel %vm7029_vm3, 0, %v422_v56  ;;  %498 = vst [vmem:[#allocation2 + $0xb0] sm:$0x1] %v497_v15 }
  0x7c   : > { %v1387_v13 = vrot.slane %v1386_v1, 4  ;;  %v1391_v14 = vrot.slane %v1389_v2, 5  ;;  %986 = vst [vmem:[#allocation2 + $0xa8] sm:$0xf] %v985_v55  ;;  %v473_v22 = vsel %vm7037_vm5, 0, %v472_v6  ;;  %v657_v28 = vshrl.u32 %v547_v9, 16 }
  0x7d   : > { %v1015_v18 = vld [vmem:[#allocation2 + $0x3c] sm:$0xf]  ;;  %v806_v19 = vor.u32 %v804_v12, %v803_v11  ;;  %v808_v21 = vrot.slane %v803_v11, 4  ;;  %424 = vst [vmem:[#allocation2 + $0x48] sm:$0x1] %v423_v17  ;;  %v660_v35 = vshll.u32 %v547_v9, 16  ;;  %v565_v44 = vpack.c.bf16 %v533_v29, %v533_v29 }
  0x7e   : > { %v1392_v20 = vsel %vm7114_vm13, %v1387_v13, %v1391_v14  ;;  %v1178_v25 = vshrl.u32 %v1015_v18, 16  ;;  %v1181_v27 = vshll.u32 %v1015_v18, 16  ;;  %474 = vst [vmem:[#allocation2 + $0x50] sm:$0x1] %v473_v22  ;;  %v659_v43 = vrot.slane %v657_v28, 7 }
  0x7f   : > { %v1470_v24 = vunpack.c.l.b16 %v1392_v20  ;;  %v7364_v32 = vld [vmem:[#allocation2 + $0x40] sm:$0xf]  ;;  %v807_v34 = vsel %vm7081_vm10, %v799_v62, %v806_v19  ;;  %v665_v48 = vshrl.u32 %v548_v23, 16  ;;  %v668_v56 = vshll.u32 %v548_v23, 16  ;;  %v499_v20 = vld [vmem:[#allocation2 + $0xbc] sm:$0x1] }
  0x80   : > { %v6703_v33 = vld [vmem:[#allocation2 + $0x3c] sm:$0xff]  ;;  %v7368_v36 = vld [vmem:[#allocation2 + $0x44] sm:$0x1]  ;;  %v1180_v37 = vrot.slane %v1178_v25, 4  ;;  %v1183_v38 = vrot.slane %v1181_v27, 5  ;;  %v1187_v39 = vshll.u32 %v7364_v32, 16  ;;  %v662_v54 = vor.u32 %v660_v35, %v659_v43 }
  0x81   : > { %v1191_v40 = vshrl.u32 %v7364_v32, 16  ;;  %v1488_v41 = vpack.c.b16 %v1470_v24, %v1469_v10  ;;  %v1197_v42 = vshll.u32 %v7368_v36, 16  ;;  %6340 = vmatmul.msk.bf16.gmra.mxu1 %vm1491_vm11, %v6703_v33  ;;  %987 = vst.msk [vmem:[#allocation2 + $0xac] sm:$0xf] %vm394_vm6, %v807_v34  ;;  %v663_v47 = vrot.slane %v659_v43, 4  ;;  %v517_v33 = vld [vmem:[%s7054_s12 + $0x60] sm:$0xff] }
  0x82   : > { %v1184_v45 = vor.u32 %v1183_v38, %v1180_v37  ;;  %v1189_v46 = vrot.slane %v1187_v39, 5  ;;  %v988_v59 = vld [vmem:[#allocation2 + $0xb0] sm:$0x1]  ;;  %v667_v62 = vrot.slane %v665_v48, 7  ;;  %v450_v0 = vsel %vm7029_vm3, 0, %v449_v49 }
  0x83   : > { %v1193_v30 = vrot.slane %v1191_v40, 4  ;;  %6268 = vmatmul.msk.bf16.gmra.mxu2 %vm1491_vm11, %v1488_v41  ;;  %v1199_v52 = vrot.slane %v1197_v42, 5  ;;  %v1033_v53 = vld [vmem:[#allocation2 + $0xa8] sm:$0xf]  ;;  %v989_v61 = vsel %vm7029_vm3, %v808_v21, %v988_v59  ;;  %v566_v1 = vpack.c.bf16 %v534_v50, %v534_v50  ;;  %451 = vst [vmem:[#allocation2 + $0xb4] sm:$0x1] %v450_v0 }
  0x84   : > { %v1185_v57 = vrot.slane %v1184_v45, 4  ;;  %v1394_v60 = vshrl.u32 %v1033_v53, 16  ;;  %v1397_v51 = vshll.u32 %v1033_v53, 16  ;;  %v928_v63 = vld [vmem:[#allocation2 + $0x48] sm:$0xf]  ;;  %v670_v10 = vor.u32 %v668_v56, %v667_v62  ;;  %v518_v53 = vld [vmem:[%s7054_s12 + $0x68] sm:$0xff] }
  0x85   : > { %v1194_v58 = vor.u32 %v1193_v30, %v1189_v46  ;;  %990 = vst [vmem:[#allocation2 + $0xb0] sm:$0x1] %v989_v61  ;;  %v672_v11 = vrot.slane %v667_v62, 4  ;;  %v929_v12 = vsel %vm7090_vm12, %v662_v54, %v928_v63  ;;  %v932_v55 = vld [vmem:[#allocation2 + $0x50] sm:$0x1]  ;;  %v810_v18 = vshrl.u32 %v565_v44, 16 }
  0x86   : > { %v1190_v2 = vsel %vm7114_vm13, %v1185_v57, %v1189_v46  ;;  %v1396_v6 = vrot.slane %v1394_v60, 4  ;;  %v1399_v7 = vrot.slane %v1397_v51, 5  ;;  %930 = vst [vmem:[#allocation2 + $0x48] sm:$0xf] %v929_v12  ;;  %v671_v23 = vsel %vm7081_vm10, %v663_v47, %v670_v10  ;;  %v425_v25 = vld [vmem:[#allocation2 + $0x54] sm:$0x1] }
  0x87   : > { %v1195_v4 = vrot.slane %v1194_v58, 4  ;;  %v1453_v9 = vunpack.c.l.b16 %v1190_v2  ;;  %931 = vst.msk [vmem:[#allocation2 + $0x4c] sm:$0xf] %vm394_vm6, %v671_v23  ;;  %v933_v28 = vsel %vm7029_vm3, %v672_v11, %v932_v55  ;;  %v812_v29 = vrot.slane %v810_v18, 7  ;;  %v475_v43 = vld [vmem:[#allocation2 + $0x5c] sm:$0x1] }
  0x88   : > { %v6712_v14 = vld [vmem:[#allocation2 + $0xa8] sm:$0xff]  ;;  %v1400_v17 = vor.u32 %v1399_v7, %v1396_v6  ;;  %v813_v24 = vshll.u32 %v565_v44, 16  ;;  %934 = vst [vmem:[#allocation2 + $0x50] sm:$0x1] %v933_v28  ;;  %v818_v38 = vshrl.u32 %v566_v1, 16  ;;  %v821_v41 = vshll.u32 %v566_v1, 16 }
  0x89   : > { %v1200_v13 = vsel %vm7114_vm13, %v1195_v4, %v1199_v52  ;;  %v1034_v15 = vld [vmem:[#allocation2 + $0xac] sm:$0xf]  ;;  %6349 = vmatmul.msk.bf16.gmra.mxu3 %vm1491_vm11, %v6712_v14  ;;  %v816_v40 = vrot.slane %v812_v29, 4  ;;  %v500_v42 = vsel %vm7037_vm5, 0, %v499_v20  ;;  %v426_v44 = vsel %vm7029_vm3, 0, %v425_v25 }
  0x8a   : > { %v1454_v19 = vunpack.c.l.b16 %v1200_v13  ;;  %v1403_v21 = vshll.u32 %v1034_v15, 16  ;;  %v1407_v22 = vshrl.u32 %v1034_v15, 16  ;;  %v1401_v27 = vrot.slane %v1400_v17, 4  ;;  %501 = vst [vmem:[#allocation2 + $0xbc] sm:$0x1] %v500_v42 }
  0x8b   : > { %v815_v39 = vor.u32 %v813_v24, %v812_v29  ;;  %v820_v30 = vrot.slane %v818_v38, 7  ;;  %v549_v48 = vpack.c.bf16 %v517_v33, %v517_v33  ;;  %v991_v52 = vld [vmem:[#allocation2 + $0xb4] sm:$0xf]  ;;  %427 = vst [vmem:[#allocation2 + $0x54] sm:$0x1] %v426_v44  ;;  %v476_v61 = vsel %vm7037_vm5, 0, %v475_v43 }
  0x8c   : > { %v1480_v34 = vpack.c.b16 %v1454_v19, %v1453_v9  ;;  %v1405_v35 = vrot.slane %v1403_v21, 5  ;;  %v1409_v37 = vrot.slane %v1407_v22, 4  ;;  %v1052_v45 = vld [vmem:[#allocation2 + $0xb0] sm:$0x1]  ;;  %477 = vst [vmem:[#allocation2 + $0x5c] sm:$0x1] %v476_v61  ;;  %v550_v2 = vpack.c.bf16 %v518_v53, %v518_v53 }
  0x8d   : > { %v1413_v50 = vshll.u32 %v1052_v45, 16  ;;  %v1017_v47 = vld [vmem:[#allocation2 + $0x48] sm:$0xf]  ;;  %v823_v56 = vor.u32 %v821_v41, %v820_v30  ;;  %v825_v57 = vrot.slane %v820_v30, 4  ;;  %v992_v58 = vsel %vm7090_vm12, %v815_v39, %v991_v52 }
  0x8e   : > { %6260 = vmatmul.msk.bf16.gmra.mxu0 %vm1491_vm11, %v1480_v34  ;;  %v1410_v46 = vor.u32 %v1409_v37, %v1405_v35  ;;  %v1406_v49 = vsel %vm7114_vm13, %v1401_v27, %v1405_v35  ;;  %v1202_v60 = vshrl.u32 %v1017_v47, 16  ;;  %v1205_v51 = vshll.u32 %v1017_v47, 16  ;;  %993 = vst [vmem:[#allocation2 + $0xb4] sm:$0xf] %v992_v58  ;;  %v7406_v63 = vld [vmem:[#allocation2 + $0x4c] sm:$0xf] }
  0x8f   : > { %v1415_v59 = vrot.slane %v1413_v50, 5  ;;  %v1471_v62 = vunpack.c.l.b16 %v1406_v49  ;;  %v6704_v0 = vld [vmem:[#allocation2 + $0x48] sm:$0xff]  ;;  %v824_v1 = vsel %vm7081_vm10, %v816_v40, %v823_v56  ;;  %v674_v4 = vshrl.u32 %v549_v48, 16  ;;  %v7412_v7 = vld [vmem:[#allocation2 + $0x50] sm:$0x1] }
  0x90   : > { %v1411_v54 = vrot.slane %v1410_v46, 4  ;;  %v1204_v9 = vrot.slane %v1202_v60, 4  ;;  %v1207_v10 = vrot.slane %v1205_v51, 5  ;;  %v1211_v11 = vshll.u32 %v7406_v63, 16  ;;  %994 = vst.msk [vmem:[#allocation2 + $0xb8] sm:$0xf] %vm394_vm6, %v824_v1 }
  0x91   : > { %v1215_v55 = vshrl.u32 %v7406_v63, 16  ;;  %v1221_v13 = vshll.u32 %v7412_v7, 16  ;;  %6341 = vmatmul.msk.bf16.gmra.mxu1 %vm1491_vm11, %v6704_v0  ;;  %v995_v17 = vld [vmem:[#allocation2 + $0xbc] sm:$0x1]  ;;  %v676_v18 = vrot.slane %v674_v4, 7  ;;  %v677_v19 = vshll.u32 %v549_v48, 16 }
  0x92   : > { %v1416_v6 = vsel %vm7114_vm13, %v1411_v54, %v1415_v59  ;;  %v1208_v14 = vor.u32 %v1207_v10, %v1204_v9  ;;  %v1213_v15 = vrot.slane %v1211_v11, 5  ;;  %v996_v23 = vsel %vm7029_vm3, %v825_v57, %v995_v17  ;;  %v935_v28 = vld [vmem:[#allocation2 + $0x54] sm:$0xf]  ;;  %v6515_v59 = vld [vmem:[%s10384_s1 + $0xc] sm:$0x3] }
  0x93   : > { %v1472_v12 = vunpack.c.l.b16 %v1416_v6  ;;  %v1217_v22 = vrot.slane %v1215_v55, 4  ;;  %997 = vst [vmem:[#allocation2 + $0xbc] sm:$0x1] %v996_v23  ;;  %v679_v25 = vor.u32 %v677_v19, %v676_v18  ;;  %v682_v27 = vshrl.u32 %v550_v2, 16  ;;  %v939_v45 = vld [vmem:[#allocation2 + $0x5c] sm:$0x1] }
  0x94   : > { %v1209_v20 = vrot.slane %v1208_v14, 4  ;;  %v1223_v24 = vrot.slane %v1221_v13, 5  ;;  %v680_v34 = vrot.slane %v676_v18, 4  ;;  %v685_v35 = vshll.u32 %v550_v2, 16  ;;  %v2525_v6 = vld [vmem:[#allocation2 + $0xc] sm:$0xf] }
  0x95   : > { %v1489_v21 = vpack.c.b16 %v1472_v12, %v1471_v62  ;;  %v1218_v29 = vor.u32 %v1217_v22, %v1213_v15  ;;  %v1035_v33 = vld [vmem:[#allocation2 + $0xb4] sm:$0xf]  ;;  %v684_v40 = vrot.slane %v682_v27, 7  ;;  %v936_v43 = vsel %vm7090_vm12, %v679_v25, %v935_v28  ;;  %v7441_v11 = vld [vmem:[#allocation2 + $0x8] sm:$0x1] }
  0x96   : > { %v1214_v37 = vsel %vm7114_vm13, %v1209_v20, %v1213_v15  ;;  %v1418_v38 = vshrl.u32 %v1035_v33, 16  ;;  %v1421_v39 = vshll.u32 %v1035_v33, 16  ;;  %937 = vst [vmem:[#allocation2 + $0x54] sm:$0xf] %v936_v43  ;;  %v3741_v4 = vsel %vm1540_vm0, %v6515_v59, 0 }
  0x97   : > { %6269 = vmatmul.msk.bf16.gmra.mxu2 %vm1491_vm11, %v1489_v21  ;;  %v1219_v41 = vrot.slane %v1218_v29, 4  ;;  %v1455_v42 = vunpack.c.l.b16 %v1214_v37  ;;  %v6713_v46 = vld [vmem:[#allocation2 + $0xb4] sm:$0xff]  ;;  %v687_v49 = vor.u32 %v685_v35, %v684_v40  ;;  %v689_v50 = vrot.slane %v684_v40, 4  ;;  %v7444_v14 = vld [vmem:[#allocation2 + $0x10] sm:$0xf] }
  0x98   : > { %v1036_v30 = vld [vmem:[#allocation2 + $0xb8] sm:$0xf]  ;;  %v1420_v44 = vrot.slane %v1418_v38, 4  ;;  %v1423_v48 = vrot.slane %v1421_v39, 5  ;;  %3750 = vmatpush.bf16.msra.mxu2 %v3741_v4  ;;  %v1909_v12 = vrot.slane %v7441_v11, 5  ;;  %v2574_v21 = vshrl.u32 %v2525_v6, 16 }
  0x99   : > { %v1224_v52 = vsel %vm7114_vm13, %v1219_v41, %v1223_v24  ;;  %v1427_v53 = vshll.u32 %v1036_v30, 16  ;;  %v1431_v54 = vshrl.u32 %v1036_v30, 16  ;;  %6350 = vmatmul.msk.bf16.gmra.mxu3 %vm1491_vm11, %v6713_v46  ;;  %v688_v57 = vsel %vm7081_vm10, %v680_v34, %v687_v49  ;;  %v1773_v13 = vpop.f32.mrf.mxu1  ;;  %v6912_v18 = vld [vmem:[#allocation2 + $0x4] sm:$0xf]  ;;  %v1853_v25 = vld [vmem:[#allocation2] sm:$0xe] }
  0x9a   : > { %v1456_v47 = vunpack.c.l.b16 %v1224_v52  ;;  %v1424_v56 = vor.u32 %v1423_v48, %v1420_v44  ;;  %v940_v58 = vsel %vm7029_vm3, %v689_v50, %v939_v45  ;;  %v1053_v60 = vld [vmem:[#allocation2 + $0xbc] sm:$0x1]  ;;  %938 = vst.msk [vmem:[#allocation2 + $0x58] sm:$0xf] %vm394_vm6, %v688_v57  ;;  %v1906_v19 = vrot.slane %v6912_v18, 5  ;;  %v6714_v50 = vld [vmem:[#allocation2 + $0xc] sm:$0xff] }
  0x9b   : > { %v1429_v51 = vrot.slane %v1427_v53, 5  ;;  %v1433_v61 = vrot.slane %v1431_v54, 4  ;;  %v1437_v1 = vshll.u32 %v1053_v60, 16  ;;  %941 = vst [vmem:[#allocation2 + $0x5c] sm:$0x1] %v940_v58  ;;  %v2577_v27 = vshll.u32 %v2525_v6, 16 }
  0x9c   : > { %v1481_v62 = vpack.c.b16 %v1456_v47, %v1455_v42  ;;  %v1425_v0 = vrot.slane %v1424_v56, 4  ;;  %v2583_v33 = vshll.u32 %v7444_v14, 16  ;;  %v6596_v34 = vld [vmem:[%s10384_s1 + $0xe] sm:$0x3]  ;;  %v2587_v46 = vshrl.u32 %v7444_v14, 16 }
  0x9d   : > { %v1434_v2 = vor.u32 %v1433_v61, %v1429_v51  ;;  %v1439_v10 = vrot.slane %v1437_v1, 5  ;;  %v1019_v17 = vld [vmem:[#allocation2 + $0x54] sm:$0xf]  ;;  %v6498_v30 = vld [vmem:[%s10384_s1 + $0xa] sm:$0x3]  ;;  %v6351_v52 = vrot.slane %v1853_v25, 9 }
  0x9e   : > { %6261 = vmatmul.msk.bf16.gmra.mxu0 %vm1491_vm11, %v1481_v62  ;;  %v1430_v9 = vsel %vm7114_vm13, %v1425_v0, %v1429_v51  ;;  %v1226_v23 = vshrl.u32 %v1019_v17, 16  ;;  %v1229_v20 = vshll.u32 %v1019_v17, 16  ;;  %v6629_v53 = vld [vmem:[%s10384_s1 + $0x10] sm:$0x3]  ;;  %v1908_v47 = vrot.slane %v1906_v19, 4 }
  0x9f   : > { %v1435_v55 = vrot.slane %v1434_v2, 4  ;;  %v1473_v15 = vunpack.c.l.b16 %v1430_v9  ;;  %v2576_v56 = vrot.slane %v2574_v21, 4  ;;  %v2579_v57 = vrot.slane %v2577_v27, 5  ;;  %v3179_v59 = vld [vmem:[#allocation2 + $0xc] sm:$0xe] }
  0xa0   : > { %v1228_v37 = vrot.slane %v1226_v23, 4  ;;  %v1231_v38 = vrot.slane %v1229_v20, 5  ;;  %v4395_v58 = vsel %vm1540_vm0, %v6596_v34, 0  ;;  %v3454_v0 = vsel %vm1540_vm0, %v6498_v30, 0 }
  0xa1   : > { %v1440_v22 = vsel %vm7114_vm13, %v1435_v55, %v1439_v10  ;;  %v7448_v29 = vld [vmem:[#allocation2 + $0x58] sm:$0xf]  ;;  %4404 = vmatpush.bf16.msra.mxu3 %v4395_v58  ;;  %v7478_v1 = vrot.slane %v2583_v33, 5  ;;  %v2589_v2 = vrot.slane %v2587_v46, 4  ;;  %3463 = vmatpush.bf16.msrb.mxu1 %v3454_v0  ;;  %v4793_v4 = vsel %vm1540_vm0, %v6629_v53, 0  ;;  %v7483_v55 = vpop.f32.mrf.mxu1 }
  0xa2   : > { %v1474_v28 = vunpack.c.l.b16 %v1440_v22  ;;  %v6705_v24 = vld [vmem:[#allocation2 + $0x54] sm:$0xff]  ;;  %v7454_v35 = vld [vmem:[#allocation2 + $0x5c] sm:$0x1]  ;;  %v1235_v39 = vshll.u32 %v7448_v29, 16  ;;  %v1239_v40 = vshrl.u32 %v7448_v29, 16  ;;  %v1232_v44 = vor.u32 %v1231_v38, %v1228_v37  ;;  %4802 = vmatpush.bf16.msra.mxu0 %v4793_v4 }
  0xa3   : > { %v1245_v43 = vshll.u32 %v7454_v35, 16  ;;  %6342 = vmatmul.msk.bf16.gmra.mxu1 %vm1491_vm11, %v6705_v24  ;;  %v2527_v10 = vld [vmem:[#allocation2 + $0x14] sm:$0x1]  ;;  %v1907_v18 = vsel %vm7473_vm1, %v6351_v52, %v1906_v19  ;;  %v1910_v21 = vsel %vm7473_vm1, %v1908_v47, %v1909_v12  ;;  %v2580_v20 = vor.u32 %v2579_v57, %v2576_v56  ;;  %v2529_v46 = vld [vmem:[#allocation2 + $0x1c] sm:$0xf] }
  0xa4   : > { %v1490_v42 = vpack.c.b16 %v1474_v28, %v1473_v15  ;;  %v1237_v48 = vrot.slane %v1235_v39, 5  ;;  %v1241_v49 = vrot.slane %v1239_v40, 4  ;;  %v1233_v60 = vrot.slane %v1232_v44, 4  ;;  %v1854_v47 = vld [vmem:[#allocation2 + $0xc] sm:$0xe] }
  0xa5   : > { %v1247_v61 = vrot.slane %v1245_v43, 5  ;;  %v3245_v15 = vrot.slane %v7444_v14, 5  ;;  %v3248_v22 = vrot.slane %v2527_v10, 5  ;;  %v2590_v28 = vor.u32 %v2589_v2, %v7478_v1  ;;  %v2528_v43 = vld [vmem:[#allocation2 + $0x18] sm:$0xf] }
  0xa6   : > { %v1553_v41 = vpop.f32.mrf.mxu0  ;;  %v1242_v51 = vor.u32 %v1241_v49, %v1237_v48  ;;  %v1238_v6 = vsel %vm7114_vm13, %v1233_v60, %v1237_v48  ;;  %v2593_v24 = vshll.u32 %v2527_v10, 16  ;;  %v2018_v34 = vunpack.c.l.b16 %v1907_v18  ;;  %v3180_v48 = vld [vmem:[#allocation2 + $0x18] sm:$0xe]  ;;  %v6913_v56 = vld [vmem:[#allocation2 + $0x10] sm:$0xf] }
  0xa7   : > { %v7460_v45 = vadd.f32 %v1773_v13, %v1553_v41  ;;  %6270 = vmatmul.msk.bf16.gmra.mxu2 %vm1491_vm11, %v1490_v42  ;;  %v1813_v54 = vpop.f32.mrf.mxu3  ;;  %v6482_v13 = vrot.slane %v3179_v59, 9  ;;  %v1457_v17 = vunpack.c.l.b16 %v1238_v6  ;;  %v3247_v14 = vrot.slane %v3245_v15, 4  ;;  %v2530_v59 = vld [vmem:[#allocation2 + $0x20] sm:$0x1]  ;;  %v6715_v6 = vld [vmem:[#allocation2 + $0x18] sm:$0xff] }
  0xa8   : > { %v1243_v9 = vrot.slane %v1242_v51, 4  ;;  %v2019_v12 = vunpack.c.l.b16 %v1910_v21  ;;  %v2581_v39 = vrot.slane %v2580_v20, 4  ;;  %v2591_v40 = vrot.slane %v2590_v28, 4 }
  0xa9   : > { %6449 = vmatmul.msk.bf16.vlgmr.msrb.gmra.mxu3 %vm1491_vm11, %v6714_v50  ;;  %v3246_v25 = vsel %vm7473_vm1, %v6482_v13, %v3245_v15  ;;  %v3249_v11 = vsel %vm7473_vm1, %v3247_v14, %v3248_v22  ;;  %v2595_v41 = vrot.slane %v2593_v24, 5  ;;  %v3252_v49 = vrot.slane %v2529_v46, 5  ;;  %v6914_v15 = vld [vmem:[#allocation2 + $0x14] sm:$0x1] }
  0xaa   : > { %v1248_v23 = vsel %vm7114_vm13, %v1243_v9, %v1247_v61  ;;  %v3357_v33 = vunpack.c.l.b16 %v3246_v25  ;;  %v3358_v38 = vunpack.c.l.b16 %v3249_v11  ;;  %v2050_v30 = vpack.c.b16 %v2019_v12, %v2018_v34 }
  0xab   : > { %v1458_v27 = vunpack.c.l.b16 %v1248_v23  ;;  %v2586_v50 = vsel %vm7114_vm13, %v2581_v39, %v7478_v1  ;;  %v1913_v57 = vrot.slane %v6913_v56, 5  ;;  %v2596_v58 = vsel %vm7114_vm13, %v2591_v40, %v2595_v41 }
  0xac   : > { %v3389_v42 = vpack.c.b16 %v3358_v38, %v3357_v33  ;;  %v2598_v60 = vshrl.u32 %v2528_v43, 16  ;;  %v2601_v51 = vshll.u32 %v2528_v43, 16  ;;  %v2607_v61 = vshll.u32 %v2529_v46, 16 }
  0xad   : > { %v1482_v19 = vpack.c.b16 %v1458_v27, %v1457_v17  ;;  %v2611_v2 = vshrl.u32 %v2529_v46, 16  ;;  %v6483_v4 = vrot.slane %v3180_v48, 9  ;;  %v3254_v1 = vrot.slane %v3252_v49, 4 }
  0xae   : > { %v7509_v0 = vpop.f32.mrf.mxu0  ;;  %v6352_v10 = vrot.slane %v1854_v47, 9  ;;  %v1915_v13 = vrot.slane %v1913_v57, 4  ;;  %v1916_v17 = vrot.slane %v6914_v15, 5  ;;  %v2959_v18 = vunpack.c.l.b16 %v2586_v50  ;;  %v2532_v50 = vld [vmem:[#allocation2 + $0x28] sm:$0xf] }
  0xaf   : > { %v1815_v37 = vpop.f32.mrf.mxu3  ;;  %6262 = vmatmul.msk.bf16.gmra.mxu0 %vm1491_vm11, %v1482_v19  ;;  %v2960_v21 = vunpack.c.l.b16 %v2596_v58  ;;  %v2600_v22 = vrot.slane %v2598_v60, 4  ;;  %v2603_v23 = vrot.slane %v2601_v51, 5  ;;  %v2609_v20 = vrot.slane %v2607_v61, 5  ;;  %v6915_v51 = vld [vmem:[#allocation2 + $0x1c] sm:$0xf] }
  0xb0   : > { %v2613_v25 = vrot.slane %v2611_v2, 4  ;;  %v3253_v14 = vsel %vm7473_vm1, %v6483_v4, %v3252_v49  ;;  %v1914_v33 = vsel %vm7473_vm1, %v6352_v10, %v1913_v57  ;;  %v1917_v11 = vsel %vm7473_vm1, %v1915_v13, %v1916_v17  ;;  %v3181_v2 = vld [vmem:[#allocation2 + $0x24] sm:$0xe]  ;;  %v2533_v15 = vld [vmem:[#allocation2 + $0x2c] sm:$0x1] }
  0xb1   : > { %v7525_v34 = vpack.c.b16 %v2960_v21, %v2959_v18  ;;  %v2604_v12 = vor.u32 %v2603_v23, %v2600_v22  ;;  %v3359_v38 = vunpack.c.l.b16 %v3253_v14  ;;  %v2617_v41 = vshll.u32 %v2530_v59, 16 }
  0xb2   : > { %v2614_v40 = vor.u32 %v2613_v25, %v2609_v20  ;;  %v2021_v43 = vunpack.c.l.b16 %v1917_v11  ;;  %v3259_v57 = vrot.slane %v2532_v50, 5  ;;  %v2631_v10 = vshll.u32 %v2532_v50, 16 }
  0xb3   : > { %6499 = vmatmul.msk.bf16.vlgmr.msrb.gmra.mxu1 %vm1491_vm11, %v3389_v42  ;;  %10467 = vst [vmem:[#allocation3_spill] sm:$0xff] %v7525_v34  ;;  %v2020_v42 = vunpack.c.l.b16 %v1914_v33  ;;  %v2605_v48 = vrot.slane %v2604_v12, 4  ;;  %v2619_v56 = vrot.slane %v2617_v41, 5  ;;  %v6484_v18 = vrot.slane %v3181_v2, 9 }
  0xb4   : > { %v2615_v47 = vrot.slane %v2614_v40, 4  ;;  %v3261_v21 = vrot.slane %v3259_v57, 4  ;;  %v3262_v22 = vrot.slane %v2533_v15, 5  ;;  %v2633_v12 = vrot.slane %v2631_v10, 5 }
  0xb5   : > { %v1593_v44 = vpop.f32.mrf.mxu2  ;;  %v1778_v53 = vpop.f32.mrf.mxu1  ;;  %v2051_v58 = vpack.c.b16 %v2021_v43, %v2020_v42  ;;  %v2610_v13 = vsel %vm7114_vm13, %v2605_v48, %v2609_v20  ;;  %v3260_v41 = vsel %vm7473_vm1, %v6484_v18, %v3259_v57 }
  0xb6   : > { %v7504_v52 = vadd.f32 %v1813_v54, %v1593_v44  ;;  %v3255_v54 = vrot.slane %v2530_v59, 5  ;;  %v1920_v59 = vrot.slane %v6915_v51, 5  ;;  %v2620_v17 = vsel %vm7114_vm13, %v2615_v47, %v2619_v56 }
  0xb7   : > { %6368 = vmatmul.msk.bf16.vlgmr.msrb.gmra.mxu2 %vm1491_vm11, %v2050_v30  ;;  %v1818_v9 = vpop.f32.mrf.mxu3  ;;  %v2531_v30 = vld [vmem:[#allocation2 + $0x24] sm:$0xf]  ;;  %v2962_v40 = vunpack.c.l.b16 %v2620_v17  ;;  %v3263_v42 = vsel %vm7473_vm1, %v3261_v21, %v3262_v22  ;;  %v2641_v47 = vshll.u32 %v2533_v15, 16  ;;  %v3361_v57 = vunpack.c.l.b16 %v3260_v41  ;;  %v2534_v15 = vld [vmem:[#allocation2 + $0x30] sm:$0xf] }
  0xb8   : > { %v3256_v27 = vsel %vm7473_vm1, %v3254_v1, %v3255_v54  ;;  %v2622_v61 = vshrl.u32 %v2531_v30, 16  ;;  %v1855_v54 = vld [vmem:[#allocation2 + $0x18] sm:$0xe]  ;;  %v1922_v14 = vrot.slane %v1920_v59, 4  ;;  %v3182_v22 = vld [vmem:[#allocation2 + $0x30] sm:$0xe] }
  0xb9   : > { %6450 = vmatmul.msk.bf16.gmra.mxu3 %vm1491_vm11, %v6715_v6  ;;  %v3360_v39 = vunpack.c.l.b16 %v3256_v27  ;;  %v2625_v6 = vshll.u32 %v2531_v30, 16  ;;  %v6353_v25 = vrot.slane %v1855_v54, 9  ;;  %v6916_v27 = vld [vmem:[#allocation2 + $0x20] sm:$0x1]  ;;  %v2643_v10 = vrot.slane %v2641_v47, 5 }
  0xba   : > { %v2624_v20 = vrot.slane %v2622_v61, 4  ;;  %v6485_v41 = vrot.slane %v3182_v22, 9 }
  0xbb   : > { %v3390_v49 = vpack.c.b16 %v3360_v39, %v3359_v38  ;;  %v2627_v11 = vrot.slane %v2625_v6, 5  ;;  %v2961_v39 = vunpack.c.l.b16 %v2610_v13  ;;  %v2535_v13 = vld [vmem:[#allocation2 + $0x34] sm:$0xf] }
  0xbc   : > { %v3266_v17 = vrot.slane %v2535_v13, 5 }
  0xbd   : > { %v1595_v28 = vpop.f32.mrf.mxu2  ;;  %v7523_v19 = vpop.f32.mrf.mxu1  ;;  %v7552_v56 = vpack.c.b16 %v2962_v40, %v2961_v39  ;;  %v2655_v39 = vshll.u32 %v2535_v13, 16  ;;  %v2659_v40 = vshrl.u32 %v2535_v13, 16 }
  0xbe   : > { %v7517_v24 = vadd.f32 %v1815_v37, %v1595_v28  ;;  %v1923_v28 = vrot.slane %v6916_v27, 5  ;;  %v1856_v27 = vld [vmem:[#allocation2 + $0x24] sm:$0xe] }
  0xbf   : > { %v1820_v46 = vpop.f32.mrf.mxu3  ;;  %6466 = vmatmul.msk.bf16.vlgmr.msrb.gmra.mxu0 %vm1491_vm11, %v7525_v34  ;;  %10468 = vst [vmem:[#allocation4_spill] sm:$0xff] %v7552_v56 }
  0xc0   : > { %v1924_v30 = vsel %vm7473_vm1, %v1922_v14, %v1923_v28  ;;  %v6917_v28 = vld [vmem:[#allocation2 + $0x28] sm:$0xf] }
  0xc1   : > { %v1558_v37 = vpop.f32.mrf.mxu0  ;;  %v2023_v61 = vunpack.c.l.b16 %v1924_v30  ;;  %v6717_v30 = vld [vmem:[#allocation2 + $0x30] sm:$0xff] }
  0xc2   : > { %v7529_v44 = vadd.f32 %v1778_v53, %v1558_v37  ;;  %v2635_v53 = vshrl.u32 %v2532_v50, 16  ;;  %v1921_v37 = vsel %vm7473_vm1, %v6353_v25, %v1920_v59 }
  0xc3   : > { %6500 = vmatmul.msk.bf16.gmra.mxu1 %vm1491_vm11, %v3390_v49  ;;  %v2628_v49 = vor.u32 %v2627_v11, %v2624_v20  ;;  %v2022_v51 = vunpack.c.l.b16 %v1921_v37  ;;  %v1927_v20 = vrot.slane %v6917_v28, 5  ;;  %v2646_v11 = vshrl.u32 %v2534_v15, 16 }
  0xc4   : > { %v2637_v38 = vrot.slane %v2635_v53, 4 }
  0xc5   : > { %v1598_v60 = vpop.f32.mrf.mxu2  ;;  %v1783_v1 = vpop.f32.mrf.mxu1  ;;  %v2629_v6 = vrot.slane %v2628_v49, 4  ;;  %v2052_v18 = vpack.c.b16 %v2023_v61, %v2022_v51  ;;  %v1929_v47 = vrot.slane %v1927_v20, 4  ;;  %v2648_v51 = vrot.slane %v2646_v11, 4  ;;  %v2537_v11 = vld [vmem:[#allocation2 + $0x3c] sm:$0xf] }
  0xc6   : > { %v7531_v4 = vadd.f32 %v1818_v9, %v1598_v60  ;;  %v6716_v9 = vld [vmem:[#allocation2 + $0x24] sm:$0xff]  ;;  %v2638_v50 = vor.u32 %v2637_v38, %v2633_v12  ;;  %v2649_v38 = vshll.u32 %v2534_v15, 16 }
  0xc7   : > { %6369 = vmatmul.msk.bf16.gmra.mxu2 %vm1491_vm11, %v2051_v58  ;;  %v1823_v23 = vpop.f32.mrf.mxu3  ;;  %v3362_v58 = vunpack.c.l.b16 %v3263_v42  ;;  %v3268_v42 = vrot.slane %v3266_v17, 4 }
  0xc8   : > { %v2639_v59 = vrot.slane %v2638_v50, 4  ;;  %v6354_v50 = vrot.slane %v1856_v27, 9  ;;  %v2651_v61 = vrot.slane %v2649_v38, 5 }
  0xc9   : > { %v7539_v33 = vpop.f32.mrf.mxu0  ;;  %6451 = vmatmul.msk.bf16.gmra.mxu3 %vm1491_vm11, %v6716_v9  ;;  %v3391_v53 = vpack.c.b16 %v3362_v58, %v3361_v57  ;;  %v2634_v9 = vsel %vm7114_vm13, %v2629_v6, %v2633_v12  ;;  %v6918_v57 = vld [vmem:[#allocation2 + $0x2c] sm:$0x1]  ;;  %v2661_v6 = vrot.slane %v2659_v40, 4 }
  0xca   : > { %v2644_v25 = vsel %vm7114_vm13, %v2639_v59, %v2643_v10  ;;  %v2963_v12 = vunpack.c.l.b16 %v2634_v9  ;;  %v1930_v58 = vrot.slane %v6918_v57, 5  ;;  %v3267_v10 = vsel %vm7473_vm1, %v6485_v41, %v3266_v17 }
  0xcb   : > { %v2964_v37 = vunpack.c.l.b16 %v2644_v25  ;;  %v2652_v25 = vor.u32 %v2651_v61, %v2648_v51  ;;  %v3363_v17 = vunpack.c.l.b16 %v3267_v10  ;;  %v3183_v51 = vld [vmem:[#allocation2 + $0x3c] sm:$0xe]  ;;  %v6919_v10 = vld [vmem:[#allocation2 + $0x34] sm:$0xf] }
  0xcc   : > { %v1931_v22 = vsel %vm7473_vm1, %v1929_v47, %v1930_v58 }
  0xcd   : > { %v1600_v43 = vpop.f32.mrf.mxu2  ;;  %v7554_v60 = vpop.f32.mrf.mxu1  ;;  %v7574_v13 = vpack.c.b16 %v2964_v37, %v2963_v12  ;;  %v2670_v37 = vshrl.u32 %v2537_v11, 16 }
  0xce   : > { %v7550_v48 = vadd.f32 %v1820_v46, %v1600_v43 }
  0xcf   : > { %v1825_v2 = vpop.f32.mrf.mxu3  ;;  %6467 = vmatmul.msk.bf16.gmra.mxu0 %vm1491_vm11, %v7552_v56  ;;  %10470 = vst [vmem:[#allocation6_spill] sm:$0xff] %v7574_v13 }
  0xd1   : > { %v1563_v54 = vpop.f32.mrf.mxu0 }
  0xd2   : > { %v7558_v46 = vadd.f32 %v1783_v1, %v1563_v54  ;;  %v2536_v1 = vld [vmem:[#allocation2 + $0x38] sm:$0x1]  ;;  %v2657_v54 = vrot.slane %v2655_v39, 5  ;;  %v2025_v39 = vunpack.c.l.b16 %v1931_v22 }
  0xd3   : > { %6501 = vmatmul.msk.bf16.gmra.mxu1 %vm1491_vm11, %v3391_v53  ;;  %v3269_v43 = vrot.slane %v2536_v1, 5  ;;  %v2665_v9 = vshll.u32 %v2536_v1, 16  ;;  %v2673_v1 = vshll.u32 %v2537_v11, 16 }
  0xd4   : > { %v2662_v27 = vor.u32 %v2661_v6, %v2657_v54 }
  0xd5   : > { %v1603_v21 = vpop.f32.mrf.mxu2  ;;  %v3270_v53 = vsel %vm7473_vm1, %v3268_v42, %v3269_v43  ;;  %v2667_v41 = vrot.slane %v2665_v9, 5  ;;  %v1857_v9 = vld [vmem:[#allocation2 + $0x30] sm:$0xe] }
  0xd6   : > { %v7564_v14 = vadd.f32 %v1823_v23, %v1603_v21  ;;  %v1928_v21 = vsel %vm7473_vm1, %v6354_v50, %v1927_v20  ;;  %v3364_v28 = vunpack.c.l.b16 %v3270_v53  ;;  %v2653_v20 = vrot.slane %v2652_v25, 4  ;;  %v2539_v25 = vld [vmem:[#allocation2 + $0x44] sm:$0x1] }
  0xd7   : > { %6370 = vmatmul.msk.bf16.gmra.mxu2 %vm1491_vm11, %v2052_v18  ;;  %v1828_v23 = vpop.f32.mrf.mxu3  ;;  %v2024_v38 = vunpack.c.l.b16 %v1928_v21  ;;  %v2663_v43 = vrot.slane %v2662_v27, 4  ;;  %v1934_v53 = vrot.slane %v6919_v10, 5  ;;  %v2672_v27 = vrot.slane %v2670_v37, 4 }
  0xd8   : > { %10469 = vst [vmem:[#allocation5_spill] sm:$0xff] %v7564_v14  ;;  %v3392_v12 = vpack.c.b16 %v3364_v28, %v3363_v17  ;;  %v2658_v21 = vsel %vm7114_vm13, %v2653_v20, %v2657_v54  ;;  %v2675_v17 = vrot.slane %v2673_v1, 5  ;;  %v6486_v28 = vrot.slane %v3183_v51, 9 }
  0xd9   : > { %v1788_v49 = vpop.f32.mrf.mxu1  ;;  %v7568_v59 = vpop.f32.mrf.mxu0  ;;  %6452 = vmatmul.msk.bf16.gmra.mxu3 %vm1491_vm11, %v6717_v30  ;;  %v2053_v50 = vpack.c.b16 %v2025_v39, %v2024_v38  ;;  %v2668_v22 = vsel %vm7114_vm13, %v2663_v43, %v2667_v41  ;;  %v6718_v38 = vld [vmem:[#allocation2 + $0x3c] sm:$0xff]  ;;  %v6355_v20 = vrot.slane %v1857_v9, 9  ;;  %v2965_v41 = vunpack.c.l.b16 %v2658_v21 }
  0xda   : > { %v2966_v43 = vunpack.c.l.b16 %v2668_v22  ;;  %v2676_v10 = vor.u32 %v2675_v17, %v2672_v27 }
  0xdb   : > { %v1935_v21 = vsel %vm7473_vm1, %v6355_v20, %v1934_v53 }
  0xdc   : > { %v7610_v9 = vpack.c.b16 %v2966_v43, %v2965_v41  ;;  %v2677_v17 = vrot.slane %v2676_v10, 4  ;;  %v3184_v10 = vld [vmem:[#allocation2 + $0x48] sm:$0xe] }
  0xdd   : > { %v1605_v15 = vpop.f32.mrf.mxu2 }
  0xde   : > { %v7577_v18 = vadd.f32 %v1825_v2, %v1605_v15  ;;  %v2538_v2 = vld [vmem:[#allocation2 + $0x40] sm:$0xf]  ;;  %10474 = vst [vmem:[#allocation10_spill] sm:$0xff] %v7610_v9 }
  0xdf   : > { %v1830_v40 = vpop.f32.mrf.mxu3  ;;  %6468 = vmatmul.msk.bf16.gmra.mxu0 %vm1491_vm11, %v7574_v13  ;;  %v3273_v30 = vrot.slane %v2538_v2, 5  ;;  %v2679_v57 = vshll.u32 %v2538_v2, 16  ;;  %v2683_v58 = vshrl.u32 %v2538_v2, 16 }
  0xe0   : > { %10471 = vst [vmem:[#allocation7_spill] sm:$0xff] %v7577_v18 }
  0xe1   : > { %v7583_v42 = vpop.f32.mrf.mxu1  ;;  %v3275_v11 = vrot.slane %v3273_v30, 4  ;;  %v2681_v39 = vrot.slane %v2679_v57, 5  ;;  %v2685_v2 = vrot.slane %v2683_v58, 4  ;;  %v3274_v37 = vsel %vm7473_vm1, %v6486_v28, %v3273_v30 }
  0xe2   : > { %v2689_v57 = vshll.u32 %v2539_v25, 16  ;;  %v3365_v30 = vunpack.c.l.b16 %v3274_v37  ;;  %v2026_v28 = vunpack.c.l.b16 %v1935_v21  ;;  %v1858_v21 = vld [vmem:[#allocation2 + $0x3c] sm:$0xe] }
  0xe3   : > { %6502 = vmatmul.msk.bf16.gmra.mxu1 %vm1491_vm11, %v3392_v12  ;;  %v2686_v51 = vor.u32 %v2685_v2, %v2681_v39  ;;  %v2540_v2 = vld [vmem:[#allocation2 + $0x48] sm:$0xf] }
  0xe5   : > { %v1608_v47 = vpop.f32.mrf.mxu2  ;;  %v1568_v61 = vpop.f32.mrf.mxu0 }
  0xe6   : > { %v7587_v6 = vadd.f32 %v1828_v23, %v1608_v47  ;;  %v7589_v15 = vadd.f32 %v1788_v49, %v1568_v61  ;;  %v3276_v23 = vrot.slane %v2539_v25, 5  ;;  %v6920_v47 = vld [vmem:[#allocation2 + $0x38] sm:$0x1]  ;;  %v1936_v61 = vrot.slane %v1934_v53, 4 }
  0xe7   : > { %6371 = vmatmul.msk.bf16.gmra.mxu2 %vm1491_vm11, %v2053_v50  ;;  %v1833_v49 = vpop.f32.mrf.mxu3  ;;  %v1937_v54 = vrot.slane %v6920_v47, 5 }
  0xe8   : > { %10472 = vst [vmem:[#allocation8_spill] sm:$0xff] %v7587_v6  ;;  %v3277_v1 = vsel %vm7473_vm1, %v3275_v11, %v3276_v23  ;;  %v2687_v23 = vrot.slane %v2686_v51, 4  ;;  %v2694_v51 = vshrl.u32 %v2540_v2, 16 }
  0xe9   : > { %6453 = vmatmul.msk.bf16.gmra.mxu3 %vm1491_vm11, %v6718_v38  ;;  %v1938_v22 = vsel %vm7473_vm1, %v1936_v61, %v1937_v54  ;;  %v3366_v27 = vunpack.c.l.b16 %v3277_v1  ;;  %v2691_v38 = vrot.slane %v2689_v57, 5  ;;  %v2682_v54 = vsel %vm7114_vm13, %v2677_v17, %v2681_v39 }
  0xea   : > { %v1793_v12 = vpop.f32.mrf.mxu1  ;;  %v2027_v11 = vunpack.c.l.b16 %v1938_v22  ;;  %v1941_v1 = vrot.slane %v7364_v32, 5  ;;  %v2697_v57 = vshll.u32 %v2540_v2, 16  ;;  %v2542_v22 = vld [vmem:[#allocation2 + $0x50] sm:$0x1]  ;;  %v6487_v17 = vrot.slane %v3184_v10, 9 }
  0xeb   : > { %v2692_v61 = vsel %vm7114_vm13, %v2687_v23, %v2691_v38  ;;  %v1944_v23 = vrot.slane %v7368_v36, 5  ;;  %v6356_v2 = vrot.slane %v1858_v21, 9 }
  0xec   : > { %v2054_v20 = vpack.c.b16 %v2027_v11, %v2026_v28  ;;  %v3283_v11 = vrot.slane %v2542_v22, 5  ;;  %v2968_v32 = vunpack.c.l.b16 %v2692_v61  ;;  %v1943_v8 = vrot.slane %v1941_v1, 4 }
  0xed   : > { %v1610_v50 = vpop.f32.mrf.mxu2  ;;  %v7602_v58 = vpop.f32.mrf.mxu0  ;;  %v1942_v61 = vsel %vm7473_vm1, %v6356_v2, %v1941_v1  ;;  %v2544_v2 = vld [vmem:[#allocation2 + $0x58] sm:$0xf] }
  0xee   : > { %v7604_v47 = vadd.f32 %v1830_v40, %v1610_v50  ;;  %v3393_v40 = vpack.c.b16 %v3366_v27, %v3365_v30  ;;  %v2541_v50 = vld [vmem:[#allocation2 + $0x4c] sm:$0xf] }
  0xef   : > { %v1835_v25 = vpop.f32.mrf.mxu3  ;;  %6469 = vmatmul.msk.bf16.gmra.mxu0 %vm1491_vm11, %v7610_v9  ;;  %v3280_v53 = vrot.slane %v2541_v50, 5  ;;  %v2703_v30 = vshll.u32 %v2541_v50, 16  ;;  %v2707_v27 = vshrl.u32 %v2541_v50, 16  ;;  %v2699_v9 = vrot.slane %v2697_v57, 5 }
  0xf0   : > { %10473 = vst [vmem:[#allocation9_spill] sm:$0xff] %v7604_v47 }
  0xf1   : > { %v3282_v28 = vrot.slane %v3280_v53, 4  ;;  %v2705_v56 = vrot.slane %v2703_v30, 5  ;;  %v2709_v50 = vrot.slane %v2707_v27, 4  ;;  %v3281_v10 = vsel %vm7473_vm1, %v6487_v17, %v3280_v53 }
  0xf2   : > { %v7618_v43 = vpop.f32.mrf.mxu1  ;;  %v2713_v53 = vshll.u32 %v2542_v22, 16  ;;  %v3367_v27 = vunpack.c.l.b16 %v3281_v10  ;;  %v1948_v22 = vrot.slane %v7406_v63, 5 }
  0xf3   : > { %6503 = vmatmul.msk.bf16.gmra.mxu1 %vm1491_vm11, %v3393_v40  ;;  %v2696_v40 = vrot.slane %v2694_v51, 4  ;;  %v3284_v36 = vsel %vm7473_vm1, %v3282_v28, %v3283_v11  ;;  %v1945_v51 = vsel %vm7473_vm1, %v1943_v8, %v1944_v23  ;;  %v2710_v30 = vor.u32 %v2709_v50, %v2705_v56 }
  0xf4   : > { %v2028_v28 = vunpack.c.l.b16 %v1942_v61  ;;  %v2029_v11 = vunpack.c.l.b16 %v1945_v51 }
  0xf5   : > { %v1613_v41 = vpop.f32.mrf.mxu2  ;;  %v2700_v57 = vor.u32 %v2699_v9, %v2696_v40  ;;  %v3287_v9 = vrot.slane %v2544_v2, 5  ;;  %v3185_v40 = vld [vmem:[#allocation2 + $0x54] sm:$0xe] }
  0xf6   : > { %v7620_v37 = vadd.f32 %v1833_v49, %v1613_v41  ;;  %v2967_v49 = vunpack.c.l.b16 %v2682_v54  ;;  %v6719_v41 = vld [vmem:[#allocation2 + $0x48] sm:$0xff]  ;;  %v2055_v23 = vpack.c.b16 %v2029_v11, %v2028_v28  ;;  %v6488_v28 = vrot.slane %v3185_v40, 9 }
  0xf7   : > { %v1573_v39 = vpop.f32.mrf.mxu0  ;;  %6372 = vmatmul.msk.bf16.gmra.mxu2 %vm1491_vm11, %v2054_v20  ;;  %v3289_v63 = vrot.slane %v3287_v9, 4 }
  0xf8   : > { %10475 = vst [vmem:[#allocation11_spill] sm:$0xff] %v7620_v37  ;;  %v7625_v38 = vadd.f32 %v1793_v12, %v1573_v39  ;;  %v1838_v13 = vpop.f32.mrf.mxu3  ;;  %v7632_v12 = vpack.c.b16 %v2968_v32, %v2967_v49  ;;  %v3368_v39 = vunpack.c.l.b16 %v3284_v36  ;;  %v2701_v49 = vrot.slane %v2700_v57, 4  ;;  %v1859_v57 = vld [vmem:[#allocation2 + $0x48] sm:$0xe] }
  0xf9   : > { %6454 = vmatmul.msk.bf16.gmra.mxu3 %vm1491_vm11, %v6719_v41  ;;  %v2715_v32 = vrot.slane %v2713_v53, 5  ;;  %v2543_v41 = vld [vmem:[#allocation2 + $0x54] sm:$0xf]  ;;  %v2727_v53 = vshll.u32 %v2544_v2, 16 }
  0xfa   : > { %10476 = vst [vmem:[#allocation12_spill] sm:$0xff] %v7632_v12  ;;  %v3394_v1 = vpack.c.b16 %v3368_v39, %v3367_v27  ;;  %v2718_v50 = vshrl.u32 %v2543_v41, 16  ;;  %v2721_v10 = vshll.u32 %v2543_v41, 16  ;;  %v2706_v36 = vsel %vm7114_vm13, %v2701_v49, %v2705_v56  ;;  %v6720_v56 = vld [vmem:[#allocation2 + $0x54] sm:$0xff] }
  0xfb   : > { %v2731_v27 = vshrl.u32 %v2544_v2, 16  ;;  %v1951_v41 = vrot.slane %v7412_v7, 5  ;;  %v2969_v49 = vunpack.c.l.b16 %v2706_v36  ;;  %v2729_v34 = vrot.slane %v2727_v53, 5 }
  0xfc   : > { %v2723_v37 = vrot.slane %v2721_v10, 5 }
  0xfd   : > { %v1615_v20 = vpop.f32.mrf.mxu2  ;;  %v2733_v47 = vrot.slane %v2731_v27, 4 }
  0xfe   : > { %v7635_v54 = vadd.f32 %v1835_v25, %v1615_v20  ;;  %v1798_v21 = vpop.f32.mrf.mxu1  ;;  %v2711_v25 = vrot.slane %v2710_v30, 4  ;;  %v2545_v30 = vld [vmem:[#allocation2 + $0x5c] sm:$0x1] }
  0xff   : > { %v7641_v17 = vpop.f32.mrf.mxu0  ;;  %6470 = vmatmul.msk.bf16.gmra.mxu0 %vm1491_vm11, %v7632_v12  ;;  %v3290_v11 = vrot.slane %v2545_v30, 5  ;;  %v1950_v12 = vrot.slane %v1948_v22, 4  ;;  %v2737_v10 = vshll.u32 %v2545_v30, 16  ;;  %v2547_v30 = vld [vmem:[#allocation2 + $0x64] sm:$0xf] }
 0x100   : > { %10477 = vst [vmem:[#allocation13_spill] sm:$0xff] %v7635_v54  ;;  %v1840_v8 = vpop.f32.mrf.mxu3  ;;  %v2716_v20 = vsel %vm7114_vm13, %v2711_v25, %v2715_v32  ;;  %v6357_v32 = vrot.slane %v1859_v57, 9 }
 0x101   : > { %v2970_v25 = vunpack.c.l.b16 %v2716_v20  ;;  %v3291_v7 = vsel %vm7473_vm1, %v3289_v63, %v3290_v11  ;;  %v2734_v20 = vor.u32 %v2733_v47, %v2729_v34  ;;  %v2739_v63 = vrot.slane %v2737_v10, 5 }
 0x102   : > { %v1949_v36 = vsel %vm7473_vm1, %v6357_v32, %v1948_v22  ;;  %v3294_v47 = vrot.slane %v2547_v30, 5  ;;  %v1955_v32 = vrot.slane %v7448_v29, 5  ;;  %v6721_v29 = vld [vmem:[#allocation2 + $0x60] sm:$0xff] }
 0x103   : > { %6504 = vmatmul.msk.bf16.gmra.mxu1 %vm1491_vm11, %v3394_v1  ;;  %v2720_v1 = vrot.slane %v2718_v50, 4  ;;  %v1952_v50 = vsel %vm7473_vm1, %v1950_v12, %v1951_v41  ;;  %v2030_v27 = vunpack.c.l.b16 %v1949_v36  ;;  %v2546_v12 = vld [vmem:[#allocation2 + $0x60] sm:$0xf]  ;;  %v1860_v36 = vld [vmem:[#allocation2 + $0x54] sm:$0xe] }
 0x104   : > { %v2745_v10 = vshll.u32 %v2546_v12, 16 }
 0x106   : > { %v1618_v61 = vpop.f32.mrf.mxu2  ;;  %v1800_v51 = vpop.f32.mrf.mxu1 }
 0x107   : > { %v7651_v39 = vadd.f32 %v1838_v13, %v1618_v61  ;;  %6373 = vmatmul.msk.bf16.gmra.mxu2 %vm1491_vm11, %v2055_v23  ;;  %v3288_v13 = vsel %vm7473_vm1, %v6488_v28, %v3287_v9  ;;  %v7662_v23 = vpack.c.b16 %v2970_v25, %v2969_v49  ;;  %v3370_v9 = vunpack.c.l.b16 %v3291_v7  ;;  %v3186_v25 = vld [vmem:[#allocation2 + $0x60] sm:$0xe] }
 0x108   : > { %v3369_v61 = vunpack.c.l.b16 %v3288_v13  ;;  %v2031_v28 = vunpack.c.l.b16 %v1952_v50  ;;  %v2548_v50 = vld [vmem:[#allocation2 + $0x68] sm:$0x1] }
 0x109   : > { %10478 = vst [vmem:[#allocation14_spill] sm:$0xff] %v7651_v39  ;;  %6455 = vmatmul.msk.bf16.gmra.mxu3 %vm1491_vm11, %v6720_v56  ;;  %v2735_v56 = vrot.slane %v2734_v20, 4  ;;  %v3296_v20 = vrot.slane %v3294_v47, 4 }
 0x10a   : > { %10479 = vst [vmem:[#allocation15_spill] sm:$0xff] %v7662_v23  ;;  %v3395_v49 = vpack.c.b16 %v3370_v9, %v3369_v61  ;;  %v3297_v61 = vrot.slane %v2548_v50, 5  ;;  %v1958_v9 = vrot.slane %v7454_v35, 5 }
 0x10b   : > { %v1578_v54 = vpop.f32.mrf.mxu0  ;;  %v2740_v7 = vsel %vm7114_vm13, %v2735_v56, %v2739_v63  ;;  %v1957_v63 = vrot.slane %v1955_v32, 4 }
 0x10c   : > { %v7655_v2 = vadd.f32 %v1798_v21, %v1578_v54  ;;  %v1843_v40 = vpop.f32.mrf.mxu3  ;;  %v2724_v21 = vor.u32 %v2723_v37, %v2720_v1  ;;  %v2056_v37 = vpack.c.b16 %v2031_v28, %v2030_v27  ;;  %v2742_v1 = vshrl.u32 %v2546_v12, 16 }
 0x10d   : > { %v3298_v35 = vsel %vm7473_vm1, %v3296_v20, %v3297_v61 }
 0x10e   : > { %v1620_v54 = vpop.f32.mrf.mxu2  ;;  %v1803_v53 = vpop.f32.mrf.mxu1  ;;  %v2725_v22 = vrot.slane %v2724_v21, 4  ;;  %v6489_v21 = vrot.slane %v3186_v25, 9  ;;  %v2744_v56 = vrot.slane %v2742_v1, 4  ;;  %v1959_v1 = vsel %vm7473_vm1, %v1957_v63, %v1958_v9 }
 0x10f   : > { %v7668_v57 = vadd.f32 %v1840_v8, %v1620_v54  ;;  %6471 = vmatmul.msk.bf16.gmra.mxu0 %vm1491_vm11, %v7662_v23  ;;  %v2755_v54 = vshrl.u32 %v2547_v30, 16  ;;  %v2033_v61 = vunpack.c.l.b16 %v1959_v1 }
 0x110   : > { %v2730_v13 = vsel %vm7114_vm13, %v2725_v22, %v2729_v34  ;;  %v2972_v34 = vunpack.c.l.b16 %v2740_v7  ;;  %v3295_v25 = vsel %vm7473_vm1, %v6489_v21, %v3294_v47  ;;  %v2761_v21 = vshll.u32 %v2548_v50, 16  ;;  %v3187_v50 = vld [vmem:[#allocation2 + $0x6c] sm:$0xe] }
 0x111   : > { %10480 = vst [vmem:[#allocation16_spill] sm:$0xff] %v7668_v57  ;;  %v2971_v27 = vunpack.c.l.b16 %v2730_v13 }
 0x112   : > { %v2763_v63 = vrot.slane %v2761_v21, 5  ;;  %v6490_v21 = vrot.slane %v3187_v50, 9 }
 0x113   : > { %v1580_v11 = vpop.f32.mrf.mxu0  ;;  %6505 = vmatmul.msk.bf16.gmra.mxu1 %vm1491_vm11, %v3395_v49  ;;  %v2747_v49 = vrot.slane %v2745_v10, 5  ;;  %v7689_v13 = vpack.c.b16 %v2972_v34, %v2971_v27  ;;  %v3371_v10 = vunpack.c.l.b16 %v3295_v25 }
 0x114   : > { %v7672_v41 = vadd.f32 %v1800_v51, %v1580_v11  ;;  %v1845_v8 = vpop.f32.mrf.mxu3  ;;  %v2751_v51 = vshll.u32 %v2547_v30, 16  ;;  %v6358_v11 = vrot.slane %v1860_v36, 9  ;;  %v2757_v30 = vrot.slane %v2755_v54, 4 }
 0x115   : > { %10482 = vst [vmem:[#allocation18_spill] sm:$0xff] %v7689_v13  ;;  %v2748_v36 = vor.u32 %v2747_v49, %v2744_v56 }
 0x116   : > { %v1805_v28 = vpop.f32.mrf.mxu1  ;;  %v2753_v23 = vrot.slane %v2751_v51, 5  ;;  %v1956_v7 = vsel %vm7473_vm1, %v6358_v11, %v1955_v32  ;;  %v3372_v51 = vunpack.c.l.b16 %v3298_v35  ;;  %v2550_v11 = vld [vmem:[#allocation2 + $0x70] sm:$0xf] }
 0x117   : > { %6374 = vmatmul.msk.bf16.gmra.mxu2 %vm1491_vm11, %v2056_v37  ;;  %v2032_v20 = vunpack.c.l.b16 %v1956_v7  ;;  %v2749_v34 = vrot.slane %v2748_v36, 4  ;;  %v3301_v56 = vrot.slane %v2550_v11, 5  ;;  %v2775_v1 = vshll.u32 %v2550_v11, 16 }
 0x118   : > { %v2758_v54 = vor.u32 %v2757_v30, %v2753_v23  ;;  %v3396_v32 = vpack.c.b16 %v3372_v51, %v3371_v10  ;;  %v2551_v10 = vld [vmem:[#allocation2 + $0x74] sm:$0x1] }
 0x119   : > { %6456 = vmatmul.msk.bf16.gmra.mxu3 %vm1491_vm11, %v6721_v29  ;;  %v2549_v29 = vld [vmem:[#allocation2 + $0x6c] sm:$0xf]  ;;  %v2057_v49 = vpack.c.b16 %v2033_v61, %v2032_v20  ;;  %v2754_v36 = vsel %vm7114_vm13, %v2749_v34, %v2753_v23  ;;  %v3303_v20 = vrot.slane %v3301_v56, 4  ;;  %v3304_v61 = vrot.slane %v2551_v10, 5 }
 0x11a   : > { %v1623_v22 = vpop.f32.mrf.mxu2  ;;  %v2759_v9 = vrot.slane %v2758_v54, 4  ;;  %v2766_v25 = vshrl.u32 %v2549_v29, 16  ;;  %v2769_v30 = vshll.u32 %v2549_v29, 16  ;;  %v6922_v29 = vld [vmem:[#allocation2 + $0x68] sm:$0x1]  ;;  %v2777_v34 = vrot.slane %v2775_v1, 5 }
 0x11b   : > { %v7682_v12 = vadd.f32 %v1843_v40, %v1623_v22  ;;  %v1583_v37 = vpop.f32.mrf.mxu0  ;;  %v2785_v1 = vshll.u32 %v2551_v10, 16 }
 0x11c   : > { %v7695_v40 = vadd.f32 %v1803_v53, %v1583_v37  ;;  %v1848_v47 = vpop.f32.mrf.mxu3  ;;  %v6921_v37 = vld [vmem:[#allocation2 + $0x64] sm:$0xf]  ;;  %v2764_v51 = vsel %vm7114_vm13, %v2759_v9, %v2763_v63  ;;  %v3302_v9 = vsel %vm7473_vm1, %v6490_v21, %v3301_v56  ;;  %v3305_v63 = vsel %vm7473_vm1, %v3303_v20, %v3304_v61 }
 0x11d   : > { %10481 = vst [vmem:[#allocation17_spill] sm:$0xff] %v7682_v12  ;;  %v1962_v7 = vrot.slane %v6921_v37, 5  ;;  %v2779_v12 = vshrl.u32 %v2550_v11, 16  ;;  %v2768_v11 = vrot.slane %v2766_v25, 4  ;;  %v2974_v57 = vunpack.c.l.b16 %v2764_v51 }
 0x11e   : > { %v3374_v56 = vunpack.c.l.b16 %v3305_v63 }
 0x11f   : > { %6472 = vmatmul.msk.bf16.gmra.mxu0 %vm1491_vm11, %v7689_v13  ;;  %v1964_v23 = vrot.slane %v1962_v7, 4 }
 0x120   : > { %v1808_v53 = vpop.f32.mrf.mxu1 }
 0x122   : > { %v1625_v27 = vpop.f32.mrf.mxu2 }
 0x123   : > { %v7699_v22 = vadd.f32 %v1845_v8, %v1625_v27  ;;  %v1585_v35 = vpop.f32.mrf.mxu0  ;;  %6506 = vmatmul.msk.bf16.gmra.mxu1 %vm1491_vm11, %v3396_v32  ;;  %v1861_v8 = vld [vmem:[#allocation2 + $0x60] sm:$0xe]  ;;  %v1965_v27 = vrot.slane %v6922_v29, 5  ;;  %v2781_v32 = vrot.slane %v2779_v12, 4 }
 0x124   : > { %v7701_v13 = vadd.f32 %v1805_v28, %v1585_v35  ;;  %v1850_v54 = vpop.f32.mrf.mxu3  ;;  %v6722_v28 = vld [vmem:[#allocation2 + $0x6c] sm:$0xff]  ;;  %v2771_v35 = vrot.slane %v2769_v30, 5  ;;  %v6359_v37 = vrot.slane %v1861_v8, 9  ;;  %v3373_v8 = vunpack.c.l.b16 %v3302_v9 }
 0x125   : > { %10483 = vst [vmem:[#allocation19_spill] sm:$0xff] %v7699_v22  ;;  %v2973_v22 = vunpack.c.l.b16 %v2754_v36  ;;  %v1966_v12 = vsel %vm7473_vm1, %v1964_v23, %v1965_v27  ;;  %v2782_v30 = vor.u32 %v2781_v32, %v2777_v34  ;;  %v2552_v27 = vld [vmem:[#allocation2 + $0x78] sm:$0xf]  ;;  %v6923_v9 = vld [vmem:[#allocation2 + $0x70] sm:$0xf] }
 0x126   : > { %v1963_v25 = vsel %vm7473_vm1, %v6359_v37, %v1962_v7  ;;  %v3397_v7 = vpack.c.b16 %v3374_v56, %v3373_v8  ;;  %v3188_v23 = vld [vmem:[#allocation2 + $0x78] sm:$0xe]  ;;  %v1969_v63 = vrot.slane %v6923_v9, 5 }
 0x127   : > { %6375 = vmatmul.msk.bf16.gmra.mxu2 %vm1491_vm11, %v2057_v49  ;;  %v2772_v49 = vor.u32 %v2771_v35, %v2768_v11  ;;  %v7720_v36 = vpack.c.b16 %v2974_v57, %v2973_v22  ;;  %v2783_v29 = vrot.slane %v2782_v30, 4  ;;  %v2553_v11 = vld [vmem:[#allocation2 + $0x7c] sm:$0xf]  ;;  %v2554_v30 = vld [vmem:[#allocation2 + $0x80] sm:$0x1] }
 0x128   : > { %v1810_v6 = vpop.f32.mrf.mxu1  ;;  %v3308_v22 = vrot.slane %v2553_v11, 5  ;;  %v2803_v8 = vshrl.u32 %v2553_v11, 16 }
 0x129   : > { %6457 = vmatmul.msk.bf16.gmra.mxu3 %vm1491_vm11, %v6722_v28  ;;  %10485 = vst [vmem:[#allocation21_spill] sm:$0xff] %v7720_v36  ;;  %v2773_v61 = vrot.slane %v2772_v49, 4  ;;  %v2787_v28 = vrot.slane %v2785_v1, 5  ;;  %v2790_v49 = vshrl.u32 %v2552_v27, 16  ;;  %v2799_v1 = vshll.u32 %v2553_v11, 16 }
 0x12a   : > { %v1628_v39 = vpop.f32.mrf.mxu2  ;;  %v2805_v11 = vrot.slane %v2803_v8, 4 }
 0x12b   : > { %v7713_v50 = vadd.f32 %v1848_v47, %v1628_v39  ;;  %v2034_v39 = vunpack.c.l.b16 %v1963_v25  ;;  %v2035_v47 = vunpack.c.l.b16 %v1966_v12  ;;  %v2788_v32 = vsel %vm7114_vm13, %v2783_v29, %v2787_v28  ;;  %v1862_v12 = vld [vmem:[#allocation2 + $0x6c] sm:$0xe] }
 0x12c   : > { %v1588_v51 = vpop.f32.mrf.mxu0  ;;  %v2413_v21 = vpop.f32.mrf.mxu3  ;;  %v2793_v25 = vshll.u32 %v2552_v27, 16  ;;  %v2976_v28 = vunpack.c.l.b16 %v2788_v32  ;;  %v6723_v27 = vld [vmem:[#allocation2 + $0x78] sm:$0xff]  ;;  %v6360_v9 = vrot.slane %v1862_v12, 9 }
 0x12d   : > { %10484 = vst [vmem:[#allocation20_spill] sm:$0xff] %v7713_v50  ;;  %v7722_v20 = vadd.f32 %v1808_v53, %v1588_v51  ;;  %v2058_v37 = vpack.c.b16 %v2035_v47, %v2034_v39  ;;  %v2778_v53 = vsel %vm7114_vm13, %v2773_v61, %v2777_v34  ;;  %v6491_v51 = vrot.slane %v3188_v23, 9  ;;  %v6924_v34 = vld [vmem:[#allocation2 + $0x74] sm:$0x1] }
 0x12e   : > { %v3310_v39 = vrot.slane %v3308_v22, 4  ;;  %v3311_v47 = vrot.slane %v2554_v30, 5  ;;  %v1972_v61 = vrot.slane %v6924_v34, 5  ;;  %v2975_v29 = vunpack.c.l.b16 %v2778_v53 }
 0x12f   : > { %6473 = vmatmul.msk.bf16.gmra.mxu0 %vm1491_vm11, %v7720_v36  ;;  %v2792_v36 = vrot.slane %v2790_v49, 4  ;;  %v2801_v50 = vrot.slane %v2799_v1, 5  ;;  %v3309_v23 = vsel %vm7473_vm1, %v6491_v51, %v3308_v22  ;;  %v1970_v53 = vsel %vm7473_vm1, %v6360_v9, %v1969_v63 }
 0x130   : > { %v3465_v57 = vpop.f32.mrf.mxu1  ;;  %v3375_v22 = vunpack.c.l.b16 %v3309_v23  ;;  %v2036_v34 = vunpack.c.l.b16 %v1970_v53  ;;  %v3189_v23 = vld [vmem:[#allocation2 + $0x84] sm:$0xe] }
 0x131   : > { %v2806_v1 = vor.u32 %v2805_v11, %v2801_v50 }
 0x132   : > { %v1630_v10 = vpop.f32.mrf.mxu2 }
 0x133   : > { %v7726_v35 = vadd.f32 %v1850_v54, %v1630_v10  ;;  %6507 = vmatmul.msk.bf16.gmra.mxu1 %vm1491_vm11, %v3397_v7  ;;  %v1971_v7 = vrot.slane %v1969_v63, 4 }
 0x134   : > { %v1590_v54 = vpop.f32.mrf.mxu0  ;;  %v2415_v56 = vpop.f32.mrf.mxu3 }
 0x135   : > { %10486 = vst [vmem:[#allocation22_spill] sm:$0xff] %v7726_v35  ;;  %v7733_v10 = vadd.f32 %v1810_v6, %v1590_v54  ;;  %v2795_v35 = vrot.slane %v2793_v25, 5  ;;  %v3312_v6 = vsel %vm7473_vm1, %v3310_v39, %v3311_v47  ;;  %v7740_v54 = vpack.c.b16 %v2976_v28, %v2975_v29 }
 0x136   : > { %v1973_v32 = vsel %vm7473_vm1, %v1971_v7, %v1972_v61  ;;  %v2809_v25 = vshll.u32 %v2554_v30, 16  ;;  %v3376_v8 = vunpack.c.l.b16 %v3312_v6  ;;  %v2555_v30 = vld [vmem:[#allocation2 + $0x84] sm:$0xf]  ;;  %v2556_v61 = vld [vmem:[#allocation2 + $0x88] sm:$0xf] }
 0x137   : > { %6376 = vmatmul.msk.bf16.gmra.mxu2 %vm1491_vm11, %v2058_v37  ;;  %10487 = vst [vmem:[#allocation23_spill] sm:$0xff] %v7740_v54  ;;  %v2796_v49 = vor.u32 %v2795_v35, %v2792_v36  ;;  %v2037_v29 = vunpack.c.l.b16 %v1973_v32  ;;  %v2807_v36 = vrot.slane %v2806_v1, 4  ;;  %v3315_v9 = vrot.slane %v2556_v61, 5  ;;  %v1863_v32 = vld [vmem:[#allocation2 + $0x78] sm:$0xe] }
 0x138   : > { %v3467_v14 = vpop.f32.mrf.mxu1  ;;  %v2811_v35 = vrot.slane %v2809_v25, 5  ;;  %v2817_v25 = vshll.u32 %v2555_v30, 16 }
 0x139   : > { %6458 = vmatmul.msk.bf16.gmra.mxu3 %vm1491_vm11, %v6723_v27  ;;  %v2059_v11 = vpack.c.b16 %v2037_v29, %v2036_v34 }
 0x13a   : > { %v2126_v18 = vpop.f32.mrf.mxu2 }
 0x13b   : > { %v2206_v37 = vadd.f32 %v2126_v18, %v7460_v45  ;;  %v1776_v45 = vadd.f32 %v7483_v55, %v7509_v0  ;;  %v2797_v18 = vrot.slane %v2796_v49, 4  ;;  %v6925_v0 = vld [vmem:[#allocation2 + $0x7c] sm:$0xf]  ;;  %v2557_v49 = vld [vmem:[#allocation2 + $0x8c] sm:$0x1] }
 0x13c   : > { %v3067_v51 = vpop.f32.mrf.mxu0  ;;  %v2418_v39 = vpop.f32.mrf.mxu3  ;;  %v1976_v6 = vrot.slane %v6925_v0, 5  ;;  %v3318_v34 = vrot.slane %v2557_v49, 5 }
 0x13d   : > { %v2493_v12 = vadd.f32 %v2413_v21, %v2206_v37  ;;  %v3398_v21 = vpack.c.b16 %v3376_v8, %v3375_v22  ;;  %v2802_v55 = vsel %vm7114_vm13, %v2797_v18, %v2801_v50  ;;  %v2814_v37 = vshrl.u32 %v2555_v30, 16  ;;  %v6926_v50 = vld [vmem:[#allocation2 + $0x80] sm:$0x1] }
 0x13e   : > { %v2827_v8 = vshrl.u32 %v2556_v61, 16  ;;  %v1979_v29 = vrot.slane %v6926_v50, 5  ;;  %v2977_v18 = vunpack.c.l.b16 %v2802_v55 }
 0x13f   : > { %v3147_v47 = vadd.f32 %v3067_v51, %v2493_v12  ;;  %6474 = vmatmul.msk.bf16.gmra.mxu0 %vm1491_vm11, %v7740_v54  ;;  %v2823_v12 = vshll.u32 %v2556_v61, 16  ;;  %v6492_v51 = vrot.slane %v3189_v23, 9  ;;  %v2816_v30 = vrot.slane %v2814_v37, 4 }
 0x140   : > { %v3470_v27 = vpop.f32.mrf.mxu1  ;;  %v2829_v23 = vrot.slane %v2827_v8, 4 }
 0x141   : > { %v7752_v63 = vadd.f32 %v3465_v57, %v3147_v47  ;;  %v2812_v57 = vsel %vm7114_vm13, %v2807_v36, %v2811_v35  ;;  %v3317_v47 = vrot.slane %v3315_v9, 4  ;;  %v6361_v35 = vrot.slane %v1863_v32, 9 }
 0x142   : > { %v2128_v28 = vpop.f32.mrf.mxu2  ;;  %v2978_v36 = vunpack.c.l.b16 %v2812_v57  ;;  %v7764_v61 = vrot.slane %v2823_v12, 5  ;;  %v3316_v50 = vsel %vm7473_vm1, %v6492_v51, %v3315_v9 }
 0x143   : > { %v2207_v7 = vadd.f32 %v2128_v28, %v1776_v45  ;;  %6508 = vmatmul.msk.bf16.gmra.mxu1 %vm1491_vm11, %v3398_v21  ;;  %v6724_v45 = vld [vmem:[#allocation2 + $0x84] sm:$0xff]  ;;  %v1978_v21 = vrot.slane %v1976_v6, 4  ;;  %v1977_v37 = vsel %vm7473_vm1, %v6361_v35, %v1976_v6  ;;  %v1781_v6 = vadd.f32 %v7523_v19, %v7539_v33 }
 0x144   : > { %v3069_v1 = vpop.f32.mrf.mxu0  ;;  %v2420_v22 = vpop.f32.mrf.mxu3  ;;  %v2830_v8 = vor.u32 %v2829_v23, %v7764_v61  ;;  %v6927_v19 = vld [vmem:[#allocation2 + $0x88] sm:$0xf] }
 0x145   : > { %v2494_v53 = vadd.f32 %v2415_v56, %v2207_v7  ;;  %v2819_v7 = vrot.slane %v2817_v25, 5  ;;  %v3377_v25 = vunpack.c.l.b16 %v3316_v50  ;;  %v1983_v33 = vrot.slane %v6927_v19, 5 }
 0x146   : > { %v2831_v35 = vrot.slane %v2830_v8, 4 }
 0x147   : > { %6377 = vmatmul.msk.bf16.gmra.mxu2 %vm1491_vm11, %v2059_v11  ;;  %v3148_v56 = vadd.f32 %v3069_v1, %v2494_v53  ;;  %v3319_v11 = vsel %vm7473_vm1, %v3317_v47, %v3318_v34  ;;  %v1980_v53 = vsel %vm7473_vm1, %v1978_v21, %v1979_v29  ;;  %v2820_v32 = vor.u32 %v2819_v7, %v2816_v30 }
 0x148   : > { %v7762_v54 = vpop.f32.mrf.mxu1  ;;  %v3378_v12 = vunpack.c.l.b16 %v3319_v11  ;;  %v2038_v47 = vunpack.c.l.b16 %v1977_v37  ;;  %v2039_v34 = vunpack.c.l.b16 %v1980_v53  ;;  %v3190_v11 = vld [vmem:[#allocation2 + $0x90] sm:$0xe] }
 0x149   : > { %v7760_v28 = vadd.f32 %v3467_v14, %v3148_v56  ;;  %6459 = vmatmul.msk.bf16.gmra.mxu3 %vm1491_vm11, %v6724_v45  ;;  %v7772_v14 = vpack.c.b16 %v2978_v36, %v2977_v18  ;;  %v2558_v56 = vld [vmem:[#allocation2 + $0x90] sm:$0xf]  ;;  %v2821_v29 = vrot.slane %v2820_v32, 4  ;;  %v2559_v18 = vld [vmem:[#allocation2 + $0x94] sm:$0xf]  ;;  %v6493_v8 = vrot.slane %v3190_v11, 9 }
 0x14a   : > { %v2131_v0 = vpop.f32.mrf.mxu2  ;;  %v3399_v45 = vpack.c.b16 %v3378_v12, %v3377_v25  ;;  %v2838_v23 = vshrl.u32 %v2558_v56, 16  ;;  %v2841_v50 = vshll.u32 %v2558_v56, 16  ;;  %v2851_v37 = vshrl.u32 %v2559_v18, 16  ;;  %v2560_v32 = vld [vmem:[#allocation2 + $0x98] sm:$0x1]  ;;  %v6725_v56 = vld [vmem:[#allocation2 + $0x90] sm:$0xff] }
 0x14b   : > { %v2208_v55 = vadd.f32 %v2131_v0, %v7529_v44  ;;  %v2833_v44 = vshll.u32 %v2557_v49, 16  ;;  %v3322_v49 = vrot.slane %v2559_v18, 5  ;;  %v2060_v0 = vpack.c.b16 %v2039_v34, %v2038_v47  ;;  %v6928_v47 = vld [vmem:[#allocation2 + $0x8c] sm:$0x1] }
 0x14c   : > { %v3072_v9 = vpop.f32.mrf.mxu0  ;;  %v7778_v1 = vpop.f32.mrf.mxu3  ;;  %v2826_v53 = vsel %vm7114_vm13, %v2821_v29, %v7764_v61  ;;  %v1986_v34 = vrot.slane %v6928_v47, 5  ;;  %v2843_v61 = vrot.slane %v2841_v50, 5 }
 0x14d   : > { %v2495_v57 = vadd.f32 %v2418_v39, %v2208_v55  ;;  %v2835_v21 = vrot.slane %v2833_v44, 5  ;;  %v2847_v55 = vshll.u32 %v2559_v18, 16  ;;  %v3324_v44 = vrot.slane %v3322_v49, 4 }
 0x14e   : > { %v3323_v47 = vsel %vm7473_vm1, %v6493_v8, %v3322_v49 }
 0x14f   : > { %v3149_v51 = vadd.f32 %v3072_v9, %v2495_v57  ;;  %6475 = vmatmul.msk.bf16.gmra.mxu0 %vm1491_vm11, %v7772_v14  ;;  %v1864_v57 = vld [vmem:[#allocation2 + $0x84] sm:$0xe]  ;;  %v2836_v12 = vsel %vm7114_vm13, %v2831_v35, %v2835_v21  ;;  %v7796_v18 = vrot.slane %v2847_v55, 5  ;;  %v2979_v35 = vunpack.c.l.b16 %v2826_v53 }
 0x150   : > { %v7787_v30 = vpop.f32.mrf.mxu1  ;;  %v6362_v29 = vrot.slane %v1864_v57, 9  ;;  %v2980_v21 = vunpack.c.l.b16 %v2836_v12  ;;  %v3379_v57 = vunpack.c.l.b16 %v3323_v47  ;;  %v2561_v12 = vld [vmem:[#allocation2 + $0x9c] sm:$0xf] }
 0x151   : > { %v7785_v39 = vadd.f32 %v3470_v27, %v3149_v51  ;;  %v3325_v51 = vrot.slane %v2560_v32, 5 }
 0x152   : > { %v2133_v36 = vpop.f32.mrf.mxu2  ;;  %v1984_v55 = vsel %vm7473_vm1, %v6362_v29, %v1983_v33  ;;  %v7812_v53 = vpack.c.b16 %v2980_v21, %v2979_v35 }
 0x153   : > { %v2209_v7 = vadd.f32 %v2133_v36, %v1781_v6  ;;  %6509 = vmatmul.msk.bf16.gmra.mxu1 %vm1491_vm11, %v3399_v45  ;;  %v2840_v6 = vrot.slane %v2838_v23, 4  ;;  %v1985_v45 = vrot.slane %v1983_v33, 4  ;;  %v2853_v36 = vrot.slane %v2851_v37, 4 }
 0x154   : > { %v3074_v25 = vpop.f32.mrf.mxu0  ;;  %v2425_v9 = vpop.f32.mrf.mxu3 }
 0x155   : > { %v2496_v27 = vadd.f32 %v2420_v22, %v2209_v7  ;;  %v2844_v50 = vor.u32 %v2843_v61, %v2840_v6  ;;  %v2854_v37 = vor.u32 %v2853_v36, %v7796_v18 }
 0x157   : > { %6378 = vmatmul.msk.bf16.gmra.mxu2 %vm1491_vm11, %v2060_v0  ;;  %v3150_v22 = vadd.f32 %v3074_v25, %v2496_v27  ;;  %v3326_v0 = vsel %vm7473_vm1, %v3324_v44, %v3325_v51  ;;  %v2857_v27 = vshll.u32 %v2560_v32, 16  ;;  %v2562_v44 = vld [vmem:[#allocation2 + $0xa0] sm:$0xf]  ;;  %v1786_v51 = vadd.f32 %v7554_v60, %v7568_v59 }
 0x158   : > { %v3477_v19 = vpop.f32.mrf.mxu1  ;;  %v3380_v25 = vunpack.c.l.b16 %v3326_v0  ;;  %v2855_v6 = vrot.slane %v2854_v37, 4  ;;  %v2862_v32 = vshrl.u32 %v2561_v12, 16  ;;  %v2871_v36 = vshll.u32 %v2562_v44, 16  ;;  %v6929_v0 = vld [vmem:[#allocation2 + $0x94] sm:$0xf] }
 0x159   : > { %v7799_v7 = vadd.f32 %v7762_v54, %v3150_v22  ;;  %6460 = vmatmul.msk.bf16.gmra.mxu3 %vm1491_vm11, %v6725_v56  ;;  %v1987_v54 = vsel %vm7473_vm1, %v1985_v45, %v1986_v34  ;;  %v2040_v22 = vunpack.c.l.b16 %v1984_v55  ;;  %v2845_v34 = vrot.slane %v2844_v50, 4  ;;  %v3191_v50 = vld [vmem:[#allocation2 + $0x9c] sm:$0xe] }
 0x15a   : > { %v2136_v11 = vpop.f32.mrf.mxu2  ;;  %v2041_v56 = vunpack.c.l.b16 %v1987_v54  ;;  %v2859_v61 = vrot.slane %v2857_v27, 5  ;;  %v3400_v29 = vpack.c.b16 %v3380_v25, %v3379_v57  ;;  %v2865_v45 = vshll.u32 %v2561_v12, 16  ;;  %v1865_v54 = vld [vmem:[#allocation2 + $0x90] sm:$0xe]  ;;  %v2563_v27 = vld [vmem:[#allocation2 + $0xa4] sm:$0x1] }
 0x15b   : > { %v2210_v23 = vadd.f32 %v2136_v11, %v7558_v46  ;;  %v2875_v60 = vshrl.u32 %v2562_v44, 16  ;;  %v3329_v59 = vrot.slane %v2562_v44, 5  ;;  %v2850_v55 = vsel %vm7114_vm13, %v2845_v34, %v7796_v18  ;;  %v6930_v18 = vld [vmem:[#allocation2 + $0x98] sm:$0x1] }
 0x15c   : > { %v3077_v46 = vpop.f32.mrf.mxu0  ;;  %v2428_v8 = vpop.f32.mrf.mxu3  ;;  %v2061_v47 = vpack.c.b16 %v2041_v56, %v2040_v22  ;;  %v2867_v57 = vrot.slane %v2865_v45, 5  ;;  %v7830_v25 = vrot.slane %v2871_v36, 5  ;;  %v3332_v22 = vrot.slane %v2563_v27, 5 }
 0x15d   : > { %v2497_v49 = vadd.f32 %v7778_v1, %v2210_v23  ;;  %v1990_v23 = vrot.slane %v6929_v0, 5  ;;  %v2877_v44 = vrot.slane %v2875_v60, 4  ;;  %v1993_v56 = vrot.slane %v6930_v18, 5 }
 0x15f   : > { %v3151_v33 = vadd.f32 %v3077_v46, %v2497_v49  ;;  %6476 = vmatmul.msk.bf16.gmra.mxu0 %vm1491_vm11, %v7812_v53  ;;  %v2864_v49 = vrot.slane %v2862_v32, 4  ;;  %v2981_v32 = vunpack.c.l.b16 %v2850_v55  ;;  %v2878_v60 = vor.u32 %v2877_v44, %v7830_v25 }
 0x160   : > { %v7822_v21 = vpop.f32.mrf.mxu1 }
 0x161   : > { %v7820_v1 = vadd.f32 %v7787_v30, %v3151_v33  ;;  %v2860_v30 = vsel %vm7114_vm13, %v2855_v6, %v2859_v61  ;;  %v3331_v33 = vrot.slane %v3329_v59, 4  ;;  %v6363_v6 = vrot.slane %v1865_v54, 9  ;;  %v2564_v54 = vld [vmem:[#allocation2 + $0xa8] sm:$0xf] }
 0x162   : > { %v2138_v35 = vpop.f32.mrf.mxu2  ;;  %v1992_v61 = vrot.slane %v1990_v23, 4  ;;  %v2982_v45 = vunpack.c.l.b16 %v2860_v30  ;;  %v2881_v30 = vshll.u32 %v2563_v27, 16  ;;  %v2879_v18 = vrot.slane %v2878_v60, 4  ;;  %v6931_v27 = vld [vmem:[#allocation2 + $0xa0] sm:$0xf] }
 0x163   : > { %v2211_v11 = vadd.f32 %v2138_v35, %v1786_v51  ;;  %6510 = vmatmul.msk.bf16.gmra.mxu1 %vm1491_vm11, %v3400_v29  ;;  %v6494_v51 = vrot.slane %v3191_v50, 9 }
 0x164   : > { %v3079_v12 = vpop.f32.mrf.mxu0  ;;  %v7832_v46 = vpop.f32.mrf.mxu3  ;;  %v1994_v55 = vsel %vm7473_vm1, %v1992_v61, %v1993_v56  ;;  %v2889_v56 = vshll.u32 %v2564_v54, 16 }
 0x165   : > { %v2498_v37 = vadd.f32 %v2425_v9, %v2211_v11  ;;  %v6726_v9 = vld [vmem:[#allocation2 + $0x9c] sm:$0xff]  ;;  %v2868_v11 = vor.u32 %v2867_v57, %v2864_v49  ;;  %v3330_v0 = vsel %vm7473_vm1, %v6494_v51, %v3329_v59 }
 0x166   : > { %v3381_v57 = vunpack.c.l.b16 %v3330_v0  ;;  %v1866_v0 = vld [vmem:[#allocation2 + $0x9c] sm:$0xe] }
 0x167   : > { %6379 = vmatmul.msk.bf16.gmra.mxu2 %vm1491_vm11, %v2061_v47  ;;  %v3152_v34 = vadd.f32 %v3079_v12, %v2498_v37  ;;  %v3333_v47 = vsel %vm7473_vm1, %v3331_v33, %v3332_v22  ;;  %v7850_v37 = vpack.c.b16 %v2982_v45, %v2981_v32  ;;  %v7852_v12 = vld [vmem:[#allocation2 + $0xac] sm:$0xf]  ;;  %v2043_v33 = vunpack.c.l.b16 %v1994_v55  ;;  %v6932_v32 = vld [vmem:[#allocation2 + $0xa4] sm:$0x1] }
 0x168   : > { %v7837_v35 = vpop.f32.mrf.mxu1  ;;  %v3382_v59 = vunpack.c.l.b16 %v3333_v47  ;;  %v2869_v22 = vrot.slane %v2868_v11, 4  ;;  %v2895_v61 = vshll.u32 %v7852_v12, 16  ;;  %v2000_v45 = vrot.slane %v6932_v32, 5  ;;  %v452_v47 = vld [vmem:[#allocation2 + $0xc0] sm:$0x1] }
 0x169   : > { %v7835_v29 = vadd.f32 %v3477_v19, %v3152_v34  ;;  %6461 = vmatmul.msk.bf16.gmra.mxu3 %vm1491_vm11, %v6726_v9  ;;  %v1991_v19 = vsel %vm7473_vm1, %v6363_v6, %v1990_v23  ;;  %10488 = vst [vmem:[#allocation24_spill] sm:$0xff] %v7850_v37  ;;  %v2883_v34 = vrot.slane %v2881_v30, 5  ;;  %v2886_v9 = vshrl.u32 %v2564_v54, 16 }
 0x16a   : > { %v2141_v36 = vpop.f32.mrf.mxu2  ;;  %v1997_v6 = vrot.slane %v6931_v27, 5  ;;  %v3401_v60 = vpack.c.b16 %v3382_v59, %v3381_v57  ;;  %v2874_v55 = vsel %vm7114_vm13, %v2869_v22, %v7830_v25  ;;  %v2891_v57 = vrot.slane %v2889_v56, 5  ;;  %v3192_v59 = vld [vmem:[#allocation2 + $0xa8] sm:$0xe]  ;;  %v2566_v22 = vld [vmem:[#allocation2 + $0xb0] sm:$0x1] }
 0x16b   : > { %v2212_v50 = vadd.f32 %v2141_v36, %v7589_v15  ;;  %v2042_v15 = vunpack.c.l.b16 %v1991_v19  ;;  %v1791_v36 = vadd.f32 %v7583_v42, %v7602_v58  ;;  %v3336_v42 = vrot.slane %v7852_v12, 5  ;;  %v536_v56 = vld [vmem:[%s7054_s12 + $0xf8] sm:$0xff] }
 0x16c   : > { %v3082_v44 = vpop.f32.mrf.mxu0  ;;  %v7854_v51 = vpop.f32.mrf.mxu3  ;;  %v453_v58 = vsel %vm7029_vm3, 0, %v452_v47 }
 0x16d   : > { %v2499_v49 = vadd.f32 %v2428_v8, %v2212_v50  ;;  %v2899_v8 = vshrl.u32 %v7852_v12, 16  ;;  %v2062_v19 = vpack.c.b16 %v2043_v33, %v2042_v15  ;;  %v6364_v15 = vrot.slane %v1866_v0, 9  ;;  %454 = vst [vmem:[#allocation2 + $0xc0] sm:$0x1] %v453_v58 }
 0x16e   : > { %v1999_v33 = vrot.slane %v1997_v6, 4 }
 0x16f   : > { %v3153_v23 = vadd.f32 %v3082_v44, %v2499_v49  ;;  %6477 = vmatmul.msk.bf16.gmra.mxu0 %vm1491_vm11, %v7850_v37  ;;  %v2888_v49 = vrot.slane %v2886_v9, 4  ;;  %v535_v44 = vld [vmem:[%s7054_s12 + $0xf0] sm:$0xff]  ;;  %v2901_v25 = vrot.slane %v2899_v8, 4  ;;  %v3339_v9 = vrot.slane %v2566_v22, 5 }
 0x170   : > { %v7868_v30 = vpop.f32.mrf.mxu1  ;;  %v6727_v8 = vld [vmem:[#allocation2 + $0xa8] sm:$0xff] }
 0x171   : > { %v7863_v11 = vadd.f32 %v7822_v21, %v3153_v23  ;;  %v2884_v21 = vsel %vm7114_vm13, %v2879_v18, %v2883_v34  ;;  %v7876_v23 = vrot.slane %v2895_v61, 5  ;;  %v6495_v18 = vrot.slane %v3192_v59, 9 }
 0x172   : > { %v2143_v50 = vpop.f32.mrf.mxu2  ;;  %v3338_v34 = vrot.slane %v3336_v42, 4  ;;  %v2983_v61 = vunpack.c.l.b16 %v2874_v55  ;;  %v2984_v47 = vunpack.c.l.b16 %v2884_v21  ;;  %v2905_v21 = vshll.u32 %v2566_v22, 16 }
 0x173   : > { %v2213_v54 = vadd.f32 %v2143_v50, %v1791_v36  ;;  %6511 = vmatmul.msk.bf16.gmra.mxu1 %vm1491_vm11, %v3401_v60  ;;  %v567_v36 = vpack.c.bf16 %v535_v44, %v535_v44  ;;  %v2001_v60 = vsel %vm7473_vm1, %v1999_v33, %v2000_v45  ;;  %v2892_v50 = vor.u32 %v2891_v57, %v2888_v49 }
 0x174   : > { %v3084_v27 = vpop.f32.mrf.mxu0  ;;  %v7880_v32 = vpop.f32.mrf.mxu3  ;;  %v2902_v58 = vor.u32 %v2901_v25, %v7876_v23  ;;  %v3340_v45 = vsel %vm7473_vm1, %v3338_v34, %v3339_v9  ;;  %v7900_v57 = vpack.c.b16 %v2984_v47, %v2983_v61  ;;  %v2907_v47 = vrot.slane %v2905_v21, 5 }
 0x175   : > { %v2500_v12 = vadd.f32 %v7832_v46, %v2213_v54  ;;  %v1998_v46 = vsel %vm7473_vm1, %v6364_v15, %v1997_v6  ;;  %v1796_v54 = vadd.f32 %v7618_v43, %v7641_v17  ;;  %v3337_v6 = vsel %vm7473_vm1, %v6495_v18, %v3336_v42 }
 0x176   : > { %v827_v49 = vshrl.u32 %v567_v36, 16  ;;  %10489 = vst [vmem:[#allocation25_spill] sm:$0xff] %v7900_v57  ;;  %v2044_v43 = vunpack.c.l.b16 %v1998_v46  ;;  %v2045_v17 = vunpack.c.l.b16 %v2001_v60  ;;  %v7904_v33 = vrot.slane %v2892_v50, 4 }
 0x177   : > { %6380 = vmatmul.msk.bf16.gmra.mxu2 %vm1491_vm11, %v2062_v19  ;;  %v3154_v0 = vadd.f32 %v3084_v27, %v2500_v12  ;;  %v568_v19 = vpack.c.bf16 %v536_v56, %v536_v56  ;;  %v7906_v25 = vrot.slane %v2902_v58, 4  ;;  %v7908_v12 = vld [vmem:[#allocation2 + $0xb8] sm:$0xf]  ;;  %v830_v22 = vshll.u32 %v567_v36, 16  ;;  %v998_v56 = vld [vmem:[#allocation2 + $0xc0] sm:$0xf] }
 0x178   : > { %v7894_v55 = vpop.f32.mrf.mxu1  ;;  %v829_v42 = vrot.slane %v827_v49, 7  ;;  %v3383_v18 = vunpack.c.l.b16 %v3337_v6  ;;  %v3384_v34 = vunpack.c.l.b16 %v3340_v45  ;;  %v2919_v36 = vshll.u32 %v7908_v12, 16 }
 0x179   : > { %v7892_v59 = vadd.f32 %v7837_v35, %v3154_v0  ;;  %6462 = vmatmul.msk.bf16.gmra.mxu3 %vm1491_vm11, %v6727_v8  ;;  %v2567_v35 = vld [vmem:[#allocation2 + $0xb4] sm:$0xf]  ;;  %v835_v9 = vshrl.u32 %v568_v19, 16  ;;  %v838_v37 = vshll.u32 %v568_v19, 16  ;;  %v3343_v5 = vrot.slane %v7908_v12, 5 }
 0x17a   : > { %v2146_v44 = vpop.f32.mrf.mxu2  ;;  %v2910_v8 = vshrl.u32 %v2567_v35, 16  ;;  %v2913_v46 = vshll.u32 %v2567_v35, 16  ;;  %v832_v60 = vor.u32 %v830_v22, %v829_v42  ;;  %v833_v58 = vrot.slane %v829_v42, 4  ;;  %v6933_v35 = vld [vmem:[#allocation2 + $0xac] sm:$0xf] }
 0x17b   : > { %v2214_v15 = vadd.f32 %v2146_v44, %v7625_v38  ;;  %v502_v38 = vld [vmem:[#allocation2 + $0xc8] sm:$0x1]  ;;  %v837_v44 = vrot.slane %v835_v9, 7  ;;  %v3402_v49 = vpack.c.b16 %v3384_v34, %v3383_v18  ;;  %v2004_v19 = vrot.slane %v6933_v35, 5  ;;  %v6934_v22 = vld [vmem:[#allocation2 + $0xb0] sm:$0x1] }
 0x17c   : > { %v3087_v0 = vpop.f32.mrf.mxu0  ;;  %v7911_v61 = vpop.f32.mrf.mxu3  ;;  %v999_v6 = vsel %vm7090_vm12, %v832_v60, %v998_v56  ;;  %v503_v45 = vsel %vm7037_vm5, 0, %v502_v38  ;;  %v2063_v38 = vpack.c.b16 %v2045_v17, %v2044_v43  ;;  %v2908_v34 = vsel %vm7114_vm13, %v7906_v25, %v2907_v47  ;;  %v2569_v17 = vld [vmem:[#allocation2 + $0xbc] sm:$0x1] }
 0x17d   : > { %v2501_v27 = vadd.f32 %v7854_v51, %v2214_v15  ;;  %v2923_v51 = vshrl.u32 %v7908_v12, 16  ;;  %v1867_v15 = vld [vmem:[#allocation2 + $0xa8] sm:$0xe]  ;;  %v840_v42 = vor.u32 %v838_v37, %v837_v44  ;;  %1000 = vst [vmem:[#allocation2 + $0xc0] sm:$0xf] %v999_v6  ;;  %v2912_v60 = vrot.slane %v2910_v8, 4 }
 0x17e   : > { %504 = vst [vmem:[#allocation2 + $0xc8] sm:$0x1] %v503_v45  ;;  %v3193_v37 = vld [vmem:[#allocation2 + $0xb4] sm:$0xe]  ;;  %v2006_v43 = vrot.slane %v2004_v19, 4  ;;  %v3345_v25 = vrot.slane %v3343_v5, 4  ;;  %v2986_v45 = vunpack.c.l.b16 %v2908_v34 }
 0x17f   : > { %v3155_v50 = vadd.f32 %v3087_v0, %v2501_v27  ;;  %6478 = vmatmul.msk.bf16.gmra.mxu0 %vm1491_vm11, %v7900_v57  ;;  %v2007_v27 = vrot.slane %v6934_v22, 5  ;;  %v841_v18 = vsel %vm7081_vm10, %v833_v58, %v840_v42  ;;  %v6365_v0 = vrot.slane %v1867_v15, 9 }
 0x180   : > { %v7924_v31 = vpop.f32.mrf.mxu1  ;;  %1001 = vst.msk [vmem:[#allocation2 + $0xc4] sm:$0xf] %vm394_vm6, %v841_v18  ;;  %v2925_v26 = vrot.slane %v2923_v51, 4  ;;  %v842_v58 = vrot.slane %v837_v44, 4  ;;  %v6496_v6 = vrot.slane %v3193_v37, 9  ;;  %v3346_v47 = vrot.slane %v2569_v17, 5 }
 0x181   : > { %v7922_v21 = vadd.f32 %v7868_v30, %v3155_v50  ;;  %v2898_v30 = vsel %vm7114_vm13, %v7904_v33, %v7876_v23  ;;  %v2915_v50 = vrot.slane %v2913_v46, 5  ;;  %v7939_v23 = vrot.slane %v2919_v36, 5  ;;  %v6728_v46 = vld [vmem:[#allocation2 + $0xb4] sm:$0xff] }
 0x182   : > { %v2148_v9 = vpop.f32.mrf.mxu2  ;;  %v2008_v36 = vsel %vm7473_vm1, %v2006_v43, %v2007_v27  ;;  %v2929_v15 = vshll.u32 %v2569_v17, 16  ;;  %v7968_v17 = vld [vmem:[#allocation2 + $0xbc] sm:$0x1] }
 0x183   : > { %v2215_v56 = vadd.f32 %v2148_v9, %v1796_v54  ;;  %6512 = vmatmul.msk.bf16.gmra.mxu1 %vm1491_vm11, %v3402_v49  ;;  %v2005_v49 = vsel %vm7473_vm1, %v6365_v0, %v2004_v19  ;;  %v2916_v51 = vor.u32 %v2915_v50, %v2912_v60  ;;  %v2926_v22 = vor.u32 %v2925_v26, %v7939_v23  ;;  %v3864_v60 = vld [vmem:[#allocation2 + $0x18] sm:$0xf]  ;;  %v7964_v50 = vld [vmem:[#allocation2 + $0x1c] sm:$0xf] }
 0x184   : > { %v3089_v33 = vpop.f32.mrf.mxu0  ;;  %v7941_v12 = vpop.f32.mrf.mxu3  ;;  %v3344_v9 = vsel %vm7473_vm1, %v6496_v6, %v3343_v5  ;;  %v2047_v18 = vunpack.c.l.b16 %v2008_v36  ;;  %v2014_v26 = vrot.slane %v7968_v17, 5 }
 0x185   : > { %v2502_v54 = vadd.f32 %v7880_v32, %v2215_v56  ;;  %v2985_v32 = vunpack.c.l.b16 %v2898_v30  ;;  %v1002_v35 = vld [vmem:[#allocation2 + $0xc8] sm:$0x1]  ;;  %v3347_v56 = vsel %vm7473_vm1, %v3345_v25, %v3346_v47  ;;  %v2046_v30 = vunpack.c.l.b16 %v2005_v49 }
 0x186   : > { %v1003_v19 = vsel %vm7029_vm3, %v842_v58, %v1002_v35  ;;  %v2917_v34 = vrot.slane %v2916_v51, 4  ;;  %v3385_v0 = vunpack.c.l.b16 %v3344_v9  ;;  %v3386_v5 = vunpack.c.l.b16 %v3347_v56  ;;  %v2570_v58 = vld [vmem:[#allocation2 + $0xc0] sm:$0xf] }
 0x187   : > { %6381 = vmatmul.msk.bf16.gmra.mxu2 %vm1491_vm11, %v2063_v38  ;;  %v7944_v8 = vadd.f32 %v3089_v33, %v2502_v54  ;;  %1004 = vst [vmem:[#allocation2 + $0xc8] sm:$0x1] %v1003_v19  ;;  %v7961_v27 = vpack.c.b16 %v2986_v45, %v2985_v32  ;;  %v2927_v43 = vrot.slane %v2926_v22, 4  ;;  %v2571_v6 = vld [vmem:[#allocation2 + $0xc4] sm:$0xf]  ;;  %v3913_v25 = vshrl.u32 %v3864_v60, 16 }
 0x188   : > { %v7950_v42 = vpop.f32.mrf.mxu1  ;;  %v3922_v47 = vshll.u32 %v7964_v50, 16  ;;  %v2064_v45 = vpack.c.b16 %v2047_v18, %v2046_v30  ;;  %v2922_v49 = vsel %vm7114_vm13, %v2917_v34, %v7939_v23  ;;  %v3403_v36 = vpack.c.b16 %v3386_v5, %v3385_v0  ;;  %v6936_v22 = vld [vmem:[#allocation2 + $0xb8] sm:$0xf] }
 0x189   : > { %6463 = vmatmul.msk.bf16.gmra.mxu3 %vm1491_vm11, %v6728_v46  ;;  %10490 = vst [vmem:[#allocation26_spill] sm:$0xff] %v7961_v27  ;;  %v3926_v46 = vshrl.u32 %v7964_v50, 16  ;;  %v2011_v9 = vrot.slane %v6936_v22, 5  ;;  %v2934_v56 = vshrl.u32 %v2570_v58, 16  ;;  %v3350_v19 = vrot.slane %v2571_v6, 5 }
 0x18a   : > { %v2151_v44 = vpop.f32.mrf.mxu2  ;;  %v2943_v30 = vshll.u32 %v2571_v6, 16  ;;  %v2947_v18 = vshrl.u32 %v2571_v6, 16  ;;  %v7986_v34 = vrot.slane %v3922_v47, 5 }
 0x18b   : > { %v2216_v38 = vadd.f32 %v2151_v44, %v7655_v2  ;;  %v2931_v2 = vrot.slane %v2929_v15, 5  ;;  %v1868_v44 = vld [vmem:[#allocation2 + $0xb4] sm:$0xe]  ;;  %v3928_v0 = vrot.slane %v3926_v46, 4  ;;  %v2013_v6 = vrot.slane %v2011_v9, 4 }
 0x18c   : > { %v3092_v54 = vpop.f32.mrf.mxu0  ;;  %v7966_v3 = vpop.f32.mrf.mxu3  ;;  %v2936_v46 = vrot.slane %v2934_v56, 4 }
 0x18d   : > { %v2503_v37 = vadd.f32 %v7911_v61, %v2216_v38  ;;  %v3916_v61 = vshll.u32 %v3864_v60, 16  ;;  %v2932_v15 = vsel %vm7114_vm13, %v2927_v43, %v2931_v2  ;;  %v2937_v38 = vshll.u32 %v2570_v58, 16 }
 0x18e   : > { %v3915_v60 = vrot.slane %v3913_v25, 4  ;;  %v2988_v43 = vunpack.c.l.b16 %v2932_v15  ;;  %v6366_v2 = vrot.slane %v1868_v44, 9  ;;  %v2572_v17 = vld [vmem:[#allocation2 + $0xc8] sm:$0x1]  ;;  %v3352_v25 = vrot.slane %v3350_v19, 4 }
 0x18f   : > { %v3157_v33 = vadd.f32 %v3092_v54, %v2503_v37  ;;  %6479 = vmatmul.msk.bf16.gmra.mxu0 %vm1491_vm11, %v7961_v27  ;;  %v3194_v37 = vld [vmem:[#allocation2 + $0xc0] sm:$0xe]  ;;  %v3918_v23 = vrot.slane %v3916_v61, 5  ;;  %v2987_v54 = vunpack.c.l.b16 %v2922_v49  ;;  %v3353_v61 = vrot.slane %v2572_v17, 5 }
 0x190   : > { %v7983_v35 = vpop.f32.mrf.mxu1  ;;  %v2939_v49 = vrot.slane %v2937_v38, 5  ;;  %v7997_v15 = vrot.slane %v2943_v30, 5  ;;  %v3929_v22 = vor.u32 %v3928_v0, %v7986_v34  ;;  %v2012_v30 = vsel %vm7473_vm1, %v6366_v2, %v2011_v9  ;;  %v8015_v0 = vld [vmem:[#allocation2 + $0x28] sm:$0xf] }
 0x191   : > { %v7976_v32 = vadd.f32 %v7924_v31, %v3157_v33  ;;  %v7990_v33 = vld [vmem:[#allocation2 + $0x20] sm:$0x1]  ;;  %v3919_v44 = vor.u32 %v3918_v23, %v3915_v60  ;;  %v8001_v27 = vpack.c.b16 %v2988_v43, %v2987_v54  ;;  %v3354_v56 = vsel %vm7473_vm1, %v3352_v25, %v3353_v61  ;;  %v3867_v23 = vld [vmem:[#allocation2 + $0x24] sm:$0xf] }
 0x192   : > { %v2153_v51 = vpop.f32.mrf.mxu2  ;;  %v2940_v60 = vor.u32 %v2939_v49, %v2936_v46  ;;  %v3930_v54 = vrot.slane %v3929_v22, 4  ;;  %v3388_v25 = vunpack.c.l.b16 %v3354_v56  ;;  %v3937_v9 = vshrl.u32 %v3867_v23, 16 }
 0x193   : > { %v2217_v31 = vadd.f32 %v2153_v51, %v7672_v41  ;;  %6513 = vmatmul.msk.bf16.gmra.mxu1 %vm1491_vm11, %v3403_v36  ;;  %v6497_v51 = vrot.slane %v3194_v37, 9  ;;  %v2949_v36 = vrot.slane %v2947_v18, 4  ;;  %10491 = vst [vmem:[#allocation27_spill] sm:$0xff] %v8001_v27  ;;  %v2015_v18 = vsel %vm7473_vm1, %v2013_v6, %v2014_v26 }
 0x194   : > { %v3094_v41 = vpop.f32.mrf.mxu0  ;;  %v7992_v58 = vpop.f32.mrf.mxu3  ;;  %v3940_v2 = vshll.u32 %v3867_v23, 16  ;;  %v3946_v26 = vshll.u32 %v8015_v0, 16  ;;  %v3950_v6 = vshrl.u32 %v8015_v0, 16  ;;  %v2048_v49 = vunpack.c.l.b16 %v2012_v30 }
 0x195   : > { %v2504_v5 = vadd.f32 %v7941_v12, %v2217_v31  ;;  %v6729_v12 = vld [vmem:[#allocation2 + $0xc0] sm:$0xff]  ;;  %v3932_v31 = vshll.u32 %v7990_v33, 16  ;;  %v3939_v30 = vrot.slane %v3937_v9, 4 }
 0x196   : > { %v3952_v23 = vrot.slane %v3950_v6, 4 }
 0x197   : > { %6382 = vmatmul.msk.bf16.gmra.mxu2 %vm1491_vm11, %v2064_v45  ;;  %v7995_v47 = vadd.f32 %v3094_v41, %v2504_v5  ;;  %v3351_v45 = vsel %vm7473_vm1, %v6497_v51, %v3350_v19  ;;  %v2950_v5 = vor.u32 %v2949_v36, %v7997_v15  ;;  %v3920_v19 = vrot.slane %v3919_v44, 4 }
 0x198   : > { %v8003_v57 = vpop.f32.mrf.mxu1  ;;  %v3934_v43 = vrot.slane %v3932_v31, 5  ;;  %v3387_v51 = vunpack.c.l.b16 %v3351_v45  ;;  %v2941_v36 = vrot.slane %v2940_v60, 4  ;;  %v3948_v60 = vrot.slane %v3946_v26, 5 }
 0x199   : > { %6464 = vmatmul.msk.bf16.gmra.mxu3 %vm1491_vm11, %v6729_v12  ;;  %v3925_v44 = vsel %vm7114_vm13, %v3920_v19, %v7986_v34  ;;  %v2951_v22 = vrot.slane %v2950_v5, 4 }
 0x19a   : > { %v2156_v37 = vpop.f32.mrf.mxu2  ;;  %v3404_v45 = vpack.c.b16 %v3388_v25, %v3387_v51 }
 0x19b   : > { %v2218_v38 = vadd.f32 %v2156_v37, %v7695_v40  ;;  %v2953_v40 = vshll.u32 %v2572_v17, 16  ;;  %v2049_v37 = vunpack.c.l.b16 %v2015_v18  ;;  %v3942_v18 = vrot.slane %v3940_v2, 5 }
 0x19c   : > { %v3097_v61 = vpop.f32.mrf.mxu0  ;;  %v2448_v12 = vpop.f32.mrf.mxu3 }
 0x19d   : > { %v2505_v41 = vadd.f32 %v7966_v3, %v2218_v38  ;;  %v3935_v3 = vsel %vm7114_vm13, %v3930_v54, %v3934_v43  ;;  %v2955_v31 = vrot.slane %v2953_v40, 5  ;;  %v2065_v19 = vpack.c.b16 %v2049_v37, %v2048_v49  ;;  %v8032_v43 = vld [vmem:[#allocation2 + $0x2c] sm:$0x1] }
 0x19e   : > { %v4299_v54 = vunpack.c.l.b16 %v3935_v3  ;;  %v3943_v25 = vor.u32 %v3942_v18, %v3939_v30  ;;  %v3956_v9 = vshll.u32 %v8032_v43, 16  ;;  %v3870_v3 = vld [vmem:[#allocation2 + $0x30] sm:$0xf] }
 0x19f   : > { %v3159_v46 = vadd.f32 %v3097_v61, %v2505_v41  ;;  %6480 = vmatmul.msk.bf16.gmra.mxu0 %vm1491_vm11, %v8001_v27  ;;  %v4298_v41 = vunpack.c.l.b16 %v3925_v44  ;;  %v2956_v40 = vsel %vm7114_vm13, %v2951_v22, %v2955_v31  ;;  %v8049_v22 = vld [vmem:[#allocation2 + $0x34] sm:$0xf]  ;;  %v8150_v27 = vld [vmem:[#allocation2 + $0x5c] sm:$0x1] }
 0x1a0   : > { %v3500_v38 = vpop.f32.mrf.mxu1  ;;  %v2990_v6 = vunpack.c.l.b16 %v2956_v40  ;;  %v3944_v49 = vrot.slane %v3943_v25, 4 }
 0x1a1   : > { %v8029_v17 = vadd.f32 %v7983_v35, %v3159_v46  ;;  %v2946_v35 = vsel %vm7114_vm13, %v2941_v36, %v7997_v15  ;;  %v3958_v36 = vrot.slane %v3956_v9, 5 }
 0x1a2   : > { %v2158_v56 = vpop.f32.mrf.mxu2  ;;  %v2989_v26 = vunpack.c.l.b16 %v2946_v35  ;;  %v3974_v35 = vshrl.u32 %v8049_v22, 16 }
 0x1a3   : > { %v2219_v34 = vadd.f32 %v2158_v56, %v7701_v13  ;;  %6514 = vmatmul.msk.bf16.gmra.mxu1 %vm1491_vm11, %v3404_v45  ;;  %v3953_v13 = vor.u32 %v3952_v23, %v3948_v60  ;;  %v4584_v56 = vrot.slane %v7964_v50, 5  ;;  %v4518_v23 = vld [vmem:[#allocation2 + $0x18] sm:$0xe] }
 0x1a4   : > { %v3099_v5 = vpop.f32.mrf.mxu0  ;;  %v2450_v51 = vpop.f32.mrf.mxu3  ;;  %v8051_v31 = vpack.c.b16 %v2990_v6, %v2989_v26  ;;  %v6730_v6 = vld [vmem:[#allocation2 + $0x18] sm:$0xff] }
 0x1a5   : > { %v2506_v61 = vadd.f32 %v7992_v58, %v2219_v34  ;;  %v4330_v58 = vpack.c.b16 %v4299_v54, %v4298_v41  ;;  %v3954_v37 = vrot.slane %v3953_v13, 4  ;;  %v3949_v34 = vsel %vm7114_vm13, %v3944_v49, %v3948_v60 }
 0x1a6   : > { %10492 = vst [vmem:[#allocation28_spill] sm:$0xff] %v8051_v31  ;;  %v3964_v54 = vshll.u32 %v3870_v3, 16  ;;  %v4587_v60 = vrot.slane %v7990_v33, 5  ;;  %v4300_v13 = vunpack.c.l.b16 %v3949_v34 }
 0x1a7   : > { %6383 = vmatmul.msk.bf16.gmra.mxu2 %vm1491_vm11, %v2065_v19  ;;  %v8043_v2 = vadd.f32 %v3099_v5, %v2506_v61  ;;  %v3959_v19 = vsel %vm7114_vm13, %v3954_v37, %v3958_v36  ;;  %v3970_v61 = vshll.u32 %v8049_v22, 16  ;;  %v4586_v5 = vrot.slane %v4584_v56, 4  ;;  %v8066_v36 = vld [vmem:[#allocation2 + $0x38] sm:$0x1] }
 0x1a8   : > { %v8045_v15 = vpop.f32.mrf.mxu1  ;;  %v4301_v9 = vunpack.c.l.b16 %v3959_v19  ;;  %v3976_v37 = vrot.slane %v3974_v35, 4  ;;  %v3980_v19 = vshll.u32 %v8066_v36, 16 }
 0x1a9   : > { %6597 = vmatmul.msk.bf16.vlgmr.msra.gmra.mxu3 %vm1491_vm11, %v4330_v58  ;;  %v3972_v49 = vrot.slane %v3970_v61, 5  ;;  %v4588_v33 = vsel %vm7473_vm1, %v4586_v5, %v4587_v60  ;;  %v3873_v60 = vld [vmem:[#allocation2 + $0x3c] sm:$0xf] }
 0x1aa   : > { %v2161_v46 = vpop.f32.mrf.mxu2 }
 0x1ab   : > { %v2220_v44 = vadd.f32 %v2161_v46, %v7722_v20  ;;  %v3961_v20 = vshrl.u32 %v3870_v3, 16  ;;  %v3966_v46 = vrot.slane %v3964_v54, 5  ;;  %v3977_v34 = vor.u32 %v3976_v37, %v3972_v49 }
 0x1ac   : > { %v3102_v30 = vpop.f32.mrf.mxu0  ;;  %v2453_v18 = vpop.f32.mrf.mxu3 }
 0x1ad   : > { %v2507_v45 = vadd.f32 %v2448_v12, %v2220_v44  ;;  %v6613_v12 = vrot.slane %v4518_v23, 9  ;;  %v3963_v58 = vrot.slane %v3961_v20, 4  ;;  %v3978_v35 = vrot.slane %v3977_v34, 4 }
 0x1ae   : > { %v4594_v34 = vrot.slane %v8032_v43, 5 }
 0x1af   : > { %v3161_v41 = vadd.f32 %v3102_v30, %v2507_v45  ;;  %6481 = vmatmul.msk.bf16.gmra.mxu0 %vm1491_vm11, %v8051_v31  ;;  %v4585_v3 = vsel %vm7473_vm1, %v6613_v12, %v4584_v56  ;;  %v4331_v30 = vpack.c.b16 %v4301_v9, %v4300_v13  ;;  %v3982_v12 = vrot.slane %v3980_v19, 5  ;;  %v8080_v13 = vld [vmem:[#allocation2 + $0x40] sm:$0xf] }
 0x1b0   : > { %v3505_v25 = vpop.f32.mrf.mxu1  ;;  %v4696_v20 = vunpack.c.l.b16 %v4585_v3  ;;  %v3994_v3 = vshll.u32 %v8080_v13, 16 }
 0x1b1   : > { %v8062_v50 = vadd.f32 %v3500_v38, %v3161_v41  ;;  %v4697_v41 = vunpack.c.l.b16 %v4588_v33 }
 0x1b2   : > { %v2163_v40 = vpop.f32.mrf.mxu2 }
 0x1b3   : > { %v2221_v26 = vadd.f32 %v2163_v40, %v7733_v10  ;;  %v3967_v10 = vor.u32 %v3966_v46, %v3963_v58  ;;  %v4728_v5 = vpack.c.b16 %v4697_v41, %v4696_v20  ;;  %v4519_v46 = vld [vmem:[#allocation2 + $0x24] sm:$0xe] }
 0x1b4   : > { %v3104_v38 = vpop.f32.mrf.mxu0  ;;  %v2455_v45 = vpop.f32.mrf.mxu3  ;;  %v6731_v20 = vld [vmem:[#allocation2 + $0x24] sm:$0xff] }
 0x1b5   : > { %v2508_v44 = vadd.f32 %v2450_v51, %v2221_v26  ;;  %v3968_v61 = vrot.slane %v3967_v10, 4  ;;  %v4591_v26 = vrot.slane %v8015_v0, 5  ;;  %v6614_v0 = vrot.slane %v4519_v46, 9 }
 0x1b7   : > { %6580 = vmatmul.msk.bf16.vlgmr.msra.gmra.mxu2 %vm1491_vm11, %v6730_v6  ;;  %v8073_v23 = vadd.f32 %v3104_v38, %v2508_v44  ;;  %v3973_v37 = vsel %vm7114_vm13, %v3968_v61, %v3972_v49  ;;  %v3985_v44 = vshrl.u32 %v3873_v60, 16  ;;  %v3988_v38 = vshll.u32 %v3873_v60, 16  ;;  %v8094_v60 = vld [vmem:[#allocation2 + $0x44] sm:$0x1] }
 0x1b8   : > { %v8076_v54 = vpop.f32.mrf.mxu1  ;;  %v4593_v10 = vrot.slane %v4591_v26, 4  ;;  %v4302_v41 = vunpack.c.l.b16 %v3973_v37 }
 0x1b9   : > { %6598 = vmatmul.msk.bf16.gmra.mxu3 %vm1491_vm11, %v4331_v30  ;;  %v3990_v61 = vrot.slane %v3988_v38, 5  ;;  %v3560_v62 = vadd.f32 %v8045_v15, %v8073_v23 }
 0x1ba   : > { %v2166_v51 = vpop.f32.mrf.mxu2  ;;  %v4595_v43 = vsel %vm7473_vm1, %v4593_v10, %v4594_v34 }
 0x1bb   : > { %v2222_v56 = vadd.f32 %v2166_v51, %v7504_v52  ;;  %v3983_v52 = vsel %vm7114_vm13, %v3978_v35, %v3982_v12  ;;  %v3996_v35 = vrot.slane %v3994_v3, 5 }
 0x1bc   : > { %v3107_v9 = vpop.f32.mrf.mxu0  ;;  %v2458_v58 = vpop.f32.mrf.mxu3  ;;  %v4303_v51 = vunpack.c.l.b16 %v3983_v52  ;;  %v4004_v52 = vshll.u32 %v8094_v60, 16 }
 0x1bd   : > { %v2509_v40 = vadd.f32 %v2453_v18, %v2222_v56  ;;  %v3998_v18 = vshrl.u32 %v8080_v13, 16  ;;  %v3987_v56 = vrot.slane %v3985_v44, 4  ;;  %v4699_v44 = vunpack.c.l.b16 %v4595_v43 }
 0x1be   : > { %v4006_v34 = vrot.slane %v4004_v52, 5 }
 0x1bf   : > { %v3163_v6 = vadd.f32 %v3107_v9, %v2509_v40  ;;  %6630 = vmatmul.msk.bf16.vlgmr.msra.gmra.mxu0 %vm1491_vm11, %v4728_v5  ;;  %v4000_v12 = vrot.slane %v3998_v18, 4  ;;  %v4592_v5 = vsel %vm7473_vm1, %v6614_v0, %v4591_v26  ;;  %v3991_v46 = vor.u32 %v3990_v61, %v3987_v56  ;;  %v3876_v18 = vld [vmem:[#allocation2 + $0x48] sm:$0xf]  ;;  %v4520_v61 = vld [vmem:[#allocation2 + $0x30] sm:$0xe] }
 0x1c0   : > { %v3510_v19 = vpop.f32.mrf.mxu1 }
 0x1c1   : > { %v8090_v33 = vadd.f32 %v3505_v25, %v3163_v6  ;;  %v4332_v6 = vpack.c.b16 %v4303_v51, %v4302_v41  ;;  %v4001_v37 = vor.u32 %v4000_v12, %v3996_v35  ;;  %v3992_v0 = vrot.slane %v3991_v46, 4 }
 0x1c2   : > { %v2168_v30 = vpop.f32.mrf.mxu2  ;;  %v4598_v41 = vrot.slane %v8049_v22, 5  ;;  %v4009_v12 = vshrl.u32 %v3876_v18, 16  ;;  %v6615_v22 = vrot.slane %v4520_v61, 9 }
 0x1c3   : > { %v2223_v49 = vadd.f32 %v2168_v30, %v7517_v24  ;;  %v8108_v30 = vld [vmem:[#allocation2 + $0x4c] sm:$0xf]  ;;  %v4002_v10 = vrot.slane %v4001_v37, 4  ;;  %v3997_v43 = vsel %vm7114_vm13, %v3992_v0, %v3996_v35  ;;  %v4601_v37 = vrot.slane %v8066_v36, 5  ;;  %v6732_v35 = vld [vmem:[#allocation2 + $0x30] sm:$0xff] }
 0x1c4   : > { %v3109_v25 = vpop.f32.mrf.mxu0  ;;  %v2460_v9 = vpop.f32.mrf.mxu3  ;;  %v4600_v46 = vrot.slane %v4598_v41, 4  ;;  %v4304_v0 = vunpack.c.l.b16 %v3997_v43 }
 0x1c5   : > { %v2510_v40 = vadd.f32 %v2455_v45, %v2223_v49  ;;  %v4698_v45 = vunpack.c.l.b16 %v4592_v5 }
 0x1c6   : > { %v4602_v36 = vsel %vm7473_vm1, %v4600_v46, %v4601_v37  ;;  %v3879_v37 = vld [vmem:[#allocation2 + $0x54] sm:$0xf] }
 0x1c7   : > { %6581 = vmatmul.msk.bf16.gmra.mxu2 %vm1491_vm11, %v6731_v20  ;;  %v8101_v24 = vadd.f32 %v3109_v25, %v2510_v40  ;;  %v4729_v49 = vpack.c.b16 %v4699_v44, %v4698_v45  ;;  %v4012_v40 = vshll.u32 %v3876_v18, 16  ;;  %v4018_v25 = vshll.u32 %v8108_v30, 16 }
 0x1c8   : > { %v8104_v3 = vpop.f32.mrf.mxu1  ;;  %v4011_v44 = vrot.slane %v4009_v12, 4  ;;  %v4701_v43 = vunpack.c.l.b16 %v4602_v36  ;;  %v4033_v36 = vshrl.u32 %v3879_v37, 16 }
 0x1c9   : > { %6599 = vmatmul.msk.bf16.gmra.mxu3 %vm1491_vm11, %v4332_v6  ;;  %v4007_v6 = vsel %vm7114_vm13, %v4002_v10, %v4006_v34  ;;  %v8122_v10 = vld [vmem:[#allocation2 + $0x50] sm:$0x1]  ;;  %v3562_v15 = vadd.f32 %v8076_v54, %v8101_v24 }
 0x1ca   : > { %v2171_v38 = vpop.f32.mrf.mxu2 }
 0x1cb   : > { %v2224_v26 = vadd.f32 %v2171_v38, %v7531_v4  ;;  %v4022_v4 = vshrl.u32 %v8108_v30, 16  ;;  %v4014_v38 = vrot.slane %v4012_v40, 5 }
 0x1cc   : > { %v3112_v51 = vpop.f32.mrf.mxu0  ;;  %v2463_v56 = vpop.f32.mrf.mxu3 }
 0x1cd   : > { %v2511_v20 = vadd.f32 %v2458_v58, %v2224_v26  ;;  %v4020_v26 = vrot.slane %v4018_v25, 5  ;;  %v4024_v18 = vrot.slane %v4022_v4, 4  ;;  %v4015_v12 = vor.u32 %v4014_v38, %v4011_v44  ;;  %v8136_v44 = vld [vmem:[#allocation2 + $0x58] sm:$0xf] }
 0x1ce   : > { %v4028_v25 = vshll.u32 %v8122_v10, 16 }
 0x1cf   : > { %v3165_v5 = vadd.f32 %v3112_v51, %v2511_v20  ;;  %6631 = vmatmul.msk.bf16.gmra.mxu0 %vm1491_vm11, %v4729_v49  ;;  %v4305_v51 = vunpack.c.l.b16 %v4007_v6  ;;  %v4025_v40 = vor.u32 %v4024_v18, %v4020_v26 }
 0x1d0   : > { %v3515_v45 = vpop.f32.mrf.mxu1 }
 0x1d1   : > { %v8118_v58 = vadd.f32 %v3510_v19, %v3165_v5  ;;  %v4599_v19 = vsel %vm7473_vm1, %v6615_v22, %v4598_v41  ;;  %v4333_v4 = vpack.c.b16 %v4305_v51, %v4304_v0  ;;  %v4016_v41 = vrot.slane %v4015_v12, 4 }
 0x1d2   : > { %v2173_v52 = vpop.f32.mrf.mxu2  ;;  %v4700_v5 = vunpack.c.l.b16 %v4599_v19  ;;  %v4026_v22 = vrot.slane %v4025_v40, 4  ;;  %v4036_v40 = vshll.u32 %v3879_v37, 16  ;;  %v6733_v37 = vld [vmem:[#allocation2 + $0x3c] sm:$0xff] }
 0x1d3   : > { %v2225_v20 = vadd.f32 %v2173_v52, %v7550_v48  ;;  %v4030_v52 = vrot.slane %v4028_v25, 5  ;;  %v4021_v19 = vsel %vm7114_vm13, %v4016_v41, %v4020_v26  ;;  %v4042_v25 = vshll.u32 %v8136_v44, 16 }
 0x1d4   : > { %v3114_v49 = vpop.f32.mrf.mxu0  ;;  %v2465_v61 = vpop.f32.mrf.mxu3  ;;  %v4730_v38 = vpack.c.b16 %v4701_v43, %v4700_v5  ;;  %v4306_v41 = vunpack.c.l.b16 %v4021_v19 }
 0x1d5   : > { %v2512_v34 = vadd.f32 %v2460_v9, %v2225_v20  ;;  %v10494_v20 = vld [vmem:[#allocation5_spill] sm:$0xff] }
 0x1d7   : > { %6582 = vmatmul.msk.bf16.gmra.mxu2 %vm1491_vm11, %v6732_v35  ;;  %v8130_v48 = vadd.f32 %v3114_v49, %v2512_v34  ;;  %v4605_v35 = vrot.slane %v8080_v13, 5  ;;  %v4521_v34 = vld [vmem:[#allocation2 + $0x3c] sm:$0xe]  ;;  %v4031_v49 = vsel %vm7114_vm13, %v4026_v22, %v4030_v52  ;;  %v4035_v22 = vrot.slane %v4033_v36, 4 }
 0x1d8   : > { %v8132_v6 = vpop.f32.mrf.mxu1  ;;  %v6616_v13 = vrot.slane %v4521_v34, 9  ;;  %v10496_v52 = vld [vmem:[#allocation7_spill] sm:$0xff] }
 0x1d9   : > { %10493 = vst [vmem:[#allocation29_spill] sm:$0xff] %v8132_v6  ;;  %6600 = vmatmul.msk.bf16.gmra.mxu3 %vm1491_vm11, %v4333_v4  ;;  %v4046_v4 = vshrl.u32 %v8136_v44, 16  ;;  %v4607_v5 = vrot.slane %v4605_v35, 4  ;;  %v8182_v6 = vld [vmem:[#allocation2 + $0x68] sm:$0x1] }
 0x1da   : > { %v2176_v9 = vpop.f32.mrf.mxu2  ;;  %v4606_v34 = vsel %vm7473_vm1, %v6616_v13, %v4605_v35 }
 0x1db   : > { %v2226_v46 = vadd.f32 %v2176_v9, %v10494_v20  ;;  %v4608_v9 = vrot.slane %v8094_v60, 5  ;;  %v4307_v20 = vunpack.c.l.b16 %v4031_v49  ;;  %v4048_v31 = vrot.slane %v4046_v4, 4 }
 0x1dc   : > { %v3117_v0 = vpop.f32.mrf.mxu0  ;;  %v2468_v51 = vpop.f32.mrf.mxu3  ;;  %v4702_v4 = vunpack.c.l.b16 %v4606_v34  ;;  %v4522_v34 = vld [vmem:[#allocation2 + $0x48] sm:$0xe] }
 0x1dd   : > { %v2513_v18 = vadd.f32 %v2463_v56, %v2226_v46  ;;  %v4609_v60 = vsel %vm7473_vm1, %v4607_v5, %v4608_v9  ;;  %v4334_v19 = vpack.c.b16 %v4307_v20, %v4306_v41 }
 0x1df   : > { %v3167_v12 = vadd.f32 %v3117_v0, %v2513_v18  ;;  %6632 = vmatmul.msk.bf16.gmra.mxu0 %vm1491_vm11, %v4730_v38  ;;  %v4038_v18 = vrot.slane %v4036_v40, 5  ;;  %v4044_v0 = vrot.slane %v4042_v25, 5  ;;  %v4052_v25 = vshll.u32 %v8150_v27, 16 }
 0x1e0   : > { %v3520_v26 = vpop.f32.mrf.mxu1 }
 0x1e1   : > { %v8146_v56 = vadd.f32 %v3515_v45, %v3167_v12  ;;  %v4039_v36 = vor.u32 %v4038_v18, %v4035_v22  ;;  %v4049_v40 = vor.u32 %v4048_v31, %v4044_v0  ;;  %v4054_v9 = vrot.slane %v4052_v25, 5 }
 0x1e2   : > { %v2178_v43 = vpop.f32.mrf.mxu2  ;;  %v4612_v18 = vrot.slane %v8108_v30, 5  ;;  %v5922_v30 = vld [vmem:[%s10388_s5] sm:$0x3] }
 0x1e3   : > { %10495 = vst [vmem:[#allocation5_spill] sm:$0xff] %v8146_v56  ;;  %v2227_v46 = vadd.f32 %v2178_v43, %v10496_v52  ;;  %v4703_v43 = vunpack.c.l.b16 %v4609_v60  ;;  %v4040_v13 = vrot.slane %v4039_v36, 4  ;;  %v4050_v5 = vrot.slane %v4049_v40, 4  ;;  %v8212_v56 = vld [vmem:[#allocation2 + $0x74] sm:$0x1] }
 0x1e4   : > { %v3119_v45 = vpop.f32.mrf.mxu0  ;;  %v2470_v12 = vpop.f32.mrf.mxu3 }
 0x1e5   : > { %v2514_v38 = vadd.f32 %v2465_v61, %v2227_v46  ;;  %v10499_v46 = vld [vmem:[#allocation8_spill] sm:$0xff]  ;;  %v4731_v41 = vpack.c.b16 %v4703_v43, %v4702_v4  ;;  %v4045_v60 = vsel %vm7114_vm13, %v4040_v13, %v4044_v0  ;;  %v4614_v0 = vrot.slane %v4612_v18, 4 }
 0x1e6   : > { %v5928_v13 = vsel %vm1540_vm0, %v5922_v30, 0  ;;  %vm10450_vm0 = vcmask 64512  }
 0x1e7   : > { %6583 = vmatmul.msk.bf16.gmra.mxu2 %vm1491_vm11, %v6733_v37  ;;  %v8157_v49 = vadd.f32 %v3119_v45, %v2514_v38  ;;  %v3882_v37 = vld [vmem:[#allocation2 + $0x60] sm:$0xf]  ;;  %v8164_v38 = vld [vmem:[#allocation2 + $0x64] sm:$0xf]  ;;  %5937 = vmatpush.bf16.msra.mxu1 %v5928_v13 }
 0x1e8   : > { %v8160_v52 = vpop.f32.mrf.mxu1  ;;  %v4057_v36 = vshrl.u32 %v3882_v37, 16  ;;  %v4060_v40 = vshll.u32 %v3882_v37, 16  ;;  %v4066_v25 = vshll.u32 %v8164_v38, 16  ;;  %v4308_v37 = vunpack.c.l.b16 %v4045_v60 }
 0x1e9   : > { %10497 = vst [vmem:[#allocation7_spill] sm:$0xff] %v8157_v49  ;;  %6601 = vmatmul.msk.bf16.gmra.mxu3 %vm1491_vm11, %v4334_v19  ;;  %v4055_v19 = vsel %vm7114_vm13, %v4050_v5, %v4054_v9  ;;  %v10501_v5 = vld [vmem:[#allocation9_spill] sm:$0xff] }
 0x1ea   : > { %v2181_v61 = vpop.f32.mrf.mxu2  ;;  %10498 = vst [vmem:[#allocation30_spill] sm:$0xff] %v8160_v52 }
 0x1eb   : > { %v2228_v35 = vadd.f32 %v2181_v61, %v10499_v46  ;;  %v6617_v61 = vrot.slane %v4522_v34, 9  ;;  %v4615_v46 = vrot.slane %v8122_v10, 5 }
 0x1ec   : > { %v3122_v31 = vpop.f32.mrf.mxu0  ;;  %v2473_v22 = vpop.f32.mrf.mxu3 }
 0x1ed   : > { %v2515_v20 = vadd.f32 %v2468_v51, %v2228_v35  ;;  %v4070_v51 = vshrl.u32 %v8164_v38, 16  ;;  %v4613_v10 = vsel %vm7473_vm1, %v6617_v61, %v4612_v18  ;;  %v4616_v30 = vsel %vm7473_vm1, %v4614_v0, %v4615_v46  ;;  %v10504_v18 = vld [vmem:[#allocation11_spill] sm:$0xff]  ;;  %v3885_v46 = vld [vmem:[#allocation2 + $0x6c] sm:$0xf] }
 0x1ef   : > { %v3169_v45 = vadd.f32 %v3122_v31, %v2515_v20  ;;  %6633 = vmatmul.msk.bf16.gmra.mxu0 %vm1491_vm11, %v4731_v41  ;;  %v6734_v20 = vld [vmem:[#allocation2 + $0x48] sm:$0xff]  ;;  %v4309_v31 = vunpack.c.l.b16 %v4055_v19  ;;  %v4062_v41 = vrot.slane %v4060_v40, 5  ;;  %v4076_v40 = vshll.u32 %v8182_v6, 16 }
 0x1f0   : > { %v3525_v35 = vpop.f32.mrf.mxu1 }
 0x1f1   : > { %v8174_v4 = vadd.f32 %v3520_v26, %v3169_v45  ;;  %v4059_v26 = vrot.slane %v4057_v36, 4  ;;  %v4068_v45 = vrot.slane %v4066_v25, 5  ;;  %v4335_v19 = vpack.c.b16 %v4309_v31, %v4308_v37 }
 0x1f2   : > { %v2183_v43 = vpop.f32.mrf.mxu2  ;;  %v4704_v25 = vunpack.c.l.b16 %v4613_v10  ;;  %v4081_v10 = vshrl.u32 %v3885_v46, 16 }
 0x1f3   : > { %10500 = vst [vmem:[#allocation8_spill] sm:$0xff] %v8174_v4  ;;  %v2229_v9 = vadd.f32 %v2183_v43, %v10501_v5  ;;  %v4072_v4 = vrot.slane %v4070_v51, 4  ;;  %v10502_v43 = vld [vmem:[#allocation3_spill] sm:$0xff]  ;;  %v4063_v36 = vor.u32 %v4062_v41, %v4059_v26  ;;  %v4705_v51 = vunpack.c.l.b16 %v4616_v30  ;;  %v8198_v5 = vld [vmem:[#allocation2 + $0x70] sm:$0xf] }
 0x1f4   : > { %v3124_v34 = vpop.f32.mrf.mxu0  ;;  %v2475_v49 = vpop.f32.mrf.mxu3  ;;  %6678 = vmatmul.msk.bf16.vlgmr.msra.gmra.mxu1 %vm1491_vm11, %v10502_v43  ;;  %v4084_v30 = vshll.u32 %v3885_v46, 16  ;;  %v4090_v43 = vshll.u32 %v8198_v5, 16 }
 0x1f5   : > { %v2516_v52 = vadd.f32 %v2470_v12, %v2229_v9  ;;  %v4073_v12 = vor.u32 %v4072_v4, %v4068_v45  ;;  %v4064_v9 = vrot.slane %v4063_v36, 4  ;;  %v4732_v37 = vpack.c.b16 %v4705_v51, %v4704_v25 }
 0x1f6   : > { %v4619_v4 = vrot.slane %v8136_v44, 5  ;;  %v4083_v51 = vrot.slane %v4081_v10, 4  ;;  %v4092_v46 = vrot.slane %v4090_v43, 5  ;;  %v4100_v43 = vshll.u32 %v8212_v56, 16 }
 0x1f7   : > { %6584 = vmatmul.msk.bf16.gmra.mxu2 %vm1491_vm11, %v6734_v20  ;;  %v8191_v60 = vadd.f32 %v3124_v34, %v2516_v52  ;;  %v4074_v52 = vrot.slane %v4073_v12, 4  ;;  %v4078_v20 = vrot.slane %v4076_v40, 5  ;;  %v4523_v34 = vld [vmem:[#allocation2 + $0x54] sm:$0xe]  ;;  %v4622_v40 = vrot.slane %v8150_v27, 5 }
 0x1f8   : > { %v8196_v0 = vpop.f32.mrf.mxu1  ;;  %v6618_v44 = vrot.slane %v4523_v34, 9  ;;  %v4621_v12 = vrot.slane %v4619_v4, 4 }
 0x1f9   : > { %10503 = vst [vmem:[#allocation9_spill] sm:$0xff] %v8191_v60  ;;  %6602 = vmatmul.msk.bf16.gmra.mxu3 %vm1491_vm11, %v4335_v19  ;;  %v4094_v19 = vshrl.u32 %v8198_v5, 16  ;;  %v4079_v36 = vsel %vm7114_vm13, %v4074_v52, %v4078_v20  ;;  %v6735_v60 = vld [vmem:[#allocation2 + $0x54] sm:$0xff] }
 0x1fa   : > { %v2186_v13 = vpop.f32.mrf.mxu2  ;;  %10505 = vst [vmem:[#allocation3_spill] sm:$0xff] %v8196_v0  ;;  %v4623_v27 = vsel %vm7473_vm1, %v4621_v12, %v4622_v40  ;;  %v10510_v12 = vld [vmem:[#allocation14_spill] sm:$0xff] }
 0x1fb   : > { %v2230_v61 = vadd.f32 %v2186_v13, %v10504_v18  ;;  %v4069_v18 = vsel %vm7114_vm13, %v4064_v9, %v4068_v45  ;;  %v4096_v0 = vrot.slane %v4094_v19, 4  ;;  %v4311_v9 = vunpack.c.l.b16 %v4079_v36  ;;  %v10508_v19 = vld [vmem:[#allocation4_spill] sm:$0xff] }
 0x1fc   : > { %v3127_v26 = vpop.f32.mrf.mxu0  ;;  %v2478_v41 = vpop.f32.mrf.mxu3  ;;  %v4310_v45 = vunpack.c.l.b16 %v4069_v18 }
 0x1fd   : > { %v2517_v31 = vadd.f32 %v2473_v22, %v2230_v61  ;;  %v4086_v61 = vrot.slane %v4084_v30, 5  ;;  %v4097_v30 = vor.u32 %v4096_v0, %v4092_v46  ;;  %v3888_v0 = vld [vmem:[#allocation2 + $0x78] sm:$0xf] }
 0x1ff   : > { %v3171_v13 = vadd.f32 %v3127_v26, %v2517_v31  ;;  %6634 = vmatmul.msk.bf16.gmra.mxu0 %vm1491_vm11, %v4732_v37  ;;  %v10507_v31 = vld [vmem:[#allocation13_spill] sm:$0xff]  ;;  %v4087_v10 = vor.u32 %v4086_v61, %v4083_v51  ;;  %v8226_v51 = vld [vmem:[#allocation2 + $0x7c] sm:$0xf] }
 0x200   : > { %v3530_v20 = vpop.f32.mrf.mxu1 }
 0x201   : > { %v8208_v22 = vadd.f32 %v3525_v35, %v3171_v13  ;;  %v4620_v35 = vsel %vm7473_vm1, %v6618_v44, %v4619_v4  ;;  %v4707_v4 = vunpack.c.l.b16 %v4623_v27  ;;  %v4088_v44 = vrot.slane %v4087_v10, 4 }
 0x202   : > { %v2188_v25 = vpop.f32.mrf.mxu2  ;;  %v4706_v18 = vunpack.c.l.b16 %v4620_v35  ;;  %v4105_v27 = vshrl.u32 %v3888_v0, 16 }
 0x203   : > { %10506 = vst [vmem:[#allocation11_spill] sm:$0xff] %v8208_v22  ;;  %v2231_v26 = vadd.f32 %v2188_v25, %v10507_v31  ;;  %v4098_v25 = vrot.slane %v4097_v30, 4  ;;  %v4102_v31 = vrot.slane %v4100_v43, 5  ;;  %v4108_v43 = vshll.u32 %v3888_v0, 16  ;;  %v8242_v22 = vld [vmem:[#allocation2 + $0x80] sm:$0x1] }
 0x204   : > { %v3129_v37 = vpop.f32.mrf.mxu0  ;;  %v2480_v34 = vpop.f32.mrf.mxu3  ;;  %6679 = vmatmul.msk.bf16.gmra.mxu1 %vm1491_vm11, %v10508_v19  ;;  %v4733_v61 = vpack.c.b16 %v4707_v4, %v4706_v18  ;;  %v4114_v19 = vshll.u32 %v8226_v51, 16 }
 0x205   : > { %v2518_v52 = vadd.f32 %v2475_v49, %v2231_v26  ;;  %v4336_v49 = vpack.c.b16 %v4311_v9, %v4310_v45  ;;  %v4524_v45 = vld [vmem:[#allocation2 + $0x60] sm:$0xe]  ;;  %v4093_v9 = vsel %vm7114_vm13, %v4088_v44, %v4092_v46  ;;  %v4103_v35 = vsel %vm7114_vm13, %v4098_v25, %v4102_v31 }
 0x206   : > { %v4629_v46 = vrot.slane %v8182_v6, 5  ;;  %v4313_v44 = vunpack.c.l.b16 %v4103_v35  ;;  %v4107_v25 = vrot.slane %v4105_v27, 4  ;;  %v10513_v31 = vld [vmem:[#allocation16_spill] sm:$0xff]  ;;  %v4110_v0 = vrot.slane %v4108_v43, 5  ;;  %v10514_v35 = vld [vmem:[#allocation6_spill] sm:$0xff] }
 0x207   : > { %6585 = vmatmul.msk.bf16.gmra.mxu2 %vm1491_vm11, %v6735_v60  ;;  %v8222_v13 = vadd.f32 %v3129_v37, %v2518_v52  ;;  %v4626_v60 = vrot.slane %v8164_v38, 5 }
 0x208   : > { %v8233_v30 = vpop.f32.mrf.mxu1 }
 0x209   : > { %10509 = vst [vmem:[#allocation13_spill] sm:$0xff] %v8222_v13  ;;  %6603 = vmatmul.msk.bf16.gmra.mxu3 %vm1491_vm11, %v4336_v49  ;;  %v6619_v49 = vrot.slane %v4524_v45, 9  ;;  %v4628_v18 = vrot.slane %v4626_v60, 4  ;;  %v8300_v13 = vld [vmem:[#allocation2 + $0x98] sm:$0x1] }
 0x20a   : > { %v2191_v36 = vpop.f32.mrf.mxu2  ;;  %10511 = vst [vmem:[#allocation4_spill] sm:$0xff] %v8233_v30 }
 0x20b   : > { %v2232_v40 = vadd.f32 %v2191_v36, %v10510_v12  ;;  %v4312_v36 = vunpack.c.l.b16 %v4093_v9  ;;  %v4630_v45 = vsel %vm7473_vm1, %v4628_v18, %v4629_v46 }
 0x20c   : > { %v3132_v52 = vpop.f32.mrf.mxu0  ;;  %v2483_v37 = vpop.f32.mrf.mxu3 }
 0x20d   : > { %v2519_v26 = vadd.f32 %v2478_v41, %v2232_v40  ;;  %v4118_v41 = vshrl.u32 %v8226_v51, 16  ;;  %v6736_v40 = vld [vmem:[#allocation2 + $0x60] sm:$0xff]  ;;  %v4337_v9 = vpack.c.b16 %v4313_v44, %v4312_v36 }
 0x20f   : > { %v3173_v10 = vadd.f32 %v3132_v52, %v2519_v26  ;;  %6635 = vmatmul.msk.bf16.gmra.mxu0 %vm1491_vm11, %v4733_v61  ;;  %v4116_v26 = vrot.slane %v4114_v19, 5  ;;  %v4120_v52 = vrot.slane %v4118_v41, 4  ;;  %v4709_v41 = vunpack.c.l.b16 %v4630_v45 }
 0x211   : > { %v8238_v38 = vadd.f32 %v3530_v20, %v3173_v10  ;;  %v4627_v20 = vsel %vm7473_vm1, %v6619_v49, %v4626_v60  ;;  %v4111_v10 = vor.u32 %v4110_v0, %v4107_v25  ;;  %v4121_v43 = vor.u32 %v4120_v52, %v4116_v26  ;;  %v10516_v49 = vld [vmem:[#allocation17_spill] sm:$0xff] }
 0x212   : > { %v2193_v4 = vpop.f32.mrf.mxu2  ;;  %v4708_v19 = vunpack.c.l.b16 %v4627_v20  ;;  %v4633_v52 = vrot.slane %v8198_v5, 5  ;;  %v4525_v20 = vld [vmem:[#allocation2 + $0x6c] sm:$0xe] }
 0x213   : > { %10512 = vst [vmem:[#allocation14_spill] sm:$0xff] %v8238_v38  ;;  %v2233_v12 = vadd.f32 %v2193_v4, %v10513_v31  ;;  %v3535_v4 = vpop.f32.mrf.mxu1  ;;  %v4112_v18 = vrot.slane %v4111_v10, 4  ;;  %v4122_v46 = vrot.slane %v4121_v43, 4  ;;  %v6620_v5 = vrot.slane %v4525_v20, 9 }
 0x214   : > { %v3134_v61 = vpop.f32.mrf.mxu0  ;;  %v2485_v6 = vpop.f32.mrf.mxu3  ;;  %6680 = vmatmul.msk.bf16.gmra.mxu1 %vm1491_vm11, %v10514_v35  ;;  %v4734_v44 = vpack.c.b16 %v4709_v41, %v4708_v19  ;;  %v4635_v41 = vrot.slane %v4633_v52, 4 }
 0x215   : > { %v2520_v30 = vadd.f32 %v2480_v34, %v2233_v12  ;;  %v4124_v34 = vshll.u32 %v8242_v22, 16  ;;  %v4117_v45 = vsel %vm7114_vm13, %v4112_v18, %v4116_v26 }
 0x217   : > { %6586 = vmatmul.msk.bf16.gmra.mxu2 %vm1491_vm11, %v6736_v40  ;;  %v8251_v27 = vadd.f32 %v3134_v61, %v2520_v30  ;;  %v4126_v36 = vrot.slane %v4124_v34, 5  ;;  %v3891_v40 = vld [vmem:[#allocation2 + $0x84] sm:$0xf]  ;;  %v8256_v30 = vld [vmem:[#allocation2 + $0x88] sm:$0xf] }
 0x218   : > { %v4129_v35 = vshrl.u32 %v3891_v40, 16  ;;  %v4132_v10 = vshll.u32 %v3891_v40, 16  ;;  %v4138_v43 = vshll.u32 %v8256_v30, 16 }
 0x219   : > { %10515 = vst [vmem:[#allocation16_spill] sm:$0xff] %v8251_v27  ;;  %6604 = vmatmul.msk.bf16.gmra.mxu3 %vm1491_vm11, %v4337_v9  ;;  %v4127_v9 = vsel %vm7114_vm13, %v4122_v46, %v4126_v36  ;;  %v4314_v46 = vunpack.c.l.b16 %v4117_v45 }
 0x21a   : > { %v2196_v60 = vpop.f32.mrf.mxu2  ;;  %v4315_v36 = vunpack.c.l.b16 %v4127_v9  ;;  %v4134_v40 = vrot.slane %v4132_v10, 5 }
 0x21b   : > { %v2234_v31 = vadd.f32 %v2196_v60, %v10516_v49  ;;  %v4636_v60 = vrot.slane %v8212_v56, 5  ;;  %v10518_v49 = vld [vmem:[#allocation19_spill] sm:$0xff]  ;;  %v8270_v18 = vpop.f32.mrf.mxu1 }
 0x21c   : > { %v3137_v25 = vpop.f32.mrf.mxu0  ;;  %v2488_v0 = vpop.f32.mrf.mxu3  ;;  %10519 = vst [vmem:[#allocation17_spill] sm:$0xff] %v8270_v18  ;;  %v4338_v9 = vpack.c.b16 %v4315_v36, %v4314_v46 }
 0x21d   : > { %v2521_v12 = vadd.f32 %v2483_v37, %v2234_v31  ;;  %v4142_v37 = vshrl.u32 %v8256_v30, 16  ;;  %v6737_v31 = vld [vmem:[#allocation2 + $0x6c] sm:$0xff]  ;;  %v4637_v56 = vsel %vm7473_vm1, %v4635_v41, %v4636_v60  ;;  %v8286_v60 = vld [vmem:[#allocation2 + $0x94] sm:$0xf] }
 0x21e   : > { %v3894_v41 = vld [vmem:[#allocation2 + $0x90] sm:$0xf] }
 0x21f   : > { %v3175_v61 = vadd.f32 %v3137_v25, %v2521_v12  ;;  %6636 = vmatmul.msk.bf16.gmra.mxu0 %vm1491_vm11, %v4734_v44  ;;  %v4131_v12 = vrot.slane %v4129_v35, 4  ;;  %v4140_v25 = vrot.slane %v4138_v43, 5  ;;  %v4144_v38 = vrot.slane %v4142_v37, 4  ;;  %v8272_v44 = vld [vmem:[#allocation2 + $0x8c] sm:$0x1] }
 0x220   : > { %v4148_v10 = vshll.u32 %v8272_v44, 16  ;;  %v4711_v37 = vunpack.c.l.b16 %v4637_v56  ;;  %v4156_v56 = vshll.u32 %v3894_v41, 16 }
 0x221   : > { %v8266_v34 = vadd.f32 %v3535_v4, %v3175_v61  ;;  %v4634_v61 = vsel %vm7473_vm1, %v6620_v5, %v4633_v52  ;;  %v4135_v35 = vor.u32 %v4134_v40, %v4131_v12  ;;  %v10522_v52 = vld [vmem:[#allocation20_spill] sm:$0xff]  ;;  %v4526_v40 = vld [vmem:[#allocation2 + $0x78] sm:$0xe] }
 0x222   : > { %v2198_v19 = vpop.f32.mrf.mxu2  ;;  %v4710_v43 = vunpack.c.l.b16 %v4634_v61  ;;  %v4153_v61 = vshrl.u32 %v3894_v41, 16  ;;  %v4158_v41 = vrot.slane %v4156_v56, 5  ;;  %v4172_v56 = vshll.u32 %v8300_v13, 16 }
 0x223   : > { %10517 = vst [vmem:[#allocation6_spill] sm:$0xff] %v8266_v34  ;;  %v2235_v26 = vadd.f32 %v2198_v19, %v10518_v49  ;;  %v10520_v19 = vld [vmem:[#allocation10_spill] sm:$0xff]  ;;  %v3540_v46 = vpop.f32.mrf.mxu1 }
 0x224   : > { %v3139_v4 = vpop.f32.mrf.mxu0  ;;  %v2490_v20 = vpop.f32.mrf.mxu3  ;;  %6681 = vmatmul.msk.bf16.gmra.mxu1 %vm1491_vm11, %v10520_v19 }
 0x225   : > { %v2522_v27 = vadd.f32 %v2485_v6, %v2235_v26  ;;  %v4145_v6 = vor.u32 %v4144_v38, %v4140_v25  ;;  %v4136_v26 = vrot.slane %v4135_v35, 4  ;;  %v4640_v38 = vrot.slane %v8226_v51, 5 }
 0x226   : > { %v6621_v51 = vrot.slane %v4526_v40, 9 }
 0x227   : > { %6587 = vmatmul.msk.bf16.gmra.mxu2 %vm1491_vm11, %v6737_v31  ;;  %v8281_v45 = vadd.f32 %v3139_v4, %v2522_v27  ;;  %v4146_v19 = vrot.slane %v4145_v6, 4  ;;  %v4150_v31 = vrot.slane %v4148_v10, 5  ;;  %v4735_v27 = vpack.c.b16 %v4711_v37, %v4710_v43 }
 0x228   : > { %v4141_v35 = vsel %vm7114_vm13, %v4136_v26, %v4140_v25  ;;  %v4642_v10 = vrot.slane %v4640_v38, 4  ;;  %v4643_v43 = vrot.slane %v8242_v22, 5 }
 0x229   : > { %10521 = vst [vmem:[#allocation19_spill] sm:$0xff] %v8281_v45  ;;  %6605 = vmatmul.msk.bf16.gmra.mxu3 %vm1491_vm11, %v4338_v9  ;;  %v4166_v9 = vshrl.u32 %v8286_v60, 16  ;;  %v4151_v6 = vsel %vm7114_vm13, %v4146_v19, %v4150_v31  ;;  %v6738_v45 = vld [vmem:[#allocation2 + $0x78] sm:$0xff]  ;;  %v4316_v25 = vunpack.c.l.b16 %v4141_v35  ;;  %v4641_v31 = vsel %vm7473_vm1, %v6621_v51, %v4640_v38 }
 0x22a   : > { %v2201_v49 = vpop.f32.mrf.mxu2  ;;  %v4317_v26 = vunpack.c.l.b16 %v4151_v6  ;;  %v4644_v22 = vsel %vm7473_vm1, %v4642_v10, %v4643_v43  ;;  %v8314_v43 = vld [vmem:[#allocation2 + $0xa0] sm:$0xf] }
 0x22b   : > { %v2236_v5 = vadd.f32 %v2201_v49, %v10522_v52  ;;  %v4162_v49 = vshll.u32 %v8286_v60, 16  ;;  %v4168_v18 = vrot.slane %v4166_v9, 4  ;;  %v4713_v35 = vunpack.c.l.b16 %v4644_v22 }
 0x22c   : > { %v3142_v36 = vpop.f32.mrf.mxu0  ;;  %v4406_v12 = vpop.f32.mrf.mxu3  ;;  %v4186_v22 = vshll.u32 %v8314_v43, 16 }
 0x22d   : > { %v2523_v4 = vadd.f32 %v2488_v0, %v2236_v5  ;;  %v4155_v5 = vrot.slane %v4153_v61, 4  ;;  %v4164_v34 = vrot.slane %v4162_v49, 5  ;;  %v10524_v49 = vld [vmem:[#allocation12_spill] sm:$0xff] }
 0x22f   : > { %v3177_v52 = vadd.f32 %v3142_v36, %v2523_v4  ;;  %6637 = vmatmul.msk.bf16.gmra.mxu0 %vm1491_vm11, %v4735_v27  ;;  %v10523_v4 = vld [vmem:[#allocation22_spill] sm:$0xff]  ;;  %v4159_v40 = vor.u32 %v4158_v41, %v4155_v5  ;;  %v4169_v61 = vor.u32 %v4168_v18, %v4164_v34  ;;  %v3897_v18 = vld [vmem:[#allocation2 + $0x9c] sm:$0xf] }
 0x231   : > { %v8296_v0 = vadd.f32 %v3540_v46, %v3177_v52  ;;  %v4712_v52 = vunpack.c.l.b16 %v4641_v31  ;;  %v4160_v6 = vrot.slane %v4159_v40, 4  ;;  %v4170_v51 = vrot.slane %v4169_v61, 4 }
 0x232   : > { %v2203_v37 = vpop.f32.mrf.mxu2  ;;  %v4177_v31 = vshrl.u32 %v3897_v18, 16  ;;  %v4190_v40 = vshrl.u32 %v8314_v43, 16 }
 0x233   : > { %v2237_v36 = vadd.f32 %v2203_v37, %v10523_v4  ;;  %v4174_v37 = vrot.slane %v4172_v56, 5  ;;  %v4736_v5 = vpack.c.b16 %v4713_v35, %v4712_v52  ;;  %v4650_v56 = vrot.slane %v8272_v44, 5  ;;  %v6739_v35 = vld [vmem:[#allocation2 + $0x84] sm:$0xff] }
 0x234   : > { %v3144_v27 = vpop.f32.mrf.mxu0  ;;  %v4408_v46 = vpop.f32.mrf.mxu3  ;;  %6682 = vmatmul.msk.bf16.gmra.mxu1 %vm1491_vm11, %v10524_v49 }
 0x235   : > { %v2524_v19 = vadd.f32 %v2490_v20, %v2237_v36  ;;  %v4339_v20 = vpack.c.b16 %v4317_v26, %v4316_v25  ;;  %v4527_v25 = vld [vmem:[#allocation2 + $0x84] sm:$0xe]  ;;  %v4165_v26 = vsel %vm7114_vm13, %v4160_v6, %v4164_v34  ;;  %v4188_v6 = vrot.slane %v4186_v22, 5 }
 0x236   : > { %v4318_v49 = vunpack.c.l.b16 %v4165_v26 }
 0x237   : > { %6588 = vmatmul.msk.bf16.gmra.mxu2 %vm1491_vm11, %v6738_v45  ;;  %v8310_v9 = vadd.f32 %v3144_v27, %v2524_v19  ;;  %v4647_v45 = vrot.slane %v8256_v30, 5  ;;  %v4175_v19 = vsel %vm7114_vm13, %v4170_v51, %v4174_v37  ;;  %v4180_v27 = vshll.u32 %v3897_v18, 16  ;;  %v8328_v37 = vld [vmem:[#allocation2 + $0xa4] sm:$0x1] }
 0x238   : > { %v6622_v30 = vrot.slane %v4527_v25, 9  ;;  %v4319_v34 = vunpack.c.l.b16 %v4175_v19  ;;  %v4192_v51 = vrot.slane %v4190_v40, 4  ;;  %v10525_v25 = vld [vmem:[#allocation15_spill] sm:$0xff] }
 0x239   : > { %6606 = vmatmul.msk.bf16.gmra.mxu3 %vm1491_vm11, %v4339_v20  ;;  %v4179_v20 = vrot.slane %v4177_v31, 4 }
 0x23a   : > { %v3752_v38 = vpop.f32.mrf.mxu2  ;;  %v4193_v19 = vor.u32 %v4192_v51, %v4188_v6  ;;  %v4528_v51 = vld [vmem:[#allocation2 + $0x90] sm:$0xe] }
 0x23b   : > { %v3832_v10 = vadd.f32 %v3752_v38, %v7752_v63  ;;  %v4182_v38 = vrot.slane %v4180_v27, 5 }
 0x23c   : > { %v4804_v4 = vpop.f32.mrf.mxu0  ;;  %v4411_v36 = vpop.f32.mrf.mxu3 }
 0x23d   : > { %v4486_v41 = vadd.f32 %v4406_v12, %v3832_v10  ;;  %v4649_v12 = vrot.slane %v4647_v45, 4  ;;  %v4183_v26 = vor.u32 %v4182_v38, %v4179_v20 }
 0x23f   : > { %v8321_v63 = vadd.f32 %v4804_v4, %v4486_v41  ;;  %6638 = vmatmul.msk.bf16.gmra.mxu0 %vm1491_vm11, %v4736_v5  ;;  %v4648_v5 = vsel %vm7473_vm1, %v6622_v30, %v4647_v45  ;;  %v4651_v41 = vsel %vm7473_vm1, %v4649_v12, %v4650_v56  ;;  %v4340_v4 = vpack.c.b16 %v4319_v34, %v4318_v49  ;;  %v3900_v49 = vld [vmem:[#allocation2 + $0xa8] sm:$0xf]  ;;  %v8342_v34 = vld [vmem:[#allocation2 + $0xac] sm:$0xf] }
 0x240   : > { %v4714_v31 = vunpack.c.l.b16 %v4648_v5  ;;  %v4715_v27 = vunpack.c.l.b16 %v4651_v41  ;;  %v4184_v40 = vrot.slane %v4183_v26, 4  ;;  %v4194_v30 = vrot.slane %v4193_v19, 4 }
 0x241   : > { %v4204_v5 = vshll.u32 %v3900_v49, 16  ;;  %v4214_v41 = vshrl.u32 %v8342_v34, 16  ;;  %v4657_v26 = vrot.slane %v8300_v13, 5 }
 0x242   : > { %v3754_v61 = vpop.f32.mrf.mxu2 }
 0x243   : > { %v3833_v52 = vadd.f32 %v3754_v61, %v7760_v28  ;;  %v4737_v61 = vpack.c.b16 %v4715_v27, %v4714_v31 }
 0x244   : > { %v4806_v18 = vpop.f32.mrf.mxu0  ;;  %v4413_v44 = vpop.f32.mrf.mxu3  ;;  %6683 = vmatmul.msk.bf16.gmra.mxu1 %vm1491_vm11, %v10525_v25  ;;  %v6623_v25 = vrot.slane %v4528_v51, 9 }
 0x245   : > { %v4487_v10 = vadd.f32 %v4408_v46, %v3833_v52  ;;  %v4196_v46 = vshll.u32 %v8328_v37, 16 }
 0x247   : > { %v8336_v28 = vadd.f32 %v4806_v18, %v4487_v10  ;;  %6589 = vmatmul.msk.bf16.gmra.mxu2 %vm1491_vm11, %v6739_v35  ;;  %v4198_v12 = vrot.slane %v4196_v46, 5  ;;  %v4654_v35 = vrot.slane %v8286_v60, 5  ;;  %v4201_v18 = vshrl.u32 %v3900_v49, 16  ;;  %v6740_v46 = vld [vmem:[#allocation2 + $0x90] sm:$0xff] }
 0x249   : > { %6607 = vmatmul.msk.bf16.gmra.mxu3 %vm1491_vm11, %v4340_v4  ;;  %v4199_v10 = vsel %vm7114_vm13, %v4194_v30, %v4198_v12  ;;  %v4656_v60 = vrot.slane %v4654_v35, 4  ;;  %v4203_v27 = vrot.slane %v4201_v18, 4  ;;  %v8356_v12 = vld [vmem:[#allocation2 + $0xb0] sm:$0x1] }
 0x24a   : > { %v3757_v22 = vpop.f32.mrf.mxu2  ;;  %v4321_v31 = vunpack.c.l.b16 %v4199_v10  ;;  %v4220_v10 = vshll.u32 %v8356_v12, 16 }
 0x24b   : > { %v3834_v45 = vadd.f32 %v3757_v22, %v7785_v39  ;;  %v4189_v39 = vsel %vm7114_vm13, %v4184_v40, %v4188_v6  ;;  %v4206_v22 = vrot.slane %v4204_v5, 5  ;;  %v4216_v40 = vrot.slane %v4214_v41, 4  ;;  %v3903_v41 = vld [vmem:[#allocation2 + $0xb4] sm:$0xf] }
 0x24c   : > { %v4809_v52 = vpop.f32.mrf.mxu0  ;;  %v4416_v20 = vpop.f32.mrf.mxu3  ;;  %v4320_v6 = vunpack.c.l.b16 %v4189_v39  ;;  %v4658_v49 = vsel %vm7473_vm1, %v4656_v60, %v4657_v26  ;;  %v4222_v26 = vrot.slane %v4220_v10, 5 }
 0x24d   : > { %v4488_v56 = vadd.f32 %v4411_v36, %v3834_v45  ;;  %v4210_v36 = vshll.u32 %v8342_v34, 16  ;;  %v4207_v39 = vor.u32 %v4206_v22, %v4203_v27  ;;  %v4717_v5 = vunpack.c.l.b16 %v4658_v49  ;;  %v4529_v22 = vld [vmem:[#allocation2 + $0x9c] sm:$0xe] }
 0x24e   : > { %v4341_v51 = vpack.c.b16 %v4321_v31, %v4320_v6  ;;  %v4661_v6 = vrot.slane %v8314_v43, 5  ;;  %v6624_v43 = vrot.slane %v4529_v22, 9 }
 0x24f   : > { %v8345_v38 = vadd.f32 %v4809_v52, %v4488_v56  ;;  %6639 = vmatmul.msk.bf16.gmra.mxu0 %vm1491_vm11, %v4737_v61  ;;  %v4212_v45 = vrot.slane %v4210_v36, 5  ;;  %v4655_v61 = vsel %vm7473_vm1, %v6623_v25, %v4654_v35  ;;  %v10526_v52 = vld [vmem:[#allocation18_spill] sm:$0xff]  ;;  %v4208_v25 = vrot.slane %v4207_v39, 4 }
 0x250   : > { %v4716_v18 = vunpack.c.l.b16 %v4655_v61 }
 0x251   : > { %v4213_v49 = vsel %vm7114_vm13, %v4208_v25, %v4212_v45 }
 0x252   : > { %v3759_v4 = vpop.f32.mrf.mxu2 }
 0x253   : > { %v3835_v19 = vadd.f32 %v3759_v4, %v7799_v7  ;;  %v8370_v4 = vld [vmem:[#allocation2 + $0xb8] sm:$0xf] }
 0x254   : > { %v4811_v56 = vpop.f32.mrf.mxu0  ;;  %v4418_v13 = vpop.f32.mrf.mxu3  ;;  %6684 = vmatmul.msk.bf16.gmra.mxu1 %vm1491_vm11, %v10526_v52  ;;  %v4238_v61 = vshrl.u32 %v8370_v4, 16 }
 0x255   : > { %v4489_v30 = vadd.f32 %v4413_v44, %v3835_v19  ;;  %v4217_v44 = vor.u32 %v4216_v40, %v4212_v45  ;;  %v4738_v19 = vpack.c.b16 %v4717_v5, %v4716_v18  ;;  %v4225_v40 = vshrl.u32 %v3903_v41, 16  ;;  %v8384_v45 = vld [vmem:[#allocation2 + $0xbc] sm:$0x1] }
 0x256   : > { %v4240_v5 = vrot.slane %v4238_v61, 4 }
 0x257   : > { %v8364_v7 = vadd.f32 %v4811_v56, %v4489_v30  ;;  %6590 = vmatmul.msk.bf16.gmra.mxu2 %vm1491_vm11, %v6740_v46  ;;  %v4218_v60 = vrot.slane %v4217_v44, 4  ;;  %v4228_v30 = vshll.u32 %v3903_v41, 16  ;;  %v4234_v56 = vshll.u32 %v8370_v4, 16 }
 0x258   : > { %v4227_v44 = vrot.slane %v4225_v40, 4  ;;  %v4322_v41 = vunpack.c.l.b16 %v4213_v49  ;;  %v4244_v40 = vshll.u32 %v8384_v45, 16 }
 0x259   : > { %6608 = vmatmul.msk.bf16.gmra.mxu3 %vm1491_vm11, %v4341_v51  ;;  %v4223_v52 = vsel %vm7114_vm13, %v4218_v60, %v4222_v26  ;;  %v4664_v51 = vrot.slane %v8328_v37, 5  ;;  %v4230_v10 = vrot.slane %v4228_v30, 5  ;;  %v4236_v18 = vrot.slane %v4234_v56, 5  ;;  %v10527_v30 = vld [vmem:[#allocation21_spill] sm:$0xff] }
 0x25a   : > { %v3762_v36 = vpop.f32.mrf.mxu2  ;;  %v4662_v60 = vsel %vm7473_vm1, %v6624_v43, %v4661_v6  ;;  %v4246_v43 = vrot.slane %v4244_v40, 5  ;;  %v4671_v40 = vrot.slane %v8356_v12, 5 }
 0x25b   : > { %v3836_v35 = vadd.f32 %v3762_v36, %v7820_v1  ;;  %v4241_v22 = vor.u32 %v4240_v5, %v4236_v18  ;;  %v4718_v56 = vunpack.c.l.b16 %v4662_v60  ;;  %v4668_v5 = vrot.slane %v8342_v34, 5 }
 0x25c   : > { %v4814_v31 = vpop.f32.mrf.mxu0  ;;  %v4421_v27 = vpop.f32.mrf.mxu3 }
 0x25d   : > { %v4490_v46 = vadd.f32 %v4416_v20, %v3836_v35  ;;  %v4663_v20 = vrot.slane %v4661_v6, 4  ;;  %v6741_v35 = vld [vmem:[#allocation2 + $0x9c] sm:$0xff] }
 0x25f   : > { %v8374_v1 = vadd.f32 %v4814_v31, %v4490_v46  ;;  %6640 = vmatmul.msk.bf16.gmra.mxu0 %vm1491_vm11, %v4738_v19  ;;  %v4323_v46 = vunpack.c.l.b16 %v4223_v52  ;;  %v4665_v37 = vsel %vm7473_vm1, %v4663_v20, %v4664_v51  ;;  %v4231_v31 = vor.u32 %v4230_v10, %v4227_v44  ;;  %v3906_v51 = vld [vmem:[#allocation2 + $0xc0] sm:$0xf] }
 0x260   : > { %v4719_v61 = vunpack.c.l.b16 %v4665_v37  ;;  %v4242_v52 = vrot.slane %v4241_v22, 4  ;;  %v4249_v60 = vshrl.u32 %v3906_v51, 16 }
 0x261   : > { %v4232_v49 = vrot.slane %v4231_v31, 4 }
 0x262   : > { %v3764_v39 = vpop.f32.mrf.mxu2  ;;  %v4739_v44 = vpack.c.b16 %v4719_v61, %v4718_v56  ;;  %v6742_v61 = vld [vmem:[#allocation2 + $0xa8] sm:$0xff] }
 0x263   : > { %v3837_v36 = vadd.f32 %v3764_v39, %v7835_v29  ;;  %v8398_v39 = vld [vmem:[#allocation2 + $0xc4] sm:$0xf] }
 0x264   : > { %v4816_v26 = vpop.f32.mrf.mxu0  ;;  %v4423_v19 = vpop.f32.mrf.mxu3  ;;  %6685 = vmatmul.msk.bf16.gmra.mxu1 %vm1491_vm11, %v10527_v30  ;;  %v4258_v37 = vshll.u32 %v8398_v39, 16  ;;  %v4262_v31 = vshrl.u32 %v8398_v39, 16 }
 0x265   : > { %v4491_v25 = vadd.f32 %v4418_v13, %v3837_v36  ;;  %v4342_v13 = vpack.c.b16 %v4323_v46, %v4322_v41  ;;  %v4530_v41 = vld [vmem:[#allocation2 + $0xa8] sm:$0xe]  ;;  %v4237_v46 = vsel %vm7114_vm13, %v4232_v49, %v4236_v18 }
 0x266   : > { %v6625_v34 = vrot.slane %v4530_v41, 9  ;;  %v4324_v30 = vunpack.c.l.b16 %v4237_v46  ;;  %v4260_v49 = vrot.slane %v4258_v37, 5  ;;  %v10528_v41 = vld [vmem:[#allocation23_spill] sm:$0xff] }
 0x267   : > { %v8393_v29 = vadd.f32 %v4816_v26, %v4491_v25  ;;  %6591 = vmatmul.msk.bf16.gmra.mxu2 %vm1491_vm11, %v6741_v35  ;;  %v4247_v25 = vsel %vm7114_vm13, %v4242_v52, %v4246_v43  ;;  %v4252_v26 = vshll.u32 %v3906_v51, 16  ;;  %v4264_v52 = vrot.slane %v4262_v31, 4  ;;  %v8412_v43 = vld [vmem:[#allocation2 + $0xc8] sm:$0x1] }
 0x268   : > { %v4325_v18 = vunpack.c.l.b16 %v4247_v25 }
 0x269   : > { %6609 = vmatmul.msk.bf16.gmra.mxu3 %vm1491_vm11, %v4342_v13  ;;  %v4251_v13 = vrot.slane %v4249_v60, 4  ;;  %v4265_v25 = vor.u32 %v4264_v52, %v4260_v49  ;;  %v4531_v52 = vld [vmem:[#allocation2 + $0xb4] sm:$0xe] }
 0x26a   : > { %v3767_v6 = vpop.f32.mrf.mxu2 }
 0x26b   : > { %v3838_v20 = vadd.f32 %v3767_v6, %v7863_v11  ;;  %v4254_v6 = vrot.slane %v4252_v26, 5 }
 0x26c   : > { %v4819_v36 = vpop.f32.mrf.mxu0  ;;  %v4426_v35 = vpop.f32.mrf.mxu3 }
 0x26d   : > { %v4492_v10 = vadd.f32 %v4421_v27, %v3838_v20  ;;  %v4670_v27 = vrot.slane %v4668_v5, 4  ;;  %v4255_v46 = vor.u32 %v4254_v6, %v4251_v13 }
 0x26f   : > { %v8405_v11 = vadd.f32 %v4819_v36, %v4492_v10  ;;  %6641 = vmatmul.msk.bf16.gmra.mxu0 %vm1491_vm11, %v4739_v44  ;;  %v4669_v44 = vsel %vm7473_vm1, %v6625_v34, %v4668_v5  ;;  %v4672_v10 = vsel %vm7473_vm1, %v4670_v27, %v4671_v40  ;;  %v4343_v36 = vpack.c.b16 %v4325_v18, %v4324_v30  ;;  %v3909_v30 = vld [vmem:[#allocation2 + $0xcc] sm:$0xf]  ;;  %v8426_v18 = vld [vmem:[#allocation2 + $0xd0] sm:$0xf] }
 0x270   : > { %v4720_v60 = vunpack.c.l.b16 %v4669_v44  ;;  %v4721_v26 = vunpack.c.l.b16 %v4672_v10  ;;  %v4256_v31 = vrot.slane %v4255_v46, 4  ;;  %v4266_v34 = vrot.slane %v4265_v25, 4 }
 0x271   : > { %v4276_v44 = vshll.u32 %v3909_v30, 16  ;;  %v4286_v10 = vshrl.u32 %v8426_v18, 16  ;;  %v4678_v25 = vrot.slane %v8384_v45, 5 }
 0x272   : > { %v3769_v22 = vpop.f32.mrf.mxu2 }
 0x273   : > { %v3839_v56 = vadd.f32 %v3769_v22, %v7892_v59  ;;  %v4740_v22 = vpack.c.b16 %v4721_v26, %v4720_v60 }
 0x274   : > { %v4821_v51 = vpop.f32.mrf.mxu0  ;;  %v4428_v12 = vpop.f32.mrf.mxu3  ;;  %6686 = vmatmul.msk.bf16.gmra.mxu1 %vm1491_vm11, %v10528_v41  ;;  %v6626_v41 = vrot.slane %v4531_v52, 9 }
 0x275   : > { %v4493_v20 = vadd.f32 %v4423_v19, %v3839_v56  ;;  %v4268_v19 = vshll.u32 %v8412_v43, 16 }
 0x277   : > { %v8420_v59 = vadd.f32 %v4821_v51, %v4493_v20  ;;  %6592 = vmatmul.msk.bf16.gmra.mxu2 %vm1491_vm11, %v6742_v61  ;;  %v4270_v27 = vrot.slane %v4268_v19, 5  ;;  %v4675_v61 = vrot.slane %v8370_v4, 5  ;;  %v4273_v51 = vshrl.u32 %v3909_v30, 16  ;;  %v6743_v19 = vld [vmem:[#allocation2 + $0xb4] sm:$0xff] }
 0x279   : > { %6610 = vmatmul.msk.bf16.gmra.mxu3 %vm1491_vm11, %v4343_v36  ;;  %v4271_v20 = vsel %vm7114_vm13, %v4266_v34, %v4270_v27  ;;  %v3554_v36 = vadd.f32 %v7894_v55, %v7944_v8  ;;  %v4677_v46 = vrot.slane %v4675_v61, 4  ;;  %v4288_v34 = vrot.slane %v4286_v10, 4 }
 0x27a   : > { %v3772_v37 = vpop.f32.mrf.mxu2  ;;  %v4327_v26 = vunpack.c.l.b16 %v4271_v20  ;;  %v4676_v55 = vsel %vm7473_vm1, %v6626_v41, %v4675_v61 }
 0x27b   : > { %v3840_v5 = vadd.f32 %v3772_v37, %v7922_v21  ;;  %v4261_v21 = vsel %vm7114_vm13, %v4256_v31, %v4260_v49  ;;  %v4275_v37 = vrot.slane %v4273_v51, 4  ;;  %v4679_v8 = vsel %vm7473_vm1, %v4677_v46, %v4678_v25 }
 0x27c   : > { %v4824_v56 = vpop.f32.mrf.mxu0  ;;  %v4431_v13 = vpop.f32.mrf.mxu3  ;;  %v4326_v60 = vunpack.c.l.b16 %v4261_v21  ;;  %v4722_v20 = vunpack.c.l.b16 %v4676_v55  ;;  %v4723_v51 = vunpack.c.l.b16 %v4679_v8  ;;  %v4682_v25 = vrot.slane %v8398_v39, 5 }
 0x27d   : > { %v4494_v40 = vadd.f32 %v4426_v35, %v3840_v5  ;;  %v4282_v35 = vshll.u32 %v8426_v18, 16  ;;  %v4278_v5 = vrot.slane %v4276_v44, 5 }
 0x27f   : > { %v8429_v6 = vadd.f32 %v4824_v56, %v4494_v40  ;;  %6642 = vmatmul.msk.bf16.gmra.mxu0 %vm1491_vm11, %v4740_v22  ;;  %v4284_v31 = vrot.slane %v4282_v35, 5  ;;  %v8441_v40 = vld [vmem:[#allocation2 + $0xd4] sm:$0x1]  ;;  %v4344_v56 = vpack.c.b16 %v4327_v26, %v4326_v60  ;;  %v4279_v52 = vor.u32 %v4278_v5, %v4275_v37 }
 0x280   : > { %v4292_v21 = vshll.u32 %v8441_v40, 16  ;;  %v3556_v26 = vadd.f32 %v7950_v42, %v7995_v47  ;;  %v4684_v5 = vrot.slane %v4682_v25, 4 }
 0x281   : > { %v4280_v35 = vrot.slane %v4279_v52, 4 }
 0x282   : > { %v3774_v4 = vpop.f32.mrf.mxu2 }
 0x283   : > { %v3841_v49 = vadd.f32 %v3774_v4, %v3554_v36  ;;  %v4294_v36 = vrot.slane %v4292_v21, 5  ;;  %v4285_v60 = vsel %vm7114_vm13, %v4280_v35, %v4284_v31  ;;  %v4689_v35 = vrot.slane %v8426_v18, 5 }
 0x284   : > { %v4826_v30 = vpop.f32.mrf.mxu0  ;;  %v4433_v22 = vpop.f32.mrf.mxu3  ;;  %6687 = vmatmul.msk.bf16.gmra.mxu1 %vm1491_vm11, %v7772_v14  ;;  %v4741_v14 = vpack.c.b16 %v4723_v51, %v4722_v20 }
 0x285   : > { %v4495_v27 = vadd.f32 %v4428_v12, %v3841_v49  ;;  %v4289_v12 = vor.u32 %v4288_v34, %v4284_v31  ;;  %v4685_v34 = vrot.slane %v8412_v43, 5 }
 0x287   : > { %v8449_v45 = vadd.f32 %v4826_v30, %v4495_v27  ;;  %6593 = vmatmul.msk.bf16.gmra.mxu2 %vm1491_vm11, %v6743_v19  ;;  %v4290_v10 = vrot.slane %v4289_v12, 4  ;;  %v4532_v19 = vld [vmem:[#allocation2 + $0xc0] sm:$0xe]  ;;  %v4328_v30 = vunpack.c.l.b16 %v4285_v60  ;;  %v4686_v31 = vsel %vm7473_vm1, %v4684_v5, %v4685_v34 }
 0x288   : > { %v6744_v27 = vld [vmem:[#allocation2 + $0xc0] sm:$0xff]  ;;  %v4725_v12 = vunpack.c.l.b16 %v4686_v31 }
 0x289   : > { %6611 = vmatmul.msk.bf16.gmra.mxu3 %vm1491_vm11, %v4344_v56 }
 0x28a   : > { %v3777_v44 = vpop.f32.mrf.mxu2 }
 0x28b   : > { %v3842_v61 = vadd.f32 %v3777_v44, %v7976_v32  ;;  %v4295_v32 = vsel %vm7114_vm13, %v4290_v10, %v4294_v36  ;;  %v3558_v36 = vadd.f32 %v8003_v57, %v8043_v2  ;;  %v10529_v2 = vld [vmem:[#allocation24_spill] sm:$0xff] }
 0x28c   : > { %v4829_v41 = vpop.f32.mrf.mxu0  ;;  %v4436_v46 = vpop.f32.mrf.mxu3  ;;  %v4329_v55 = vunpack.c.l.b16 %v4295_v32 }
 0x28d   : > { %v4496_v4 = vadd.f32 %v4431_v13, %v3842_v61  ;;  %v6627_v13 = vrot.slane %v4532_v19, 9  ;;  %v6745_v19 = vld [vmem:[#allocation2 + $0xcc] sm:$0xff] }
 0x28e   : > { %v4345_v43 = vpack.c.b16 %v4329_v55, %v4328_v30 }
 0x28f   : > { %v8456_v49 = vadd.f32 %v4829_v41, %v4496_v4  ;;  %6643 = vmatmul.msk.bf16.gmra.mxu0 %vm1491_vm11, %v4741_v14  ;;  %v4683_v16 = vsel %vm7473_vm1, %v6627_v13, %v4682_v25  ;;  %v4691_v41 = vrot.slane %v4689_v35, 4 }
 0x290   : > { %v4724_v52 = vunpack.c.l.b16 %v4683_v16 }
 0x292   : > { %v3779_v37 = vpop.f32.mrf.mxu2  ;;  %v4742_v20 = vpack.c.b16 %v4725_v12, %v4724_v52 }
 0x293   : > { %v3843_v39 = vadd.f32 %v3779_v37, %v3556_v26 }
 0x294   : > { %v4831_v56 = vpop.f32.mrf.mxu0  ;;  %v4438_v42 = vpop.f32.mrf.mxu3  ;;  %6688 = vmatmul.msk.bf16.gmra.mxu1 %vm1491_vm11, %v7812_v53  ;;  %v4533_v53 = vld [vmem:[#allocation2 + $0xcc] sm:$0xe] }
 0x295   : > { %v4497_v8 = vadd.f32 %v4433_v22, %v3843_v39  ;;  %v6628_v4 = vrot.slane %v4533_v53, 9 }
 0x297   : > { %v8472_v47 = vadd.f32 %v4831_v56, %v4497_v8  ;;  %6594 = vmatmul.msk.bf16.gmra.mxu2 %vm1491_vm11, %v6744_v27  ;;  %v4690_v18 = vsel %vm7473_vm1, %v6628_v4, %v4689_v35 }
 0x299   : > { %6612 = vmatmul.msk.bf16.gmra.mxu3 %vm1491_vm11, %v4345_v43 }
 0x29a   : > { %v3782_v21 = vpop.f32.mrf.mxu2 }
 0x29b   : > { %v3844_v22 = vadd.f32 %v3782_v21, %v8029_v17  ;;  %v4692_v17 = vrot.slane %v8441_v40, 5  ;;  %v4726_v40 = vunpack.c.l.b16 %v4690_v18 }
 0x29c   : > { %v4834_v44 = vpop.f32.mrf.mxu0  ;;  %v4441_v61 = vpop.f32.mrf.mxu3 }
 0x29d   : > { %v4498_v51 = vadd.f32 %v4436_v46, %v3844_v22  ;;  %v8484_v46 = vpop.f32.mrf.mxu1  ;;  %v4693_v26 = vsel %vm7473_vm1, %v4691_v41, %v4692_v17 }
 0x29e   : > { %v4727_v13 = vunpack.c.l.b16 %v4693_v26 }
 0x29f   : > { %v8478_v10 = vadd.f32 %v4834_v44, %v4498_v51  ;;  %6644 = vmatmul.msk.bf16.gmra.mxu0 %vm1491_vm11, %v4742_v20 }
 0x2a0   : > { %v4743_v39 = vpack.c.b16 %v4727_v13, %v4726_v40 }
 0x2a2   : > { %v3784_v14 = vpop.f32.mrf.mxu2 }
 0x2a3   : > { %v3845_v25 = vadd.f32 %v3784_v14, %v3558_v36 }
 0x2a4   : > { %v4836_v32 = vpop.f32.mrf.mxu0  ;;  %v4443_v57 = vpop.f32.mrf.mxu3  ;;  %6689 = vmatmul.msk.bf16.gmra.mxu1 %vm1491_vm11, %v10529_v2  ;;  %v10530_v2 = vld [vmem:[#allocation5_spill] sm:$0xff] }
 0x2a5   : > { %v4499_v60 = vadd.f32 %v4438_v42, %v3845_v25 }
 0x2a7   : > { %v8492_v37 = vadd.f32 %v4836_v32, %v4499_v60  ;;  %6595 = vmatmul.msk.bf16.gmra.mxu2 %vm1491_vm11, %v6745_v19  ;;  %v3564_v19 = vadd.f32 %v8104_v3, %v8130_v48 }
 0x2aa   : > { %v3787_v5 = vpop.f32.mrf.mxu2 }
 0x2ab   : > { %v3846_v34 = vadd.f32 %v3787_v5, %v8062_v50 }
 0x2ac   : > { %v4839_v30 = vpop.f32.mrf.mxu0  ;;  %v4446_v55 = vpop.f32.mrf.mxu3 }
 0x2ad   : > { %v4500_v27 = vadd.f32 %v4441_v61, %v3846_v34 }
 0x2af   : > { %v8496_v8 = vadd.f32 %v4839_v30, %v4500_v27  ;;  %6645 = vmatmul.msk.bf16.gmra.mxu0 %vm1491_vm11, %v4743_v39 }
 0x2b2   : > { %v3789_v56 = vpop.f32.mrf.mxu2 }
 0x2b3   : > { %v3847_v16 = vadd.f32 %v3789_v56, %v3560_v62  ;;  %v8539_v62 = vld [vmem:[%s10385_s2] ss:$0 sm:$0xff] }
 0x2b4   : > { %v4841_v42 = vpop.f32.mrf.mxu0  ;;  %v4448_v43 = vpop.f32.mrf.mxu3 }
 0x2b5   : > { %v4501_v31 = vadd.f32 %v4443_v57, %v3847_v16  ;;  %v8545_v16 = vadd.f32 %v8539_v62, %v8336_v28 }
 0x2b7   : > { %v8501_v52 = vadd.f32 %v4841_v42, %v4501_v31  ;;  %v8549_v31 = vadd.f32 %v8539_v62, %v8321_v63  ;;  %v8553_v42 = vadd.f32 %v8539_v62, %v8345_v38  ;;  %v4954_v63 = vsel %vm10450_vm0, %v8545_v16, 0.0 }
 0x2b9   : > { %v5022_v28 = vmul.f32 %v8549_v31, %v8549_v31  ;;  %v5024_v38 = vmul.f32 %v8553_v42, %v8553_v42 }
 0x2ba   : > { %v3792_v12 = vpop.f32.mrf.mxu2 }
 0x2bb   : > { %v3848_v50 = vadd.f32 %v3792_v12, %v8090_v33  ;;  %v5023_v12 = vmul.f32 %v8545_v16, %v8545_v16 }
 0x2bc   : > { %v4844_v22 = vpop.f32.mrf.mxu0  ;;  %v4451_v20 = vpop.f32.mrf.mxu3 }
 0x2bd   : > { %v4502_v21 = vadd.f32 %v4446_v55, %v3848_v50  ;;  %v8561_v50 = vadd.f32 %v8539_v62, %v8364_v7 }
 0x2bf   : > { %v8504_v51 = vadd.f32 %v4844_v22, %v4502_v21  ;;  %v8573_v22 = vadd.f32 %v8539_v62, %v8374_v1  ;;  %v5054_v1 = vsel %vm10450_vm0, %v5022_v28, 0.0 }
 0x2c2   : > { %v3794_v23 = vpop.f32.mrf.mxu2 }
 0x2c3   : > { %v3849_v44 = vadd.f32 %v3794_v23, %v3562_v15  ;;  %v5055_v15 = vsel %vm10450_vm0, %v5023_v12, 0.0  ;;  %v4956_v23 = vsel %vm10450_vm0, %v8553_v42, 0.0 }
 0x2c4   : > { %v4846_v35 = vpop.f32.mrf.mxu0  ;;  %v4453_v53 = vpop.f32.mrf.mxu3 }
 0x2c5   : > { %v4503_v61 = vadd.f32 %v4448_v43, %v3849_v44  ;;  %v5025_v44 = vmul.f32 %v8561_v50, %v8561_v50 }
 0x2c7   : > { %v8508_v36 = vadd.f32 %v4846_v35, %v4503_v61  ;;  %v8586_v61 = vadd.f32 %v8539_v62, %v8393_v29  ;;  %v5059_v29 = vsel %vm10450_vm0, %v5025_v44, 0.0 }
 0x2ca   : > { %v3797_v14 = vpop.f32.mrf.mxu2 }
 0x2cb   : > { %v3850_v4 = vadd.f32 %v3797_v14, %v8118_v58  ;;  %v4958_v14 = vsel %vm10450_vm0, %v8561_v50, 0.0 }
 0x2cc   : > { %v4849_v33 = vpop.f32.mrf.mxu0  ;;  %v4456_v17 = vpop.f32.mrf.mxu3 }
 0x2cd   : > { %v4504_v41 = vadd.f32 %v4451_v20, %v3850_v4  ;;  %v4953_v20 = vsel %vm10450_vm0, %v8549_v31, 0.0  ;;  %v5026_v4 = vmul.f32 %v8573_v22, %v8573_v22 }
 0x2ce   : > { %v4955_v35 = vadd.f32 %v4954_v63, %v4953_v20 }
 0x2cf   : > { %v8511_v25 = vadd.f32 %v4849_v33, %v4504_v41  ;;  %v8596_v41 = vadd.f32 %v8539_v62, %v8405_v11  ;;  %v5056_v33 = vadd.f32 %v5055_v15, %v5054_v1  ;;  %v5061_v11 = vsel %vm10450_vm0, %v5026_v4, 0.0 }
 0x2d0   : > { %v8629_v15 = vadd.f32 %v8539_v62, %v8449_v45 }
 0x2d2   : > { %v3799_v60 = vpop.f32.mrf.mxu2 }
 0x2d3   : > { %v3851_v54 = vadd.f32 %v3799_v60, %v3564_v19  ;;  %v4960_v60 = vsel %vm10450_vm0, %v8573_v22, 0.0 }
 0x2d4   : > { %v4851_v32 = vpop.f32.mrf.mxu0  ;;  %v8515_v18 = vpop.f32.mrf.mxu3 }
 0x2d5   : > { %v4505_v24 = vadd.f32 %v4453_v53, %v3851_v54  ;;  %v5057_v53 = vsel %vm10450_vm0, %v5024_v38, 0.0  ;;  %v5027_v54 = vmul.f32 %v8586_v61, %v8586_v61  ;;  %v4964_v38 = vsel %vm10450_vm0, %v8596_v41, 0.0 }
 0x2d7   : > { %v8517_v26 = vadd.f32 %v4851_v32, %v4505_v24  ;;  %v8607_v24 = vadd.f32 %v8539_v62, %v8420_v59  ;;  %v5058_v32 = vadd.f32 %v5057_v53, %v5056_v33  ;;  %v5063_v63 = vsel %vm10450_vm0, %v5027_v54, 0.0 }
 0x2d8   : > { %v8638_v53 = vadd.f32 %v8539_v62, %v8456_v49 }
 0x2d9   : > { %v5029_v20 = vmul.f32 %v8607_v24, %v8607_v24  ;;  %v4966_v1 = vsel %vm10450_vm0, %v8607_v24, 0.0 }
 0x2da   : > { %v3802_v57 = vpop.f32.mrf.mxu2 }
 0x2db   : > { %v3852_v40 = vadd.f32 %v3802_v57, %v10530_v2  ;;  %v4962_v2 = vsel %vm10450_vm0, %v8586_v61, 0.0  ;;  %v5067_v45 = vsel %vm10450_vm0, %v5029_v20, 0.0  ;;  %v8669_v20 = vadd.f32 %v8539_v62, %v8492_v37 }
 0x2dc   : > { %v4854_v13 = vpop.f32.mrf.mxu0  ;;  %v8520_v5 = vpop.f32.mrf.mxu3 }
 0x2dd   : > { %v4506_v58 = vadd.f32 %v4456_v17, %v3852_v40  ;;  %v4957_v17 = vadd.f32 %v4956_v23, %v4955_v35  ;;  %v5028_v40 = vmul.f32 %v8596_v41, %v8596_v41  ;;  %10533 = vst [vmem:[#allocation22_spill] sm:$0xff] %v8669_v20 }
 0x2df   : > { %v8522_v34 = vadd.f32 %v4854_v13, %v4506_v58  ;;  %v4959_v57 = vadd.f32 %v4958_v14, %v4957_v17  ;;  %v8616_v58 = vadd.f32 %v8539_v62, %v8429_v6  ;;  %v5060_v13 = vadd.f32 %v5059_v29, %v5058_v32 }
 0x2e0   : > { %v5065_v44 = vsel %vm10450_vm0, %v5028_v40, 0.0  ;;  %v5031_v29 = vmul.f32 %v8629_v15, %v8629_v15 }
 0x2e1   : > { %v4961_v12 = vadd.f32 %v4960_v60, %v4959_v57  ;;  %v5062_v6 = vadd.f32 %v5061_v11, %v5060_v13  ;;  %v5030_v35 = vmul.f32 %v8616_v58, %v8616_v58  ;;  %v4968_v17 = vsel %vm10450_vm0, %v8616_v58, 0.0 }
 0x2e2   : > { %v8524_v39 = vpop.f32.mrf.mxu2  ;;  %v8649_v60 = vadd.f32 %v8539_v62, %v8472_v47  ;;  %v4970_v57 = vsel %vm10450_vm0, %v8629_v15, 0.0  ;;  %v5032_v11 = vmul.f32 %v8638_v53, %v8638_v53  ;;  %v5071_v47 = vsel %vm10450_vm0, %v5031_v29, 0.0 }
 0x2e3   : > { %v4963_v23 = vadd.f32 %v4962_v2, %v4961_v12  ;;  %v5064_v14 = vadd.f32 %v5063_v63, %v5062_v6  ;;  %v5069_v49 = vsel %vm10450_vm0, %v5030_v35, 0.0  ;;  %v8658_v2 = vadd.f32 %v8539_v62, %v8478_v10 }
 0x2e4   : > { %v8526_v3 = vpop.f32.mrf.mxu0  ;;  %v8528_v48 = vpop.f32.mrf.mxu3  ;;  %10531 = vst [vmem:[#allocation10_spill] sm:$0xff] %v8649_v60  ;;  %v4972_v63 = vsel %vm10450_vm0, %v8638_v53, 0.0 }
 0x2e5   : > { %v4965_v4 = vadd.f32 %v4964_v38, %v4963_v23  ;;  %v5066_v54 = vadd.f32 %v5065_v44, %v5064_v14  ;;  %10532 = vst [vmem:[#allocation20_spill] sm:$0xff] %v8658_v2  ;;  %v5033_v38 = vmul.f32 %v8649_v60, %v8649_v60  ;;  %v5073_v44 = vsel %vm10450_vm0, %v5032_v11, 0.0  ;;  %v10535_v11 = vld [vmem:[#allocation29_spill] sm:$0xff] }
 0x2e6   : > { %v5034_v35 = vmul.f32 %v8658_v2, %v8658_v2  ;;  %v8680_v14 = vadd.f32 %v8539_v62, %v8496_v8  ;;  %v4976_v29 = vsel %vm10450_vm0, %v8658_v2, 0.0  ;;  %v10534_v8 = vld [vmem:[#allocation7_spill] sm:$0xff] }
 0x2e7   : > { %v4967_v32 = vadd.f32 %v4966_v1, %v4965_v4  ;;  %v5068_v40 = vadd.f32 %v5067_v45, %v5066_v54  ;;  %v4974_v1 = vsel %vm10450_vm0, %v8649_v60, 0.0  ;;  %v5035_v54 = vmul.f32 %v8669_v20, %v8669_v20  ;;  %v10542_v60 = vld [vmem:[#allocation4_spill] sm:$0xff] }
 0x2e9   : > { %v4969_v13 = vadd.f32 %v4968_v17, %v4967_v32  ;;  %v5070_v6 = vadd.f32 %v5069_v49, %v5068_v40  ;;  %v5075_v17 = vsel %vm10450_vm0, %v5033_v38, 0.0  ;;  %v8691_v32 = vadd.f32 %v8539_v62, %v8501_v52 }
 0x2ea   : > { %v8530_v27 = vpop.f32.mrf.mxu2  ;;  %v3566_v40 = vadd.f32 %v10535_v11, %v10534_v8  ;;  %v5079_v2 = vsel %vm10450_vm0, %v5035_v54, 0.0  ;;  %v4980_v8 = vsel %vm10450_vm0, %v8680_v14, 0.0 }
 0x2eb   : > { %v4971_v23 = vadd.f32 %v4970_v57, %v4969_v13  ;;  %v5072_v4 = vadd.f32 %v5071_v47, %v5070_v6  ;;  %v5077_v13 = vsel %vm10450_vm0, %v5034_v35, 0.0  ;;  %v5036_v47 = vmul.f32 %v8680_v14, %v8680_v14  ;;  %v10536_v35 = vld [vmem:[#allocation9_spill] sm:$0xff] }
 0x2ec   : > { %v8532_v30 = vpop.f32.mrf.mxu0  ;;  %v8534_v55 = vpop.f32.mrf.mxu3  ;;  %v4978_v6 = vsel %vm10450_vm0, %v8669_v20, 0.0  ;;  %v5037_v52 = vmul.f32 %v8691_v32, %v8691_v32  ;;  %v8717_v20 = vadd.f32 %v8539_v62, %v8508_v36 }
 0x2ed   : > { %v4973_v45 = vadd.f32 %v4972_v63, %v4971_v23  ;;  %v5074_v49 = vadd.f32 %v5073_v44, %v5072_v4  ;;  %v8705_v44 = vadd.f32 %v8539_v62, %v8504_v51  ;;  %v10537_v4 = vld [vmem:[#allocation30_spill] sm:$0xff]  ;;  %v5081_v11 = vsel %vm10450_vm0, %v5036_v47, 0.0  ;;  %v10540_v51 = vld [vmem:[#allocation8_spill] sm:$0xff] }
 0x2ee   : > { %v5083_v36 = vsel %vm10450_vm0, %v5037_v52, 0.0 }
 0x2ef   : > { %v4975_v57 = vadd.f32 %v4974_v1, %v4973_v45  ;;  %v5076_v63 = vadd.f32 %v5075_v17, %v5074_v49  ;;  %v3853_v1 = vadd.f32 %v8524_v39, %v3566_v40  ;;  %v3568_v45 = vadd.f32 %v10537_v4, %v10536_v35  ;;  %v10538_v17 = vld [vmem:[#allocation13_spill] sm:$0xff]  ;;  %v10541_v40 = vld [vmem:[#allocation16_spill] sm:$0xff] }
 0x2f0   : > { %v3854_v39 = vadd.f32 %v8530_v27, %v10540_v51  ;;  %v3572_v35 = vadd.f32 %v10542_v60, %v10541_v40  ;;  %v4984_v60 = vsel %vm10450_vm0, %v8705_v44, 0.0  ;;  %v5039_v51 = vmul.f32 %v8717_v20, %v8717_v20 }
 0x2f1   : > { %v4977_v38 = vadd.f32 %v4976_v29, %v4975_v57  ;;  %v10539_v29 = vld [vmem:[#allocation3_spill] sm:$0xff]  ;;  %v5078_v57 = vadd.f32 %v5077_v13, %v5076_v63  ;;  %v4982_v13 = vsel %vm10450_vm0, %v8691_v32, 0.0  ;;  %v4507_v27 = vadd.f32 %v8515_v18, %v3853_v1 }
 0x2f2   : > { %v8541_v56 = vpop.f32.mrf.mxu2  ;;  %v3570_v49 = vadd.f32 %v10539_v29, %v10538_v17  ;;  %v4508_v18 = vadd.f32 %v8520_v5, %v3854_v39  ;;  %v10546_v39 = vld [vmem:[#allocation14_spill] sm:$0xff] }
 0x2f3   : > { %v4979_v54 = vadd.f32 %v4978_v6, %v4977_v38  ;;  %v5080_v4 = vadd.f32 %v5079_v2, %v5078_v57  ;;  %v3855_v63 = vadd.f32 %v8541_v56, %v3568_v45  ;;  %v5038_v6 = vmul.f32 %v8705_v44, %v8705_v44  ;;  %v10543_v56 = vld [vmem:[#allocation11_spill] sm:$0xff] }
 0x2f4   : > { %v8555_v43 = vpop.f32.mrf.mxu0  ;;  %v8565_v21 = vpop.f32.mrf.mxu3  ;;  %v8738_v2 = vadd.f32 %v8539_v62, %v8511_v25  ;;  %v10544_v57 = vld [vmem:[#allocation19_spill] sm:$0xff] }
 0x2f5   : > { %v4981_v47 = vadd.f32 %v4980_v8, %v4979_v54  ;;  %v5082_v29 = vadd.f32 %v5081_v11, %v5080_v4  ;;  %v10545_v8 = vld [vmem:[#allocation17_spill] sm:$0xff]  ;;  %v8749_v11 = vadd.f32 %v8539_v62, %v8517_v26  ;;  %v4509_v25 = vadd.f32 %v8528_v48, %v3855_v63 }
 0x2f6   : > { %v3574_v54 = vadd.f32 %v10545_v8, %v10544_v57  ;;  %v4986_v57 = vsel %vm10450_vm0, %v8717_v20, 0.0  ;;  %v5040_v5 = vmul.f32 %v8738_v2, %v8738_v2  ;;  %v8761_v26 = vadd.f32 %v8539_v62, %v8522_v34 }
 0x2f7   : > { %v4983_v52 = vadd.f32 %v4982_v13, %v4981_v47  ;;  %v5084_v1 = vadd.f32 %v5083_v36, %v5082_v29  ;;  %v4905_v13 = vadd.f32 %v8526_v3, %v4507_v27  ;;  %v5124_v47 = vlaneseq }
 0x2f8   : > { %v4907_v27 = vadd.f32 %v8555_v43, %v4509_v25  ;;  %v5089_v8 = vsel %vm10450_vm0, %v5040_v5, 0.0 }
 0x2f9   : > { %v5125_v63 = vshrl.u32 %v5124_v47, 7 }
 0x2fa   : > { %v8577_v7 = vpop.f32.mrf.mxu2 }
 0x2fb   : > { %v3856_v45 = vadd.f32 %v8577_v7, %v10543_v56  ;;  %v4985_v7 = vadd.f32 %v4984_v60, %v4983_v52  ;;  %v5085_v56 = vsel %vm10450_vm0, %v5038_v6, 0.0  ;;  %v5041_v6 = vmul.f32 %v8749_v11, %v8749_v11  ;;  %6773 = vset.pattern.permute.xlu0 %v5125_v63  ;;  %6774 = vset.pattern.permute.xlu1 %v5125_v63 }
 0x2fc   : > { %v8598_v19 = vpop.f32.mrf.mxu0  ;;  %v8620_v59 = vpop.f32.mrf.mxu3  ;;  %v5086_v36 = vadd.f32 %v5085_v56, %v5084_v1  ;;  %v5042_v52 = vmul.f32 %v8761_v26, %v8761_v26 }
 0x2fd   : > { %v4510_v48 = vadd.f32 %v8534_v55, %v3856_v45  ;;  %v4987_v60 = vadd.f32 %v4986_v57, %v4985_v7  ;;  %v4988_v55 = vsel %vm10450_vm0, %v8738_v2, 0.0  ;;  %v8791_v7 = vadd.f32 %v8539_v62, %v4907_v27 }
 0x2ff   : > { %v4908_v43 = vadd.f32 %v8598_v19, %v4510_v48  ;;  %v4989_v25 = vadd.f32 %v4988_v55, %v4987_v60 }
 0x302   : > { %v8618_v28 = vpop.f32.mrf.mxu2 }
 0x303   : > { %v3857_v40 = vadd.f32 %v8618_v28, %v3570_v49  ;;  %v5087_v28 = vsel %vm10450_vm0, %v5039_v51, 0.0  ;;  %v4906_v49 = vadd.f32 %v8532_v30, %v4508_v18  ;;  %v8776_v30 = vadd.f32 %v8539_v62, %v4905_v13 }
 0x304   : > { %v8640_v33 = vpop.f32.mrf.mxu0  ;;  %v8671_v10 = vpop.f32.mrf.mxu3  ;;  %v4990_v51 = vsel %vm10450_vm0, %v8749_v11, 0.0  ;;  %v4992_v13 = vsel %vm10450_vm0, %v8761_v26, 0.0 }
 0x305   : > { %v4511_v34 = vadd.f32 %v8565_v21, %v3857_v40  ;;  %v8785_v18 = vadd.f32 %v8539_v62, %v4906_v49  ;;  %v5091_v40 = vsel %vm10450_vm0, %v5041_v6, 0.0  ;;  %v5043_v57 = vmul.f32 %v8776_v30, %v8776_v30 }
 0x306   : > { %v8801_v49 = vadd.f32 %v8539_v62, %v4908_v43 }
 0x307   : > { %v4909_v56 = vadd.f32 %v8640_v33, %v4511_v34  ;;  %v4994_v33 = vsel %vm10450_vm0, %v8776_v30, 0.0  ;;  %v5095_v34 = vsel %vm10450_vm0, %v5043_v57, 0.0  ;;  %v4996_v60 = vsel %vm10450_vm0, %v8785_v18, 0.0 }
 0x309   : > { %v8812_v6 = vadd.f32 %v8539_v62, %v4909_v56 }
 0x30a   : > { %v8660_v12 = vpop.f32.mrf.mxu2 }
 0x30b   : > { %v3858_v3 = vadd.f32 %v8660_v12, %v10546_v39  ;;  %v5088_v12 = vadd.f32 %v5087_v28, %v5086_v36  ;;  %v5093_v28 = vsel %vm10450_vm0, %v5042_v52, 0.0  ;;  %v5044_v39 = vmul.f32 %v8785_v18, %v8785_v18 }
 0x30c   : > { %v8682_v37 = vpop.f32.mrf.mxu0  ;;  %v8728_v38 = vpop.f32.mrf.mxu3  ;;  %v4998_v52 = vsel %vm10450_vm0, %v8791_v7, 0.0 }
 0x30d   : > { %v4512_v1 = vadd.f32 %v8620_v59, %v3858_v3  ;;  %v5090_v48 = vadd.f32 %v5089_v8, %v5088_v12  ;;  %v5097_v8 = vsel %vm10450_vm0, %v5044_v39, 0.0 }
 0x30f   : > { %v4910_v3 = vadd.f32 %v8682_v37, %v4512_v1  ;;  %v5092_v36 = vadd.f32 %v5091_v40, %v5090_v48  ;;  %v5000_v40 = vsel %vm10450_vm0, %v8801_v49, 0.0 }
 0x311   : > { %v5094_v37 = vadd.f32 %v5093_v28, %v5092_v36  ;;  %v8824_v43 = vadd.f32 %v8539_v62, %v4910_v3 }
 0x312   : > { %v3819_v23 = vpop.f32.mrf.mxu2 }
 0x313   : > { %v3859_v45 = vadd.f32 %v3819_v23, %v3572_v35  ;;  %v10547_v23 = vld [vmem:[#allocation6_spill] sm:$0xff]  ;;  %v5096_v1 = vadd.f32 %v5095_v34, %v5094_v37  ;;  %v5048_v48 = vmul.f32 %v8824_v43, %v8824_v43 }
 0x314   : > { %v8726_v17 = vpop.f32.mrf.mxu0  ;;  %v4478_v21 = vpop.f32.mrf.mxu3 }
 0x315   : > { %v4513_v5 = vadd.f32 %v8671_v10, %v3859_v45  ;;  %v5098_v57 = vadd.f32 %v5097_v8, %v5096_v1 }
 0x317   : > { %v4911_v55 = vadd.f32 %v8726_v17, %v4513_v5  ;;  %v5047_v17 = vmul.f32 %v8812_v6, %v8812_v6 }
 0x319   : > { %v8832_v56 = vadd.f32 %v8539_v62, %v4911_v55  ;;  %v5103_v3 = vsel %vm10450_vm0, %v5047_v17, 0.0  ;;  %v5105_v55 = vsel %vm10450_vm0, %v5048_v48, 0.0 }
 0x31a   : > { %v3822_v4 = vpop.f32.mrf.mxu2 }
 0x31b   : > { %v3860_v35 = vadd.f32 %v3822_v4, %v10547_v23  ;;  %v4991_v4 = vadd.f32 %v4990_v51, %v4989_v25  ;;  %v5049_v36 = vmul.f32 %v8832_v56, %v8832_v56 }
 0x31c   : > { %v4874_v29 = vpop.f32.mrf.mxu0 }
 0x31d   : > { %v4514_v63 = vadd.f32 %v8728_v38, %v3860_v35  ;;  %v4993_v10 = vadd.f32 %v4992_v13, %v4991_v4  ;;  %v5046_v38 = vmul.f32 %v8801_v49, %v8801_v49 }
 0x31f   : > { %v4995_v12 = vadd.f32 %v4994_v33, %v4993_v10  ;;  %v4912_v51 = vadd.f32 %v4874_v29, %v4514_v63  ;;  %v5101_v5 = vsel %vm10450_vm0, %v5046_v38, 0.0 }
 0x321   : > { %v4997_v23 = vadd.f32 %v4996_v60, %v4995_v12  ;;  %v8841_v4 = vadd.f32 %v8539_v62, %v4912_v51  ;;  %v5107_v51 = vsel %vm10450_vm0, %v5049_v36, 0.0 }
 0x322   : > { %v3824_v19 = vpop.f32.mrf.mxu2 }
 0x323   : > { %v3861_v59 = vadd.f32 %v3824_v19, %v3574_v54  ;;  %v5045_v54 = vmul.f32 %v8791_v7, %v8791_v7  ;;  %v4999_v29 = vadd.f32 %v4998_v52, %v4997_v23  ;;  %10548 = vst [vmem:[#allocation12_spill] sm:$0xff] %v8841_v4  ;;  %v5050_v37 = vmul.f32 %v8841_v4, %v8841_v4 }
 0x324   : > { %v4876_v27 = vpop.f32.mrf.mxu0  ;;  %v5008_v1 = vsel %vm10450_vm0, %v8841_v4, 0.0 }
 0x325   : > { %v4515_v45 = vadd.f32 %v4478_v21, %v3861_v59  ;;  %v5099_v35 = vsel %vm10450_vm0, %v5045_v54, 0.0  ;;  %v4481_v21 = vpop.f32.mrf.mxu3  ;;  %v5002_v59 = vsel %vm10450_vm0, %v8812_v6, 0.0  ;;  %v5001_v39 = vadd.f32 %v5000_v40, %v4999_v29 }
 0x326   : > { %v5100_v33 = vadd.f32 %v5099_v35, %v5098_v57  ;;  %v5109_v40 = vsel %vm10450_vm0, %v5050_v37, 0.0 }
 0x327   : > { %v4913_v19 = vadd.f32 %v4876_v27, %v4515_v45  ;;  %v3576_v27 = vadd.f32 %v8484_v46, %v8310_v9  ;;  %v5003_v60 = vadd.f32 %v5002_v59, %v5001_v39  ;;  %v5006_v45 = vsel %vm10450_vm0, %v8832_v56, 0.0  ;;  %v6779_v9 = vld [vmem:[%s10386_s3] ss:$0 sm:$0xff]  ;;  %v8864_v46 = vpop.f32.mrf.mxu1 }
 0x328   : > { %v5102_v34 = vadd.f32 %v5101_v5, %v5100_v33  ;;  %5159 = vperm.xlu1 %6774, %v6779_v9  }
 0x329   : > { %v8849_v10 = vadd.f32 %v8539_v62, %v4913_v19 }
 0x32a   : > { %v3827_v25 = vpop.f32.mrf.mxu2  ;;  %v5104_v38 = vadd.f32 %v5103_v3, %v5102_v34  ;;  %v10552_v34 = vld [vmem:[#allocation25_spill] sm:$0xff] }
 0x32b   : > { %v3862_v13 = vadd.f32 %v3827_v25, %v8296_v0  ;;  %v5004_v0 = vsel %vm10450_vm0, %v8824_v43, 0.0  ;;  %10549 = vst [vmem:[#allocation15_spill] sm:$0xff] %v8849_v10  ;;  %v5051_v23 = vmul.f32 %v8849_v10, %v8849_v10  ;;  %v5010_v19 = vsel %vm10450_vm0, %v8849_v10, 0.0 }
 0x32c   : > { %v4879_v63 = vpop.f32.mrf.mxu0  ;;  %v5005_v8 = vadd.f32 %v5004_v0, %v5003_v60  ;;  %v5106_v17 = vadd.f32 %v5105_v55, %v5104_v38  ;;  %v10553_v38 = vmov 0  }
 0x32d   : > { %v4516_v28 = vadd.f32 %v4481_v21, %v3862_v13  ;;  %v4483_v25 = vpop.f32.mrf.mxu3  ;;  %v5111_v48 = vsel %vm10450_vm0, %v5051_v23, 0.0 }
 0x32e   : > { %v5007_v21 = vadd.f32 %v5006_v45, %v5005_v8  ;;  %v5108_v29 = vadd.f32 %v5107_v51, %v5106_v17 }
 0x32f   : > { %v4914_v54 = vadd.f32 %v4879_v63, %v4516_v28 }
 0x330   : > { %v5009_v5 = vadd.f32 %v5008_v1, %v5007_v21  ;;  %v5110_v39 = vadd.f32 %v5109_v40, %v5108_v29  ;;  %6775 = vset.pattern.permute.xlu1 %v10553_v38 }
 0x331   : > { %v8859_v12 = vadd.f32 %v8539_v62, %v4914_v54 }
 0x332   : > { %v3829_v52 = vpop.f32.mrf.mxu2  ;;  %v5011_v3 = vadd.f32 %v5010_v19, %v5009_v5  ;;  %v5112_v54 = vadd.f32 %v5111_v48, %v5110_v39 }
 0x333   : > { %10550 = vst [vmem:[#allocation18_spill] sm:$0xff] %v8859_v12  ;;  %v3863_v35 = vadd.f32 %v3829_v52, %v3576_v27  ;;  %v5052_v13 = vmul.f32 %v8859_v12, %v8859_v12  ;;  %v5012_v33 = vsel %vm10450_vm0, %v8859_v12, 0.0  ;;  %v8883_v27 = vpop.f32.mrf.mxu1  ;;  %6690 = vmatmul.msk.bf16.gmra.mxu1 %vm1491_vm11, %v10552_v34 }
 0x334   : > { %v4881_v59 = vpop.f32.mrf.mxu0  ;;  %v5013_v36 = vadd.f32 %v5012_v33, %v5011_v3  ;;  %v10556_v3 = vld [vmem:[#allocation28_spill] sm:$0xff] }
 0x335   : > { %v4517_v57 = vadd.f32 %v4483_v25, %v3863_v35  ;;  %v5113_v0 = vsel %vm10450_vm0, %v5052_v13, 0.0 }
 0x336   : > { %v5114_v37 = vadd.f32 %v5113_v0, %v5112_v54 }
 0x337   : > { %v4915_v28 = vadd.f32 %v4881_v59, %v4517_v57  ;;  %v10554_v57 = vld [vmem:[#allocation26_spill] sm:$0xff] }
 0x339   : > { %v8880_v63 = vadd.f32 %v8539_v62, %v4915_v28  ;;  %v10555_v28 = vld [vmem:[#allocation27_spill] sm:$0xff] }
 0x33b   : > { %10551 = vst [vmem:[#allocation21_spill] sm:$0xff] %v8880_v63  ;;  %v5053_v60 = vmul.f32 %v8880_v63, %v8880_v63  ;;  %v5014_v55 = vsel %vm10450_vm0, %v8880_v63, 0.0  ;;  %v8893_v35 = vpop.f32.mrf.mxu1 }
 0x33c   : > { %v5015_v45 = vadd.f32 %v5014_v55, %v5013_v36 }
 0x33d   : > { %v5115_v62 = vsel %vm10450_vm0, %v5053_v60, 0.0 }
 0x33e   : > { %v5016_v8 = vrot.slane %v5015_v45, 4  ;;  %v5116_v52 = vadd.f32 %v5115_v62, %v5114_v37 }
 0x340   : > { %v5017_v9 = vadd.f32 %v5016_v8, %v5015_v45  ;;  %v5117_v51 = vrot.slane %v5116_v52, 4 }
 0x342   : > { %v5018_v1 = vrot.slane %v5017_v9, 2  ;;  %v5118_v23 = vadd.f32 %v5117_v51, %v5116_v52 }
 0x343   : > { %v8895_v13 = vpop.f32.mrf.mxu1  ;;  %6691 = vmatmul.msk.bf16.gmra.mxu1 %vm1491_vm11, %v10554_v57 }
 0x344   : > { %v5019_v17 = vadd.f32 %v5018_v1, %v5017_v9  ;;  %v5119_v21 = vrot.slane %v5118_v23, 2 }
 0x346   : > { %v5020_v25 = vrot.slane %v5019_v17, 1  ;;  %v5120_v19 = vadd.f32 %v5119_v21, %v5118_v23 }
 0x348   : > { %v5021_v40 = vadd.f32 %v5020_v25, %v5019_v17  ;;  %v5121_v29 = vrot.slane %v5120_v19, 1 }
 0x34a   : > { %5128 = vperm.xlu0 %6773, %v5021_v40   ;;  %v5122_v5 = vadd.f32 %v5121_v29, %v5120_v19 }
 0x34b   : > { %v8899_v59 = vpop.f32.mrf.mxu1 }
 0x352   : > { %5135 = vperm.xlu0 %6773, %v5122_v5  }
 0x353   : > { %v8901_v48 = vpop.f32.mrf.mxu1  ;;  %6692 = vmatmul.msk.bf16.gmra.mxu1 %vm1491_vm11, %v10555_v28 }
 0x35a   : > { %6777 = vset.pattern.permute.xlu0 %v10553_v38 }
 0x35b   : > { %v8906_v33 = vpop.f32.mrf.mxu1 }
 0x363   : > { %v8908_v39 = vpop.f32.mrf.mxu1  ;;  %6693 = vmatmul.msk.bf16.gmra.mxu1 %vm1491_vm11, %v10556_v3 }
 0x36b   : > { %v5959_v3 = vpop.f32.mrf.mxu1 }
 0x39a   : > { %v5160_v9 = vpop.permute.xlu1 %5159 }
 0x3bc   : > { %v5129_v0 = vpop.permute.xlu0 %5128 }
 0x3bd   : > { %v5137_v36 = vmul.f32 0.00390625, %v5129_v0  ;;  %v5961_v0 = vpop.f32.mrf.mxu1 }
 0x3bf   : > { %v5139_v34 = vmul.f32 %v5137_v36, %v5137_v36 }
 0x3c4   : > { %v5136_v54 = vpop.permute.xlu0 %5135 }
 0x3c5   : > { %v5138_v60 = vmul.f32 0.00390625, %v5136_v54 }
 0x3c7   : > { %v5140_v55 = vsub.f32 %v5138_v60, %v5139_v34 }
 0x3c9   : > { %v5141_v45 = vadd.f32 1e-05, %v5140_v55 }
 0x3cb   : > { %6781 = vrsqrt.f32 %v5141_v45  ;;  %vm5148_vm3 = vweird.f32 %v5141_v45 }
 0x3d1   : > { %v6782_v37 = vpop.eup %6781 }
 0x3d2   : > { %v5143_v62 = vmul.f32 %v6782_v37, %v5141_v45  ;;  %vm5149_vm2 = vweird.f32 %v6782_v37 }
 0x3d3   : > { %vm5150_vm4 = vmor %vm5148_vm3, %vm5149_vm2 }
 0x3d4   : > { %v5144_v8 = vmul.f32 %v6782_v37, %v5143_v62 }
 0x3d6   : > { %v5145_v52 = vmul.f32 0.5, %v5144_v8 }
 0x3d8   : > { %v5146_v38 = vsub.f32 1.5, %v5145_v52  ;;  %v5193_v52 = vand.u32 127, %v5124_v47 }
 0x3da   : > { %v5147_v51 = vmul.f32 %v6782_v37, %v5146_v38 }
 0x3dc   : > { %v5151_v1 = vsel %vm5150_vm4, %v6782_v37, %v5147_v51  ;;  %v5163_v51 = vld [vmem:[%s10387_s4] sm:$0x1] }
 0x3dd   : > { %v5162_v23 = vmul.f32 %v5160_v9, %v5151_v1 }
 0x3df   : > { %v5164_v17 = vmul.f32 %v5162_v23, %v5137_v36  ;;  %5199 = vperm.xlu2 %6776, %v5162_v23   ;;  %v5964_v36 = vpop.f32.mrf.mxu1 }
 0x3e1   : > { %5173 = vst [vmem:[#allocation1] ss:$9 sm:$0xff] %v5164_v17  ;;  %v5166_v21 = vrot.slane %v5164_v17, 1  ;;  %v5167_v25 = vrot.slane %v5164_v17, 2  ;;  %v5168_v40 = vrot.slane %v5164_v17, 3  ;;  %v5169_v19 = vrot.slane %v5164_v17, 4 }
 0x3e2   : > { %v5170_v57 = vrot.slane %v5164_v17, 5  ;;  %v5171_v29 = vrot.slane %v5164_v17, 6  ;;  %v5172_v5 = vrot.slane %v5164_v17, 7  ;;  %v8919_v17 = vld [vmem:[%s10389_s6] ss:$0 sm:$0xff] }
 0x3e3   : > { %5175 = vst [vmem:[#allocation1 + $0x1] ss:$9 sm:$0xff] %v5166_v21  ;;  %v8927_v47 = vadd.f32 %v8919_v17, %v8864_v46  ;;  %v8947_v46 = vadd.f32 %v8919_v17, %v8901_v48 }
 0x3e4   : > { %5177 = vst [vmem:[#allocation1 + $0x2] ss:$9 sm:$0xff] %v5167_v25 }
 0x3e5   : > { %5179 = vst [vmem:[#allocation1 + $0x3] ss:$9 sm:$0xff] %v5168_v40  ;;  %v8931_v40 = vadd.f32 %v8919_v17, %v8883_v27  ;;  %v8951_v27 = vadd.f32 %v8919_v17, %v8906_v33 }
 0x3e6   : > { %5181 = vst [vmem:[#allocation1 + $0x4] ss:$9 sm:$0xff] %v5169_v19  ;;  %v8935_v19 = vadd.f32 %v8919_v17, %v8893_v35 }
 0x3e7   : > { %5183 = vst [vmem:[#allocation1 + $0x5] ss:$9 sm:$0xff] %v5170_v57  ;;  %v5966_v54 = vpop.f32.mrf.mxu1  ;;  %v8939_v57 = vadd.f32 %v8919_v17, %v8895_v13  ;;  %v8957_v13 = vadd.f32 %v8919_v17, %v8908_v39 }
 0x3e8   : > { %5185 = vst [vmem:[#allocation1 + $0x6] ss:$9 sm:$0xff] %v5171_v29  ;;  %v8971_v33 = vadd.f32 %v8919_v17, %v5966_v54 }
 0x3e9   : > { %5187 = vst [vmem:[#allocation1 + $0x7] ss:$9 sm:$0xff] %v5172_v5  ;;  %v8943_v5 = vadd.f32 %v8919_v17, %v8899_v59  ;;  %v8963_v59 = vadd.f32 %v8919_v17, %v5961_v0 }
 0x3ea   : > { %10559 = vst [vmem:[#allocation5_spill] sm:$0xff] %v8927_v47 }
 0x3eb   : > { %10560 = vst [vmem:[#allocation7_spill] sm:$0xff] %v8931_v40 }
 0x3ec   : > { %10561 = vst [vmem:[#allocation29_spill] sm:$0xff] %v8935_v19 }
 0x3ed   : > { %10562 = vst [vmem:[#allocation9_spill] sm:$0xff] %v8939_v57 }
 0x3ee   : > { %10563 = vst [vmem:[#allocation30_spill] sm:$0xff] %v8943_v5 }
 0x3ef   : > { %v5969_v34 = vpop.f32.mrf.mxu1  ;;  %10564 = vst [vmem:[#allocation13_spill] sm:$0xff] %v8947_v46 }
 0x3f0   : > { %v5188_v28 = vld [vmem:[#allocation1] sm:$0xff]  ;;  %10565 = vst [vmem:[#allocation3_spill] sm:$0xff] %v8951_v27 }
 0x3f1   : > { %5190 = vperm.xlu1 %6775, %v5188_v28   ;;  %10566 = vst [vmem:[#allocation8_spill] sm:$0xff] %v8957_v13  ;;  %v8960_v28 = vadd.f32 %v8919_v17, %v5959_v3  ;;  %v8979_v3 = vadd.f32 %v8919_v17, %v5969_v34 }
 0x3f2   : > { %10568 = vst [vmem:[#allocation4_spill] sm:$0xff] %v8963_v59 }
 0x3f3   : > { %10567 = vst [vmem:[#allocation16_spill] sm:$0xff] %v8960_v28 }
 0x3f4   : > { %10570 = vst [vmem:[#allocation19_spill] sm:$0xff] %v8971_v33 }
 0x3f5   : > { %10572 = vst [vmem:[#allocation14_spill] sm:$0xff] %v8979_v3 }
 0x3f7   : > { %v5971_v60 = vpop.f32.mrf.mxu1 }
 0x3f8   : > { %v8982_v0 = vadd.f32 %v8919_v17, %v5971_v60 }
 0x3fa   : > { %10573 = vst [vmem:[#allocation6_spill] sm:$0xff] %v8982_v0 }
 0x3ff   : > { %v5974_v55 = vpop.f32.mrf.mxu1 }
 0x400   : > { %v8990_v54 = vadd.f32 %v8919_v17, %v5974_v55 }
 0x402   : > { %10575 = vst [vmem:[#allocation26_spill] sm:$0xff] %v8990_v54 }
 0x407   : > { %v5976_v45 = vpop.f32.mrf.mxu1 }
 0x40f   : > { %v5979_v37 = vpop.f32.mrf.mxu1 }
 0x410   : > { %v9001_v60 = vadd.f32 %v8919_v17, %v5979_v37 }
 0x412   : > { %10578 = vst [vmem:[#allocation31_spill] sm:$0xff] %v9001_v60 }
 0x417   : > { %v5981_v62 = vpop.f32.mrf.mxu1 }
 0x41f   : > { %v5984_v38 = vpop.f32.mrf.mxu1 }
 0x427   : > { %v5986_v29 = vpop.f32.mrf.mxu1 }
 0x439   : > { %v5200_v1 = vpop.permute.xlu2 %5199 }
 0x43a   : > { %v8921_v21 = vperm.slane %v5200_v1, %v5193_v52 }
 0x43c   : > { %10557 = vst [vmem:[#allocation23_spill] sm:$0xff] %v8921_v21  ;;  %v5215_v35 = vmul.f32 %v8921_v21, %v8549_v31  ;;  %v5216_v48 = vmul.f32 %v8921_v21, %v8545_v16  ;;  %v5217_v31 = vmul.f32 %v8921_v21, %v8553_v42  ;;  %v5218_v16 = vmul.f32 %v8921_v21, %v8561_v50 }
 0x43d   : > { %v8993_v42 = vadd.f32 %v8919_v17, %v5976_v45  ;;  %v9004_v50 = vadd.f32 %v8919_v17, %v5981_v62  ;;  %v9012_v45 = vadd.f32 %v8919_v17, %v5984_v38  ;;  %v9021_v62 = vadd.f32 %v8919_v17, %v5986_v29 }
 0x43f   : > { %10576 = vst [vmem:[#allocation27_spill] sm:$0xff] %v8993_v42 }
 0x440   : > { %10579 = vst [vmem:[#allocation32_spill] sm:$0xff] %v9004_v50  ;;  %v5233_v50 = vmul.f32 %v8921_v21, %v8738_v2  ;;  %v5235_v2 = vmul.f32 %v8921_v21, %v8761_v26  ;;  %v5237_v26 = vmul.f32 %v8921_v21, %v8785_v18  ;;  %v5239_v18 = vmul.f32 %v8921_v21, %v8801_v49 }
 0x441   : > { %10581 = vst [vmem:[#allocation34_spill] sm:$0xff] %v9012_v45  ;;  %v10590_v45 = vld [vmem:[#allocation22_spill] sm:$0xff]  ;;  %v5241_v49 = vmul.f32 %v8921_v21, %v8824_v43 }
 0x442   : > { %10583 = vst [vmem:[#allocation36_spill] sm:$0xff] %v9021_v62 }
 0x463   : > { %v5191_v8 = vpop.permute.xlu1 %5190 }
 0x464   : > { %v5194_v9 = vperm.slane %v5191_v8, %v5193_v52  ;;  %v8968_v8 = vadd.f32 %v8919_v17, %v5964_v36  ;;  %v5219_v52 = vmul.f32 %v8921_v21, %v8573_v22  ;;  %v5221_v22 = vmul.f32 %v8921_v21, %v8596_v41 }
 0x465   : > { %v5224_v41 = vmul.f32 %v8921_v21, %v8629_v15 }
 0x466   : > { %v5196_v23 = vsub.f32 %v5163_v51, %v5194_v9  ;;  %10569 = vst [vmem:[#allocation11_spill] sm:$0xff] %v8968_v8  ;;  %v5220_v9 = vmul.f32 %v8921_v21, %v8586_v61  ;;  %v5222_v61 = vmul.f32 %v8921_v21, %v8607_v24  ;;  %v5225_v24 = vmul.f32 %v8921_v21, %v8638_v53 }
 0x467   : > { %v5228_v53 = vmul.f32 %v8921_v21, %v10590_v45 }
 0x468   : > { %v8923_v25 = vperm.slane %v5196_v23, 0  ;;  %v5223_v23 = vmul.f32 %v8921_v21, %v8616_v58 }
 0x46a   : > { %10558 = vst [vmem:[#allocation24_spill] sm:$0xff] %v8923_v25  ;;  %v8976_v39 = vadd.f32 %v8923_v25, %v5215_v35  ;;  %v8987_v36 = vadd.f32 %v8923_v25, %v5216_v48  ;;  %v8998_v34 = vadd.f32 %v8923_v25, %v5217_v31  ;;  %v9009_v55 = vadd.f32 %v8923_v25, %v5218_v16  ;;  %v9037_v48 = vpop.f32.mrf.mxu1  ;;  %v10586_v31 = vld [vmem:[#allocation10_spill] sm:$0xff] }
 0x46b   : > { %v9017_v51 = vadd.f32 %v8923_v25, %v5219_v52  ;;  %v9026_v1 = vadd.f32 %v8923_v25, %v5220_v9  ;;  %v9034_v35 = vadd.f32 %v8923_v25, %v5221_v22  ;;  %v5226_v16 = vmul.f32 %v8921_v21, %v10586_v31  ;;  %v10588_v9 = vld [vmem:[#allocation20_spill] sm:$0xff] }
 0x46c   : > { %10571 = vst [vmem:[#allocation17_spill] sm:$0xff] %v8976_v39  ;;  %v6646_v37 = vmul.f32 -1.442695, %v8976_v39  ;;  %v6647_v38 = vmul.f32 -1.442695, %v8987_v36  ;;  %v9044_v52 = vadd.f32 %v8923_v25, %v5222_v61  ;;  %v5227_v15 = vmul.f32 %v8921_v21, %v10588_v9 }
 0x46d   : > { %10574 = vst [vmem:[#allocation25_spill] sm:$0xff] %v8987_v36  ;;  %v6648_v29 = vmul.f32 -1.442695, %v8998_v34  ;;  %v6649_v58 = vmul.f32 -1.442695, %v9009_v55  ;;  %v9050_v22 = vadd.f32 %v8923_v25, %v5223_v23  ;;  %v9056_v63 = vadd.f32 %v8923_v25, %v5224_v41 }
 0x46e   : > { %10577 = vst [vmem:[#allocation28_spill] sm:$0xff] %v8998_v34  ;;  %6783 = vpow2.f32 %v6646_v37  ;;  %v6650_v62 = vmul.f32 -1.442695, %v9017_v51  ;;  %v6651_v61 = vmul.f32 -1.442695, %v9026_v1  ;;  %v5229_v31 = vmul.f32 %v8921_v21, %v8680_v14 }
 0x46f   : > { %10580 = vst [vmem:[#allocation33_spill] sm:$0xff] %v9009_v55  ;;  %6785 = vpow2.f32 %v6647_v38  ;;  %v9062_v9 = vadd.f32 %v8923_v25, %v5225_v24  ;;  %v6652_v37 = vmul.f32 -1.442695, %v9034_v35  ;;  %v5230_v23 = vmul.f32 %v8921_v21, %v8691_v32 }
 0x470   : > { %10582 = vst [vmem:[#allocation35_spill] sm:$0xff] %v9017_v51  ;;  %6787 = vpow2.f32 %v6648_v29  ;;  %v9068_v45 = vadd.f32 %v8923_v25, %v5226_v16  ;;  %v6653_v38 = vmul.f32 -1.442695, %v9044_v52  ;;  %v5231_v41 = vmul.f32 %v8921_v21, %v8705_v44 }
 0x471   : > { %10584 = vst [vmem:[#allocation37_spill] sm:$0xff] %v9026_v1  ;;  %6789 = vpow2.f32 %v6649_v58  ;;  %v9074_v14 = vadd.f32 %v8923_v25, %v5227_v15  ;;  %v6654_v29 = vmul.f32 -1.442695, %v9050_v22  ;;  %v5232_v24 = vmul.f32 %v8921_v21, %v8717_v20 }
 0x472   : > { %10585 = vst [vmem:[#allocation38_spill] sm:$0xff] %v9034_v35  ;;  %6791 = vpow2.f32 %v6650_v62  ;;  %v9080_v32 = vadd.f32 %v8923_v25, %v5228_v53  ;;  %v6655_v16 = vmul.f32 -1.442695, %v9056_v63  ;;  %v9086_v44 = vadd.f32 %v8923_v25, %v5229_v31 }
 0x473   : > { %10587 = vst [vmem:[#allocation10_spill] sm:$0xff] %v9044_v52  ;;  %6793 = vpow2.f32 %v6651_v61  ;;  %v6656_v62 = vmul.f32 -1.442695, %v9062_v9  ;;  %v5234_v20 = vmul.f32 %v8921_v21, %v8749_v11  ;;  %v9092_v53 = vadd.f32 %v8923_v25, %v5230_v23  ;;  %v5991_v11 = vpop.f32.mrf.mxu1 }
 0x474   : > { %10589 = vst [vmem:[#allocation20_spill] sm:$0xff] %v9050_v22  ;;  %v6784_v58 = vpop.eup %6783  ;;  %6795 = vpow2.f32 %v6652_v37  ;;  %v6657_v61 = vmul.f32 -1.442695, %v9068_v45  ;;  %v9100_v31 = vadd.f32 %v8923_v25, %v5231_v41  ;;  %v6658_v37 = vmul.f32 -1.442695, %v9074_v14 }
 0x475   : > { %10591 = vst [vmem:[#allocation22_spill] sm:$0xff] %v9056_v63  ;;  %v6786_v15 = vpop.eup %6785  ;;  %6797 = vpow2.f32 %v6653_v38  ;;  %v5236_v23 = vmul.f32 %v8921_v21, %v8776_v30  ;;  %v9108_v38 = vadd.f32 %v8923_v25, %v5232_v24  ;;  %v6659_v42 = vmul.f32 -1.442695, %v9080_v32 }
 0x476   : > { %10592 = vst [vmem:[#allocation39_spill] sm:$0xff] %v9062_v9  ;;  %v9095_v60 = vpop.eup %6787  ;;  %6799 = vpow2.f32 %v6654_v29  ;;  %v9116_v41 = vadd.f32 %v8923_v25, %v5233_v50  ;;  %v6660_v29 = vmul.f32 -1.442695, %v9086_v44  ;;  %v5238_v30 = vmul.f32 %v8921_v21, %v8791_v7 }
 0x477   : > { %10593 = vst [vmem:[#allocation40_spill] sm:$0xff] %v9068_v45  ;;  %v9103_v12 = vpop.eup %6789  ;;  %6801 = vpow2.f32 %v6655_v16  ;;  %v9124_v24 = vadd.f32 %v8923_v25, %v5234_v20  ;;  %v6661_v16 = vmul.f32 -1.442695, %v9092_v53  ;;  %v9132_v50 = vadd.f32 %v8923_v25, %v5235_v2 }
 0x478   : > { %10594 = vst [vmem:[#allocation41_spill] sm:$0xff] %v9074_v14  ;;  %v9111_v54 = vpop.eup %6791  ;;  %6803 = vpow2.f32 %v6656_v62  ;;  %v6662_v62 = vmul.f32 -1.442695, %v9100_v31  ;;  %v5240_v7 = vmul.f32 %v8921_v21, %v8812_v6  ;;  %v9138_v20 = vadd.f32 %v8923_v25, %v5236_v23 }
 0x479   : > { %10595 = vst [vmem:[#allocation42_spill] sm:$0xff] %v9080_v32  ;;  %v9119_v0 = vpop.eup %6793  ;;  %6805 = vpow2.f32 %v6657_v61  ;;  %v6663_v61 = vmul.f32 -1.442695, %v9108_v38  ;;  %v9144_v2 = vadd.f32 %v8923_v25, %v5237_v26  ;;  %v5242_v6 = vmul.f32 %v8921_v21, %v8832_v56 }
 0x47a   : > { %10596 = vst [vmem:[#allocation43_spill] sm:$0xff] %v9086_v44  ;;  %v9127_v10 = vpop.eup %6795  ;;  %6807 = vpow2.f32 %v6658_v37  ;;  %v6664_v37 = vmul.f32 -1.442695, %v9116_v41  ;;  %v9150_v23 = vadd.f32 %v8923_v25, %v5238_v30  ;;  %v6666_v43 = vmul.f32 -1.442695, %v9132_v50 }
 0x47b   : > { %10597 = vst [vmem:[#allocation44_spill] sm:$0xff] %v9092_v53  ;;  %v6798_v3 = vpop.eup %6797  ;;  %6809 = vpow2.f32 %v6659_v42  ;;  %v6665_v42 = vmul.f32 -1.442695, %v9124_v24  ;;  %v9154_v53 = vadd.f32 %v8923_v25, %v5239_v18  ;;  %v9157_v26 = vadd.f32 1.0, %v6784_v58 }
 0x47c   : > { %10598 = vst [vmem:[#allocation45_spill] sm:$0xff] %v9100_v31  ;;  %v6800_v33 = vpop.eup %6799  ;;  %6811 = vpow2.f32 %v6660_v29  ;;  %v9163_v56 = vadd.f32 %v8923_v25, %v5241_v49  ;;  %v6667_v30 = vmul.f32 -1.442695, %v9138_v20  ;;  %v6668_v18 = vmul.f32 -1.442695, %v9144_v2 }
 0x47d   : > { %10599 = vst [vmem:[#allocation46_spill] sm:$0xff] %v9108_v38  ;;  %v6802_v31 = vpop.eup %6801  ;;  %6813 = vpow2.f32 %v6661_v16  ;;  %v9177_v49 = vadd.f32 %v8919_v17, %v5991_v11  ;;  %vm5415_vm5 = vweird.f32 %v9157_v26 }
 0x47e   : > { %10600 = vst [vmem:[#allocation47_spill] sm:$0xff] %v9116_v41  ;;  %v6804_v38 = vpop.eup %6803  ;;  %6815 = vpow2.f32 %v6662_v62  ;;  %v9160_v41 = vadd.f32 %v8923_v25, %v5240_v7  ;;  %v9170_v62 = vadd.f32 1.0, %v6786_v15  ;;  %v9174_v7 = vadd.f32 %v8919_v17, %v9037_v48 }
 0x47f   : > { %10601 = vst [vmem:[#allocation48_spill] sm:$0xff] %v9124_v24  ;;  %v6806_v29 = vpop.eup %6805  ;;  %6817 = vpow2.f32 %v6663_v61  ;;  %v9167_v24 = vadd.f32 %v8923_v25, %v5242_v6  ;;  %v5994_v61 = vpop.f32.mrf.mxu1  ;;  %v9184_v15 = vadd.f32 1.0, %v9095_v60  ;;  %v6670_v48 = vmul.f32 -1.442695, %v9154_v53 }
 0x480   : > { %10602 = vst [vmem:[#allocation49_spill] sm:$0xff] %v9132_v50  ;;  %v6808_v16 = vpop.eup %6807  ;;  %6819 = vpow2.f32 %v6664_v37  ;;  %v9181_v6 = vadd.f32 %v8919_v17, %v5994_v61  ;;  %v5421_v37 = vand.u32 2147483648, %v9157_v26  ;;  %v6671_v11 = vmul.f32 -1.442695, %v9160_v41 }
 0x481   : > { %10603 = vst [vmem:[#allocation50_spill] sm:$0xff] %v9138_v20  ;;  %v6810_v58 = vpop.eup %6809  ;;  %6821 = vpow2.f32 %v6665_v42  ;;  %v6669_v20 = vmul.f32 -1.442695, %v9150_v23  ;;  %v9190_v42 = vadd.f32 1.0, %v9103_v12  ;;  %v6672_v17 = vmul.f32 -1.442695, %v9163_v56 }
 0x482   : > { %10604 = vst [vmem:[#allocation51_spill] sm:$0xff] %v9144_v2  ;;  %v6812_v50 = vpop.eup %6811  ;;  %6823 = vpow2.f32 %v6666_v43  ;;  %v6673_v43 = vmul.f32 -1.442695, %v9167_v24  ;;  %v5436_v60 = vand.u32 2147483648, %v9170_v62  ;;  %v9201_v12 = vadd.f32 1.0, %v9119_v0 }
 0x483   : > { %10605 = vst [vmem:[#allocation52_spill] sm:$0xff] %v9150_v23  ;;  %v6814_v2 = vpop.eup %6813  ;;  %6825 = vpow2.f32 %v6667_v30  ;;  %v9220_v25 = vadd.f32 1.0, %v6802_v31  ;;  %v9225_v4 = vadd.f32 1.0, %v6804_v38  ;;  %v9240_v59 = vadd.f32 1.0, %v6810_v58 }
 0x484   : > { %10606 = vst [vmem:[#allocation53_spill] sm:$0xff] %v9154_v53  ;;  %6827 = vpow2.f32 %v6668_v18  ;;  %v9204_v18 = vor.u32 1.1754944e-38, %v5421_v37  ;;  %v9214_v53 = vadd.f32 1.0, %v6800_v33  ;;  %v9216_v0 = vor.u32 1.1754944e-38, %v5436_v60 }
 0x485   : > { %10607 = vst [vmem:[#allocation54_spill] sm:$0xff] %v9160_v41  ;;  %6829 = vpow2.f32 %v6669_v20  ;;  %v9208_v20 = vadd.f32 1.0, %v9127_v10  ;;  %v5466_v41 = vand.u32 2147483648, %v9190_v42  ;;  %v9227_v33 = vadd.f32 1.0, %v6806_v29 }
 0x486   : > { %10608 = vst [vmem:[#allocation55_spill] sm:$0xff] %v9163_v56  ;;  %6831 = vrcp.f32 %v9157_v26  ;;  %v9232_v37 = vadd.f32 1.0, %v6808_v16  ;;  %v5496_v10 = vand.u32 2147483648, %v9201_v12  ;;  %v9242_v38 = vadd.f32 1.0, %v6812_v50 }
 0x487   : > { %10609 = vst [vmem:[#allocation56_spill] sm:$0xff] %v9167_v24  ;;  %v5451_v24 = vand.u32 2147483648, %v9184_v15  ;;  %6833 = vrcp.f32 %v9170_v62  ;;  %v9234_v31 = vor.u32 1.1754944e-38, %v5466_v41  ;;  %v9248_v16 = vadd.f32 1.0, %v6814_v2 }
 0x488   : > { %10610 = vst [vmem:[#allocation57_spill] sm:$0xff] %v9174_v7  ;;  %6835 = vrcp.f32 %v9184_v15  ;;  %vm5430_vm6 = vweird.f32 %v9170_v62  ;;  %v5556_v40 = vand.u32 2147483648, %v9220_v25  ;;  %vm5445_vm7 = vweird.f32 %v9184_v15 }
 0x489   : > { %10611 = vst [vmem:[#allocation58_spill] sm:$0xff] %v9177_v49  ;;  %v6816_v49 = vpop.eup %6815  ;;  %6837 = vrcp.f32 %v9190_v42  ;;  %v9229_v60 = vor.u32 1.1754944e-38, %v5451_v24  ;;  %v5511_v24 = vand.u32 2147483648, %v9208_v20 }
 0x48a   : > { %10612 = vst [vmem:[#allocation59_spill] sm:$0xff] %v9181_v6  ;;  %v6818_v61 = vpop.eup %6817  ;;  %v9196_v6 = vadd.f32 1.0, %v9111_v54  ;;  %v9210_v54 = vadd.f32 1.0, %v6798_v3  ;;  %v9255_v58 = vadd.f32 1.0, %v6816_v49 }
 0x48b   : > { %v6820_v7 = vpop.eup %6819  ;;  %v9257_v50 = vadd.f32 1.0, %v6818_v61  ;;  %v9288_v27 = vor.u32 1.1754944e-38, %v5511_v24  ;;  %v5541_v24 = vand.u32 2147483648, %v9214_v53 }
 0x48c   : > { %v6822_v56 = vpop.eup %6821  ;;  %v5481_v3 = vand.u32 2147483648, %v9196_v6  ;;  %6839 = vrcp.f32 %v9196_v6  ;;  %v5526_v61 = vand.u32 2147483648, %v9210_v54 }
 0x48d   : > { %v6824_v30 = vpop.eup %6823  ;;  %6841 = vrcp.f32 %v9201_v12  ;;  %v9327_v34 = vor.u32 1.1754944e-38, %v5541_v24  ;;  %v9346_v24 = vor.u32 1.1754944e-38, %v5556_v40 }
 0x48e   : > { %v6826_v23 = vpop.eup %6825  ;;  %6843 = vrcp.f32 %v9208_v20  ;;  %v9250_v41 = vor.u32 1.1754944e-38, %v5481_v3 }
 0x48f   : > { %v6828_v21 = vpop.eup %6827  ;;  %6845 = vpow2.f32 %v6670_v48  ;;  %v9264_v48 = vor.u32 1.1754944e-38, %v5496_v10 }
 0x490   : > { %v6830_v8 = vpop.eup %6829  ;;  %6847 = vpow2.f32 %v6671_v11  ;;  %v9269_v11 = vadd.f32 1.0, %v6820_v7  ;;  %v9284_v7 = vadd.f32 1.0, %v6824_v30 }
 0x491   : > { %v9238_v44 = vpop.eup %6831  ;;  %6849 = vpow2.f32 %v6672_v17  ;;  %v9276_v17 = vadd.f32 1.0, %v6822_v56  ;;  %v9291_v56 = vadd.f32 1.0, %v6828_v21  ;;  %v9307_v19 = vadd.f32 1.0, %v6830_v8 }
 0x492   : > { %v9246_v29 = vpop.eup %6833  ;;  %v5411_v2 = vmul.f32 %v9238_v44, %v9157_v26  ;;  %6851 = vpow2.f32 %v6673_v43  ;;  %10613 = vst [vmem:[#allocation60_spill] sm:$0xff] %v9284_v7  ;;  %v9286_v43 = vadd.f32 1.0, %v6826_v23  ;;  %v9298_v23 = vor.u32 1.1754944e-38, %v5526_v61 }
 0x493   : > { %v9253_v28 = vpop.eup %6835  ;;  %v5426_v49 = vmul.f32 %v9246_v29, %v9170_v62  ;;  %6853 = vrcp.f32 %v9210_v54  ;;  %10615 = vst [vmem:[#allocation62_spill] sm:$0xff] %v9291_v56  ;;  %vm5416_vm10 = vweird.f32 %v9238_v44  ;;  %vm5431_vm12 = vweird.f32 %v9246_v29 }
 0x494   : > { %v9260_v14 = vpop.eup %6837  ;;  %v5441_v10 = vmul.f32 %v9253_v28, %v9184_v15  ;;  %10614 = vst [vmem:[#allocation61_spill] sm:$0xff] %v9286_v43  ;;  %6855 = vrcp.f32 %v9214_v53  ;;  %v5412_v46 = vsub.f32 1.0, %v5411_v2  ;;  %vm5446_vm15 = vweird.f32 %v9253_v28  ;;  %vm9387_vm0 = vmor %vm5415_vm5, %vm5416_vm10 }
 0x495   : > { %v9267_v32 = vpop.eup %6839  ;;  %v5456_v63 = vmul.f32 %v9260_v14, %v9190_v42  ;;  %6857 = vrcp.f32 %v9220_v25  ;;  %v5427_v5 = vsub.f32 1.0, %v5426_v49  ;;  %10616 = vst [vmem:[#allocation63_spill] sm:$0xff] %v9307_v19  ;;  %vm5461_vm3 = vweird.f32 %v9260_v14  ;;  %vm9405_vm5 = vmor %vm5430_vm6, %vm5431_vm12 }
 0x496   : > { %v9274_v13 = vpop.eup %6841  ;;  %v5471_v30 = vmul.f32 %v9267_v32, %v9196_v6  ;;  %v5442_v21 = vsub.f32 1.0, %v5441_v10  ;;  %6859 = vrcp.f32 %v9225_v4  ;;  %v5413_v35 = vmul.f32 %v9238_v44, %v5412_v46  ;;  %vm9434_vm6 = vmor %vm5445_vm7, %vm5446_vm15 }
 0x497   : > { %v9282_v45 = vpop.eup %6843  ;;  %v5486_v2 = vmul.f32 %v9274_v13, %v9201_v12  ;;  %v5457_v1 = vsub.f32 1.0, %v5456_v63  ;;  %v5428_v55 = vmul.f32 %v9246_v29, %v5427_v5  ;;  %6861 = vrcp.f32 %v9227_v33 }
 0x498   : > { %v6846_v9 = vpop.eup %6845  ;;  %v5501_v57 = vmul.f32 %v9282_v45, %v9208_v20  ;;  %v5472_v61 = vsub.f32 1.0, %v5471_v30  ;;  %v5443_v46 = vmul.f32 %v9253_v28, %v5442_v21  ;;  %6863 = vrcp.f32 %v9232_v37 }
 0x499   : > { %v6848_v3 = vpop.eup %6847  ;;  %v9309_v52 = vadd.f32 1.0, %v6846_v9  ;;  %v5487_v63 = vsub.f32 1.0, %v5486_v2  ;;  %v10624_v2 = vand.u32 2147483647, %v9170_v62  ;;  %v5458_v40 = vmul.f32 %v9260_v14, %v5457_v1 }
 0x49a   : > { %v6850_v22 = vpop.eup %6849  ;;  %v9316_v47 = vadd.f32 1.0, %v6848_v3  ;;  %v5502_v8 = vsub.f32 1.0, %v5501_v57  ;;  %v5414_v57 = vadd.f32 %v9238_v44, %v5413_v35  ;;  %v10630_v1 = vand.u32 2147483647, %v9190_v42 }
 0x49b   : > { %v6852_v49 = vpop.eup %6851  ;;  %10617 = vst [vmem:[#allocation64_spill] sm:$0xff] %v9309_v52  ;;  %v9323_v9 = vadd.f32 1.0, %v6850_v22  ;;  %v10621_v22 = vand.u32 2147483647, %v9157_v26  ;;  %vm9353_vm14 = vcmp.eq.f32.partialorder %v10624_v2, 8.507059e+37  ;;  %v5429_v2 = vadd.f32 %v9246_v29, %v5428_v55 }
 0x49c   : > { %v9314_v10 = vpop.eup %6853  ;;  %10618 = vst [vmem:[#allocation65_spill] sm:$0xff] %v9316_v47  ;;  %v9331_v36 = vadd.f32 1.0, %v6852_v49  ;;  %vm9377_vm4 = vcmp.eq.f32.partialorder %v10630_v1, 8.507059e+37  ;;  %v5488_v52 = vmul.f32 %v9274_v13, %v5487_v63  ;;  %v5503_v55 = vmul.f32 %v9282_v45, %v5502_v8 }
 0x49d   : > { %v9321_v51 = vpop.eup %6855  ;;  %10619 = vst [vmem:[#allocation66_spill] sm:$0xff] %v9323_v9  ;;  %vm9338_vm11 = vcmp.eq.f32.partialorder %v10621_v22, 8.507059e+37  ;;  %v5516_v30 = vmul.f32 %v9314_v10, %v9210_v54  ;;  %v10627_v22 = vand.u32 2147483647, %v9184_v15  ;;  %v5459_v63 = vadd.f32 %v9260_v14, %v5458_v40 }
 0x49e   : > { %v9329_v3 = vpop.eup %6857  ;;  %10620 = vst [vmem:[#allocation67_spill] sm:$0xff] %v9331_v36  ;;  %v5531_v35 = vmul.f32 %v9321_v51, %v9214_v53  ;;  %v5473_v36 = vmul.f32 %v9267_v32, %v5472_v61  ;;  %vm5491_vm10 = vweird.f32 %v9274_v13  ;;  %vm5506_vm2 = vweird.f32 %v9282_v45 }
 0x49f   : > { %v9348_v21 = vpop.eup %6859  ;;  %vm9360_vm1 = vcmp.eq.f32.partialorder %v10627_v22, 8.507059e+37  ;;  %v5546_v9 = vmul.f32 %v9329_v3, %v9220_v25  ;;  %v5444_v22 = vadd.f32 %v9253_v28, %v5443_v46  ;;  %v10635_v46 = vand.u32 2147483647, %v9196_v6 }
 0x4a0   : > { %v5517_v19 = vsub.f32 1.0, %v5516_v30  ;;  %v5561_v8 = vmul.f32 %v9348_v21, %v9225_v4  ;;  %v10643_v56 = vand.u32 2147483647, %v9208_v20  ;;  %v5532_v43 = vsub.f32 1.0, %v5531_v35 }
 0x4a1   : > { %vm9394_vm13 = vcmp.eq.f32.partialorder %v10635_v46, 8.507059e+37  ;;  %v10640_v46 = vand.u32 2147483647, %v9201_v12  ;;  %v5418_v40 = vsel %vm9387_vm0, %v9238_v44, %v5414_v57  ;;  %v5547_v35 = vsub.f32 1.0, %v5546_v9 }
 0x4a2   : > { %vm9420_vm8 = vcmp.eq.f32.partialorder %v10643_v56, 8.507059e+37  ;;  %v5474_v56 = vadd.f32 %v9267_v32, %v5473_v36  ;;  %v5448_v44 = vsel %vm9434_vm6, %v9253_v28, %v5444_v22  ;;  %vm10648_vm0 = vweird.f32 %v9190_v42  ;;  %v9455_v36 = vpop.eup %6861 }
 0x4a3   : > { %vm9413_vm9 = vcmp.eq.f32.partialorder %v10640_v46, 8.507059e+37  ;;  %v5433_v46 = vsel %vm9405_vm5, %v9246_v29, %v5429_v2  ;;  %vm9447_vm5 = vmor %vm10648_vm0, %vm5461_vm3  ;;  %v5489_v15 = vadd.f32 %v9274_v13, %v5488_v52  ;;  %v5504_v57 = vadd.f32 %v9282_v45, %v5503_v55  ;;  %v9487_v55 = vpop.eup %6863 }
 0x4a4   : > { %vm5535_vm7 = vweird.f32 %v9214_v53  ;;  %6865 = vrcp.f32 %v9240_v59  ;;  %vm10651_vm15 = vweird.f32 %v9267_v32  ;;  %vm10652_vm6 = vweird.f32 %v9196_v6 }
 0x4a5   : > { %vm9461_vm12 = vmor %vm10652_vm6, %vm10651_vm15  ;;  %v5518_v42 = vmul.f32 %v9314_v10, %v5517_v19  ;;  %vm5550_vm3 = vweird.f32 %v9220_v25  ;;  %v5562_v52 = vsub.f32 1.0, %v5561_v8  ;;  %v5569_v7 = vand.u32 2147483647, %v9225_v4 }
 0x4a6   : > { %v5571_v9 = vand.u32 2147483648, %v9225_v4  ;;  %v9472_v2 = vsel %vm9338_vm11, %v9204_v18, %v5418_v40  ;;  %v5463_v6 = vsel %vm9447_vm5, %v9260_v14, %v5459_v63  ;;  %vm10655_vm0 = vweird.f32 %v9201_v12 }
 0x4a7   : > { %vm9481_vm15 = vmor %vm10655_vm0, %vm5491_vm10  ;;  %v5533_v22 = vmul.f32 %v9321_v51, %v5532_v43  ;;  %6867 = vrcp.f32 %v9242_v38  ;;  %v9492_v18 = vsel %vm9353_vm14, %v9216_v0, %v5433_v46  ;;  %v9497_v14 = vsel %vm9360_vm1, %v9229_v60, %v5448_v44 }
 0x4a8   : > { %v5478_v12 = vsel %vm9461_vm12, %v9267_v32, %v5474_v56  ;;  %vm10658_vm11 = vweird.f32 %v9208_v20  ;;  %v10661_v0 = vand.u32 2147483647, %v9210_v54  ;;  %v5548_v39 = vmul.f32 %v9329_v3, %v5547_v35 }
 0x4a9   : > { %vm9506_vm10 = vmor %vm10658_vm11, %vm5506_vm2  ;;  %vm5565_vm1 = vweird.f32 %v9225_v4  ;;  %v5493_v32 = vsel %vm9481_vm15, %v9274_v13, %v5489_v15  ;;  %v10664_v60 = vand.u32 2147483647, %v9214_v53  ;;  %v5576_v61 = vmul.f32 %v9455_v36, %v9227_v33  ;;  %v10690_v53 = vld [vmem:[#allocation61_spill] sm:$0xff] }
 0x4aa   : > { %vm9512_vm14 = vcmp.eq.f32.partialorder %v10661_v0, 8.507059e+37  ;;  %v5508_v20 = vsel %vm9506_vm10, %v9282_v45, %v5504_v57  ;;  %6869 = vrcp.f32 %v9248_v16  ;;  %v9536_v8 = vsel %vm9377_vm4, %v9234_v31, %v5463_v6  ;;  %v9547_v40 = vpop.eup %6865 }
 0x4ab   : > { %vm9526_vm2 = vcmp.eq.f32.partialorder %v10664_v60, 8.507059e+37  ;;  %v5519_v13 = vadd.f32 %v9314_v10, %v5518_v42  ;;  %vm5521_vm12 = vweird.f32 %v9314_v10  ;;  %v10667_v45 = vand.u32 2147483647, %v9220_v25 }
 0x4ac   : > { %v5563_v63 = vmul.f32 %v9348_v21, %v5562_v52  ;;  %v9552_v47 = vsel %vm9394_vm13, %v9250_v41, %v5478_v12  ;;  %v5534_v31 = vadd.f32 %v9321_v51, %v5533_v22  ;;  %vm5536_vm4 = vweird.f32 %v9321_v51 }
 0x4ad   : > { %vm9542_vm5 = vcmp.eq.f32.partialorder %v10667_v45, 8.507059e+37  ;;  %v5591_v46 = vmul.f32 %v9487_v55, %v9232_v37  ;;  %v9561_v56 = vsel %vm9413_vm9, %v9264_v48, %v5493_v32  ;;  %v9566_v35 = vsel %vm9420_vm8, %v9288_v27, %v5508_v20  ;;  %v9574_v44 = vpop.eup %6867  ;;  %vm9590_vm8 = vmor %vm5535_vm7, %vm5536_vm4  ;;  %v10685_v48 = vld [vmem:[#allocation60_spill] sm:$0xff] }
 0x4ae   : > { %v5549_v41 = vadd.f32 %v9329_v3, %v5548_v39  ;;  %vm5551_vm13 = vweird.f32 %v9329_v3  ;;  %vm9570_vm6 = vcmp.eq.f32.partialorder %v5569_v7, 8.507059e+37  ;;  %vm10672_vm0 = vweird.f32 %v9210_v54 }
 0x4af   : > { %vm9578_vm15 = vmor %vm10672_vm0, %vm5521_vm12  ;;  %vm5566_vm9 = vweird.f32 %v9348_v21  ;;  %v5577_v27 = vsub.f32 1.0, %v5576_v61  ;;  %v5586_v30 = vand.u32 2147483648, %v9227_v33  ;;  %6871 = vrcp.f32 %v9255_v58 }
 0x4b0   : > { %v5523_v62 = vsel %vm9578_vm15, %v9314_v10, %v5519_v13  ;;  %v5564_v54 = vadd.f32 %v9348_v21, %v5563_v63  ;;  %v5572_v15 = vor.u32 1.1754944e-38, %v5571_v9  ;;  %v5606_v57 = vmul.f32 %v9547_v40, %v9240_v59  ;;  %v9597_v28 = vpop.eup %6869  ;;  %vm9606_vm7 = vmor %vm5550_vm3, %vm5551_vm13 }
 0x4b1   : > { %v5538_v42 = vsel %vm9590_vm8, %v9321_v51, %v5534_v31  ;;  %v5592_v10 = vsub.f32 1.0, %v5591_v46  ;;  %v5601_v52 = vand.u32 2147483648, %v9232_v37  ;;  %6873 = vrcp.f32 %v9257_v50  ;;  %vm9628_vm3 = vmor %vm5565_vm1, %vm5566_vm9 }
 0x4b2   : > { %v5553_v7 = vsel %vm9606_vm7, %v9329_v3, %v5549_v41  ;;  %vm5580_vm11 = vweird.f32 %v9227_v33  ;;  %v5584_v51 = vand.u32 2147483647, %v9227_v33  ;;  %v5621_v25 = vmul.f32 %v9574_v44, %v9242_v38  ;;  %v9683_v41 = vpop.f32.mrf.mxu1 }
 0x4b3   : > { %v9622_v9 = vsel %vm9512_vm14, %v9298_v23, %v5523_v62  ;;  %v5578_v3 = vmul.f32 %v9455_v36, %v5577_v27  ;;  %v9633_v19 = vor.u32 1.1754944e-38, %v5586_v30  ;;  %vm5595_vm10 = vweird.f32 %v9232_v37 }
 0x4b4   : > { %v5599_v22 = vand.u32 2147483647, %v9232_v37  ;;  %v9640_v23 = vsel %vm9526_vm2, %v9327_v34, %v5538_v42  ;;  %v5568_v4 = vsel %vm9628_vm3, %v9348_v21, %v5564_v54  ;;  %v5607_v12 = vsub.f32 1.0, %v5606_v57 }
 0x4b5   : > { %v5636_v43 = vmul.f32 %v9597_v28, %v9248_v16  ;;  %v9647_v0 = vpop.eup %6871  ;;  %v9652_v5 = vsel %vm9542_vm5, %v9346_v24, %v5553_v7  ;;  %v5593_v39 = vmul.f32 %v9487_v55, %v5592_v10  ;;  %v9655_v32 = vor.u32 1.1754944e-38, %v5601_v52 }
 0x4b6   : > { %6875 = vrcp.f32 %v9269_v11  ;;  %vm5581_vm14 = vweird.f32 %v9455_v36  ;;  %vm9659_vm1 = vcmp.eq.f32.partialorder %v5584_v51, 8.507059e+37  ;;  %vm5610_vm2 = vweird.f32 %v9240_v59 }
 0x4b7   : > { %v5614_v21 = vand.u32 2147483647, %v9240_v59  ;;  %v5616_v20 = vand.u32 2147483648, %v9240_v59  ;;  %v5622_v24 = vsub.f32 1.0, %v5621_v25  ;;  %v9666_v60 = vpop.eup %6873  ;;  %v9670_v49 = vsel %vm9570_vm6, %v5572_v15, %v5568_v4  ;;  %vm9703_vm6 = vmor %vm5580_vm11, %vm5581_vm14 }
 0x4b8   : > { %v5579_v61 = vadd.f32 %v9455_v36, %v5578_v3  ;;  %v5629_v13 = vand.u32 2147483647, %v9242_v38  ;;  %v5631_v45 = vand.u32 2147483648, %v9242_v38  ;;  %vm9675_vm12 = vcmp.eq.f32.partialorder %v5599_v22, 8.507059e+37 }
 0x4b9   : > { %v5608_v63 = vmul.f32 %v9547_v40, %v5607_v12  ;;  %v5637_v31 = vsub.f32 1.0, %v5636_v43  ;;  %v5651_v46 = vmul.f32 %v9647_v0, %v9255_v58  ;;  %6877 = vrcp.f32 %v9276_v17  ;;  %v10697_v43 = vld [vmem:[#allocation62_spill] sm:$0xff] }
 0x4ba   : > { %v5594_v1 = vadd.f32 %v9487_v55, %v5593_v39  ;;  %vm5596_vm5 = vweird.f32 %v9487_v55  ;;  %vm5625_vm4 = vweird.f32 %v9242_v38  ;;  %6879 = vrcp.f32 %v10685_v48 }
 0x4bb   : > { %vm9689_vm13 = vcmp.eq.f32.partialorder %v5614_v21, 8.507059e+37  ;;  %v5617_v30 = vor.u32 1.1754944e-38, %v5616_v20  ;;  %v5623_v62 = vmul.f32 %v9574_v44, %v5622_v24  ;;  %v5644_v29 = vand.u32 2147483647, %v9248_v16  ;;  %vm9717_vm9 = vmor %vm5595_vm10, %vm5596_vm5 }
 0x4bc   : > { %v5666_v54 = vmul.f32 %v9666_v60, %v9257_v50  ;;  %v9697_v15 = vpop.eup %6875  ;;  %vm5611_vm0 = vweird.f32 %v9547_v40  ;;  %v5632_v42 = vor.u32 1.1754944e-38, %v5631_v45  ;;  %vm5640_vm15 = vweird.f32 %v9248_v16 }
 0x4bd   : > { %6881 = vrcp.f32 %v10690_v53  ;;  %v5583_v10 = vsel %vm9703_vm6, %v9455_v36, %v5579_v61  ;;  %v5609_v52 = vadd.f32 %v9547_v40, %v5608_v63  ;;  %vm9722_vm8 = vcmp.eq.f32.partialorder %v5629_v13, 8.507059e+37  ;;  %vm9755_vm10 = vmor %vm5610_vm2, %vm5611_vm0 }
 0x4be   : > { %v5638_v51 = vmul.f32 %v9597_v28, %v5637_v31  ;;  %v5652_v25 = vsub.f32 1.0, %v5651_v46  ;;  %v5598_v36 = vsel %vm9717_vm9, %v9487_v55, %v5594_v1  ;;  %vm5626_vm7 = vweird.f32 %v9574_v44  ;;  %v10715_v31 = vld [vmem:[#allocation64_spill] sm:$0xff] }
 0x4bf   : > { %v5646_v37 = vand.u32 2147483648, %v9248_v16  ;;  %v5659_v6 = vand.u32 2147483647, %v9255_v58  ;;  %v9733_v3 = vpop.eup %6877  ;;  %v5624_v22 = vadd.f32 %v9574_v44, %v5623_v62  ;;  %vm9736_vm11 = vcmp.eq.f32.partialorder %v5644_v29, 8.507059e+37  ;;  %v9796_v29 = vpop.f32.mrf.mxu1 }
 0x4c0   : > { %vm5655_vm3 = vweird.f32 %v9255_v58  ;;  %v5667_v12 = vsub.f32 1.0, %v5666_v54  ;;  %v5681_v55 = vmul.f32 %v9697_v15, %v9269_v11  ;;  %6883 = vrcp.f32 %v10697_v43  ;;  %v9744_v39 = vpop.eup %6879 }
 0x4c1   : > { %v9749_v21 = vsel %vm9659_vm1, %v9633_v19, %v5583_v10  ;;  %vm5641_vm14 = vweird.f32 %v9597_v28  ;;  %v5661_v24 = vand.u32 2147483648, %v9255_v58  ;;  %v5676_v61 = vand.u32 2147483648, %v9257_v50  ;;  %vm9779_vm1 = vmor %vm5625_vm4, %vm5626_vm7 }
 0x4c2   : > { %v5613_v34 = vsel %vm9755_vm10, %v9547_v40, %v5609_v52  ;;  %v5639_v19 = vadd.f32 %v9597_v28, %v5638_v51  ;;  %v5653_v13 = vmul.f32 %v9647_v0, %v5652_v25  ;;  %v5674_v59 = vand.u32 2147483647, %v9257_v50  ;;  %vm9806_vm5 = vmor %vm5640_vm15, %vm5641_vm14 }
 0x4c3   : > { %v9768_v45 = vpop.eup %6881  ;;  %v9773_v63 = vsel %vm9675_vm12, %v9655_v32, %v5598_v36  ;;  %v5647_v40 = vor.u32 1.1754944e-38, %v5646_v37  ;;  %vm5670_vm2 = vweird.f32 %v9257_v50  ;;  %v5696_v46 = vmul.f32 %v9733_v3, %v9276_v17 }
 0x4c4   : > { %v5628_v26 = vsel %vm9779_vm1, %v9574_v44, %v5624_v22  ;;  %vm9789_vm12 = vcmp.eq.f32.partialorder %v5659_v6, 8.507059e+37  ;;  %v5668_v38 = vmul.f32 %v9666_v60, %v5667_v12  ;;  %v5682_v1 = vsub.f32 1.0, %v5681_v55  ;;  %v10708_v12 = vld [vmem:[#allocation63_spill] sm:$0xff] }
 0x4c5   : > { %v5711_v62 = vmul.f32 %v9744_v39, %v10685_v48  ;;  %v9800_v54 = vsel %vm9689_vm13, %v5617_v30, %v5613_v34  ;;  %vm5656_vm4 = vweird.f32 %v9647_v0  ;;  %v5662_v57 = vor.u32 1.1754944e-38, %v5661_v24 }
 0x4c6   : > { %v5677_v10 = vor.u32 1.1754944e-38, %v5676_v61  ;;  %v9811_v33 = vpop.eup %6883  ;;  %v5643_v27 = vsel %vm9806_vm5, %v9597_v28, %v5639_v19  ;;  %v5654_v30 = vadd.f32 %v9647_v0, %v5653_v13  ;;  %vm9817_vm13 = vcmp.eq.f32.partialorder %v5674_v59, 8.507059e+37  ;;  %vm9842_vm15 = vmor %vm5655_vm3, %vm5656_vm4 }
 0x4c7   : > { %vm5685_vm6 = vweird.f32 %v9269_v11  ;;  %v5689_v16 = vand.u32 2147483647, %v9269_v11  ;;  %v5726_v51 = vmul.f32 %v9768_v45, %v10690_v53  ;;  %v9827_v25 = vsel %vm9722_vm8, %v5632_v42, %v5628_v26  ;;  %v10716_v26 = vld [vmem:[#allocation65_spill] sm:$0xff] }
 0x4c8   : > { %vm5671_vm0 = vweird.f32 %v9666_v60  ;;  %v5691_v28 = vand.u32 2147483648, %v9269_v11  ;;  %v5697_v36 = vsub.f32 1.0, %v5696_v46  ;;  %v5669_v37 = vadd.f32 %v9666_v60, %v5668_v38 }
 0x4c9   : > { %v5683_v6 = vmul.f32 %v9697_v15, %v5682_v1  ;;  %v5712_v22 = vsub.f32 1.0, %v5711_v62  ;;  %6885 = vrcp.f32 %v10708_v12  ;;  %v9836_v55 = vsel %vm9736_vm11, %v5647_v40, %v5643_v27  ;;  %vm9864_vm11 = vmor %vm5670_vm2, %vm5671_vm0 }
 0x4ca   : > { %vm5686_vm9 = vweird.f32 %v9697_v15  ;;  %vm5700_vm8 = vweird.f32 %v9276_v17  ;;  %v5704_v7 = vand.u32 2147483647, %v9276_v17  ;;  %v5741_v20 = vmul.f32 %v9811_v33, %v10697_v43 }
 0x4cb   : > { %v5658_v4 = vsel %vm9842_vm15, %v9647_v0, %v5654_v30  ;;  %vm9854_vm7 = vcmp.eq.f32.partialorder %v5689_v16, 8.507059e+37  ;;  %v5706_v58 = vand.u32 2147483648, %v9276_v17  ;;  %v5721_v61 = vand.u32 2147483648, %v10685_v48  ;;  %vm9901_vm1 = vmor %vm5685_vm6, %vm5686_vm9 }
 0x4cc   : > { %v5727_v34 = vsub.f32 1.0, %v5726_v51  ;;  %v5698_v13 = vmul.f32 %v9733_v3, %v5697_v36  ;;  %v5719_v0 = vand.u32 2147483647, %v10685_v48  ;;  %v5734_v59 = vand.u32 2147483647, %v10690_v53  ;;  %v9891_v51 = vpop.f32.mrf.mxu1 }
 0x4cd   : > { %6887 = vrcp.f32 %v10715_v31  ;;  %v5673_v40 = vsel %vm9864_vm11, %v9666_v60, %v5669_v37  ;;  %v5684_v46 = vadd.f32 %v9697_v15, %v5683_v6  ;;  %v5713_v50 = vmul.f32 %v9744_v39, %v5712_v22 }
 0x4ce   : > { %6889 = vrcp.f32 %v10716_v26  ;;  %v9880_v38 = vsel %vm9789_vm12, %v5662_v57, %v5658_v4  ;;  %v5692_v1 = vor.u32 1.1754944e-38, %v5691_v28  ;;  %vm5715_vm3 = vweird.f32 %v10685_v48 }
 0x4cf   : > { %v5742_v62 = vsub.f32 1.0, %v5741_v20  ;;  %v9883_v44 = vpop.eup %6885  ;;  %vm5701_vm10 = vweird.f32 %v9733_v3  ;;  %vm9886_vm14 = vcmp.eq.f32.partialorder %v5704_v7, 8.507059e+37  ;;  %v5707_v27 = vor.u32 1.1754944e-38, %v5706_v58  ;;  %v10725_v7 = vld [vmem:[#allocation66_spill] sm:$0xff] }
 0x4d0   : > { %v5722_v30 = vor.u32 1.1754944e-38, %v5721_v61  ;;  %v5728_v16 = vmul.f32 %v9768_v45, %v5727_v34  ;;  %v9895_v32 = vsel %vm9817_vm13, %v5677_v10, %v5673_v40  ;;  %v5699_v28 = vadd.f32 %v9733_v3, %v5698_v13  ;;  %vm9934_vm6 = vmor %vm5700_vm8, %vm5701_vm10 }
 0x4d1   : > { %vm9906_vm2 = vcmp.eq.f32.partialorder %v5719_v0, 8.507059e+37  ;;  %vm5730_vm12 = vweird.f32 %v10690_v53  ;;  %v5736_v52 = vand.u32 2147483648, %v10690_v53  ;;  %v5688_v10 = vsel %vm9901_vm1, %v9697_v15, %v5684_v46 }
 0x4d2   : > { %v5714_v11 = vadd.f32 %v9744_v39, %v5713_v50  ;;  %vm5716_vm5 = vweird.f32 %v9744_v39  ;;  %vm9917_vm4 = vcmp.eq.f32.partialorder %v5734_v59, 8.507059e+37  ;;  %v5743_v22 = vmul.f32 %v9811_v33, %v5742_v62  ;;  %v10829_v62 = vld [vmem:[#allocation55_spill] sm:$0xff] }
 0x4d3   : > { %v9921_v6 = vpop.eup %6887  ;;  %vm5745_vm13 = vweird.f32 %v10697_v43  ;;  %v5756_v42 = vmul.f32 %v9883_v44, %v10708_v12  ;;  %6891 = vrcp.f32 %v10725_v7  ;;  %v5729_v4 = vadd.f32 %v9768_v45, %v5728_v16  ;;  %vm9953_vm15 = vmor %vm5715_vm3, %vm5716_vm5 }
 0x4d4   : > { %v9928_v15 = vpop.eup %6889  ;;  %vm5731_vm0 = vweird.f32 %v9768_v45  ;;  %v5749_v58 = vand.u32 2147483647, %v10697_v43  ;;  %v5751_v61 = vand.u32 2147483648, %v10697_v43  ;;  %v9944_v34 = vsel %vm9854_vm7, %v5692_v1, %v5688_v10 }
 0x4d5   : > { %v5703_v17 = vsel %vm9934_vm6, %v9733_v3, %v5699_v28  ;;  %v5737_v13 = vor.u32 1.1754944e-38, %v5736_v52  ;;  %v5766_v0 = vand.u32 2147483648, %v10708_v12  ;;  %v5718_v24 = vsel %vm9953_vm15, %v9744_v39, %v5714_v11  ;;  %vm9967_vm8 = vmor %vm5730_vm12, %vm5731_vm0  ;;  %v10732_v39 = vld [vmem:[#allocation67_spill] sm:$0xff] }
 0x4d6   : > { %vm5746_vm9 = vweird.f32 %v9811_v33  ;;  %v5771_v3 = vmul.f32 %v9921_v6, %v10715_v31  ;;  %v5781_v59 = vand.u32 2147483648, %v10715_v31  ;;  %v5744_v40 = vadd.f32 %v9811_v33, %v5743_v22 }
 0x4d7   : > { %v5757_v46 = vsub.f32 1.0, %v5756_v42  ;;  %v5786_v50 = vmul.f32 %v9928_v15, %v10716_v26  ;;  %6893 = vrcp.f32 %v10732_v39  ;;  %v5733_v1 = vsel %vm9967_vm8, %v9768_v45, %v5729_v4  ;;  %vm10002_vm3 = vmor %vm5745_vm13, %vm5746_vm9  ;;  %v10009_v42 = vpop.f32.mrf.mxu1 }
 0x4d8   : > { %vm9978_vm7 = vcmp.eq.f32.partialorder %v5749_v58, 8.507059e+37  ;;  %v5752_v53 = vor.u32 1.1754944e-38, %v5751_v61  ;;  %v5764_v16 = vand.u32 2147483647, %v10708_v12  ;;  %v9987_v28 = vsel %vm9886_vm14, %v5707_v27, %v5703_v17 }
 0x4d9   : > { %v9983_v57 = vpop.eup %6891  ;;  %vm5760_vm11 = vweird.f32 %v10708_v12  ;;  %v9990_v52 = vor.u32 1.1754944e-38, %v5766_v0  ;;  %v5779_v10 = vand.u32 2147483647, %v10715_v31  ;;  %v5796_v45 = vand.u32 2147483648, %v10716_v26 }
 0x4da   : > { %v9996_v11 = vsel %vm9906_vm2, %v5722_v30, %v5718_v24  ;;  %vm5761_vm10 = vweird.f32 %v9883_v44  ;;  %v5772_v27 = vsub.f32 1.0, %v5771_v3  ;;  %v10007_v22 = vor.u32 1.1754944e-38, %v5781_v59  ;;  %v10740_v24 = vld [vmem:[#allocation25_spill] sm:$0xff] }
 0x4db   : > { %v10013_v36 = vsel %vm9917_vm4, %v5737_v13, %v5733_v1  ;;  %v5748_v30 = vsel %vm10002_vm3, %v9811_v33, %v5744_v40  ;;  %v5758_v43 = vmul.f32 %v9883_v44, %v5757_v46  ;;  %v5787_v20 = vsub.f32 1.0, %v5786_v50  ;;  %v10739_v13 = vld [vmem:[#allocation17_spill] sm:$0xff]  ;;  %v10741_v40 = vld [vmem:[#allocation28_spill] sm:$0xff]  ;;  %vm10083_vm6 = vmor %vm5760_vm11, %vm5761_vm10 }
 0x4dc   : > { %vm5775_vm14 = vweird.f32 %v10715_v31  ;;  %vm5776_vm1 = vweird.f32 %v9921_v6  ;;  %v5794_v4 = vand.u32 2147483647, %v10716_v26  ;;  %v5801_v58 = vmul.f32 %v9983_v57, %v10725_v7  ;;  %v10742_v50 = vld [vmem:[#allocation33_spill] sm:$0xff] }
 0x4dd   : > { %v5811_v37 = vand.u32 2147483648, %v10725_v7  ;;  %v10025_v61 = vpop.eup %6893  ;;  %vm10027_vm2 = vcmp.eq.f32.partialorder %v5764_v16, 8.507059e+37  ;;  %vm5790_vm12 = vweird.f32 %v10716_v26  ;;  %v10032_v33 = vor.u32 1.1754944e-38, %v5796_v45  ;;  %vm10114_vm8 = vmor %vm5775_vm14, %vm5776_vm1 }
 0x4de   : > { %v5809_v19 = vand.u32 2147483647, %v10725_v7  ;;  %v5890_v0 = vmul.f32 %v9472_v2, %v10739_v13  ;;  %v5891_v3 = vmul.f32 %v9492_v18, %v10740_v24  ;;  %v10041_v59 = vsel %vm9978_vm7, %v5752_v53, %v5748_v30  ;;  %v10743_v2 = vld [vmem:[#allocation35_spill] sm:$0xff]  ;;  %v10749_v30 = vld [vmem:[#allocation38_spill] sm:$0xff] }
 0x4df   : > { %v5773_v48 = vmul.f32 %v9921_v6, %v5772_v27  ;;  %v5892_v46 = vmul.f32 %v9497_v14, %v10741_v40  ;;  %v5893_v1 = vmul.f32 %v9536_v8, %v10742_v50  ;;  %v5759_v16 = vadd.f32 %v9883_v44, %v5758_v43  ;;  %v10746_v8 = vld [vmem:[#allocation37_spill] sm:$0xff]  ;;  %v10754_v24 = vld [vmem:[#allocation10_spill] sm:$0xff] }
 0x4e0   : > { %v5788_v45 = vmul.f32 %v9928_v15, %v5787_v20  ;;  %vm5791_vm5 = vweird.f32 %v9928_v15  ;;  %v5894_v18 = vmul.f32 %v9552_v47, %v10743_v2  ;;  %vm10053_vm4 = vcmp.eq.f32.partialorder %v5779_v10, 8.507059e+37  ;;  %v10750_v20 = vld [vmem:[#allocation5_spill] sm:$0xff] }
 0x4e1   : > { %v5802_v53 = vsub.f32 1.0, %v5801_v58  ;;  %v10057_v60 = vor.u32 1.1754944e-38, %v5811_v37  ;;  %v5816_v14 = vmul.f32 %v10025_v61, %v10732_v39  ;;  %v5895_v27 = vmul.f32 %v9561_v56, %v10746_v8  ;;  %v10751_v37 = vld [vmem:[#allocation7_spill] sm:$0xff]  ;;  %v10755_v40 = vld [vmem:[#allocation29_spill] sm:$0xff]  ;;  %v10757_v8 = vld [vmem:[#allocation20_spill] sm:$0xff] }
 0x4e2   : > { %vm10070_vm13 = vcmp.eq.f32.partialorder %v5794_v4, 8.507059e+37  ;;  %v5826_v10 = vand.u32 2147483648, %v10732_v39  ;;  %v5896_v43 = vmul.f32 %v9566_v35, %v10749_v30  ;;  %v6019_v58 = vadd.f32 %v10750_v20, %v5890_v0  ;;  %v10756_v50 = vld [vmem:[#allocation9_spill] sm:$0xff]  ;;  %vm10137_vm3 = vmor %vm5790_vm12, %vm5791_vm5 }
 0x4e3   : > { %v6020_v56 = vadd.f32 %v10751_v37, %v5891_v3  ;;  %v5774_v4 = vadd.f32 %v9921_v6, %v5773_v48  ;;  %vm5805_vm0 = vweird.f32 %v10725_v7  ;;  %v5897_v35 = vmul.f32 %v9622_v9, %v10754_v24  ;;  %v10758_v48 = vld [vmem:[#allocation30_spill] sm:$0xff]  ;;  %v10761_v24 = vld [vmem:[#allocation13_spill] sm:$0xff] }
 0x4e4   : > { %v6021_v0 = vadd.f32 %v10755_v40, %v5892_v46  ;;  %v6022_v3 = vadd.f32 %v10756_v50, %v5893_v1  ;;  %v5763_v12 = vsel %vm10083_vm6, %v9883_v44, %v5759_v16  ;;  %v5789_v2 = vadd.f32 %v9928_v15, %v5788_v45  ;;  %v10760_v46 = vld [vmem:[#allocation22_spill] sm:$0xff]  ;;  %v10108_v44 = vpop.f32.mrf.mxu1  ;;  %v10765_v16 = vld [vmem:[#allocation39_spill] sm:$0xff]  ;;  %v10793_v47 = vld [vmem:[#allocation45_spill] sm:$0xff] }
 0x4e5   : > { %v5898_v30 = vmul.f32 %v9640_v23, %v10757_v8  ;;  %v6023_v20 = vadd.f32 %v10758_v48, %v5894_v18  ;;  %vm10759_vm15 = vcmask 64512   ;;  %v5803_v9 = vmul.f32 %v9983_v57, %v5802_v53  ;;  %v10766_v18 = vld [vmem:[#allocation3_spill] sm:$0xff]  ;;  %v10778_v50 = vld [vmem:[#allocation42_spill] sm:$0xff] }
 0x4e6   : > { %6051 = vst.msk [vmem:[%s10068_s21] sm:$0xff] %vm10759_vm15, %v6019_v58  ;;  %v5817_v37 = vsub.f32 1.0, %v5816_v14  ;;  %v5899_v1 = vmul.f32 %v9652_v5, %v10760_v46  ;;  %v6024_v13 = vadd.f32 %v10761_v24, %v5895_v27  ;;  %vm10762_vm9 = vmmov %vm10759_vm15  ;;  %vm5806_vm7 = vweird.f32 %v9983_v57  ;;  %v10770_v27 = vld [vmem:[#allocation40_spill] sm:$0xff]  ;;  %v10773_v58 = vld [vmem:[#allocation41_spill] sm:$0xff] }
 0x4e7   : > { %6052 = vst.msk [vmem:[%s10068_s21 + $0x8] sm:$0xff] %vm10762_vm9, %v6020_v56  ;;  %v5824_v5 = vand.u32 2147483647, %v10732_v39  ;;  %v5900_v45 = vmul.f32 %v9670_v49, %v10765_v16  ;;  %v6025_v53 = vadd.f32 %v10766_v18, %v5896_v43  ;;  %vm10767_vm11 = vmmov %vm10762_vm9  ;;  %v10128_v31 = vsel %vm10027_vm2, %v9990_v52, %v5763_v12  ;;  %v10771_v52 = vld [vmem:[#allocation8_spill] sm:$0xff]  ;;  %v10781_v12 = vld [vmem:[#allocation43_spill] sm:$0xff] }
 0x4e8   : > { %6053 = vst.msk [vmem:[%s10068_s21 + $0x10] sm:$0xff] %vm10767_vm11, %v6021_v0  ;;  %v5778_v14 = vsel %vm10114_vm8, %v9921_v6, %v5774_v4  ;;  %vm5820_vm10 = vweird.f32 %v10732_v39  ;;  %v5901_v17 = vmul.f32 %v9749_v21, %v10770_v27  ;;  %v6026_v43 = vadd.f32 %v10771_v52, %v5897_v35  ;;  %vm10772_vm14 = vmmov %vm10762_vm9  ;;  %v10774_v4 = vld [vmem:[#allocation16_spill] sm:$0xff]  ;;  %v10784_v48 = vld [vmem:[#allocation23_spill] sm:$0xff] }
 0x4e9   : > { %6054 = vst.msk [vmem:[%s10068_s21 + $0x18] sm:$0xff] %vm10772_vm14, %v6022_v3  ;;  %v5793_v6 = vsel %vm10137_vm3, %v9928_v15, %v5789_v2  ;;  %v10150_v26 = vor.u32 1.1754944e-38, %v5826_v10  ;;  %v5902_v56 = vmul.f32 %v9773_v63, %v10773_v58  ;;  %v6027_v40 = vadd.f32 %v10774_v4, %v5898_v30  ;;  %vm10775_vm1 = vmmov %vm10762_vm9  ;;  %v10779_v10 = vld [vmem:[#allocation4_spill] sm:$0xff]  ;;  %v10782_v2 = vld [vmem:[#allocation11_spill] sm:$0xff] }
 0x4ea   : > { %6055 = vst.msk [vmem:[%s10068_s21 + $0x20] sm:$0xff] %vm10775_vm1, %v6023_v20  ;;  %v5804_v21 = vadd.f32 %v9983_v57, %v5803_v9  ;;  %vm10158_vm2 = vcmp.eq.f32.partialorder %v5809_v19, 8.507059e+37  ;;  %v5818_v0 = vmul.f32 %v10025_v61, %v5817_v37  ;;  %v5903_v15 = vmul.f32 %v9800_v54, %v10778_v50  ;;  %vm10780_vm12 = vmmov %vm10775_vm1  ;;  %v10783_v30 = vld [vmem:[#allocation12_spill] sm:$0xff]  ;;  %v10789_v9 = vld [vmem:[#allocation19_spill] sm:$0xff] }
 0x4eb   : > { %v6028_v3 = vadd.f32 %v10779_v10, %v5899_v1  ;;  %6056 = vst.msk [vmem:[%s10068_s21 + $0x28] sm:$0xff] %vm10780_vm12, %v6024_v13  ;;  %v5783_v63 = vsel %vm10053_vm4, %v10007_v22, %v5778_v14  ;;  %v5904_v19 = vmul.f32 %v9827_v25, %v10781_v12  ;;  %v6029_v8 = vadd.f32 %v10782_v2, %v5900_v45  ;;  %vm10785_vm5 = vmmov %vm10775_vm1  ;;  %v10788_v22 = vld [vmem:[#allocation44_spill] sm:$0xff]  ;;  %v10794_v1 = vld [vmem:[#allocation14_spill] sm:$0xff] }
 0x4ec   : > { %v5243_v20 = vmul.f32 %v10784_v48, %v10783_v30  ;;  %6057 = vst.msk [vmem:[%s10068_s21 + $0x30] sm:$0xff] %vm10785_vm5, %v6025_v53  ;;  %v5798_v54 = vsel %vm10070_vm13, %v10032_v33, %v5793_v6  ;;  %vm5821_vm6 = vweird.f32 %v10025_v61  ;;  %vm10182_vm15 = vcmp.eq.f32.partialorder %v5824_v5, 8.507059e+37  ;;  %vm10790_vm4 = vmmov %vm10775_vm1  ;;  %v10795_v13 = vld [vmem:[#allocation24_spill] sm:$0xff]  ;;  %v10797_v23 = vld [vmem:[#allocation15_spill] sm:$0xff] }
 0x4ed   : > { %v5905_v25 = vmul.f32 %v9836_v55, %v10788_v22  ;;  %v6030_v37 = vadd.f32 %v10789_v9, %v5901_v17  ;;  %6058 = vst.msk [vmem:[%s10068_s21 + $0x38] sm:$0xff] %vm10790_vm4, %v6026_v43  ;;  %vm10195_vm13 = vmor %vm5805_vm0, %vm5806_vm7  ;;  %v5906_v46 = vmul.f32 %v9880_v38, %v10793_v47  ;;  %v6031_v24 = vadd.f32 %v10794_v1, %v5902_v56  ;;  %v10798_v45 = vld [vmem:[#allocation46_spill] sm:$0xff]  ;;  %v10801_v14 = vld [vmem:[#allocation47_spill] sm:$0xff] }
 0x4ee   : > { %v10203_v55 = vadd.f32 %v10795_v13, %v5243_v20  ;;  %vm10796_vm9 = vmmov %vm10775_vm1  ;;  %v5244_v5 = vmul.f32 %v10784_v48, %v10797_v23  ;;  %v5808_v7 = vsel %vm10195_vm13, %v9983_v57, %v5804_v21  ;;  %v5819_v16 = vadd.f32 %v10025_v61, %v5818_v0  ;;  %v10799_v18 = vld [vmem:[#allocation6_spill] sm:$0xff]  ;;  %v10804_v43 = vld [vmem:[#allocation48_spill] sm:$0xff] }
 0x4ef   : > { %6059 = vst.msk [vmem:[%s10068_s21 + $0x40] sm:$0xff] %vm10796_vm9, %v6027_v40  ;;  %v5907_v38 = vmul.f32 %v9895_v32, %v10798_v45  ;;  %v6032_v53 = vadd.f32 %v10799_v18, %v5903_v15  ;;  %vm10800_vm0 = vmmov %vm10775_vm1  ;;  %v5908_v49 = vmul.f32 %v9944_v34, %v10801_v14  ;;  %v10802_v27 = vld [vmem:[#allocation26_spill] sm:$0xff]  ;;  %v5909_v32 = vmul.f32 %v9987_v28, %v10804_v43  ;;  %v10805_v6 = vld [vmem:[#allocation49_spill] sm:$0xff]  ;;  %v10247_v15 = vpop.f32.mrf.mxu1 }
 0x4f0   : > { %6060 = vst.msk [vmem:[%s10068_s21 + $0x48] sm:$0xff] %vm10800_vm0, %v6028_v3  ;;  %v6033_v17 = vadd.f32 %v10802_v27, %v5904_v19  ;;  %v6674_v52 = vmul.f32 -1.442695, %v10203_v55  ;;  %vm10803_vm8 = vmmov %vm10800_vm0  ;;  %v10225_v57 = vadd.f32 %v10795_v13, %v5244_v5  ;;  %v5910_v58 = vmul.f32 %v9996_v11, %v10805_v6  ;;  %v10806_v56 = vld [vmem:[#allocation27_spill] sm:$0xff]  ;;  %v10808_v34 = vld [vmem:[#allocation18_spill] sm:$0xff] }
 0x4f1   : > { %6061 = vst.msk [vmem:[%s10068_s21 + $0x50] sm:$0xff] %vm10803_vm8, %v6029_v8  ;;  %v6034_v4 = vadd.f32 %v10806_v56, %v5905_v25  ;;  %vm10807_vm7 = vmmov %vm10800_vm0  ;;  %v5245_v40 = vmul.f32 %v10784_v48, %v10808_v34  ;;  %v10811_v28 = vld [vmem:[#allocation50_spill] sm:$0xff]  ;;  %v10812_v11 = vld [vmem:[#allocation31_spill] sm:$0xff]  ;;  %v5813_v8 = vsel %vm10158_vm2, %v10057_v60, %v5808_v7 }
 0x4f2   : > { %6062 = vst.msk [vmem:[%s10068_s21 + $0x58] sm:$0xff] %vm10807_vm7, %v6030_v37  ;;  %vm10240_vm11 = vmor %vm5820_vm10, %vm5821_vm6  ;;  %v5911_v0 = vmul.f32 %v10013_v36, %v10811_v28  ;;  %v6035_v50 = vadd.f32 %v10812_v11, %v5906_v46  ;;  %6895 = vpow2.f32 %v6674_v52  ;;  %v6675_v10 = vmul.f32 -1.442695, %v10225_v57  ;;  %v10814_v3 = vld [vmem:[#allocation32_spill] sm:$0xff]  ;;  %v10816_v19 = vld [vmem:[#allocation21_spill] sm:$0xff] }
 0x4f3   : > { %vm10813_vm3 = vmmov %vm10800_vm0  ;;  %v5823_v39 = vsel %vm10240_vm11, %v10025_v61, %v5819_v16  ;;  %v6036_v12 = vadd.f32 %v10814_v3, %v5907_v38  ;;  %v10259_v36 = vadd.f32 %v10795_v13, %v5245_v40  ;;  %v5246_v2 = vmul.f32 %v10784_v48, %v10816_v19  ;;  %v10817_v30 = vld [vmem:[#allocation51_spill] sm:$0xff]  ;;  %v10818_v22 = vld [vmem:[#allocation34_spill] sm:$0xff] }
 0x4f4   : > { %6063 = vst.msk [vmem:[%s10068_s21 + $0x60] sm:$0xff] %vm10813_vm3, %v6031_v24  ;;  %vm10815_vm10 = vmmov %vm10800_vm0  ;;  %v5912_v20 = vmul.f32 %v10041_v59, %v10817_v30  ;;  %v6037_v61 = vadd.f32 %v10818_v22, %v5908_v49  ;;  %6897 = vpow2.f32 %v6675_v10  ;;  %v10820_v25 = vld [vmem:[#allocation52_spill] sm:$0xff]  ;;  %v10283_v59 = vld [vmem:[%s10389_s6] ss:$0 sm:$0xff]  ;;  %v5916_v45 = vmul.f32 %v5813_v8, %v10829_v62 }
 0x4f5   : > { %6064 = vst.msk [vmem:[%s10068_s21 + $0x68] sm:$0xff] %vm10815_vm10, %v6032_v53  ;;  %vm10819_vm14 = vmmov %vm10800_vm0  ;;  %v5913_v9 = vmul.f32 %v10128_v31, %v10820_v25  ;;  %v10821_v37 = vld [vmem:[#allocation36_spill] sm:$0xff]  ;;  %v6676_v35 = vmul.f32 -1.442695, %v10259_v36  ;;  %v10278_v60 = vadd.f32 %v10795_v13, %v5246_v2  ;;  %v5997_v48 = vadd.f32 %v10283_v59, %v9683_v41  ;;  %v10823_v47 = vld [vmem:[#allocation53_spill] sm:$0xff] }
 0x4f6   : > { %6065 = vst.msk [vmem:[%s10068_s21 + $0x70] sm:$0xff] %vm10819_vm14, %v6033_v17  ;;  %v6038_v33 = vadd.f32 %v10821_v37, %v5909_v32  ;;  %vm10822_vm1 = vmmov %vm10800_vm0  ;;  %v5828_v31 = vsel %vm10182_vm15, %v10150_v26, %v5823_v39  ;;  %v5914_v46 = vmul.f32 %v5783_v63, %v10823_v47  ;;  %v10824_v1 = vld [vmem:[#allocation57_spill] sm:$0xff]  ;;  %v10826_v13 = vld [vmem:[#allocation54_spill] sm:$0xff]  ;;  %v6000_v26 = vadd.f32 %v10283_v59, %v9796_v29 }
 0x4f7   : > { %6066 = vst.msk [vmem:[%s10068_s21 + $0x78] sm:$0xff] %vm10822_vm1, %v6034_v4  ;;  %v6039_v24 = vadd.f32 %v10824_v1, %v5910_v58  ;;  %vm10825_vm2 = vmmov %vm10800_vm0  ;;  %v5915_v23 = vmul.f32 %v5798_v54, %v10826_v13  ;;  %v10827_v5 = vld [vmem:[#allocation58_spill] sm:$0xff]  ;;  %6899 = vpow2.f32 %v6676_v35  ;;  %v6677_v41 = vmul.f32 -1.442695, %v10278_v60  ;;  %v10830_v38 = vld [vmem:[#allocation59_spill] sm:$0xff]  ;;  %v6011_v6 = vpop.f32.mrf.mxu1 }
 0x4f8   : > { %6067 = vst.msk [vmem:[%s10068_s21 + $0x80] sm:$0xff] %vm10825_vm2, %v6035_v50  ;;  %v6040_v7 = vadd.f32 %v10827_v5, %v5911_v0  ;;  %vm10828_vm12 = vmmov %vm10800_vm0  ;;  %v6896_v16 = vpop.eup %6895  ;;  %v6002_v63 = vadd.f32 %v10283_v59, %v9891_v51  ;;  %v6041_v54 = vadd.f32 %v10830_v38, %v5912_v20  ;;  %v10832_v18 = vld [vmem:[#allocation56_spill] sm:$0xff]  ;;  %v6042_v14 = vadd.f32 %v5997_v48, %v5913_v9 }
 0x4f9   : > { %6068 = vst.msk [vmem:[%s10068_s21 + $0x88] sm:$0xff] %vm10828_vm12, %v6036_v12  ;;  %vm10831_vm5 = vmmov %vm10800_vm0  ;;  %v5917_v53 = vmul.f32 %v5828_v31, %v10832_v18  ;;  %v5406_v49 = vadd.f32 1.0, %v6896_v16  ;;  %6901 = vpow2.f32 %v6677_v41  ;;  %v6005_v51 = vadd.f32 %v10283_v59, %v10009_v42 }
 0x4fa   : > { %6069 = vst.msk [vmem:[%s10068_s21 + $0x90] sm:$0xff] %vm10831_vm5, %v6037_v61  ;;  %vm10833_vm6 = vmmov %vm10800_vm0  ;;  %v6898_v29 = vpop.eup %6897  ;;  %v6043_v27 = vadd.f32 %v6000_v26, %v5914_v46  ;;  %v6007_v17 = vadd.f32 %v10283_v59, %v10108_v44  ;;  %v6044_v52 = vadd.f32 %v6002_v63, %v5915_v23  ;;  %v6010_v3 = vadd.f32 %v10283_v59, %v10247_v15 }
 0x4fb   : > { %6070 = vst.msk [vmem:[%s10068_s21 + $0x98] sm:$0xff] %vm10833_vm6, %v6038_v33  ;;  %vm10834_vm15 = vmmov %vm10800_vm0  ;;  %6903 = vrcp.f32 %v5406_v49  ;;  %v6045_v43 = vadd.f32 %v6005_v51, %v5916_v45  ;;  %v5407_v32 = vadd.f32 1.0, %v6898_v29  ;;  %v5839_v21 = vand.u32 2147483647, %v5406_v49 }
 0x4fc   : > { %6071 = vst.msk [vmem:[%s10068_s21 + $0xa0] sm:$0xff] %vm10834_vm15, %v6039_v24  ;;  %vm10835_vm4 = vmmov %vm10800_vm0  ;;  %v6046_v42 = vadd.f32 %v6007_v17, %v5917_v53  ;;  %v5841_v11 = vand.u32 2147483648, %v5406_v49  ;;  %vm5835_vm10 = vweird.f32 %v5406_v49  ;;  %v6012_v20 = vadd.f32 %v10283_v59, %v6011_v6 }
 0x4fd   : > { %6072 = vst.msk [vmem:[%s10068_s21 + $0xa8] sm:$0xff] %vm10835_vm4, %v6040_v7  ;;  %vm10836_vm13 = vmmov %vm10800_vm0  ;;  %v6900_v58 = vpop.eup %6899  ;;  %6905 = vrcp.f32 %v5407_v32  ;;  %v5854_v10 = vand.u32 2147483647, %v5407_v32  ;;  %v5856_v12 = vand.u32 2147483648, %v5407_v32  ;;  %vm10338_vm14 = vcmp.eq.f32.partialorder %v5839_v21, 8.507059e+37 }
 0x4fe   : > { %6073 = vst.msk [vmem:[%s10068_s21 + $0xb0] sm:$0xff] %vm10836_vm13, %v6041_v54  ;;  %vm10837_vm9 = vmmov %vm10800_vm0  ;;  %v10326_v44 = vadd.f32 1.0, %v6900_v58  ;;  %v5842_v25 = vor.u32 1.1754944e-38, %v5841_v11  ;;  %vm5850_vm1 = vweird.f32 %v5407_v32 }
 0x4ff   : > { %6074 = vst.msk [vmem:[%s10068_s21 + $0xb8] sm:$0xff] %vm10837_vm9, %v6042_v14  ;;  %v6902_v56 = vpop.eup %6901  ;;  %vm10838_vm8 = vmmov %vm10800_vm0  ;;  %v6014_v19 = vpop.f32.mrf.mxu1  ;;  %vm10344_vm5 = vcmp.eq.f32.partialorder %v5854_v10, 8.507059e+37  ;;  %v5857_v48 = vor.u32 1.1754944e-38, %v5856_v12 }
 0x500   : > { %6075 = vst.msk [vmem:[%s10068_s21 + $0xc0] sm:$0xff] %vm10800_vm0, %v6043_v27  ;;  %vm10839_vm7 = vmmov %vm10800_vm0  ;;  %v10330_v4 = vadd.f32 1.0, %v6902_v56  ;;  %6907 = vrcp.f32 %v10326_v44  ;;  %v5869_v47 = vand.u32 2147483647, %v10326_v44  ;;  %v5871_v24 = vand.u32 2147483648, %v10326_v44 }
 0x501   : > { %6076 = vst.msk [vmem:[%s10068_s21 + $0xc8] sm:$0xff] %vm10838_vm8, %v6044_v52  ;;  %v6904_v34 = vpop.eup %6903  ;;  %vm10840_vm11 = vmmov %vm10800_vm0  ;;  %vm5865_vm13 = vweird.f32 %v10326_v44  ;;  %v6015_v27 = vadd.f32 %v10283_v59, %v6014_v19 }
 0x502   : > { %6077 = vst.msk [vmem:[%s10068_s21 + $0xd0] sm:$0xff] %vm10839_vm7, %v6045_v43  ;;  %v5831_v40 = vmul.f32 %v6904_v34, %v5406_v49  ;;  %6909 = vrcp.f32 %v10330_v4  ;;  %vm5836_vm3 = vweird.f32 %v6904_v34  ;;  %v5886_v7 = vand.u32 2147483648, %v10330_v4  ;;  %vm10845_vm8 = vmmov %vm10839_vm7 }
 0x503   : > { %6078 = vst.msk [vmem:[%s10068_s21 + $0xd8] sm:$0xff] %vm10840_vm11, %v6046_v42  ;;  %v6906_v28 = vpop.eup %6905  ;;  %vm5837_vm2 = vmor %vm5835_vm10, %vm5836_vm3  ;;  %v5884_v26 = vand.u32 2147483647, %v10330_v4  ;;  %v5872_v38 = vor.u32 1.1754944e-38, %v5871_v24  ;;  %vm5880_vm0 = vweird.f32 %v10330_v4  ;;  %vm5870_vm7 = vcmp.eq.f32.partialorder %v5869_v47, 8.507059e+37 }
 0x504   : > { %v5832_v0 = vsub.f32 1.0, %v5831_v40  ;;  %v5846_v50 = vmul.f32 %v6906_v28, %v5407_v32  ;;  %vm5851_vm12 = vweird.f32 %v6906_v28  ;;  %v5887_v53 = vor.u32 1.1754944e-38, %v5886_v7  ;;  %vm10846_vm10 = vmmov %vm10845_vm8 }
 0x505   : > { %vm5852_vm6 = vmor %vm5850_vm1, %vm5851_vm12  ;;  %vm5885_vm3 = vcmp.eq.f32.partialorder %v5884_v26, 8.507059e+37 }
 0x506   : > { %v5833_v39 = vmul.f32 %v6904_v34, %v5832_v0  ;;  %v6908_v2 = vpop.eup %6907  ;;  %v5847_v30 = vsub.f32 1.0, %v5846_v50  ;;  %vm10848_vm1 = vmmov %vm10845_vm8 }
 0x507   : > { %v5861_v9 = vmul.f32 %v6908_v2, %v10326_v44  ;;  %vm5866_vm15 = vweird.f32 %v6908_v2  ;;  %v6016_v14 = vpop.f32.mrf.mxu1 }
 0x508   : > { %v6910_v22 = vpop.eup %6909  ;;  %v5834_v61 = vadd.f32 %v6904_v34, %v5833_v39  ;;  %v5848_v37 = vmul.f32 %v6906_v28, %v5847_v30  ;;  %vm5867_vm9 = vmor %vm5865_vm13, %vm5866_vm15  ;;  %v6017_v43 = vadd.f32 %v10283_v59, %v6016_v14 }
 0x509   : > { %v5876_v33 = vmul.f32 %v6910_v22, %v10330_v4  ;;  %v5862_v31 = vsub.f32 1.0, %v5861_v9  ;;  %vm5881_vm4 = vweird.f32 %v6910_v22 }
 0x50a   : > { %v5838_v35 = vsel %vm5837_vm2, %v6904_v34, %v5834_v61  ;;  %v5849_v1 = vadd.f32 %v6906_v28, %v5848_v37  ;;  %vm5882_vm11 = vmor %vm5880_vm0, %vm5881_vm4 }
 0x50b   : > { %v5843_v46 = vsel %vm10338_vm14, %v5842_v25, %v5838_v35  ;;  %v5877_v13 = vsub.f32 1.0, %v5876_v33  ;;  %v5863_v5 = vmul.f32 %v6908_v2, %v5862_v31  ;;  %vm10847_vm14 = vmmov %vm10845_vm8 }
 0x50c   : > { %v5918_v23 = vmul.f32 %v5843_v46, %v10203_v55  ;;  %v5853_v41 = vsel %vm5852_vm6, %v6906_v28, %v5849_v1 }
 0x50d   : > { %v5878_v16 = vmul.f32 %v6910_v22, %v5877_v13  ;;  %v5858_v62 = vsel %vm10344_vm5, %v5857_v48, %v5853_v41  ;;  %v5864_v45 = vadd.f32 %v6908_v2, %v5863_v5 }
 0x50e   : > { %v6047_v63 = vadd.f32 %v6010_v3, %v5918_v23  ;;  %v5919_v55 = vmul.f32 %v5858_v62, %v10225_v57 }
 0x50f   : > { %v5879_v54 = vadd.f32 %v6910_v22, %v5878_v16  ;;  %v5868_v18 = vsel %vm5867_vm9, %v6908_v2, %v5864_v45 }
 0x510   : > { %6079 = vst.msk [vmem:[%s10068_s21 + $0xe0] sm:$0xff] %vm10845_vm8, %v6047_v63  ;;  %v6048_v49 = vadd.f32 %v6012_v20, %v5919_v55  ;;  %v5873_v29 = vsel %vm5870_vm7, %v5872_v38, %v5868_v18 }
 0x511   : > { %v5883_v51 = vsel %vm5882_vm11, %v6910_v22, %v5879_v54  ;;  %v5920_v57 = vmul.f32 %v5873_v29, %v10259_v36 }
 0x512   : > { %v5888_v17 = vsel %vm5885_vm3, %v5887_v53, %v5883_v51  ;;  %6080 = vst.msk [vmem:[%s10068_s21 + $0xe8] sm:$0xff] %vm10846_vm10, %v6048_v49 }
 0x513   : > { %v5921_v52 = vmul.f32 %v5888_v17, %v10278_v60  ;;  %v6049_v32 = vadd.f32 %v6015_v27, %v5920_v57 }
 0x515   : > { %v6050_v6 = vadd.f32 %v6017_v43, %v5921_v52  ;;  %6081 = vst.msk [vmem:[%s10068_s21 + $0xf0] sm:$0xff] %vm10847_vm14, %v6049_v32 }
 0x517   : > { %6082 = vst.msk [vmem:[%s10068_s21 + $0xf8] sm:$0xff] %vm10848_vm1, %v6050_v6 }
 0x518 PF: > { %s17_s26 = sadd.s32 1, %s6960_s26   ;;  %s10849_s24 = smov %s6956_s25 }
 0x519   : > { %p14_p5 = scmp.ge.s32.totalorder %s17_s26, 4   ;;  %s10850_s25 = smov %s10852_s27 }
 0x51b   :  { %16 = sbr.rel (!%p14_p5) target bundleno = 2 (0x2), region = 119 }

</bundles_post_ra>
